<compile_context>
chip_gen: v7x
topology: tpu7x:2x2x1
jax: 0.10.0
libtpu: 0.0.40
codegen_flags: <defaults>
</compile_context>

<pallas_src>
import functools

import jax
import jax.numpy as jnp
from jax.experimental import pallas as pl
from jax.experimental.pallas import tpu as pltpu


# ----------------------------------------------------------------------------
# helpers
# ----------------------------------------------------------------------------
def _round_up(x, m):
    return ((x + m - 1) // m) * m


def _vmem_limit_bytes():
    """Generation-aware scoped-VMEM limit (defaults of 16/32 MiB are too small;
    v7x has only 64 MiB physical, v5e/v6e have 128 MiB)."""
    cap = 64 * 1024 * 1024                      # conservative (v7x physical)
    try:
        cap = int(pltpu.get_tpu_info().vmem_capacity_bytes)
    except Exception:
        pass
    cap = min(cap, 128 * 1024 * 1024)
    return (cap * 3) // 4


def _pick_row_tile(n):
    for cand in (512, 256, 128, 64, 32, 16):
        if n % cand == 0:
            return cand
    return 16


def _pick_time_chunk(t):
    # Cap the chunk so the per-chunk input-projection scratch stays small.
    for c in range(min(t, 16), 0, -1):
        if t % c == 0:
            return c
    return 1


def _pick_vocab_tile(vp, rt, hp, budget, out_bytes):
    """Largest vocab tile (multiple of 128, divides Vp) fitting the VMEM budget
    with 2x double-buffering of every pipelined block."""
    for k in range(vp // 128, 0, -1):
        vt = 128 * k
        if vp % vt:
            continue
        need = (2 * rt * hp * 2          # x block (bf16), double-buffered
                + 2 * hp * vt * 2        # weight block (bf16)
                + 2 * vt * 4             # bias block (f32)
                + 2 * rt * 4             # lse block (f32)
                + 2 * rt * vt * max(out_bytes, 4))   # out block / f32 logits headroom
        if need <= budget:
            return vt
    return 128


# ----------------------------------------------------------------------------
# Kernel 1: fused 2-layer LSTM recurrence (grid over time chunks).
# ----------------------------------------------------------------------------
def fused_lstm2(emb_flat, wih1, b1, wbig, b2, h0, c0, *, vmem_limit):
    """emb_flat: (T*Bp, E) bf16, time-major rows; wih1: (E, 4Hp) bf16;
    b1/b2: (1, 4Hp) f32; wbig: (2Hp, 8Hp) bf16 = [[Whh1, Wih2],[0, Whh2]];
    h0/c0: (2, Bp, Hp) f32.  Returns out (T*Bp, Hp) bf16, hT/cT (2, Bp, Hp) f32."""
    TBp, E = emb_flat.shape
    _, Bp, Hp = h0.shape
    T = TBp // Bp
    G = 4 * Hp
    Tc = _pick_time_chunk(T)
    rows = Tc * Bp

    def kernel(emb_ref, wih1_ref, b1_ref, wbig_ref, b2_ref, h0_ref, c0_ref,
               out_ref, hT_ref, cT_ref,
               pre_s, h1_s, c1_s, h2_s, c2_s, hc_s):
        t = pl.program_id(0)

        @pl.when(t == 0)
        def _():
            h1_s[...] = h0_ref[0]
            c1_s[...] = c0_ref[0]
            h2_s[...] = h0_ref[1]
            c2_s[...] = c0_ref[1]
            # hc = h1(0) @ Whh1, via the fused weight (second operand half hits
            # the zero block, so its contents are irrelevant here).
            lhs0 = jnp.concatenate([h0_ref[0], h0_ref[1]],
                                   axis=1).astype(jnp.bfloat16)
            hc_s[...] = jnp.dot(lhs0, wbig_ref[...],
                                preferred_element_type=jnp.float32)[:, :G]

        # Chunk-level layer-1 input projection (off the serial chain); result
        # lives in VMEM scratch and is read back one timestep at a time.
        pre_s[...] = jnp.dot(emb_ref[...], wih1_ref[...],
                             preferred_element_type=jnp.float32) + b1_ref[...]

        b2v = b2_ref[...]
        h1, c1 = h1_s[...], c1_s[...]
        h2, c2 = h2_s[...], c2_s[...]
        hc = hc_s[...]

        for i in range(Tc):   # static unroll; per-step live state is a few vregs
            # ---- layer 1: pre-activations from scratch + carried h@Whh1 ----
            g1 = pre_s[i * Bp:(i + 1) * Bp, :] + hc
            i1 = jax.nn.sigmoid(g1[:, 0 * Hp:1 * Hp])
            f1 = jax.nn.sigmoid(g1[:, 1 * Hp:2 * Hp])
            gg1 = jnp.tanh(g1[:, 2 * Hp:3 * Hp])
            o1 = jax.nn.sigmoid(g1[:, 3 * Hp:4 * Hp])
            c1 = f1 * c1 + i1 * gg1
            h1 = o1 * jnp.tanh(c1)

            # ---- single fused MXU push per step (skewed layer 2) ----
            # [h1(t), h2(t-1)] @ [[Whh1, Wih2],[0, Whh2]]
            lhs = jnp.concatenate([h1, h2], axis=1).astype(jnp.bfloat16)
            big = jnp.dot(lhs, wbig_ref[...], preferred_element_type=jnp.float32)
            hc = big[:, :G]                       # h1(t) @ Whh1 -> next step
            g2 = big[:, G:] + b2v                 # layer-2 gates at step t
            i2 = jax.nn.sigmoid(g2[:, 0 * Hp:1 * Hp])
            f2 = jax.nn.sigmoid(g2[:, 1 * Hp:2 * Hp])
            gg2 = jnp.tanh(g2[:, 2 * Hp:3 * Hp])
            o2 = jax.nn.sigmoid(g2[:, 3 * Hp:4 * Hp])
            c2 = f2 * c2 + i2 * gg2
            h2 = o2 * jnp.tanh(c2)

            # per-step store (vst slot, overlapped) instead of stacking Tc values
            out_ref[i * Bp:(i + 1) * Bp, :] = h2.astype(out_ref.dtype)

        # carry state across chunks
        h1_s[...], c1_s[...] = h1, c1
        h2_s[...], c2_s[...] = h2, c2
        hc_s[...] = hc

        # final states: resident outputs, written once on the last chunk only
        @pl.when(t == pl.num_programs(0) - 1)
        def _():
            hT_ref[0] = h1
            hT_ref[1] = h2
            cT_ref[0] = c1
            cT_ref[1] = c2

    out, hT, cT = pl.pallas_call(
        kernel,
        out_shape=(jax.ShapeDtypeStruct((TBp, Hp), jnp.bfloat16),
                   jax.ShapeDtypeStruct((2, Bp, Hp), jnp.float32),
                   jax.ShapeDtypeStruct((2, Bp, Hp), jnp.float32)),
        grid_spec=pltpu.PrefetchScalarGridSpec(
            num_scalar_prefetch=0,
            grid=(T // Tc,),
            in_specs=[
                pl.BlockSpec((rows, E), lambda t: (t, 0)),
                pl.BlockSpec((E, G), lambda t: (0, 0)),
                pl.BlockSpec((1, G), lambda t: (0, 0)),
                pl.BlockSpec((2 * Hp, 2 * G), lambda t: (0, 0)),
                pl.BlockSpec((1, G), lambda t: (0, 0)),
                pl.BlockSpec((2, Bp, Hp), lambda t: (0, 0, 0)),
                pl.BlockSpec((2, Bp, Hp), lambda t: (0, 0, 0)),
            ],
            out_specs=[
                pl.BlockSpec((rows, Hp), lambda t: (t, 0)),
                pl.BlockSpec((2, Bp, Hp), lambda t: (0, 0, 0)),
                pl.BlockSpec((2, Bp, Hp), lambda t: (0, 0, 0)),
            ],
            scratch_shapes=[
                pltpu.VMEM((rows, G), jnp.float32),   # chunk pre-activations
                pltpu.VMEM((Bp, Hp), jnp.float32),    # h1
                pltpu.VMEM((Bp, Hp), jnp.float32),    # c1
                pltpu.VMEM((Bp, Hp), jnp.float32),    # h2
                pltpu.VMEM((Bp, Hp), jnp.float32),    # c2
                pltpu.VMEM((Bp, G), jnp.float32),     # carried h1 @ Whh1
            ]),
        compiler_params=pltpu.CompilerParams(
            dimension_semantics=("arbitrary",),        # time is sequential
            vmem_limit_bytes=vmem_limit),
    )(emb_flat, wih1, b1, wbig, b2, h0, c0)
    return out, hT, cT


# ----------------------------------------------------------------------------
# Kernel 2: row-tiled + vocab-tiled projection + log_softmax.
# ----------------------------------------------------------------------------
def proj_log_softmax(x_flat, w_out, b_out, *, vmem_limit,
                     out_dtype=jnp.bfloat16):
    """x_flat: (Np, Hp) bf16; w_out: (Hp, Vp) bf16; b_out: (1, Vp) f32 with
    -1e30 in padded vocab columns.  Returns (Np, Vp) in out_dtype."""
    Np, Hp = x_flat.shape
    Vp = w_out.shape[1]
    rt = _pick_row_tile(Np)
    out_bytes = jnp.dtype(out_dtype).itemsize
    vt = _pick_vocab_tile(Vp, rt, Hp, vmem_limit // 2, out_bytes)
    nv = Vp // vt
    nrows = Np // rt

    if nv == 1:
        # Whole vocab fits the budget: fused single-pass kernel.
        def fused_kernel(x_ref, w_ref, b_ref, o_ref):
            logits = jnp.dot(x_ref[...], w_ref[...],
                             preferred_element_type=jnp.float32) + b_ref[...]
            m = jnp.max(logits, axis=-1, keepdims=True)
            shifted = logits - m
            lse = jnp.log(jnp.sum(jnp.exp(shifted), axis=-1, keepdims=True))
            o_ref[...] = (shifted - lse).astype(o_ref.dtype)

        return pl.pallas_call(
            fused_kernel,
            out_shape=jax.ShapeDtypeStruct((Np, Vp), out_dtype),
            grid_spec=pltpu.PrefetchScalarGridSpec(
                num_scalar_prefetch=0,
                grid=(nrows,),
                in_specs=[
                    pl.BlockSpec((rt, Hp), lambda r: (r, 0)),
                    pl.BlockSpec((Hp, Vp), lambda r: (0, 0)),
                    pl.BlockSpec((1, Vp), lambda r: (0, 0)),
                ],
                out_specs=pl.BlockSpec((rt, Vp), lambda r: (r, 0)),
            ),
            compiler_params=pltpu.CompilerParams(
                dimension_semantics=("parallel",),
                vmem_limit_bytes=vmem_limit),
        )(x_flat, w_out, b_out)

    # Pass A: per-row logsumexp accumulated online across vocab tiles.
    def lse_kernel(x_ref, w_ref, b_ref, lse_ref, m_s, l_s):
        v = pl.program_id(1)

        @pl.when(v == 0)
        def _():
            m_s[...] = jnp.full(m_s.shape, -jnp.inf, jnp.float32)
            l_s[...] = jnp.zeros(l_s.shape, jnp.float32)

        logits = jnp.dot(x_ref[...], w_ref[...],
                         preferred_element_type=jnp.float32) + b_ref[...]
        m_new = jnp.maximum(m_s[...], jnp.max(logits, axis=-1, keepdims=True))
        l_s[...] = (l_s[...] * jnp.exp(m_s[...] - m_new)
                    + jnp.sum(jnp.exp(logits - m_new), axis=-1, keepdims=True))
        m_s[...] = m_new

        @pl.when(v == pl.num_programs(1) - 1)
        def _():
            lse_ref[...] = m_s[...] + jnp.log(l_s[...])

    lse = pl.pallas_call(
        lse_kernel,
        out_shape=jax.ShapeDtypeStruct((Np, 1), jnp.float32),
        grid_spec=pltpu.PrefetchScalarGridSpec(
            num_scalar_prefetch=0,
            grid=(nrows, nv),
            in_specs=[
                pl.BlockSpec((rt, Hp), lambda r, v: (r, 0)),
                pl.BlockSpec((Hp, vt), lambda r, v: (0, v)),
                pl.BlockSpec((1, vt), lambda r, v: (0, v)),
            ],
            out_specs=pl.BlockSpec((rt, 1), lambda r, v: (r, 0)),
            scratch_shapes=[pltpu.VMEM((rt, 1), jnp.float32),
                            pltpu.VMEM((rt, 1), jnp.float32)]),
        compiler_params=pltpu.CompilerParams(
            dimension_semantics=("parallel", "arbitrary"),
            vmem_limit_bytes=vmem_limit),
    )(x_flat, w_out, b_out)

    # Pass B: recompute the logits tile and emit logits - lse (bf16 by default).
    # (Recompute trades a 2nd matmul for never materializing f32 logits in HBM.)
    def logp_kernel(x_ref, w_ref, b_ref, lse_ref, o_ref):
        logits = jnp.dot(x_ref[...], w_ref[...],
                         preferred_element_type=jnp.float32) + b_ref[...]
        o_ref[...] = (logits - lse_ref[...]).astype(o_ref.dtype)

    return pl.pallas_call(
        logp_kernel,
        out_shape=jax.ShapeDtypeStruct((Np, Vp), out_dtype),
        grid_spec=pltpu.PrefetchScalarGridSpec(
            num_scalar_prefetch=0,
            grid=(nrows, nv),
            in_specs=[
                pl.BlockSpec((rt, Hp), lambda r, v: (r, 0)),
                pl.BlockSpec((Hp, vt), lambda r, v: (0, v)),
                pl.BlockSpec((1, vt), lambda r, v: (0, v)),
                pl.BlockSpec((rt, 1), lambda r, v: (r, 0)),
            ],
            out_specs=pl.BlockSpec((rt, vt), lambda r, v: (r, v)),
        ),
        compiler_params=pltpu.CompilerParams(
            dimension_semantics=("parallel", "parallel"),
            vmem_limit_bytes=vmem_limit),
    )(x_flat, w_out, b_out, lse)


# ----------------------------------------------------------------------------
# Parameters: raw (PyTorch-layout) init + one-time kernel-ready preparation.
# ----------------------------------------------------------------------------
def init_params(key, vocab_size, emb_dim, hidden_dim, num_layers):
    k = float(jnp.sqrt(1.0 / hidden_dim))

    def unif(key, shape):
        return jax.random.uniform(key, shape, jnp.float32, minval=-k, maxval=k)

    keys = iter(jax.random.split(key, 4 + 4 * num_layers))
    params = {"embedding": unif(next(keys), (vocab_size, emb_dim))}
    for l in range(num_layers):
        in_dim = emb_dim if l == 0 else hidden_dim
        params[f"wih_{l}"] = unif(next(keys), (4 * hidden_dim, in_dim))
        params[f"whh_{l}"] = unif(next(keys), (4 * hidden_dim, hidden_dim))
        params[f"bih_{l}"] = unif(next(keys), (4 * hidden_dim,))
        params[f"bhh_{l}"] = unif(next(keys), (4 * hidden_dim,))
    params["w_out"] = unif(next(keys), (vocab_size, hidden_dim))
    params["b_out"] = unif(next(keys), (vocab_size,))
    return params


def prepare_params(params, emb_dim, hidden_dim, vocab_size, num_layers=2):
    """Pre-transpose / pre-combine / pad / bf16-cast weights once at init time.

    Gate blocks are placed at lane-aligned offsets k*Hp (Hp = H rounded up to
    128); padded lanes carry exact zeros through the recurrence, padded vocab
    logits get a -1e30 bias so the log_softmax is unaffected.  Layer 2's input
    and hidden weights are stacked with layer 1's hidden weight into the single
    skewed-fusion matrix [[Whh1, Wih2],[0, Whh2]]."""
    assert num_layers == 2, "fused kernel implements the module default (2 layers)"
    H, V, E = hidden_dim, vocab_size, emb_dim
    Hp = _round_up(H, 128)
    Vp = _round_up(V, 128)
    G = 4 * Hp

    def pad_gate_w(w, in_dim, in_dim_pad):
        wt = w.T                                   # (in_dim, 4H)
        out = jnp.zeros((in_dim_pad, G), jnp.float32)
        for k in range(4):
            out = out.at[:in_dim, k * Hp:k * Hp + H].set(wt[:, k * H:(k + 1) * H])
        return out

    def pad_gate_b(b):
        out = jnp.zeros((1, G), jnp.float32)
        for k in range(4):
            out = out.at[0, k * Hp:k * Hp + H].set(b[k * H:(k + 1) * H])
        return out

    wih1 = pad_gate_w(params["wih_0"], E, E).astype(jnp.bfloat16)       # (E, 4Hp)
    b1 = pad_gate_b(params["bih_0"] + params["bhh_0"])
    whh1 = pad_gate_w(params["whh_0"], H, Hp)                            # (Hp, 4Hp)
    wih2 = pad_gate_w(params["wih_1"], H, Hp)
    whh2 = pad_gate_w(params["whh_1"], H, Hp)
    top = jnp.concatenate([whh1, wih2], axis=1)                          # (Hp, 8Hp)
    bot = jnp.concatenate([jnp.zeros_like(whh2), whh2], axis=1)          # (Hp, 8Hp)
    wbig = jnp.concatenate([top, bot], axis=0).astype(jnp.bfloat16)      # (2Hp, 8Hp)
    b2 = pad_gate_b(params["bih_1"] + params["bhh_1"])

    w_out = (jnp.zeros((Hp, Vp), jnp.float32)
             .at[:H, :V].set(params["w_out"].T)).astype(jnp.bfloat16)
    b_out = jnp.full((1, Vp), -1e30, jnp.float32).at[0, :V].set(params["b_out"])

    return {
        "embedding": params["embedding"].astype(jnp.bfloat16),
        "wih1": wih1, "b1": b1,
        "wbig": wbig, "b2": b2,
        "w_out": w_out, "b_out": b_out,
    }


# ----------------------------------------------------------------------------
# Forward (eval-mode semantics of MyLSTM.forward).
# ----------------------------------------------------------------------------
@functools.partial(jax.jit, static_argnames=("vocab_size", "out_dtype"))
def mylstm_forward(kparams, x_tokens, hidden, *, vocab_size,
                   out_dtype=jnp.bfloat16):
    h0_all, c0_all = hidden                        # (2, B, H) each
    L, B, H = h0_all.shape
    assert L == 2
    Hp = kparams["wbig"].shape[0] // 2
    T = x_tokens.shape[1]
    Bp = _round_up(B, 8)                           # f32 sublane width
    vmem_limit = _vmem_limit_bytes()

    # Embedding gather (plain JAX glue), time-major, bf16, batch padded.
    emb = kparams["embedding"][x_tokens.T]         # (T, B, E) bf16
    E = emb.shape[-1]
    if Bp != B:
        emb = jnp.pad(emb, ((0, 0), (0, Bp - B), (0, 0)))
    emb_flat = emb.reshape(T * Bp, E)              # contiguous, no relayout

    h0_p = jnp.zeros((2, Bp, Hp), jnp.float32).at[:, :B, :H].set(h0_all)
    c0_p = jnp.zeros((2, Bp, Hp), jnp.float32).at[:, :B, :H].set(c0_all)

    # 1) fused 2-layer recurrence (inter-layer dropout: identity in eval mode)
    out_flat, hT, cT = fused_lstm2(emb_flat, kparams["wih1"], kparams["b1"],
                                   kparams["wbig"], kparams["b2"], h0_p, c0_p,
                                   vmem_limit=vmem_limit)

    # 2) output projection + log_softmax over only the REAL batch rows
    x_rows = out_flat.reshape(T, Bp, Hp)[:, :B, :].reshape(T * B, Hp)
    N = T * B
    Np = _round_up(N, 16)
    if Np != N:
        x_rows = jnp.pad(x_rows, ((0, Np - N), (0, 0)))

    logp = proj_log_softmax(x_rows, kparams["w_out"], kparams["b_out"],
                            vmem_limit=vmem_limit, out_dtype=out_dtype)
    log_prob = (logp[:N, :vocab_size]
                .reshape(T, B, vocab_size)
                .transpose(1, 0, 2))               # (B, T, V)

    return log_prob, (hT[:, :B, :H], cT[:, :B, :H])


# ----------------------------------------------------------------------------
# Pure-JAX reference (eval-mode PyTorch semantics) for correctness check.
# ----------------------------------------------------------------------------
def reference_forward(params, x_tokens, hidden, num_layers=2):
    h_all, c_all = hidden
    emb = params["embedding"][x_tokens]            # (B, T, E)
    B, T, _ = emb.shape
    H = h_all.shape[2]
    x = emb
    next_h, next_c = [], []
    for l in range(num_layers):
        wih, whh = params[f"wih_{l}"], params[f"whh_{l}"]
        b = params[f"bih_{l}"] + params[f"bhh_{l}"]
        h, c = h_all[l], c_all[l]
        outs = []
        for t in range(T):
            g = x[:, t, :] @ wih.T + h @ whh.T + b
            i = jax.nn.sigmoid(g[:, :H])
            f = jax.nn.sigmoid(g[:, H:2 * H])
            gg = jnp.tanh(g[:, 2 * H:3 * H])
            o = jax.nn.sigmoid(g[:, 3 * H:])
            c = f * c + i * gg
            h = o * jnp.tanh(c)
            outs.append(h)
        x = jnp.stack(outs, axis=1)
        next_h.append(h)
        next_c.append(c)
    logits = x @ params["w_out"].T + params["b_out"]
    return jax.nn.log_softmax(logits, axis=-1), (jnp.stack(next_h), jnp.stack(next_c))


if __name__ == "__main__":
    vocab_size, emb_dim, hidden_dim, num_layers = 64, 32, 32, 2
    batch, seq = 2, 8

    root = jax.random.PRNGKey(0)
    k_param, k_tok = jax.random.split(root)
    params = init_params(k_param, vocab_size, emb_dim, hidden_dim, num_layers)
    kparams = prepare_params(params, emb_dim, hidden_dim, vocab_size, num_layers)

    x_tokens = jax.random.randint(k_tok, (batch, seq), 0, vocab_size,
                                  dtype=jnp.int32)
    hidden = (jnp.zeros((num_layers, batch, hidden_dim), jnp.float32),
              jnp.zeros((num_layers, batch, hidden_dim), jnp.float32))

    log_prob, (next_h, next_c) = mylstm_forward(kparams, x_tokens, hidden,
                                                vocab_size=vocab_size)
    jax.block_until_ready((log_prob, next_h, next_c))

    assert log_prob.shape == (batch, seq, vocab_size)
    assert next_h.shape == (num_layers, batch, hidden_dim)
    assert next_c.shape == (num_layers, batch, hidden_dim)

    log_prob_f32 = log_prob.astype(jnp.float32)

    # log_softmax sanity: probabilities sum to ~1 along vocab (bf16 output).
    prob_sums = jnp.exp(log_prob_f32).sum(-1)
    assert bool(jnp.allclose(prob_sums, 1.0, atol=3e-2))

    # match the f32 pure-JAX reference (bf16 MXU operands / bf16 output
    # -> loose tolerance)
    ref_lp, (ref_h, ref_c) = reference_forward(params, x_tokens, hidden, num_layers)
    assert bool(jnp.allclose(log_prob_f32, ref_lp, atol=5e-2, rtol=5e-2))
    assert bool(jnp.allclose(next_h, ref_h, atol=3e-2, rtol=3e-2))
    assert bool(jnp.allclose(next_c, ref_c, atol=3e-2, rtol=3e-2))

    print("KERNEL_OK")
</pallas_src>

<mosaic_0001>
module attributes {stable_mosaic.version = 11 : i64} {
  func.func @fused_kernel(%arg0: i32, %arg1: memref<16x128xbf16, #tpu.memory_space<vmem>>, %arg2: memref<128x128xbf16, #tpu.memory_space<vmem>>, %arg3: memref<1x128xf32, #tpu.memory_space<vmem>>, %arg4: memref<16x128xbf16, #tpu.memory_space<vmem>>) attributes {dimension_semantics = [#tpu.dimension_semantics<parallel>], iteration_bounds = array<i64: 1>, scalar_prefetch = 0 : i64, scratch_operands = 0 : i64, tpu.core_type = #tpu.core_type<tc>, window_params = [{transform_indices = @transform_0, window_bounds = array<i64: 16, 128>}, {pipeline_mode = #tpu.pipeline_mode<synchronous>, transform_indices = @transform_1, window_bounds = array<i64: 128, 128>}, {pipeline_mode = #tpu.pipeline_mode<synchronous>, transform_indices = @transform_2, window_bounds = array<i64: 1, 128>}, {transform_indices = @transform_3, window_bounds = array<i64: 16, 128>}]} {
    %c0 = arith.constant 0 : index
    %c0_0 = arith.constant 0 : index
    %0 = vector.load %arg1[%c0, %c0_0] : memref<16x128xbf16, #tpu.memory_space<vmem>>, vector<16x128xbf16>
    %c0_1 = arith.constant 0 : index
    %c0_2 = arith.constant 0 : index
    %1 = vector.load %arg2[%c0_1, %c0_2] : memref<128x128xbf16, #tpu.memory_space<vmem>>, vector<128x128xbf16>
    %cst = arith.constant dense<0.000000e+00> : vector<16x128xf32>
    %2 = tpu.matmul %0, %1, %cst {dimension_numbers = #tpu.dot_dimension_numbers<[1], [0], [0], [1], [0, 0, 1, 1], [], []>} : vector<16x128xbf16>, vector<128x128xbf16>, vector<16x128xf32> -> vector<16x128xf32>
    %c0_3 = arith.constant 0 : index
    %c0_4 = arith.constant 0 : index
    %3 = vector.load %arg3[%c0_3, %c0_4] : memref<1x128xf32, #tpu.memory_space<vmem>>, vector<1x128xf32>
    %4 = vector.broadcast %3 : vector<1x128xf32> to vector<16x128xf32>
    %5 = arith.addf %2, %4 : vector<16x128xf32>
    %cst_5 = arith.constant dense<0xFF800000> : vector<16xf32>
    %6 = vector.multi_reduction <maximumf>, %5, %cst_5 [1] : vector<16x128xf32> to vector<16xf32>
    %7 = vector.shape_cast %6 : vector<16xf32> to vector<16x1xf32>
    %8 = vector.broadcast %7 : vector<16x1xf32> to vector<16x128xf32>
    %9 = arith.subf %5, %8 : vector<16x128xf32>
    %10 = math.exp %9 : vector<16x128xf32>
    %cst_6 = arith.constant dense<0.000000e+00> : vector<16xf32>
    %11 = vector.multi_reduction <add>, %10, %cst_6 [1] : vector<16x128xf32> to vector<16xf32>
    %12 = vector.shape_cast %11 : vector<16xf32> to vector<16x1xf32>
    %13 = math.log %12 : vector<16x1xf32>
    %14 = vector.broadcast %13 : vector<16x1xf32> to vector<16x128xf32>
    %15 = arith.subf %9, %14 : vector<16x128xf32>
    %16 = arith.truncf %15 : vector<16x128xf32> to vector<16x128xbf16>
    %c0_7 = arith.constant 0 : index
    %c0_8 = arith.constant 0 : index
    %17 = vector.load %arg4[%c0_7, %c0_8] : memref<16x128xbf16, #tpu.memory_space<vmem>>, vector<16x128xbf16>
    tpu.vector_store %arg4[%c0_7, %c0_8], %16 {strides = array<i32>} : memref<16x128xbf16, #tpu.memory_space<vmem>>, vector<16x128xbf16>,
    return
  }
  func.func @transform_0(%arg0: i32) -> (i32, i32) {
    %c0_i32 = arith.constant 0 : i32
    %c0_i32_0 = arith.constant 0 : i32
    return %arg0, %c0_i32 : i32, i32
  }
  func.func @transform_1(%arg0: i32) -> (i32, i32) {
    %c0_i32 = arith.constant 0 : i32
    %c0_i32_0 = arith.constant 0 : i32
    %c0_i32_1 = arith.constant 0 : i32
    return %c0_i32, %c0_i32_0 : i32, i32
  }
  func.func @transform_2(%arg0: i32) -> (i32, i32) {
    %c0_i32 = arith.constant 0 : i32
    %c0_i32_0 = arith.constant 0 : i32
    %c0_i32_1 = arith.constant 0 : i32
    return %c0_i32, %c0_i32_0 : i32, i32
  }
  func.func @transform_3(%arg0: i32) -> (i32, i32) {
    %c0_i32 = arith.constant 0 : i32
    %c0_i32_0 = arith.constant 0 : i32
    return %arg0, %c0_i32 : i32, i32
  }
}

module attributes {stable_mosaic.version = 11 : i64} {
  func.func @kernel(%arg0: i32, %arg1: memref<64x32xbf16, #tpu.memory_space<vmem>>, %arg2: memref<32x512xbf16, #tpu.memory_space<vmem>>, %arg3: memref<1x512xf32, #tpu.memory_space<vmem>>, %arg4: memref<256x1024xbf16, #tpu.memory_space<vmem>>, %arg5: memref<1x512xf32, #tpu.memory_space<vmem>>, %arg6: memref<2x8x128xf32, #tpu.memory_space<vmem>>, %arg7: memref<2x8x128xf32, #tpu.memory_space<vmem>>, %arg8: memref<64x128xbf16, #tpu.memory_space<vmem>>, %arg9: memref<2x8x128xf32, #tpu.memory_space<vmem>>, %arg10: memref<2x8x128xf32, #tpu.memory_space<vmem>>, %arg11: memref<64x512xf32, #tpu.memory_space<vmem>>, %arg12: memref<8x128xf32, #tpu.memory_space<vmem>>, %arg13: memref<8x128xf32, #tpu.memory_space<vmem>>, %arg14: memref<8x128xf32, #tpu.memory_space<vmem>>, %arg15: memref<8x128xf32, #tpu.memory_space<vmem>>, %arg16: memref<8x512xf32, #tpu.memory_space<vmem>>) attributes {dimension_semantics = [#tpu.dimension_semantics<arbitrary>], iteration_bounds = array<i64: 1>, scalar_prefetch = 0 : i64, scratch_operands = 6 : i64, tpu.core_type = #tpu.core_type<tc>, window_params = [{transform_indices = @transform_0, window_bounds = array<i64: 64, 32>}, {pipeline_mode = #tpu.pipeline_mode<synchronous>, transform_indices = @transform_1, window_bounds = array<i64: 32, 512>}, {pipeline_mode = #tpu.pipeline_mode<synchronous>, transform_indices = @transform_2, window_bounds = array<i64: 1, 512>}, {pipeline_mode = #tpu.pipeline_mode<synchronous>, transform_indices = @transform_3, window_bounds = array<i64: 256, 1024>}, {pipeline_mode = #tpu.pipeline_mode<synchronous>, transform_indices = @transform_4, window_bounds = array<i64: 1, 512>}, {pipeline_mode = #tpu.pipeline_mode<synchronous>, transform_indices = @transform_5, window_bounds = array<i64: 2, 8, 128>}, {pipeline_mode = #tpu.pipeline_mode<synchronous>, transform_indices = @transform_6, window_bounds = array<i64: 2, 8, 128>}, {transform_indices = @transform_7, window_bounds = array<i64: 64, 128>}, {pipeline_mode = #tpu.pipeline_mode<synchronous>, transform_indices = @transform_8, window_bounds = array<i64: 2, 8, 128>}, {pipeline_mode = #tpu.pipeline_mode<synchronous>, transform_indices = @transform_9, window_bounds = array<i64: 2, 8, 128>}]} {
    %c0_i32 = arith.constant 0 : i32
    %0 = arith.cmpi eq, %arg0, %c0_i32 : i32
    %1 = arith.extui %0 : i1 to i32
    %c0_i32_0 = arith.constant 0 : i32
    %2 = arith.cmpi ne, %1, %c0_i32_0 : i32
    scf.if %2 {
      %c0_127 = arith.constant 0 : index
      %c0_128 = arith.constant 0 : index
      %c0_129 = arith.constant 0 : index
      %519 = vector.load %arg6[%c0_127, %c0_128, %c0_129] : memref<2x8x128xf32, #tpu.memory_space<vmem>>, vector<1x8x128xf32>
      %520 = vector.shape_cast %519 : vector<1x8x128xf32> to vector<8x128xf32>
      %c0_130 = arith.constant 0 : index
      %c0_131 = arith.constant 0 : index
      %521 = vector.load %arg12[%c0_130, %c0_131] : memref<8x128xf32, #tpu.memory_space<vmem>>, vector<8x128xf32>
      tpu.vector_store %arg12[%c0_130, %c0_131], %520 {strides = array<i32>} : memref<8x128xf32, #tpu.memory_space<vmem>>, vector<8x128xf32>,
      %c0_132 = arith.constant 0 : index
      %c0_133 = arith.constant 0 : index
      %c0_134 = arith.constant 0 : index
      %522 = vector.load %arg7[%c0_132, %c0_133, %c0_134] : memref<2x8x128xf32, #tpu.memory_space<vmem>>, vector<1x8x128xf32>
      %523 = vector.shape_cast %522 : vector<1x8x128xf32> to vector<8x128xf32>
      %c0_135 = arith.constant 0 : index
      %c0_136 = arith.constant 0 : index
      %524 = vector.load %arg13[%c0_135, %c0_136] : memref<8x128xf32, #tpu.memory_space<vmem>>, vector<8x128xf32>
      tpu.vector_store %arg13[%c0_135, %c0_136], %523 {strides = array<i32>} : memref<8x128xf32, #tpu.memory_space<vmem>>, vector<8x128xf32>,
      %c1 = arith.constant 1 : index
      %c0_137 = arith.constant 0 : index
      %c0_138 = arith.constant 0 : index
      %525 = vector.load %arg6[%c1, %c0_137, %c0_138] : memref<2x8x128xf32, #tpu.memory_space<vmem>>, vector<1x8x128xf32>
      %526 = vector.shape_cast %525 : vector<1x8x128xf32> to vector<8x128xf32>
      %c0_139 = arith.constant 0 : index
      %c0_140 = arith.constant 0 : index
      %527 = vector.load %arg14[%c0_139, %c0_140] : memref<8x128xf32, #tpu.memory_space<vmem>>, vector<8x128xf32>
      tpu.vector_store %arg14[%c0_139, %c0_140], %526 {strides = array<i32>} : memref<8x128xf32, #tpu.memory_space<vmem>>, vector<8x128xf32>,
      %c1_141 = arith.constant 1 : index
      %c0_142 = arith.constant 0 : index
      %c0_143 = arith.constant 0 : index
      %528 = vector.load %arg7[%c1_141, %c0_142, %c0_143] : memref<2x8x128xf32, #tpu.memory_space<vmem>>, vector<1x8x128xf32>
      %529 = vector.shape_cast %528 : vector<1x8x128xf32> to vector<8x128xf32>
      %c0_144 = arith.constant 0 : index
      %c0_145 = arith.constant 0 : index
      %530 = vector.load %arg15[%c0_144, %c0_145] : memref<8x128xf32, #tpu.memory_space<vmem>>, vector<8x128xf32>
      tpu.vector_store %arg15[%c0_144, %c0_145], %529 {strides = array<i32>} : memref<8x128xf32, #tpu.memory_space<vmem>>, vector<8x128xf32>,
      %c0_146 = arith.constant 0 : index
      %c0_147 = arith.constant 0 : index
      %c0_148 = arith.constant 0 : index
      %531 = vector.load %arg6[%c0_146, %c0_147, %c0_148] : memref<2x8x128xf32, #tpu.memory_space<vmem>>, vector<1x8x128xf32>
      %532 = vector.shape_cast %531 : vector<1x8x128xf32> to vector<8x128xf32>
      %c1_149 = arith.constant 1 : index
      %c0_150 = arith.constant 0 : index
      %c0_151 = arith.constant 0 : index
      %533 = vector.load %arg6[%c1_149, %c0_150, %c0_151] : memref<2x8x128xf32, #tpu.memory_space<vmem>>, vector<1x8x128xf32>
      %534 = vector.shape_cast %533 : vector<1x8x128xf32> to vector<8x128xf32>
      %535 = tpu.concatenate %532, %534 in 1 : vector<8x128xf32>, vector<8x128xf32> -> vector<8x256xf32>
      %536 = arith.truncf %535 : vector<8x256xf32> to vector<8x256xbf16>
      %c0_152 = arith.constant 0 : index
      %c0_153 = arith.constant 0 : index
      %537 = vector.load %arg4[%c0_152, %c0_153] : memref<256x1024xbf16, #tpu.memory_space<vmem>>, vector<256x1024xbf16>
      %cst_154 = arith.constant dense<0.000000e+00> : vector<8x1024xf32>
      %538 = tpu.matmul %536, %537, %cst_154 {dimension_numbers = #tpu.dot_dimension_numbers<[1], [0], [0], [1], [0, 0, 1, 1], [], []>} : vector<8x256xbf16>, vector<256x1024xbf16>, vector<8x1024xf32> -> vector<8x1024xf32>
      %539 = vector.extract_strided_slice %538 {offsets = [0, 0], sizes = [8, 512], strides = [1, 1]} : vector<8x1024xf32> to vector<8x512xf32>
      %c0_155 = arith.constant 0 : index
      %c0_156 = arith.constant 0 : index
      %540 = vector.load %arg16[%c0_155, %c0_156] : memref<8x512xf32, #tpu.memory_space<vmem>>, vector<8x512xf32>
      tpu.vector_store %arg16[%c0_155, %c0_156], %539 {strides = array<i32>} : memref<8x512xf32, #tpu.memory_space<vmem>>, vector<8x512xf32>,
    } else {
    }
    %c0 = arith.constant 0 : index
    %c0_1 = arith.constant 0 : index
    %3 = vector.load %arg1[%c0, %c0_1] : memref<64x32xbf16, #tpu.memory_space<vmem>>, vector<64x32xbf16>
    %c0_2 = arith.constant 0 : index
    %c0_3 = arith.constant 0 : index
    %4 = vector.load %arg2[%c0_2, %c0_3] : memref<32x512xbf16, #tpu.memory_space<vmem>>, vector<32x512xbf16>
    %cst = arith.constant dense<0.000000e+00> : vector<64x512xf32>
    %5 = tpu.matmul %3, %4, %cst {dimension_numbers = #tpu.dot_dimension_numbers<[1], [0], [0], [1], [0, 0, 1, 1], [], []>} : vector<64x32xbf16>, vector<32x512xbf16>, vector<64x512xf32> -> vector<64x512xf32>
    %c0_4 = arith.constant 0 : index
    %c0_5 = arith.constant 0 : index
    %6 = vector.load %arg3[%c0_4, %c0_5] : memref<1x512xf32, #tpu.memory_space<vmem>>, vector<1x512xf32>
    %7 = vector.broadcast %6 : vector<1x512xf32> to vector<64x512xf32>
    %8 = arith.addf %5, %7 : vector<64x512xf32>
    %c0_6 = arith.constant 0 : index
    %c0_7 = arith.constant 0 : index
    %9 = vector.load %arg11[%c0_6, %c0_7] : memref<64x512xf32, #tpu.memory_space<vmem>>, vector<64x512xf32>
    tpu.vector_store %arg11[%c0_6, %c0_7], %8 {strides = array<i32>} : memref<64x512xf32, #tpu.memory_space<vmem>>, vector<64x512xf32>,
    %c0_8 = arith.constant 0 : index
    %c0_9 = arith.constant 0 : index
    %10 = vector.load %arg5[%c0_8, %c0_9] : memref<1x512xf32, #tpu.memory_space<vmem>>, vector<1x512xf32>
    %c0_10 = arith.constant 0 : index
    %c0_11 = arith.constant 0 : index
    %11 = vector.load %arg13[%c0_10, %c0_11] : memref<8x128xf32, #tpu.memory_space<vmem>>, vector<8x128xf32>
    %c0_12 = arith.constant 0 : index
    %c0_13 = arith.constant 0 : index
    %12 = vector.load %arg14[%c0_12, %c0_13] : memref<8x128xf32, #tpu.memory_space<vmem>>, vector<8x128xf32>
    %c0_14 = arith.constant 0 : index
    %c0_15 = arith.constant 0 : index
    %13 = vector.load %arg15[%c0_14, %c0_15] : memref<8x128xf32, #tpu.memory_space<vmem>>, vector<8x128xf32>
    %c0_16 = arith.constant 0 : index
    %c0_17 = arith.constant 0 : index
    %14 = vector.load %arg16[%c0_16, %c0_17] : memref<8x512xf32, #tpu.memory_space<vmem>>, vector<8x512xf32>
    %c0_18 = arith.constant 0 : index
    %c0_19 = arith.constant 0 : index
    %15 = vector.load %arg11[%c0_18, %c0_19] : memref<64x512xf32, #tpu.memory_space<vmem>>, vector<8x512xf32>
    %16 = arith.addf %15, %14 : vector<8x512xf32>
    %17 = vector.extract_strided_slice %16 {offsets = [0, 0], sizes = [8, 128], strides = [1, 1]} : vector<8x512xf32> to vector<8x128xf32>
    %18 = arith.negf %17 : vector<8x128xf32>
    %19 = math.exp %18 : vector<8x128xf32>
    %cst_20 = arith.constant 1.000000e+00 : f32
    %20 = vector.broadcast %cst_20 : f32 to vector<8x128xf32>
    %21 = arith.addf %20, %19 : vector<8x128xf32>
    %22 = arith.divf %20, %21 : vector<8x128xf32>
    %23 = vector.extract_strided_slice %16 {offsets = [0, 128], sizes = [8, 128], strides = [1, 1]} : vector<8x512xf32> to vector<8x128xf32>
    %24 = arith.negf %23 : vector<8x128xf32>
    %25 = math.exp %24 : vector<8x128xf32>
    %cst_21 = arith.constant 1.000000e+00 : f32
    %26 = vector.broadcast %cst_21 : f32 to vector<8x128xf32>
    %27 = arith.addf %26, %25 : vector<8x128xf32>
    %28 = arith.divf %26, %27 : vector<8x128xf32>
    %29 = vector.extract_strided_slice %16 {offsets = [0, 256], sizes = [8, 128], strides = [1, 1]} : vector<8x512xf32> to vector<8x128xf32>
    %30 = math.tanh %29 : vector<8x128xf32>
    %31 = vector.extract_strided_slice %16 {offsets = [0, 384], sizes = [8, 128], strides = [1, 1]} : vector<8x512xf32> to vector<8x128xf32>
    %32 = arith.negf %31 : vector<8x128xf32>
    %33 = math.exp %32 : vector<8x128xf32>
    %cst_22 = arith.constant 1.000000e+00 : f32
    %34 = vector.broadcast %cst_22 : f32 to vector<8x128xf32>
    %35 = arith.addf %34, %33 : vector<8x128xf32>
    %36 = arith.divf %34, %35 : vector<8x128xf32>
    %37 = arith.mulf %28, %11 : vector<8x128xf32>
    %38 = arith.mulf %22, %30 : vector<8x128xf32>
    %39 = arith.addf %37, %38 : vector<8x128xf32>
    %40 = math.tanh %39 : vector<8x128xf32>
    %41 = arith.mulf %36, %40 : vector<8x128xf32>
    %42 = tpu.concatenate %41, %12 in 1 : vector<8x128xf32>, vector<8x128xf32> -> vector<8x256xf32>
    %43 = arith.truncf %42 : vector<8x256xf32> to vector<8x256xbf16>
    %c0_23 = arith.constant 0 : index
    %c0_24 = arith.constant 0 : index
    %44 = vector.load %arg4[%c0_23, %c0_24] : memref<256x1024xbf16, #tpu.memory_space<vmem>>, vector<256x1024xbf16>
    %cst_25 = arith.constant dense<0.000000e+00> : vector<8x1024xf32>
    %45 = tpu.matmul %43, %44, %cst_25 {dimension_numbers = #tpu.dot_dimension_numbers<[1], [0], [0], [1], [0, 0, 1, 1], [], []>} : vector<8x256xbf16>, vector<256x1024xbf16>, vector<8x1024xf32> -> vector<8x1024xf32>
    %46 = vector.extract_strided_slice %45 {offsets = [0, 0], sizes = [8, 512], strides = [1, 1]} : vector<8x1024xf32> to vector<8x512xf32>
    %47 = vector.extract_strided_slice %45 {offsets = [0, 512], sizes = [8, 512], strides = [1, 1]} : vector<8x1024xf32> to vector<8x512xf32>
    %48 = vector.broadcast %10 : vector<1x512xf32> to vector<8x512xf32>
    %49 = arith.addf %47, %48 : vector<8x512xf32>
    %50 = vector.extract_strided_slice %49 {offsets = [0, 0], sizes = [8, 128], strides = [1, 1]} : vector<8x512xf32> to vector<8x128xf32>
    %51 = arith.negf %50 : vector<8x128xf32>
    %52 = math.exp %51 : vector<8x128xf32>
    %cst_26 = arith.constant 1.000000e+00 : f32
    %53 = vector.broadcast %cst_26 : f32 to vector<8x128xf32>
    %54 = arith.addf %53, %52 : vector<8x128xf32>
    %55 = arith.divf %53, %54 : vector<8x128xf32>
    %56 = vector.extract_strided_slice %49 {offsets = [0, 128], sizes = [8, 128], strides = [1, 1]} : vector<8x512xf32> to vector<8x128xf32>
    %57 = arith.negf %56 : vector<8x128xf32>
    %58 = math.exp %57 : vector<8x128xf32>
    %cst_27 = arith.constant 1.000000e+00 : f32
    %59 = vector.broadcast %cst_27 : f32 to vector<8x128xf32>
    %60 = arith.addf %59, %58 : vector<8x128xf32>
    %61 = arith.divf %59, %60 : vector<8x128xf32>
    %62 = vector.extract_strided_slice %49 {offsets = [0, 256], sizes = [8, 128], strides = [1, 1]} : vector<8x512xf32> to vector<8x128xf32>
    %63 = math.tanh %62 : vector<8x128xf32>
    %64 = vector.extract_strided_slice %49 {offsets = [0, 384], sizes = [8, 128], strides = [1, 1]} : vector<8x512xf32> to vector<8x128xf32>
    %65 = arith.negf %64 : vector<8x128xf32>
    %66 = math.exp %65 : vector<8x128xf32>
    %cst_28 = arith.constant 1.000000e+00 : f32
    %67 = vector.broadcast %cst_28 : f32 to vector<8x128xf32>
    %68 = arith.addf %67, %66 : vector<8x128xf32>
    %69 = arith.divf %67, %68 : vector<8x128xf32>
    %70 = arith.mulf %61, %13 : vector<8x128xf32>
    %71 = arith.mulf %55, %63 : vector<8x128xf32>
    %72 = arith.addf %70, %71 : vector<8x128xf32>
    %73 = math.tanh %72 : vector<8x128xf32>
    %74 = arith.mulf %69, %73 : vector<8x128xf32>
    %75 = arith.truncf %74 : vector<8x128xf32> to vector<8x128xbf16>
    %c0_29 = arith.constant 0 : index
    %c0_30 = arith.constant 0 : index
    %76 = vector.load %arg8[%c0_29, %c0_30] : memref<64x128xbf16, #tpu.memory_space<vmem>>, vector<8x128xbf16>
    tpu.vector_store %arg8[%c0_29, %c0_30], %75 {strides = array<i32>} : memref<64x128xbf16, #tpu.memory_space<vmem>>, vector<8x128xbf16>,
    %c8 = arith.constant 8 : index
    %c0_31 = arith.constant 0 : index
    %77 = vector.load %arg11[%c8, %c0_31] : memref<64x512xf32, #tpu.memory_space<vmem>>, vector<8x512xf32>
    %78 = arith.addf %77, %46 : vector<8x512xf32>
    %79 = vector.extract_strided_slice %78 {offsets = [0, 0], sizes = [8, 128], strides = [1, 1]} : vector<8x512xf32> to vector<8x128xf32>
    %80 = arith.negf %79 : vector<8x128xf32>
    %81 = math.exp %80 : vector<8x128xf32>
    %cst_32 = arith.constant 1.000000e+00 : f32
    %82 = vector.broadcast %cst_32 : f32 to vector<8x128xf32>
    %83 = arith.addf %82, %81 : vector<8x128xf32>
    %84 = arith.divf %82, %83 : vector<8x128xf32>
    %85 = vector.extract_strided_slice %78 {offsets = [0, 128], sizes = [8, 128], strides = [1, 1]} : vector<8x512xf32> to vector<8x128xf32>
    %86 = arith.negf %85 : vector<8x128xf32>
    %87 = math.exp %86 : vector<8x128xf32>
    %cst_33 = arith.constant 1.000000e+00 : f32
    %88 = vector.broadcast %cst_33 : f32 to vector<8x128xf32>
    %89 = arith.addf %88, %87 : vector<8x128xf32>
    %90 = arith.divf %88, %89 : vector<8x128xf32>
    %91 = vector.extract_strided_slice %78 {offsets = [0, 256], sizes = [8, 128], strides = [1, 1]} : vector<8x512xf32> to vector<8x128xf32>
    %92 = math.tanh %91 : vector<8x128xf32>
    %93 = vector.extract_strided_slice %78 {offsets = [0, 384], sizes = [8, 128], strides = [1, 1]} : vector<8x512xf32> to vector<8x128xf32>
    %94 = arith.negf %93 : vector<8x128xf32>
    %95 = math.exp %94 : vector<8x128xf32>
    %cst_34 = arith.constant 1.000000e+00 : f32
    %96 = vector.broadcast %cst_34 : f32 to vector<8x128xf32>
    %97 = arith.addf %96, %95 : vector<8x128xf32>
    %98 = arith.divf %96, %97 : vector<8x128xf32>
    %99 = arith.mulf %90, %39 : vector<8x128xf32>
    %100 = arith.mulf %84, %92 : vector<8x128xf32>
    %101 = arith.addf %99, %100 : vector<8x128xf32>
    %102 = math.tanh %101 : vector<8x128xf32>
    %103 = arith.mulf %98, %102 : vector<8x128xf32>
    %104 = tpu.concatenate %103, %74 in 1 : vector<8x128xf32>, vector<8x128xf32> -> vector<8x256xf32>
    %105 = arith.truncf %104 : vector<8x256xf32> to vector<8x256xbf16>
    %c0_35 = arith.constant 0 : index
    %c0_36 = arith.constant 0 : index
    %106 = vector.load %arg4[%c0_35, %c0_36] : memref<256x1024xbf16, #tpu.memory_space<vmem>>, vector<256x1024xbf16>
    %cst_37 = arith.constant dense<0.000000e+00> : vector<8x1024xf32>
    %107 = tpu.matmul %105, %106, %cst_37 {dimension_numbers = #tpu.dot_dimension_numbers<[1], [0], [0], [1], [0, 0, 1, 1], [], []>} : vector<8x256xbf16>, vector<256x1024xbf16>, vector<8x1024xf32> -> vector<8x1024xf32>
    %108 = vector.extract_strided_slice %107 {offsets = [0, 0], sizes = [8, 512], strides = [1, 1]} : vector<8x1024xf32> to vector<8x512xf32>
    %109 = vector.extract_strided_slice %107 {offsets = [0, 512], sizes = [8, 512], strides = [1, 1]} : vector<8x1024xf32> to vector<8x512xf32>
    %110 = vector.broadcast %10 : vector<1x512xf32> to vector<8x512xf32>
    %111 = arith.addf %109, %110 : vector<8x512xf32>
    %112 = vector.extract_strided_slice %111 {offsets = [0, 0], sizes = [8, 128], strides = [1, 1]} : vector<8x512xf32> to vector<8x128xf32>
    %113 = arith.negf %112 : vector<8x128xf32>
    %114 = math.exp %113 : vector<8x128xf32>
    %cst_38 = arith.constant 1.000000e+00 : f32
    %115 = vector.broadcast %cst_38 : f32 to vector<8x128xf32>
    %116 = arith.addf %115, %114 : vector<8x128xf32>
    %117 = arith.divf %115, %116 : vector<8x128xf32>
    %118 = vector.extract_strided_slice %111 {offsets = [0, 128], sizes = [8, 128], strides = [1, 1]} : vector<8x512xf32> to vector<8x128xf32>
    %119 = arith.negf %118 : vector<8x128xf32>
    %120 = math.exp %119 : vector<8x128xf32>
    %cst_39 = arith.constant 1.000000e+00 : f32
    %121 = vector.broadcast %cst_39 : f32 to vector<8x128xf32>
    %122 = arith.addf %121, %120 : vector<8x128xf32>
    %123 = arith.divf %121, %122 : vector<8x128xf32>
    %124 = vector.extract_strided_slice %111 {offsets = [0, 256], sizes = [8, 128], strides = [1, 1]} : vector<8x512xf32> to vector<8x128xf32>
    %125 = math.tanh %124 : vector<8x128xf32>
    %126 = vector.extract_strided_slice %111 {offsets = [0, 384], sizes = [8, 128], strides = [1, 1]} : vector<8x512xf32> to vector<8x128xf32>
    %127 = arith.negf %126 : vector<8x128xf32>
    %128 = math.exp %127 : vector<8x128xf32>
    %cst_40 = arith.constant 1.000000e+00 : f32
    %129 = vector.broadcast %cst_40 : f32 to vector<8x128xf32>
    %130 = arith.addf %129, %128 : vector<8x128xf32>
    %131 = arith.divf %129, %130 : vector<8x128xf32>
    %132 = arith.mulf %123, %72 : vector<8x128xf32>
    %133 = arith.mulf %117, %125 : vector<8x128xf32>
    %134 = arith.addf %132, %133 : vector<8x128xf32>
    %135 = math.tanh %134 : vector<8x128xf32>
    %136 = arith.mulf %131, %135 : vector<8x128xf32>
    %137 = arith.truncf %136 : vector<8x128xf32> to vector<8x128xbf16>
    %c8_41 = arith.constant 8 : index
    %c0_42 = arith.constant 0 : index
    %138 = vector.load %arg8[%c8_41, %c0_42] : memref<64x128xbf16, #tpu.memory_space<vmem>>, vector<8x128xbf16>
    tpu.vector_store %arg8[%c8_41, %c0_42], %137 {strides = array<i32>} : memref<64x128xbf16, #tpu.memory_space<vmem>>, vector<8x128xbf16>,
    %c16 = arith.constant 16 : index
    %c0_43 = arith.constant 0 : index
    %139 = vector.load %arg11[%c16, %c0_43] : memref<64x512xf32, #tpu.memory_space<vmem>>, vector<8x512xf32>
    %140 = arith.addf %139, %108 : vector<8x512xf32>
    %141 = vector.extract_strided_slice %140 {offsets = [0, 0], sizes = [8, 128], strides = [1, 1]} : vector<8x512xf32> to vector<8x128xf32>
    %142 = arith.negf %141 : vector<8x128xf32>
    %143 = math.exp %142 : vector<8x128xf32>
    %cst_44 = arith.constant 1.000000e+00 : f32
    %144 = vector.broadcast %cst_44 : f32 to vector<8x128xf32>
    %145 = arith.addf %144, %143 : vector<8x128xf32>
    %146 = arith.divf %144, %145 : vector<8x128xf32>
    %147 = vector.extract_strided_slice %140 {offsets = [0, 128], sizes = [8, 128], strides = [1, 1]} : vector<8x512xf32> to vector<8x128xf32>
    %148 = arith.negf %147 : vector<8x128xf32>
    %149 = math.exp %148 : vector<8x128xf32>
    %cst_45 = arith.constant 1.000000e+00 : f32
    %150 = vector.broadcast %cst_45 : f32 to vector<8x128xf32>
    %151 = arith.addf %150, %149 : vector<8x128xf32>
    %152 = arith.divf %150, %151 : vector<8x128xf32>
    %153 = vector.extract_strided_slice %140 {offsets = [0, 256], sizes = [8, 128], strides = [1, 1]} : vector<8x512xf32> to vector<8x128xf32>
    %154 = math.tanh %153 : vector<8x128xf32>
    %155 = vector.extract_strided_slice %140 {offsets = [0, 384], sizes = [8, 128], strides = [1, 1]} : vector<8x512xf32> to vector<8x128xf32>
    %156 = arith.negf %155 : vector<8x128xf32>
    %157 = math.exp %156 : vector<8x128xf32>
    %cst_46 = arith.constant 1.000000e+00 : f32
    %158 = vector.broadcast %cst_46 : f32 to vector<8x128xf32>
    %159 = arith.addf %158, %157 : vector<8x128xf32>
    %160 = arith.divf %158, %159 : vector<8x128xf32>
    %161 = arith.mulf %152, %101 : vector<8x128xf32>
    %162 = arith.mulf %146, %154 : vector<8x128xf32>
    %163 = arith.addf %161, %162 : vector<8x128xf32>
    %164 = math.tanh %163 : vector<8x128xf32>
    %165 = arith.mulf %160, %164 : vector<8x128xf32>
    %166 = tpu.concatenate %165, %136 in 1 : vector<8x128xf32>, vector<8x128xf32> -> vector<8x256xf32>
    %167 = arith.truncf %166 : vector<8x256xf32> to vector<8x256xbf16>
    %c0_47 = arith.constant 0 : index
    %c0_48 = arith.constant 0 : index
    %168 = vector.load %arg4[%c0_47, %c0_48] : memref<256x1024xbf16, #tpu.memory_space<vmem>>, vector<256x1024xbf16>
    %cst_49 = arith.constant dense<0.000000e+00> : vector<8x1024xf32>
    %169 = tpu.matmul %167, %168, %cst_49 {dimension_numbers = #tpu.dot_dimension_numbers<[1], [0], [0], [1], [0, 0, 1, 1], [], []>} : vector<8x256xbf16>, vector<256x1024xbf16>, vector<8x1024xf32> -> vector<8x1024xf32>
    %170 = vector.extract_strided_slice %169 {offsets = [0, 0], sizes = [8, 512], strides = [1, 1]} : vector<8x1024xf32> to vector<8x512xf32>
    %171 = vector.extract_strided_slice %169 {offsets = [0, 512], sizes = [8, 512], strides = [1, 1]} : vector<8x1024xf32> to vector<8x512xf32>
    %172 = vector.broadcast %10 : vector<1x512xf32> to vector<8x512xf32>
    %173 = arith.addf %171, %172 : vector<8x512xf32>
    %174 = vector.extract_strided_slice %173 {offsets = [0, 0], sizes = [8, 128], strides = [1, 1]} : vector<8x512xf32> to vector<8x128xf32>
    %175 = arith.negf %174 : vector<8x128xf32>
    %176 = math.exp %175 : vector<8x128xf32>
    %cst_50 = arith.constant 1.000000e+00 : f32
    %177 = vector.broadcast %cst_50 : f32 to vector<8x128xf32>
    %178 = arith.addf %177, %176 : vector<8x128xf32>
    %179 = arith.divf %177, %178 : vector<8x128xf32>
    %180 = vector.extract_strided_slice %173 {offsets = [0, 128], sizes = [8, 128], strides = [1, 1]} : vector<8x512xf32> to vector<8x128xf32>
    %181 = arith.negf %180 : vector<8x128xf32>
    %182 = math.exp %181 : vector<8x128xf32>
    %cst_51 = arith.constant 1.000000e+00 : f32
    %183 = vector.broadcast %cst_51 : f32 to vector<8x128xf32>
    %184 = arith.addf %183, %182 : vector<8x128xf32>
    %185 = arith.divf %183, %184 : vector<8x128xf32>
    %186 = vector.extract_strided_slice %173 {offsets = [0, 256], sizes = [8, 128], strides = [1, 1]} : vector<8x512xf32> to vector<8x128xf32>
    %187 = math.tanh %186 : vector<8x128xf32>
    %188 = vector.extract_strided_slice %173 {offsets = [0, 384], sizes = [8, 128], strides = [1, 1]} : vector<8x512xf32> to vector<8x128xf32>
    %189 = arith.negf %188 : vector<8x128xf32>
    %190 = math.exp %189 : vector<8x128xf32>
    %cst_52 = arith.constant 1.000000e+00 : f32
    %191 = vector.broadcast %cst_52 : f32 to vector<8x128xf32>
    %192 = arith.addf %191, %190 : vector<8x128xf32>
    %193 = arith.divf %191, %192 : vector<8x128xf32>
    %194 = arith.mulf %185, %134 : vector<8x128xf32>
    %195 = arith.mulf %179, %187 : vector<8x128xf32>
    %196 = arith.addf %194, %195 : vector<8x128xf32>
    %197 = math.tanh %196 : vector<8x128xf32>
    %198 = arith.mulf %193, %197 : vector<8x128xf32>
    %199 = arith.truncf %198 : vector<8x128xf32> to vector<8x128xbf16>
    %c16_53 = arith.constant 16 : index
    %c0_54 = arith.constant 0 : index
    %200 = vector.load %arg8[%c16_53, %c0_54] : memref<64x128xbf16, #tpu.memory_space<vmem>>, vector<8x128xbf16>
    tpu.vector_store %arg8[%c16_53, %c0_54], %199 {strides = array<i32>} : memref<64x128xbf16, #tpu.memory_space<vmem>>, vector<8x128xbf16>,
    %c24 = arith.constant 24 : index
    %c0_55 = arith.constant 0 : index
    %201 = vector.load %arg11[%c24, %c0_55] : memref<64x512xf32, #tpu.memory_space<vmem>>, vector<8x512xf32>
    %202 = arith.addf %201, %170 : vector<8x512xf32>
    %203 = vector.extract_strided_slice %202 {offsets = [0, 0], sizes = [8, 128], strides = [1, 1]} : vector<8x512xf32> to vector<8x128xf32>
    %204 = arith.negf %203 : vector<8x128xf32>
    %205 = math.exp %204 : vector<8x128xf32>
    %cst_56 = arith.constant 1.000000e+00 : f32
    %206 = vector.broadcast %cst_56 : f32 to vector<8x128xf32>
    %207 = arith.addf %206, %205 : vector<8x128xf32>
    %208 = arith.divf %206, %207 : vector<8x128xf32>
    %209 = vector.extract_strided_slice %202 {offsets = [0, 128], sizes = [8, 128], strides = [1, 1]} : vector<8x512xf32> to vector<8x128xf32>
    %210 = arith.negf %209 : vector<8x128xf32>
    %211 = math.exp %210 : vector<8x128xf32>
    %cst_57 = arith.constant 1.000000e+00 : f32
    %212 = vector.broadcast %cst_57 : f32 to vector<8x128xf32>
    %213 = arith.addf %212, %211 : vector<8x128xf32>
    %214 = arith.divf %212, %213 : vector<8x128xf32>
    %215 = vector.extract_strided_slice %202 {offsets = [0, 256], sizes = [8, 128], strides = [1, 1]} : vector<8x512xf32> to vector<8x128xf32>
    %216 = math.tanh %215 : vector<8x128xf32>
    %217 = vector.extract_strided_slice %202 {offsets = [0, 384], sizes = [8, 128], strides = [1, 1]} : vector<8x512xf32> to vector<8x128xf32>
    %218 = arith.negf %217 : vector<8x128xf32>
    %219 = math.exp %218 : vector<8x128xf32>
    %cst_58 = arith.constant 1.000000e+00 : f32
    %220 = vector.broadcast %cst_58 : f32 to vector<8x128xf32>
    %221 = arith.addf %220, %219 : vector<8x128xf32>
    %222 = arith.divf %220, %221 : vector<8x128xf32>
    %223 = arith.mulf %214, %163 : vector<8x128xf32>
    %224 = arith.mulf %208, %216 : vector<8x128xf32>
    %225 = arith.addf %223, %224 : vector<8x128xf32>
    %226 = math.tanh %225 : vector<8x128xf32>
    %227 = arith.mulf %222, %226 : vector<8x128xf32>
    %228 = tpu.concatenate %227, %198 in 1 : vector<8x128xf32>, vector<8x128xf32> -> vector<8x256xf32>
    %229 = arith.truncf %228 : vector<8x256xf32> to vector<8x256xbf16>
    %c0_59 = arith.constant 0 : index
    %c0_60 = arith.constant 0 : index
    %230 = vector.load %arg4[%c0_59, %c0_60] : memref<256x1024xbf16, #tpu.memory_space<vmem>>, vector<256x1024xbf16>
    %cst_61 = arith.constant dense<0.000000e+00> : vector<8x1024xf32>
    %231 = tpu.matmul %229, %230, %cst_61 {dimension_numbers = #tpu.dot_dimension_numbers<[1], [0], [0], [1], [0, 0, 1, 1], [], []>} : vector<8x256xbf16>, vector<256x1024xbf16>, vector<8x1024xf32> -> vector<8x1024xf32>
    %232 = vector.extract_strided_slice %231 {offsets = [0, 0], sizes = [8, 512], strides = [1, 1]} : vector<8x1024xf32> to vector<8x512xf32>
    %233 = vector.extract_strided_slice %231 {offsets = [0, 512], sizes = [8, 512], strides = [1, 1]} : vector<8x1024xf32> to vector<8x512xf32>
    %234 = vector.broadcast %10 : vector<1x512xf32> to vector<8x512xf32>
    %235 = arith.addf %233, %234 : vector<8x512xf32>
    %236 = vector.extract_strided_slice %235 {offsets = [0, 0], sizes = [8, 128], strides = [1, 1]} : vector<8x512xf32> to vector<8x128xf32>
    %237 = arith.negf %236 : vector<8x128xf32>
    %238 = math.exp %237 : vector<8x128xf32>
    %cst_62 = arith.constant 1.000000e+00 : f32
    %239 = vector.broadcast %cst_62 : f32 to vector<8x128xf32>
    %240 = arith.addf %239, %238 : vector<8x128xf32>
    %241 = arith.divf %239, %240 : vector<8x128xf32>
    %242 = vector.extract_strided_slice %235 {offsets = [0, 128], sizes = [8, 128], strides = [1, 1]} : vector<8x512xf32> to vector<8x128xf32>
    %243 = arith.negf %242 : vector<8x128xf32>
    %244 = math.exp %243 : vector<8x128xf32>
    %cst_63 = arith.constant 1.000000e+00 : f32
    %245 = vector.broadcast %cst_63 : f32 to vector<8x128xf32>
    %246 = arith.addf %245, %244 : vector<8x128xf32>
    %247 = arith.divf %245, %246 : vector<8x128xf32>
    %248 = vector.extract_strided_slice %235 {offsets = [0, 256], sizes = [8, 128], strides = [1, 1]} : vector<8x512xf32> to vector<8x128xf32>
    %249 = math.tanh %248 : vector<8x128xf32>
    %250 = vector.extract_strided_slice %235 {offsets = [0, 384], sizes = [8, 128], strides = [1, 1]} : vector<8x512xf32> to vector<8x128xf32>
    %251 = arith.negf %250 : vector<8x128xf32>
    %252 = math.exp %251 : vector<8x128xf32>
    %cst_64 = arith.constant 1.000000e+00 : f32
    %253 = vector.broadcast %cst_64 : f32 to vector<8x128xf32>
    %254 = arith.addf %253, %252 : vector<8x128xf32>
    %255 = arith.divf %253, %254 : vector<8x128xf32>
    %256 = arith.mulf %247, %196 : vector<8x128xf32>
    %257 = arith.mulf %241, %249 : vector<8x128xf32>
    %258 = arith.addf %256, %257 : vector<8x128xf32>
    %259 = math.tanh %258 : vector<8x128xf32>
    %260 = arith.mulf %255, %259 : vector<8x128xf32>
    %261 = arith.truncf %260 : vector<8x128xf32> to vector<8x128xbf16>
    %c24_65 = arith.constant 24 : index
    %c0_66 = arith.constant 0 : index
    %262 = vector.load %arg8[%c24_65, %c0_66] : memref<64x128xbf16, #tpu.memory_space<vmem>>, vector<8x128xbf16>
    tpu.vector_store %arg8[%c24_65, %c0_66], %261 {strides = array<i32>} : memref<64x128xbf16, #tpu.memory_space<vmem>>, vector<8x128xbf16>,
    %c32 = arith.constant 32 : index
    %c0_67 = arith.constant 0 : index
    %263 = vector.load %arg11[%c32, %c0_67] : memref<64x512xf32, #tpu.memory_space<vmem>>, vector<8x512xf32>
    %264 = arith.addf %263, %232 : vector<8x512xf32>
    %265 = vector.extract_strided_slice %264 {offsets = [0, 0], sizes = [8, 128], strides = [1, 1]} : vector<8x512xf32> to vector<8x128xf32>
    %266 = arith.negf %265 : vector<8x128xf32>
    %267 = math.exp %266 : vector<8x128xf32>
    %cst_68 = arith.constant 1.000000e+00 : f32
    %268 = vector.broadcast %cst_68 : f32 to vector<8x128xf32>
    %269 = arith.addf %268, %267 : vector<8x128xf32>
    %270 = arith.divf %268, %269 : vector<8x128xf32>
    %271 = vector.extract_strided_slice %264 {offsets = [0, 128], sizes = [8, 128], strides = [1, 1]} : vector<8x512xf32> to vector<8x128xf32>
    %272 = arith.negf %271 : vector<8x128xf32>
    %273 = math.exp %272 : vector<8x128xf32>
    %cst_69 = arith.constant 1.000000e+00 : f32
    %274 = vector.broadcast %cst_69 : f32 to vector<8x128xf32>
    %275 = arith.addf %274, %273 : vector<8x128xf32>
    %276 = arith.divf %274, %275 : vector<8x128xf32>
    %277 = vector.extract_strided_slice %264 {offsets = [0, 256], sizes = [8, 128], strides = [1, 1]} : vector<8x512xf32> to vector<8x128xf32>
    %278 = math.tanh %277 : vector<8x128xf32>
    %279 = vector.extract_strided_slice %264 {offsets = [0, 384], sizes = [8, 128], strides = [1, 1]} : vector<8x512xf32> to vector<8x128xf32>
    %280 = arith.negf %279 : vector<8x128xf32>
    %281 = math.exp %280 : vector<8x128xf32>
    %cst_70 = arith.constant 1.000000e+00 : f32
    %282 = vector.broadcast %cst_70 : f32 to vector<8x128xf32>
    %283 = arith.addf %282, %281 : vector<8x128xf32>
    %284 = arith.divf %282, %283 : vector<8x128xf32>
    %285 = arith.mulf %276, %225 : vector<8x128xf32>
    %286 = arith.mulf %270, %278 : vector<8x128xf32>
    %287 = arith.addf %285, %286 : vector<8x128xf32>
    %288 = math.tanh %287 : vector<8x128xf32>
    %289 = arith.mulf %284, %288 : vector<8x128xf32>
    %290 = tpu.concatenate %289, %260 in 1 : vector<8x128xf32>, vector<8x128xf32> -> vector<8x256xf32>
    %291 = arith.truncf %290 : vector<8x256xf32> to vector<8x256xbf16>
    %c0_71 = arith.constant 0 : index
    %c0_72 = arith.constant 0 : index
    %292 = vector.load %arg4[%c0_71, %c0_72] : memref<256x1024xbf16, #tpu.memory_space<vmem>>, vector<256x1024xbf16>
    %cst_73 = arith.constant dense<0.000000e+00> : vector<8x1024xf32>
    %293 = tpu.matmul %291, %292, %cst_73 {dimension_numbers = #tpu.dot_dimension_numbers<[1], [0], [0], [1], [0, 0, 1, 1], [], []>} : vector<8x256xbf16>, vector<256x1024xbf16>, vector<8x1024xf32> -> vector<8x1024xf32>
    %294 = vector.extract_strided_slice %293 {offsets = [0, 0], sizes = [8, 512], strides = [1, 1]} : vector<8x1024xf32> to vector<8x512xf32>
    %295 = vector.extract_strided_slice %293 {offsets = [0, 512], sizes = [8, 512], strides = [1, 1]} : vector<8x1024xf32> to vector<8x512xf32>
    %296 = vector.broadcast %10 : vector<1x512xf32> to vector<8x512xf32>
    %297 = arith.addf %295, %296 : vector<8x512xf32>
    %298 = vector.extract_strided_slice %297 {offsets = [0, 0], sizes = [8, 128], strides = [1, 1]} : vector<8x512xf32> to vector<8x128xf32>
    %299 = arith.negf %298 : vector<8x128xf32>
    %300 = math.exp %299 : vector<8x128xf32>
    %cst_74 = arith.constant 1.000000e+00 : f32
    %301 = vector.broadcast %cst_74 : f32 to vector<8x128xf32>
    %302 = arith.addf %301, %300 : vector<8x128xf32>
    %303 = arith.divf %301, %302 : vector<8x128xf32>
    %304 = vector.extract_strided_slice %297 {offsets = [0, 128], sizes = [8, 128], strides = [1, 1]} : vector<8x512xf32> to vector<8x128xf32>
    %305 = arith.negf %304 : vector<8x128xf32>
    %306 = math.exp %305 : vector<8x128xf32>
    %cst_75 = arith.constant 1.000000e+00 : f32
    %307 = vector.broadcast %cst_75 : f32 to vector<8x128xf32>
    %308 = arith.addf %307, %306 : vector<8x128xf32>
    %309 = arith.divf %307, %308 : vector<8x128xf32>
    %310 = vector.extract_strided_slice %297 {offsets = [0, 256], sizes = [8, 128], strides = [1, 1]} : vector<8x512xf32> to vector<8x128xf32>
    %311 = math.tanh %310 : vector<8x128xf32>
    %312 = vector.extract_strided_slice %297 {offsets = [0, 384], sizes = [8, 128], strides = [1, 1]} : vector<8x512xf32> to vector<8x128xf32>
    %313 = arith.negf %312 : vector<8x128xf32>
    %314 = math.exp %313 : vector<8x128xf32>
    %cst_76 = arith.constant 1.000000e+00 : f32
    %315 = vector.broadcast %cst_76 : f32 to vector<8x128xf32>
    %316 = arith.addf %315, %314 : vector<8x128xf32>
    %317 = arith.divf %315, %316 : vector<8x128xf32>
    %318 = arith.mulf %309, %258 : vector<8x128xf32>
    %319 = arith.mulf %303, %311 : vector<8x128xf32>
    %320 = arith.addf %318, %319 : vector<8x128xf32>
    %321 = math.tanh %320 : vector<8x128xf32>
    %322 = arith.mulf %317, %321 : vector<8x128xf32>
    %323 = arith.truncf %322 : vector<8x128xf32> to vector<8x128xbf16>
    %c32_77 = arith.constant 32 : index
    %c0_78 = arith.constant 0 : index
    %324 = vector.load %arg8[%c32_77, %c0_78] : memref<64x128xbf16, #tpu.memory_space<vmem>>, vector<8x128xbf16>
    tpu.vector_store %arg8[%c32_77, %c0_78], %323 {strides = array<i32>} : memref<64x128xbf16, #tpu.memory_space<vmem>>, vector<8x128xbf16>,
    %c40 = arith.constant 40 : index
    %c0_79 = arith.constant 0 : index
    %325 = vector.load %arg11[%c40, %c0_79] : memref<64x512xf32, #tpu.memory_space<vmem>>, vector<8x512xf32>
    %326 = arith.addf %325, %294 : vector<8x512xf32>
    %327 = vector.extract_strided_slice %326 {offsets = [0, 0], sizes = [8, 128], strides = [1, 1]} : vector<8x512xf32> to vector<8x128xf32>
    %328 = arith.negf %327 : vector<8x128xf32>
    %329 = math.exp %328 : vector<8x128xf32>
    %cst_80 = arith.constant 1.000000e+00 : f32
    %330 = vector.broadcast %cst_80 : f32 to vector<8x128xf32>
    %331 = arith.addf %330, %329 : vector<8x128xf32>
    %332 = arith.divf %330, %331 : vector<8x128xf32>
    %333 = vector.extract_strided_slice %326 {offsets = [0, 128], sizes = [8, 128], strides = [1, 1]} : vector<8x512xf32> to vector<8x128xf32>
    %334 = arith.negf %333 : vector<8x128xf32>
    %335 = math.exp %334 : vector<8x128xf32>
    %cst_81 = arith.constant 1.000000e+00 : f32
    %336 = vector.broadcast %cst_81 : f32 to vector<8x128xf32>
    %337 = arith.addf %336, %335 : vector<8x128xf32>
    %338 = arith.divf %336, %337 : vector<8x128xf32>
    %339 = vector.extract_strided_slice %326 {offsets = [0, 256], sizes = [8, 128], strides = [1, 1]} : vector<8x512xf32> to vector<8x128xf32>
    %340 = math.tanh %339 : vector<8x128xf32>
    %341 = vector.extract_strided_slice %326 {offsets = [0, 384], sizes = [8, 128], strides = [1, 1]} : vector<8x512xf32> to vector<8x128xf32>
    %342 = arith.negf %341 : vector<8x128xf32>
    %343 = math.exp %342 : vector<8x128xf32>
    %cst_82 = arith.constant 1.000000e+00 : f32
    %344 = vector.broadcast %cst_82 : f32 to vector<8x128xf32>
    %345 = arith.addf %344, %343 : vector<8x128xf32>
    %346 = arith.divf %344, %345 : vector<8x128xf32>
    %347 = arith.mulf %338, %287 : vector<8x128xf32>
    %348 = arith.mulf %332, %340 : vector<8x128xf32>
    %349 = arith.addf %347, %348 : vector<8x128xf32>
    %350 = math.tanh %349 : vector<8x128xf32>
    %351 = arith.mulf %346, %350 : vector<8x128xf32>
    %352 = tpu.concatenate %351, %322 in 1 : vector<8x128xf32>, vector<8x128xf32> -> vector<8x256xf32>
    %353 = arith.truncf %352 : vector<8x256xf32> to vector<8x256xbf16>
    %c0_83 = arith.constant 0 : index
    %c0_84 = arith.constant 0 : index
    %354 = vector.load %arg4[%c0_83, %c0_84] : memref<256x1024xbf16, #tpu.memory_space<vmem>>, vector<256x1024xbf16>
    %cst_85 = arith.constant dense<0.000000e+00> : vector<8x1024xf32>
    %355 = tpu.matmul %353, %354, %cst_85 {dimension_numbers = #tpu.dot_dimension_numbers<[1], [0], [0], [1], [0, 0, 1, 1], [], []>} : vector<8x256xbf16>, vector<256x1024xbf16>, vector<8x1024xf32> -> vector<8x1024xf32>
    %356 = vector.extract_strided_slice %355 {offsets = [0, 0], sizes = [8, 512], strides = [1, 1]} : vector<8x1024xf32> to vector<8x512xf32>
    %357 = vector.extract_strided_slice %355 {offsets = [0, 512], sizes = [8, 512], strides = [1, 1]} : vector<8x1024xf32> to vector<8x512xf32>
    %358 = vector.broadcast %10 : vector<1x512xf32> to vector<8x512xf32>
    %359 = arith.addf %357, %358 : vector<8x512xf32>
    %360 = vector.extract_strided_slice %359 {offsets = [0, 0], sizes = [8, 128], strides = [1, 1]} : vector<8x512xf32> to vector<8x128xf32>
    %361 = arith.negf %360 : vector<8x128xf32>
    %362 = math.exp %361 : vector<8x128xf32>
    %cst_86 = arith.constant 1.000000e+00 : f32
    %363 = vector.broadcast %cst_86 : f32 to vector<8x128xf32>
    %364 = arith.addf %363, %362 : vector<8x128xf32>
    %365 = arith.divf %363, %364 : vector<8x128xf32>
    %366 = vector.extract_strided_slice %359 {offsets = [0, 128], sizes = [8, 128], strides = [1, 1]} : vector<8x512xf32> to vector<8x128xf32>
    %367 = arith.negf %366 : vector<8x128xf32>
    %368 = math.exp %367 : vector<8x128xf32>
    %cst_87 = arith.constant 1.000000e+00 : f32
    %369 = vector.broadcast %cst_87 : f32 to vector<8x128xf32>
    %370 = arith.addf %369, %368 : vector<8x128xf32>
    %371 = arith.divf %369, %370 : vector<8x128xf32>
    %372 = vector.extract_strided_slice %359 {offsets = [0, 256], sizes = [8, 128], strides = [1, 1]} : vector<8x512xf32> to vector<8x128xf32>
    %373 = math.tanh %372 : vector<8x128xf32>
    %374 = vector.extract_strided_slice %359 {offsets = [0, 384], sizes = [8, 128], strides = [1, 1]} : vector<8x512xf32> to vector<8x128xf32>
    %375 = arith.negf %374 : vector<8x128xf32>
    %376 = math.exp %375 : vector<8x128xf32>
    %cst_88 = arith.constant 1.000000e+00 : f32
    %377 = vector.broadcast %cst_88 : f32 to vector<8x128xf32>
    %378 = arith.addf %377, %376 : vector<8x128xf32>
    %379 = arith.divf %377, %378 : vector<8x128xf32>
    %380 = arith.mulf %371, %320 : vector<8x128xf32>
    %381 = arith.mulf %365, %373 : vector<8x128xf32>
    %382 = arith.addf %380, %381 : vector<8x128xf32>
    %383 = math.tanh %382 : vector<8x128xf32>
    %384 = arith.mulf %379, %383 : vector<8x128xf32>
    %385 = arith.truncf %384 : vector<8x128xf32> to vector<8x128xbf16>
    %c40_89 = arith.constant 40 : index
    %c0_90 = arith.constant 0 : index
    %386 = vector.load %arg8[%c40_89, %c0_90] : memref<64x128xbf16, #tpu.memory_space<vmem>>, vector<8x128xbf16>
    tpu.vector_store %arg8[%c40_89, %c0_90], %385 {strides = array<i32>} : memref<64x128xbf16, #tpu.memory_space<vmem>>, vector<8x128xbf16>,
    %c48 = arith.constant 48 : index
    %c0_91 = arith.constant 0 : index
    %387 = vector.load %arg11[%c48, %c0_91] : memref<64x512xf32, #tpu.memory_space<vmem>>, vector<8x512xf32>
    %388 = arith.addf %387, %356 : vector<8x512xf32>
    %389 = vector.extract_strided_slice %388 {offsets = [0, 0], sizes = [8, 128], strides = [1, 1]} : vector<8x512xf32> to vector<8x128xf32>
    %390 = arith.negf %389 : vector<8x128xf32>
    %391 = math.exp %390 : vector<8x128xf32>
    %cst_92 = arith.constant 1.000000e+00 : f32
    %392 = vector.broadcast %cst_92 : f32 to vector<8x128xf32>
    %393 = arith.addf %392, %391 : vector<8x128xf32>
    %394 = arith.divf %392, %393 : vector<8x128xf32>
    %395 = vector.extract_strided_slice %388 {offsets = [0, 128], sizes = [8, 128], strides = [1, 1]} : vector<8x512xf32> to vector<8x128xf32>
    %396 = arith.negf %395 : vector<8x128xf32>
    %397 = math.exp %396 : vector<8x128xf32>
    %cst_93 = arith.constant 1.000000e+00 : f32
    %398 = vector.broadcast %cst_93 : f32 to vector<8x128xf32>
    %399 = arith.addf %398, %397 : vector<8x128xf32>
    %400 = arith.divf %398, %399 : vector<8x128xf32>
    %401 = vector.extract_strided_slice %388 {offsets = [0, 256], sizes = [8, 128], strides = [1, 1]} : vector<8x512xf32> to vector<8x128xf32>
    %402 = math.tanh %401 : vector<8x128xf32>
    %403 = vector.extract_strided_slice %388 {offsets = [0, 384], sizes = [8, 128], strides = [1, 1]} : vector<8x512xf32> to vector<8x128xf32>
    %404 = arith.negf %403 : vector<8x128xf32>
    %405 = math.exp %404 : vector<8x128xf32>
    %cst_94 = arith.constant 1.000000e+00 : f32
    %406 = vector.broadcast %cst_94 : f32 to vector<8x128xf32>
    %407 = arith.addf %406, %405 : vector<8x128xf32>
    %408 = arith.divf %406, %407 : vector<8x128xf32>
    %409 = arith.mulf %400, %349 : vector<8x128xf32>
    %410 = arith.mulf %394, %402 : vector<8x128xf32>
    %411 = arith.addf %409, %410 : vector<8x128xf32>
    %412 = math.tanh %411 : vector<8x128xf32>
    %413 = arith.mulf %408, %412 : vector<8x128xf32>
    %414 = tpu.concatenate %413, %384 in 1 : vector<8x128xf32>, vector<8x128xf32> -> vector<8x256xf32>
    %415 = arith.truncf %414 : vector<8x256xf32> to vector<8x256xbf16>
    %c0_95 = arith.constant 0 : index
    %c0_96 = arith.constant 0 : index
    %416 = vector.load %arg4[%c0_95, %c0_96] : memref<256x1024xbf16, #tpu.memory_space<vmem>>, vector<256x1024xbf16>
    %cst_97 = arith.constant dense<0.000000e+00> : vector<8x1024xf32>
    %417 = tpu.matmul %415, %416, %cst_97 {dimension_numbers = #tpu.dot_dimension_numbers<[1], [0], [0], [1], [0, 0, 1, 1], [], []>} : vector<8x256xbf16>, vector<256x1024xbf16>, vector<8x1024xf32> -> vector<8x1024xf32>
    %418 = vector.extract_strided_slice %417 {offsets = [0, 0], sizes = [8, 512], strides = [1, 1]} : vector<8x1024xf32> to vector<8x512xf32>
    %419 = vector.extract_strided_slice %417 {offsets = [0, 512], sizes = [8, 512], strides = [1, 1]} : vector<8x1024xf32> to vector<8x512xf32>
    %420 = vector.broadcast %10 : vector<1x512xf32> to vector<8x512xf32>
    %421 = arith.addf %419, %420 : vector<8x512xf32>
    %422 = vector.extract_strided_slice %421 {offsets = [0, 0], sizes = [8, 128], strides = [1, 1]} : vector<8x512xf32> to vector<8x128xf32>
    %423 = arith.negf %422 : vector<8x128xf32>
    %424 = math.exp %423 : vector<8x128xf32>
    %cst_98 = arith.constant 1.000000e+00 : f32
    %425 = vector.broadcast %cst_98 : f32 to vector<8x128xf32>
    %426 = arith.addf %425, %424 : vector<8x128xf32>
    %427 = arith.divf %425, %426 : vector<8x128xf32>
    %428 = vector.extract_strided_slice %421 {offsets = [0, 128], sizes = [8, 128], strides = [1, 1]} : vector<8x512xf32> to vector<8x128xf32>
    %429 = arith.negf %428 : vector<8x128xf32>
    %430 = math.exp %429 : vector<8x128xf32>
    %cst_99 = arith.constant 1.000000e+00 : f32
    %431 = vector.broadcast %cst_99 : f32 to vector<8x128xf32>
    %432 = arith.addf %431, %430 : vector<8x128xf32>
    %433 = arith.divf %431, %432 : vector<8x128xf32>
    %434 = vector.extract_strided_slice %421 {offsets = [0, 256], sizes = [8, 128], strides = [1, 1]} : vector<8x512xf32> to vector<8x128xf32>
    %435 = math.tanh %434 : vector<8x128xf32>
    %436 = vector.extract_strided_slice %421 {offsets = [0, 384], sizes = [8, 128], strides = [1, 1]} : vector<8x512xf32> to vector<8x128xf32>
    %437 = arith.negf %436 : vector<8x128xf32>
    %438 = math.exp %437 : vector<8x128xf32>
    %cst_100 = arith.constant 1.000000e+00 : f32
    %439 = vector.broadcast %cst_100 : f32 to vector<8x128xf32>
    %440 = arith.addf %439, %438 : vector<8x128xf32>
    %441 = arith.divf %439, %440 : vector<8x128xf32>
    %442 = arith.mulf %433, %382 : vector<8x128xf32>
    %443 = arith.mulf %427, %435 : vector<8x128xf32>
    %444 = arith.addf %442, %443 : vector<8x128xf32>
    %445 = math.tanh %444 : vector<8x128xf32>
    %446 = arith.mulf %441, %445 : vector<8x128xf32>
    %447 = arith.truncf %446 : vector<8x128xf32> to vector<8x128xbf16>
    %c48_101 = arith.constant 48 : index
    %c0_102 = arith.constant 0 : index
    %448 = vector.load %arg8[%c48_101, %c0_102] : memref<64x128xbf16, #tpu.memory_space<vmem>>, vector<8x128xbf16>
    tpu.vector_store %arg8[%c48_101, %c0_102], %447 {strides = array<i32>} : memref<64x128xbf16, #tpu.memory_space<vmem>>, vector<8x128xbf16>,
    %c56 = arith.constant 56 : index
    %c0_103 = arith.constant 0 : index
    %449 = vector.load %arg11[%c56, %c0_103] : memref<64x512xf32, #tpu.memory_space<vmem>>, vector<8x512xf32>
    %450 = arith.addf %449, %418 : vector<8x512xf32>
    %451 = vector.extract_strided_slice %450 {offsets = [0, 0], sizes = [8, 128], strides = [1, 1]} : vector<8x512xf32> to vector<8x128xf32>
    %452 = arith.negf %451 : vector<8x128xf32>
    %453 = math.exp %452 : vector<8x128xf32>
    %cst_104 = arith.constant 1.000000e+00 : f32
    %454 = vector.broadcast %cst_104 : f32 to vector<8x128xf32>
    %455 = arith.addf %454, %453 : vector<8x128xf32>
    %456 = arith.divf %454, %455 : vector<8x128xf32>
    %457 = vector.extract_strided_slice %450 {offsets = [0, 128], sizes = [8, 128], strides = [1, 1]} : vector<8x512xf32> to vector<8x128xf32>
    %458 = arith.negf %457 : vector<8x128xf32>
    %459 = math.exp %458 : vector<8x128xf32>
    %cst_105 = arith.constant 1.000000e+00 : f32
    %460 = vector.broadcast %cst_105 : f32 to vector<8x128xf32>
    %461 = arith.addf %460, %459 : vector<8x128xf32>
    %462 = arith.divf %460, %461 : vector<8x128xf32>
    %463 = vector.extract_strided_slice %450 {offsets = [0, 256], sizes = [8, 128], strides = [1, 1]} : vector<8x512xf32> to vector<8x128xf32>
    %464 = math.tanh %463 : vector<8x128xf32>
    %465 = vector.extract_strided_slice %450 {offsets = [0, 384], sizes = [8, 128], strides = [1, 1]} : vector<8x512xf32> to vector<8x128xf32>
    %466 = arith.negf %465 : vector<8x128xf32>
    %467 = math.exp %466 : vector<8x128xf32>
    %cst_106 = arith.constant 1.000000e+00 : f32
    %468 = vector.broadcast %cst_106 : f32 to vector<8x128xf32>
    %469 = arith.addf %468, %467 : vector<8x128xf32>
    %470 = arith.divf %468, %469 : vector<8x128xf32>
    %471 = arith.mulf %462, %411 : vector<8x128xf32>
    %472 = arith.mulf %456, %464 : vector<8x128xf32>
    %473 = arith.addf %471, %472 : vector<8x128xf32>
    %474 = math.tanh %473 : vector<8x128xf32>
    %475 = arith.mulf %470, %474 : vector<8x128xf32>
    %476 = tpu.concatenate %475, %446 in 1 : vector<8x128xf32>, vector<8x128xf32> -> vector<8x256xf32>
    %477 = arith.truncf %476 : vector<8x256xf32> to vector<8x256xbf16>
    %c0_107 = arith.constant 0 : index
    %c0_108 = arith.constant 0 : index
    %478 = vector.load %arg4[%c0_107, %c0_108] : memref<256x1024xbf16, #tpu.memory_space<vmem>>, vector<256x1024xbf16>
    %cst_109 = arith.constant dense<0.000000e+00> : vector<8x1024xf32>
    %479 = tpu.matmul %477, %478, %cst_109 {dimension_numbers = #tpu.dot_dimension_numbers<[1], [0], [0], [1], [0, 0, 1, 1], [], []>} : vector<8x256xbf16>, vector<256x1024xbf16>, vector<8x1024xf32> -> vector<8x1024xf32>
    %480 = vector.extract_strided_slice %479 {offsets = [0, 0], sizes = [8, 512], strides = [1, 1]} : vector<8x1024xf32> to vector<8x512xf32>
    %481 = vector.extract_strided_slice %479 {offsets = [0, 512], sizes = [8, 512], strides = [1, 1]} : vector<8x1024xf32> to vector<8x512xf32>
    %482 = vector.broadcast %10 : vector<1x512xf32> to vector<8x512xf32>
    %483 = arith.addf %481, %482 : vector<8x512xf32>
    %484 = vector.extract_strided_slice %483 {offsets = [0, 0], sizes = [8, 128], strides = [1, 1]} : vector<8x512xf32> to vector<8x128xf32>
    %485 = arith.negf %484 : vector<8x128xf32>
    %486 = math.exp %485 : vector<8x128xf32>
    %cst_110 = arith.constant 1.000000e+00 : f32
    %487 = vector.broadcast %cst_110 : f32 to vector<8x128xf32>
    %488 = arith.addf %487, %486 : vector<8x128xf32>
    %489 = arith.divf %487, %488 : vector<8x128xf32>
    %490 = vector.extract_strided_slice %483 {offsets = [0, 128], sizes = [8, 128], strides = [1, 1]} : vector<8x512xf32> to vector<8x128xf32>
    %491 = arith.negf %490 : vector<8x128xf32>
    %492 = math.exp %491 : vector<8x128xf32>
    %cst_111 = arith.constant 1.000000e+00 : f32
    %493 = vector.broadcast %cst_111 : f32 to vector<8x128xf32>
    %494 = arith.addf %493, %492 : vector<8x128xf32>
    %495 = arith.divf %493, %494 : vector<8x128xf32>
    %496 = vector.extract_strided_slice %483 {offsets = [0, 256], sizes = [8, 128], strides = [1, 1]} : vector<8x512xf32> to vector<8x128xf32>
    %497 = math.tanh %496 : vector<8x128xf32>
    %498 = vector.extract_strided_slice %483 {offsets = [0, 384], sizes = [8, 128], strides = [1, 1]} : vector<8x512xf32> to vector<8x128xf32>
    %499 = arith.negf %498 : vector<8x128xf32>
    %500 = math.exp %499 : vector<8x128xf32>
    %cst_112 = arith.constant 1.000000e+00 : f32
    %501 = vector.broadcast %cst_112 : f32 to vector<8x128xf32>
    %502 = arith.addf %501, %500 : vector<8x128xf32>
    %503 = arith.divf %501, %502 : vector<8x128xf32>
    %504 = arith.mulf %495, %444 : vector<8x128xf32>
    %505 = arith.mulf %489, %497 : vector<8x128xf32>
    %506 = arith.addf %504, %505 : vector<8x128xf32>
    %507 = math.tanh %506 : vector<8x128xf32>
    %508 = arith.mulf %503, %507 : vector<8x128xf32>
    %509 = arith.truncf %508 : vector<8x128xf32> to vector<8x128xbf16>
    %c56_113 = arith.constant 56 : index
    %c0_114 = arith.constant 0 : index
    %510 = vector.load %arg8[%c56_113, %c0_114] : memref<64x128xbf16, #tpu.memory_space<vmem>>, vector<8x128xbf16>
    tpu.vector_store %arg8[%c56_113, %c0_114], %509 {strides = array<i32>} : memref<64x128xbf16, #tpu.memory_space<vmem>>, vector<8x128xbf16>,
    %c0_115 = arith.constant 0 : index
    %c0_116 = arith.constant 0 : index
    %511 = vector.load %arg12[%c0_115, %c0_116] : memref<8x128xf32, #tpu.memory_space<vmem>>, vector<8x128xf32>
    tpu.vector_store %arg12[%c0_115, %c0_116], %475 {strides = array<i32>} : memref<8x128xf32, #tpu.memory_space<vmem>>, vector<8x128xf32>,
    %c0_117 = arith.constant 0 : index
    %c0_118 = arith.constant 0 : index
    %512 = vector.load %arg13[%c0_117, %c0_118] : memref<8x128xf32, #tpu.memory_space<vmem>>, vector<8x128xf32>
    tpu.vector_store %arg13[%c0_117, %c0_118], %473 {strides = array<i32>} : memref<8x128xf32, #tpu.memory_space<vmem>>, vector<8x128xf32>,
    %c0_119 = arith.constant 0 : index
    %c0_120 = arith.constant 0 : index
    %513 = vector.load %arg14[%c0_119, %c0_120] : memref<8x128xf32, #tpu.memory_space<vmem>>, vector<8x128xf32>
    tpu.vector_store %arg14[%c0_119, %c0_120], %508 {strides = array<i32>} : memref<8x128xf32, #tpu.memory_space<vmem>>, vector<8x128xf32>,
    %c0_121 = arith.constant 0 : index
    %c0_122 = arith.constant 0 : index
    %514 = vector.load %arg15[%c0_121, %c0_122] : memref<8x128xf32, #tpu.memory_space<vmem>>, vector<8x128xf32>
    tpu.vector_store %arg15[%c0_121, %c0_122], %506 {strides = array<i32>} : memref<8x128xf32, #tpu.memory_space<vmem>>, vector<8x128xf32>,
    %c0_123 = arith.constant 0 : index
    %c0_124 = arith.constant 0 : index
    %515 = vector.load %arg16[%c0_123, %c0_124] : memref<8x512xf32, #tpu.memory_space<vmem>>, vector<8x512xf32>
    tpu.vector_store %arg16[%c0_123, %c0_124], %480 {strides = array<i32>} : memref<8x512xf32, #tpu.memory_space<vmem>>, vector<8x512xf32>,
    %c0_i32_125 = arith.constant 0 : i32
    %516 = arith.cmpi eq, %arg0, %c0_i32_125 : i32
    %517 = arith.extui %516 : i1 to i32
    %c0_i32_126 = arith.constant 0 : i32
    %518 = arith.cmpi ne, %517, %c0_i32_126 : i32
    scf.if %518 {
      %c0_127 = arith.constant 0 : index
      %c0_128 = arith.constant 0 : index
      %c0_129 = arith.constant 0 : index
      %519 = vector.load %arg9[%c0_127, %c0_128, %c0_129] : memref<2x8x128xf32, #tpu.memory_space<vmem>>, vector<1x8x128xf32>
      %520 = vector.shape_cast %519 : vector<1x8x128xf32> to vector<8x128xf32>
      %521 = vector.shape_cast %475 : vector<8x128xf32> to vector<1x8x128xf32>
      tpu.vector_store %arg9[%c0_127, %c0_128, %c0_129], %521 {strides = array<i32>} : memref<2x8x128xf32, #tpu.memory_space<vmem>>, vector<1x8x128xf32>,
      %c1 = arith.constant 1 : index
      %c0_130 = arith.constant 0 : index
      %c0_131 = arith.constant 0 : index
      %522 = vector.load %arg9[%c1, %c0_130, %c0_131] : memref<2x8x128xf32, #tpu.memory_space<vmem>>, vector<1x8x128xf32>
      %523 = vector.shape_cast %522 : vector<1x8x128xf32> to vector<8x128xf32>
      %524 = vector.shape_cast %508 : vector<8x128xf32> to vector<1x8x128xf32>
      tpu.vector_store %arg9[%c1, %c0_130, %c0_131], %524 {strides = array<i32>} : memref<2x8x128xf32, #tpu.memory_space<vmem>>, vector<1x8x128xf32>,
      %c0_132 = arith.constant 0 : index
      %c0_133 = arith.constant 0 : index
      %c0_134 = arith.constant 0 : index
      %525 = vector.load %arg10[%c0_132, %c0_133, %c0_134] : memref<2x8x128xf32, #tpu.memory_space<vmem>>, vector<1x8x128xf32>
      %526 = vector.shape_cast %525 : vector<1x8x128xf32> to vector<8x128xf32>
      %527 = vector.shape_cast %473 : vector<8x128xf32> to vector<1x8x128xf32>
      tpu.vector_store %arg10[%c0_132, %c0_133, %c0_134], %527 {strides = array<i32>} : memref<2x8x128xf32, #tpu.memory_space<vmem>>, vector<1x8x128xf32>,
      %c1_135 = arith.constant 1 : index
      %c0_136 = arith.constant 0 : index
      %c0_137 = arith.constant 0 : index
      %528 = vector.load %arg10[%c1_135, %c0_136, %c0_137] : memref<2x8x128xf32, #tpu.memory_space<vmem>>, vector<1x8x128xf32>
      %529 = vector.shape_cast %528 : vector<1x8x128xf32> to vector<8x128xf32>
      %530 = vector.shape_cast %506 : vector<8x128xf32> to vector<1x8x128xf32>
      tpu.vector_store %arg10[%c1_135, %c0_136, %c0_137], %530 {strides = array<i32>} : memref<2x8x128xf32, #tpu.memory_space<vmem>>, vector<1x8x128xf32>,
    } else {
    }
    return
  }
  func.func @transform_0(%arg0: i32) -> (i32, i32) {
    %c0_i32 = arith.constant 0 : i32
    %c0_i32_0 = arith.constant 0 : i32
    return %arg0, %c0_i32 : i32, i32
  }
  func.func @transform_1(%arg0: i32) -> (i32, i32) {
    %c0_i32 = arith.constant 0 : i32
    %c0_i32_0 = arith.constant 0 : i32
    %c0_i32_1 = arith.constant 0 : i32
    return %c0_i32, %c0_i32_0 : i32, i32
  }
  func.func @transform_2(%arg0: i32) -> (i32, i32) {
    %c0_i32 = arith.constant 0 : i32
    %c0_i32_0 = arith.constant 0 : i32
    %c0_i32_1 = arith.constant 0 : i32
    return %c0_i32, %c0_i32_0 : i32, i32
  }
  func.func @transform_3(%arg0: i32) -> (i32, i32) {
    %c0_i32 = arith.constant 0 : i32
    %c0_i32_0 = arith.constant 0 : i32
    %c0_i32_1 = arith.constant 0 : i32
    return %c0_i32, %c0_i32_0 : i32, i32
  }
  func.func @transform_4(%arg0: i32) -> (i32, i32) {
    %c0_i32 = arith.constant 0 : i32
    %c0_i32_0 = arith.constant 0 : i32
    %c0_i32_1 = arith.constant 0 : i32
    return %c0_i32, %c0_i32_0 : i32, i32
  }
  func.func @transform_5(%arg0: i32) -> (i32, i32, i32) {
    %c0_i32 = arith.constant 0 : i32
    %c0_i32_0 = arith.constant 0 : i32
    %c0_i32_1 = arith.constant 0 : i32
    %c0_i32_2 = arith.constant 0 : i32
    return %c0_i32, %c0_i32_0, %c0_i32_1 : i32, i32, i32
  }
  func.func @transform_6(%arg0: i32) -> (i32, i32, i32) {
    %c0_i32 = arith.constant 0 : i32
    %c0_i32_0 = arith.constant 0 : i32
    %c0_i32_1 = arith.constant 0 : i32
    %c0_i32_2 = arith.constant 0 : i32
    return %c0_i32, %c0_i32_0, %c0_i32_1 : i32, i32, i32
  }
  func.func @transform_7(%arg0: i32) -> (i32, i32) {
    %c0_i32 = arith.constant 0 : i32
    %c0_i32_0 = arith.constant 0 : i32
    return %arg0, %c0_i32 : i32, i32
  }
  func.func @transform_8(%arg0: i32) -> (i32, i32, i32) {
    %c0_i32 = arith.constant 0 : i32
    %c0_i32_0 = arith.constant 0 : i32
    %c0_i32_1 = arith.constant 0 : i32
    %c0_i32_2 = arith.constant 0 : i32
    return %c0_i32, %c0_i32_0, %c0_i32_1 : i32, i32, i32
  }
  func.func @transform_9(%arg0: i32) -> (i32, i32, i32) {
    %c0_i32 = arith.constant 0 : i32
    %c0_i32_0 = arith.constant 0 : i32
    %c0_i32_1 = arith.constant 0 : i32
    %c0_i32_2 = arith.constant 0 : i32
    return %c0_i32, %c0_i32_0, %c0_i32_1 : i32, i32, i32
  }
}

</mosaic_0001>

<bundles_post_ra>
// kernel: mylstm_forward.3
= control target key start
LH: loop header
LB: loop body
LE: loop exit
PB: predicated region body
PF: predicated region fallthrough
CT: control target
= control target key end

     0   :  { %v236_v0 = vmov 0.0   ;;  %vm237_vm0 = vmmov 0   ;;  %s291_s1 = inlined_call_operand.vmem [shape: bf16[128,128], index: 1, kind: input, shape index: {}]   ;;  %s292_s0 = inlined_call_operand.vmem [shape: bf16[16,128], index: 0, kind: input, shape index: {}]   ;;  %s293_s2 = inlined_call_operand.vmem [shape: f32[1,128], index: 2, kind: input, shape index: {}]   ;;  %s294_s3 = inlined_call_operand.vmem [shape: bf16[16,128], index: 3, kind: output, shape index: {}]  }
   0x1   :  { %197 = vmatprep.subr.bf16.mxu0 %v236_v0  ;;  %v219_v1 = vld [vmem:[%s291_s1] sm:$0xff]   ;;  %213 = vmatprep.mubr.msk.bf16.mxu0 %vm237_vm0, %v236_v0  ;;  %v220_v2 = vld [vmem:[%s291_s1 + $0x8] sm:$0xff]   ;;  %v221_v3 = vld [vmem:[%s291_s1 + $0x10] sm:$0xff]  }
   0x2   :  { %198 = vmatpush3.bf16.msra.mxu0 %v219_v1  ;;  %v222_v4 = vld [vmem:[%s291_s1 + $0x18] sm:$0xff]   ;;  %v223_v5 = vld [vmem:[%s291_s1 + $0x20] sm:$0xff]   ;;  %v224_v6 = vld [vmem:[%s291_s1 + $0x28] sm:$0xff]  }
   0x3   :  { %199 = vmatprep.subr.bf16.mxu0 %v236_v0  ;;  %v225_v7 = vld [vmem:[%s291_s1 + $0x30] sm:$0xff]   ;;  %v226_v8 = vld [vmem:[%s291_s1 + $0x38] sm:$0xff]   ;;  %v227_v9 = vld [vmem:[%s292_s0] sm:$0xff]  }
   0x4   :  { %v169_v10 = vld [vmem:[%s293_s2] ss:$0 sm:$0xff] }
   0x6   :  { %200 = vmatpush3.bf16.msra.mxu0 %v220_v2 }
   0x7   :  { %201 = vmatprep.subr.bf16.mxu0 %v236_v0 }
   0xa   :  { %202 = vmatpush3.bf16.msra.mxu0 %v221_v3 }
   0xb   :  { %203 = vmatprep.subr.bf16.mxu0 %v236_v0 }
   0xe   :  { %204 = vmatpush3.bf16.msra.mxu0 %v222_v4 }
   0xf   :  { %205 = vmatprep.subr.bf16.mxu0 %v236_v0 }
  0x12   :  { %206 = vmatpush3.bf16.msra.mxu0 %v223_v5 }
  0x13   :  { %207 = vmatprep.subr.bf16.mxu0 %v236_v0 }
  0x16   :  { %208 = vmatpush3.bf16.msra.mxu0 %v224_v6 }
  0x17   :  { %209 = vmatprep.subr.bf16.mxu0 %v236_v0 }
  0x1a   :  { %210 = vmatpush3.bf16.msra.mxu0 %v225_v7 }
  0x1b   :  { %211 = vmatprep.subr.bf16.mxu0 %v236_v0 }
  0x1e   :  { %212 = vmatpush3.bf16.msra.mxu0 %v226_v8 }
  0x21   :  { %214 = vmatmul.mubr.bf16.vlgmr.msra.gmra.mrb[0].mxu0 %v227_v9 }
  0xf4   :  { %v128_v11 = vpop.f32.mrb[0].mxu0 }
  0xf5   :  { %v129_v12 = vadd.f32 %v169_v10, %v128_v11  ;;  %v215_v13 = vpop.f32.mrb[1].mxu0 }
  0xf6   :  { %v131_v14 = vpop.f32.mrb[2].mxu0 }
  0xf7   :  { %135 = vmax.xlane.f32.xlu0 %v129_v12  ;;  %v216_v15 = vpop.f32.mrb[3].mxu0  ;;  %v132_v16 = vadd.f32 %v169_v10, %v131_v14 }
  0xfb   :  { %137 = vmax.xlane.f32.xlu0 %v132_v16 }
 0x184   :  { %v136_v17 = vpop.xlane.xlu0 %135 }
 0x185   :  { %v139_v18 = vsub.f32 %v129_v12, %v136_v17 }
 0x187   :  { %v141_v19 = vmul.f32 1.442695, %v139_v18 }
 0x188   :  { %v138_v20 = vpop.xlane.xlu0 %137 }
 0x189   :  { %v140_v21 = vsub.f32 %v132_v16, %v138_v20  ;;  %228 = vpow2.f32 %v141_v19 }
 0x18b   :  { %v143_v22 = vmul.f32 1.442695, %v140_v21 }
 0x18d   :  { %230 = vpow2.f32 %v143_v22 }
 0x193   :  { %v229_v23 = vpop.eup %228 }
 0x194   :  { %145 = vadd.xlane.f32.xlu1 %v229_v23 }
 0x197   :  { %v231_v24 = vpop.eup %230 }
 0x198   :  { %147 = vadd.xlane.f32.xlu1 %v231_v24 }
 0x221   :  { %v146_v25 = vpop.xlane.xlu1 %145 }
 0x222   :  { %232 = vlog2.f32 %v146_v25 }
 0x225   :  { %v148_v26 = vpop.xlane.xlu1 %147 }
 0x226   :  { %234 = vlog2.f32 %v148_v26 }
 0x22c   :  { %v233_v27 = vpop.eup %232 }
 0x22d   :  { %v150_v28 = vmul.f32 0.6931472, %v233_v27 }
 0x22f   :  { %v153_v31 = vsub.f32 %v139_v18, %v150_v28 }
 0x230   :  { %v235_v29 = vpop.eup %234 }
 0x231   :  { %v152_v30 = vmul.f32 0.6931472, %v235_v29 }
 0x233   :  { %v154_v32 = vsub.f32 %v140_v21, %v152_v30 }
 0x235   :  { %v186_v33 = vpack.c.bf16 %v154_v32, %v153_v31 }
 0x237   :  { %187 = vst [vmem:[%s294_s3] sm:$0xff] %v186_v33  }

// kernel: mylstm_forward.2
= control target key start
LH: loop header
LB: loop body
LE: loop exit
PB: predicated region body
PF: predicated region fallthrough
CT: control target
= control target key end

     0   :  { %15 = vsyncpa [#allocation9], 0  ;;  %s10302_s30 = smov [#allocation8]   ;;  %s12820_s0 = inlined_call_operand.vmem [shape: bf16[64,32], index: 0, kind: input, shape index: {}]   ;;  %s12821_s1 = inlined_call_operand.vmem [shape: bf16[32,512], index: 1, kind: input, shape index: {}]   ;;  %s12822_s2 = inlined_call_operand.vmem [shape: f32[1,512], index: 2, kind: input, shape index: {}]   ;;  %s12823_s3 = inlined_call_operand.hbm [shape: bf16[256,1024], index: 3, kind: input, shape index: {}]   ;;  %s12824_s4 = inlined_call_operand.vmem [shape: f32[1,512], index: 4, kind: input, shape index: {}]   ;;  %s12825_s5 = inlined_call_operand.vmem [shape: f32[2,8,128], index: 5, kind: input, shape index: {}]   ;;  %s12826_s6 = inlined_call_operand.vmem [shape: f32[2,8,128], index: 6, kind: input, shape index: {}]   ;;  %s12827_s7 = inlined_call_operand.vmem [shape: bf16[64,128], index: 7, kind: output, shape index: {0}]   ;;  %s12828_s8 = inlined_call_operand.vmem [shape: f32[2,8,128], index: 8, kind: output, shape index: {1}]   ;;  %s12829_s9 = inlined_call_operand.vmem [shape: f32[2,8,128], index: 9, kind: output, shape index: {2}]  }
   0x1   :  { %s27_s10 = sshll.u32 %s10302_s30, 4  ;;  %s10278_s13 = scalar_lea.hbm %s12823_s3, 16384  ;;  %s28_s10 = int_to_ptr.vmem [resolvable:$true] %s27_s10 }
   0x2   :  { %p10279_p0 = scmp.ne.s32.totalorder %s12823_s3, %s10278_s13  ;;  %p10282_p1 = scmp.lt.u32.totalorder %s10278_s13, %s12823_s3 }
   0x4   :  { %p10284_p2 = pnand %p10282_p1, %p10279_p0 }
   0x6   :  { %10287 = shalt.err (!%p10284_p2)
}
   0x7   :  { %s10288_s18 = scalar_lea.vmem %s28_s10, 16384  ;;  %p10293_p4 = scmp.lt.s32.totalorder %s28_s10, %s28_s10 }
   0x8   :  { %p10289_p3 = scmp.ne.s32.totalorder %s28_s10, %s10288_s18  ;;  %p10294_p5 = scmp.lt.s32.totalorder %s10288_s18, %s10288_s18 }
   0xa   :  { %p10295_p6 = por %p10294_p5, %p10293_p4 }
   0xc   :  { %p10296_p7 = pnand %p10295_p6, %p10289_p3 }
   0xe   :  { %10299 = shalt.err (!%p10296_p7)
}
   0xf   :  { %s10303_s19 = smov 512   ;;  %s10304_s20 = smov 32  }
  0x10   :  { %33 = dma.hbm_to_vmem [thread:$0]  %s12823_s3, 16384, %s28_s10, [#allocation9], %s10303_s19, %s10303_s19, %s10304_s20  }
  0x11   :  { %10300 = dma.done.wait [#allocation9], 16384  }
  0x12   :  { %10301 = vsyncadd [#allocation9], 4294950912  ;;  %v62_v0 = vld [vmem:[#allocation8] sm:$0xff]  ;;  %v63_v6 = vld [vmem:[#allocation8 + $0x8] sm:$0xff]  ;;  %vm630_vm0 = vcmask 261120  }
  0x13   :  { %v64_v1 = vld [vmem:[#allocation8 + $0x20] sm:$0xff]  ;;  %v65_v7 = vld [vmem:[#allocation8 + $0x28] sm:$0xff] }
  0x14   :  { %v66_v2 = vld [vmem:[#allocation8 + $0x40] sm:$0xff]  ;;  %v10368_v3 = vcombine.high %v62_v0, %v64_v1  ;;  %v10370_v4 = vcombine.low %v62_v0, %v64_v1  ;;  %v10374_v9 = vcombine.high %v63_v6, %v65_v7  ;;  %v10376_v10 = vcombine.low %v63_v6, %v65_v7  ;;  %v67_v13 = vld [vmem:[#allocation8 + $0x48] sm:$0xff] }
  0x15   :  { %v68_v5 = vld [vmem:[#allocation8 + $0x60] sm:$0xff]  ;;  %v69_v14 = vld [vmem:[#allocation8 + $0x68] sm:$0xff] }
  0x16   :  { %v10372_v8 = vcombine.high %v66_v2, %v68_v5  ;;  %v70_v11 = vld [vmem:[#allocation8 + $0x80] sm:$0xff]  ;;  %446 = vmatprep.subr.bf16.mxu0 %v10368_v3  ;;  %v10380_v15 = vcombine.low %v66_v2, %v68_v5  ;;  %487 = vmatprep.subr.bf16.mxu1 %v10374_v9  ;;  %v10383_v16 = vcombine.high %v67_v13, %v69_v14  ;;  %v71_v17 = vld [vmem:[#allocation8 + $0x88] sm:$0xff] }
  0x17   :  { %v72_v12 = vld [vmem:[#allocation8 + $0xa0] sm:$0xff]  ;;  %447 = vmatpush1.bf16.msra.mxu0 %v10370_v4  ;;  %v73_v18 = vld [vmem:[#allocation8 + $0xa8] sm:$0xff]  ;;  %488 = vmatpush1.bf16.msra.mxu1 %v10376_v10  ;;  %v10389_v20 = vcombine.low %v67_v13, %v69_v14 }
  0x18   :  { %448 = vmatprep.subr.bf16.mxu0 %v10372_v8  ;;  %v10387_v19 = vcombine.high %v70_v11, %v72_v12  ;;  %489 = vmatprep.subr.bf16.mxu1 %v10383_v16  ;;  %v74_v21 = vld [vmem:[#allocation8 + $0xc0] sm:$0xff]  ;;  %v10392_v23 = vcombine.high %v71_v17, %v73_v18  ;;  %v75_v24 = vld [vmem:[#allocation8 + $0xc8] sm:$0xff]  ;;  %v10395_v26 = vcombine.low %v70_v11, %v72_v12 }
  0x19   :  { %v76_v22 = vld [vmem:[#allocation8 + $0xe0] sm:$0xff]  ;;  %v77_v25 = vld [vmem:[#allocation8 + $0xe8] sm:$0xff]  ;;  %v10401_v28 = vcombine.low %v71_v17, %v73_v18 }
  0x1a   :  { %v10399_v27 = vcombine.high %v74_v21, %v76_v22  ;;  %v78_v29 = vld [vmem:[#allocation8 + $0x100] sm:$0xff]  ;;  %v10404_v31 = vcombine.high %v75_v24, %v77_v25  ;;  %v79_v32 = vld [vmem:[#allocation8 + $0x108] sm:$0xff]  ;;  %v10407_v34 = vcombine.low %v74_v21, %v76_v22  ;;  %v10413_v36 = vcombine.low %v75_v24, %v77_v25 }
  0x1b   :  { %449 = vmatpush1.bf16.msra.mxu0 %v10380_v15  ;;  %490 = vmatpush1.bf16.msra.mxu1 %v10389_v20  ;;  %v80_v30 = vld [vmem:[#allocation8 + $0x120] sm:$0xff]  ;;  %v81_v33 = vld [vmem:[#allocation8 + $0x128] sm:$0xff] }
  0x1c   :  { %450 = vmatprep.subr.bf16.mxu0 %v10387_v19  ;;  %491 = vmatprep.subr.bf16.mxu1 %v10392_v23  ;;  %v10411_v35 = vcombine.high %v78_v29, %v80_v30  ;;  %v82_v37 = vld [vmem:[#allocation8 + $0x140] sm:$0xff]  ;;  %v10416_v39 = vcombine.high %v79_v32, %v81_v33  ;;  %v83_v40 = vld [vmem:[#allocation8 + $0x148] sm:$0xff]  ;;  %v10419_v42 = vcombine.low %v78_v29, %v80_v30 }
  0x1d   :  { %v84_v38 = vld [vmem:[#allocation8 + $0x160] sm:$0xff]  ;;  %v85_v41 = vld [vmem:[#allocation8 + $0x168] sm:$0xff]  ;;  %v10425_v44 = vcombine.low %v79_v32, %v81_v33 }
  0x1e   :  { %v10423_v43 = vcombine.high %v82_v37, %v84_v38  ;;  %v86_v45 = vld [vmem:[#allocation8 + $0x180] sm:$0xff]  ;;  %v10428_v47 = vcombine.high %v83_v40, %v85_v41  ;;  %v87_v48 = vld [vmem:[#allocation8 + $0x188] sm:$0xff]  ;;  %v10431_v50 = vcombine.low %v82_v37, %v84_v38  ;;  %v10440_v53 = vcombine.low %v83_v40, %v85_v41 }
  0x1f   :  { %451 = vmatpush1.bf16.msra.mxu0 %v10395_v26  ;;  %492 = vmatpush1.bf16.msra.mxu1 %v10401_v28  ;;  %v88_v46 = vld [vmem:[#allocation8 + $0x1a0] sm:$0xff]  ;;  %v89_v49 = vld [vmem:[#allocation8 + $0x1a8] sm:$0xff] }
  0x20   :  { %452 = vmatprep.subr.bf16.mxu0 %v10399_v27  ;;  %493 = vmatprep.subr.bf16.mxu1 %v10404_v31  ;;  %v8843_v51 = vld [vmem:[%s12825_s5 + $0x8] sm:$0xff]  ;;  %v10438_v52 = vcombine.high %v86_v45, %v88_v46  ;;  %v90_v55 = vld [vmem:[#allocation8 + $0x1c0] sm:$0xff]  ;;  %v10445_v57 = vcombine.high %v87_v48, %v89_v49  ;;  %v10450_v60 = vcombine.low %v86_v45, %v88_v46 }
  0x21   :  { %v10442_v54 = vpack.c.bf16 %v8843_v51, %v8843_v51  ;;  %v92_v56 = vld [vmem:[#allocation8 + $0x1e0] sm:$0xff]  ;;  %v91_v58 = vld [vmem:[#allocation8 + $0x1c8] sm:$0xff]  ;;  %v10456_v62 = vcombine.low %v87_v48, %v89_v49 }
  0x22   :  { %v93_v59 = vld [vmem:[#allocation8 + $0x1e8] sm:$0xff]  ;;  %v10454_v61 = vcombine.high %v90_v55, %v92_v56  ;;  %v94_v63 = vld [vmem:[#allocation8 + $0x200] sm:$0xff]  ;;  %v10462_v6 = vcombine.low %v90_v55, %v92_v56 }
  0x23   :  { %453 = vmatpush1.bf16.msra.mxu0 %v10407_v34  ;;  %494 = vmatpush1.bf16.msra.mxu1 %v10413_v36  ;;  %13160 = vst [vmem:[#allocation11_spill] sm:$0xff] %v10442_v54  ;;  %v96_v0 = vld [vmem:[#allocation8 + $0x220] sm:$0xff]  ;;  %v10459_v1 = vcombine.high %v91_v58, %v93_v59  ;;  %v95_v2 = vld [vmem:[#allocation8 + $0x208] sm:$0xff]  ;;  %v10468_v11 = vcombine.low %v91_v58, %v93_v59 }
  0x24   :  { %454 = vmatprep.subr.bf16.mxu0 %v10411_v35  ;;  %495 = vmatprep.subr.bf16.mxu1 %v10416_v39  ;;  %v97_v5 = vld [vmem:[#allocation8 + $0x228] sm:$0xff]  ;;  %v10466_v7 = vcombine.high %v94_v63, %v96_v0  ;;  %v98_v12 = vld [vmem:[#allocation8 + $0x240] sm:$0xff]  ;;  %v10474_v21 = vcombine.low %v94_v63, %v96_v0 }
  0x25   :  { %478 = vmatprep.mubr.bf16.mxu0 %v10442_v54  ;;  %519 = vmatprep.mubr.bf16.mxu1 %v10442_v54  ;;  %v100_v13 = vld [vmem:[#allocation8 + $0x260] sm:$0xff]  ;;  %v10471_v14 = vcombine.high %v95_v2, %v97_v5  ;;  %v99_v17 = vld [vmem:[#allocation8 + $0x248] sm:$0xff]  ;;  %v10480_v24 = vcombine.low %v95_v2, %v97_v5 }
  0x26   :  { %v101_v18 = vld [vmem:[#allocation8 + $0x268] sm:$0xff]  ;;  %v10478_v22 = vcombine.high %v98_v12, %v100_v13  ;;  %v102_v25 = vld [vmem:[#allocation8 + $0x280] sm:$0xff]  ;;  %v10486_v37 = vcombine.low %v98_v12, %v100_v13 }
  0x27   :  { %455 = vmatpush1.bf16.msra.mxu0 %v10419_v42  ;;  %496 = vmatpush1.bf16.msra.mxu1 %v10425_v44  ;;  %v104_v29 = vld [vmem:[#allocation8 + $0x2a0] sm:$0xff]  ;;  %v10483_v30 = vcombine.high %v99_v17, %v101_v18  ;;  %v103_v32 = vld [vmem:[#allocation8 + $0x288] sm:$0xff]  ;;  %v10492_v40 = vcombine.low %v99_v17, %v101_v18 }
  0x28   :  { %456 = vmatprep.subr.bf16.mxu0 %v10423_v43  ;;  %497 = vmatprep.subr.bf16.mxu1 %v10428_v47  ;;  %v105_v33 = vld [vmem:[#allocation8 + $0x2a8] sm:$0xff]  ;;  %v10490_v38 = vcombine.high %v102_v25, %v104_v29  ;;  %v106_v41 = vld [vmem:[#allocation8 + $0x2c0] sm:$0xff]  ;;  %v10498_v51 = vcombine.low %v102_v25, %v104_v29 }
  0x29   :  { %v108_v45 = vld [vmem:[#allocation8 + $0x2e0] sm:$0xff]  ;;  %v10495_v46 = vcombine.high %v103_v32, %v105_v33  ;;  %v107_v48 = vld [vmem:[#allocation8 + $0x2c8] sm:$0xff]  ;;  %v10504_v56 = vcombine.low %v103_v32, %v105_v33 }
  0x2a   :  { %v109_v49 = vld [vmem:[#allocation8 + $0x2e8] sm:$0xff]  ;;  %v10502_v55 = vcombine.high %v106_v41, %v108_v45  ;;  %v110_v58 = vld [vmem:[#allocation8 + $0x300] sm:$0xff]  ;;  %v10510_v5 = vcombine.low %v106_v41, %v108_v45 }
  0x2b   :  { %457 = vmatpush1.bf16.msra.mxu0 %v10431_v50  ;;  %498 = vmatpush1.bf16.msra.mxu1 %v10440_v53  ;;  %v112_v59 = vld [vmem:[#allocation8 + $0x320] sm:$0xff]  ;;  %v10507_v63 = vcombine.high %v107_v48, %v109_v49  ;;  %v111_v0 = vld [vmem:[#allocation8 + $0x308] sm:$0xff]  ;;  %v10516_v13 = vcombine.low %v107_v48, %v109_v49 }
  0x2c   :  { %458 = vmatprep.subr.bf16.mxu0 %v10438_v52  ;;  %499 = vmatprep.subr.bf16.mxu1 %v10445_v57  ;;  %13161 = vst [vmem:[#allocation12_spill] sm:$0xff] %v10502_v55  ;;  %v113_v2 = vld [vmem:[#allocation8 + $0x328] sm:$0xff]  ;;  %13163 = vst [vmem:[#allocation14_spill] sm:$0xff] %v10510_v5  ;;  %v10514_v12 = vcombine.high %v110_v58, %v112_v59  ;;  %v114_v17 = vld [vmem:[#allocation8 + $0x340] sm:$0xff]  ;;  %v10522_v33 = vcombine.low %v110_v58, %v112_v59 }
  0x2d   :  { %13162 = vst [vmem:[#allocation13_spill] sm:$0xff] %v10507_v63  ;;  %13165 = vst [vmem:[#allocation16_spill] sm:$0xff] %v10516_v13  ;;  %v116_v18 = vld [vmem:[#allocation8 + $0x360] sm:$0xff]  ;;  %v10519_v25 = vcombine.high %v111_v0, %v113_v2  ;;  %v115_v29 = vld [vmem:[#allocation8 + $0x348] sm:$0xff]  ;;  %v10528_v45 = vcombine.low %v111_v0, %v113_v2 }
  0x2e   :  { %13164 = vst [vmem:[#allocation15_spill] sm:$0xff] %v10514_v12  ;;  %v117_v32 = vld [vmem:[#allocation8 + $0x368] sm:$0xff]  ;;  %v10526_v41 = vcombine.high %v114_v17, %v116_v18  ;;  %v118_v48 = vld [vmem:[#allocation8 + $0x380] sm:$0xff]  ;;  %v10534_v58 = vcombine.low %v114_v17, %v116_v18 }
  0x2f   :  { %459 = vmatpush1.bf16.msra.mxu0 %v10450_v60  ;;  %500 = vmatpush1.bf16.msra.mxu1 %v10456_v62  ;;  %13166 = vst [vmem:[#allocation17_spill] sm:$0xff] %v10519_v25  ;;  %v120_v49 = vld [vmem:[#allocation8 + $0x3a0] sm:$0xff]  ;;  %v10531_v54 = vcombine.high %v115_v29, %v117_v32  ;;  %v10540_v0 = vcombine.low %v115_v29, %v117_v32 }
  0x30   :  { %460 = vmatprep.subr.bf16.mxu0 %v10454_v61  ;;  %501 = vmatprep.subr.bf16.mxu1 %v10459_v1  ;;  %v10538_v59 = vcombine.high %v118_v48, %v120_v49  ;;  %v122_v2 = vld [vmem:[#allocation8 + $0x3c0] sm:$0xff]  ;;  %v10546_v17 = vcombine.low %v118_v48, %v120_v49 }
  0x31   :  { %13167 = vst [vmem:[#allocation18_spill] sm:$0xff] %v10531_v54  ;;  %v58_v48 = vld [vmem:[%s12825_s5] sm:$0xff] }
  0x32   :  { %v60_v49 = vpack.c.bf16 %v58_v48, %v58_v48  ;;  %v10018_v48 = vld [vmem:[%s12821_s1 + $0x2c] ss:$16 sps:$4 sm:$0xff]  }
  0x33   :  { %461 = vmatpush1.bf16.msra.mxu0 %v10462_v6  ;;  %502 = vmatpush1.bf16.msra.mxu1 %v10468_v11 }
  0x34   :  { %462 = vmatprep.subr.bf16.mxu0 %v10466_v7  ;;  %503 = vmatprep.subr.bf16.mxu1 %v10471_v14 }
  0x37   :  { %463 = vmatpush1.bf16.msra.mxu0 %v10474_v21  ;;  %504 = vmatpush1.bf16.msra.mxu1 %v10480_v24 }
  0x38   :  { %464 = vmatprep.subr.bf16.mxu0 %v10478_v22  ;;  %505 = vmatprep.subr.bf16.mxu1 %v10483_v30 }
  0x3b   :  { %465 = vmatpush1.bf16.msra.mxu0 %v10486_v37  ;;  %506 = vmatpush1.bf16.msra.mxu1 %v10492_v40 }
  0x3c   :  { %466 = vmatprep.subr.bf16.mxu0 %v10490_v38  ;;  %507 = vmatprep.subr.bf16.mxu1 %v10495_v46 }
  0x3f   :  { %467 = vmatpush1.bf16.msra.mxu0 %v10498_v51  ;;  %508 = vmatpush1.bf16.msra.mxu1 %v10504_v56 }
  0x40   :  { %468 = vmatprep.subr.bf16.mxu0 %v10502_v55  ;;  %509 = vmatprep.subr.bf16.mxu1 %v10507_v63  ;;  %v119_v63 = vld [vmem:[#allocation8 + $0x388] sm:$0xff] }
  0x41   :  { %v121_v55 = vld [vmem:[#allocation8 + $0x3a8] sm:$0xff] }
  0x42   :  { %v10552_v29 = vcombine.low %v119_v63, %v121_v55 }
  0x43   :  { %469 = vmatpush1.bf16.msra.mxu0 %v10510_v5  ;;  %510 = vmatpush1.bf16.msra.mxu1 %v10516_v13  ;;  %v123_v13 = vld [vmem:[#allocation8 + $0x3c8] sm:$0xff] }
  0x44   :  { %470 = vmatprep.subr.bf16.mxu0 %v10514_v12  ;;  %511 = vmatprep.subr.bf16.mxu1 %v10519_v25  ;;  %v124_v25 = vld [vmem:[#allocation8 + $0x3e0] sm:$0xff]  ;;  %v10543_v12 = vcombine.high %v119_v63, %v121_v55  ;;  %v125_v5 = vld [vmem:[#allocation8 + $0x3e8] sm:$0xff] }
  0x45   :  { %v10550_v18 = vcombine.high %v122_v2, %v124_v25  ;;  %v10555_v32 = vcombine.high %v123_v13, %v125_v5  ;;  %v10008_v55 = vld [vmem:[%s12821_s1 + $0x4] ss:$16 sps:$4 sm:$0xff]   ;;  %v10568_v63 = vcombine.low %v123_v13, %v125_v5  ;;  %v10012_v13 = vld [vmem:[%s12821_s1 + $0x8] ss:$16 sps:$4 sm:$0xff]  }
  0x46   :  { %v10011_v5 = vld [vmem:[%s12821_s1 + $0x24] ss:$16 sps:$4 sm:$0xff]  }
  0x47   :  { %471 = vmatpush1.bf16.msra.mxu0 %v10522_v33  ;;  %512 = vmatpush1.bf16.msra.mxu1 %v10528_v45  ;;  %13169 = vst [vmem:[#allocation20_spill] sm:$0xff] %v10568_v63 }
  0x48   :  { %472 = vmatprep.subr.bf16.mxu0 %v10526_v41  ;;  %513 = vmatprep.subr.bf16.mxu1 %v10531_v54  ;;  %v10558_v54 = vcombine.low %v122_v2, %v124_v25  ;;  %v10014_v25 = vld [vmem:[%s12821_s1 + $0xc] ss:$16 sps:$4 sm:$0xff]   ;;  %v10006_v2 = vld [vmem:[%s12821_s1] ss:$16 sps:$4 sm:$0xff]  }
  0x4a   :  { %13168 = vst [vmem:[#allocation19_spill] sm:$0xff] %v10558_v54 }
  0x4b   :  { %473 = vmatpush1.bf16.msra.mxu0 %v10534_v58  ;;  %514 = vmatpush1.bf16.msra.mxu1 %v10540_v0 }
  0x4c   :  { %474 = vmatprep.subr.bf16.mxu0 %v10538_v59  ;;  %515 = vmatprep.subr.bf16.mxu1 %v10543_v12 }
  0x4f   :  { %475 = vmatpush1.bf16.msra.mxu0 %v10546_v17  ;;  %516 = vmatpush1.bf16.msra.mxu1 %v10552_v29 }
  0x50   :  { %476 = vmatprep.subr.bf16.mxu0 %v10550_v18  ;;  %517 = vmatprep.subr.bf16.mxu1 %v10555_v32 }
  0x53   :  { %477 = vmatpush1.bf16.msra.mxu0 %v10558_v54  ;;  %518 = vmatpush1.bf16.msra.mxu1 %v10568_v63  ;;  %v10016_v63 = vld [vmem:[%s12821_s1 + $0x28] ss:$16 sps:$4 sm:$0xff]   ;;  %v10305_v54 = vmov 0  }
  0x54   :  { %643 = vmatprep.subr.bf16.mxu0 %v10008_v55  ;;  %716 = vmatprep.subr.bf16.mxu1 %v10014_v25  ;;  %v10009_v55 = vld [vmem:[%s12821_s1 + $0x20] ss:$16 sps:$4 sm:$0xff]  }
  0x55   :  { %v10015_v25 = vld [vmem:[%s12820_s0] sm:$0xff]  }
  0x56   :  { %479 = vmatmul.mubr.bf16.vlgmr.msra.gmra.mrb[0].mxu0 %v60_v49  ;;  %520 = vmatmul.mubr.bf16.vlgmr.msra.gmra.mrb[0].mxu1 %v60_v49 }
  0x57   :  { %644 = vmatpush1.bf16.msra.mxu0 %v10006_v2  ;;  %717 = vmatpush1.bf16.msra.mxu1 %v10012_v13 }
  0x58   :  { %645 = vmatprep.subr.bf16.mxu0 %v10011_v5  ;;  %675 = vmatprep.mubr.bf16.mxu0 %v10305_v54 }
  0x59   :  { %718 = vmatprep.subr.bf16.mxu1 %v10018_v48  ;;  %748 = vmatprep.mubr.bf16.mxu1 %v10305_v54 }
  0x5b   :  { %646 = vmatpush1.bf16.msra.mxu0 %v10009_v55  ;;  %719 = vmatpush1.bf16.msra.mxu1 %v10016_v63 }
  0x5c   :  { %1631 = vmatprep.subr.bf16.mxu0 %v10368_v3  ;;  %1672 = vmatprep.subr.bf16.mxu1 %v10374_v9  ;;  %v13170_v3 = vld [vmem:[#allocation12_spill] sm:$0xff] }
  0x5d   :  { %v13173_v9 = vld [vmem:[#allocation16_spill] sm:$0xff] }
  0x5e   :  { %8920 = vmatmul.mubr.msk.bf16.vlgmr.msra.gmra.mrb[4].mxu0 %vm630_vm0, %v10015_v25  ;;  %8924 = vmatmul.mubr.msk.bf16.vlgmr.msra.gmra.mrb[4].mxu1 %vm630_vm0, %v10015_v25 }
  0x5f   :  { %1632 = vmatpush1.bf16.msra.mxu0 %v10370_v4  ;;  %1673 = vmatpush1.bf16.msra.mxu1 %v10376_v10  ;;  %v13171_v4 = vld [vmem:[#allocation13_spill] sm:$0xff]  ;;  %v13174_v10 = vld [vmem:[#allocation15_spill] sm:$0xff] }
  0x60   :  { %1633 = vmatprep.subr.bf16.mxu0 %v10372_v8  ;;  %1674 = vmatprep.subr.bf16.mxu1 %v10383_v16  ;;  %v13172_v8 = vld [vmem:[#allocation14_spill] sm:$0xff] }
  0x61   :  { %685 = vmatprep.mubr.bf16.mxu0 %v10305_v54  ;;  %758 = vmatprep.mubr.bf16.mxu1 %v10305_v54  ;;  %v13176_v16 = vld [vmem:[#allocation18_spill] sm:$0xff] }
  0x63   :  { %1634 = vmatpush1.bf16.msra.mxu0 %v10380_v15  ;;  %1675 = vmatpush1.bf16.msra.mxu1 %v10389_v20  ;;  %v13175_v15 = vld [vmem:[#allocation17_spill] sm:$0xff]  ;;  %v13178_v20 = vld [vmem:[#allocation20_spill] sm:$0xff] }
  0x64   :  { %1635 = vmatprep.subr.bf16.mxu0 %v10387_v19  ;;  %1676 = vmatprep.subr.bf16.mxu1 %v10392_v23  ;;  %v13177_v19 = vld [vmem:[#allocation19_spill] sm:$0xff]  ;;  %v10019_v23 = vld [vmem:[%s12820_s0 + $0x8] sm:$0xff]  }
  0x66   :  { %8921 = vmatmul.mubr.msk.bf16.gmra.mrb[8].mxu0 %vm630_vm0, %v10019_v23  ;;  %8925 = vmatmul.mubr.msk.bf16.gmra.mrb[8].mxu1 %vm630_vm0, %v10019_v23  ;;  %v873_v23 = vld [vmem:[#allocation8 + $0x50] sm:$0xff] }
  0x67   :  { %1636 = vmatpush1.bf16.msra.mxu0 %v10395_v26  ;;  %1677 = vmatpush1.bf16.msra.mxu1 %v10401_v28  ;;  %v10020_v26 = vld [vmem:[%s12820_s0 + $0x10] sm:$0xff]  }
  0x68   :  { %1637 = vmatprep.subr.bf16.mxu0 %v10399_v27  ;;  %1678 = vmatprep.subr.bf16.mxu1 %v10404_v31  ;;  %v10021_v27 = vld [vmem:[%s12820_s0 + $0x18] sm:$0xff]   ;;  %v865_v28 = vld [vmem:[#allocation8 + $0x10] sm:$0xff] }
  0x69   :  { %695 = vmatprep.mubr.bf16.mxu0 %v10305_v54  ;;  %768 = vmatprep.mubr.bf16.mxu1 %v10305_v54  ;;  %v869_v31 = vld [vmem:[#allocation8 + $0x30] sm:$0xff] }
  0x6b   :  { %1638 = vmatpush1.bf16.msra.mxu0 %v10407_v34  ;;  %1679 = vmatpush1.bf16.msra.mxu1 %v10413_v36  ;;  %v10684_v34 = vcombine.low %v865_v28, %v869_v31  ;;  %v866_v36 = vld [vmem:[#allocation8 + $0x18] sm:$0xff] }
  0x6c   :  { %1639 = vmatprep.subr.bf16.mxu0 %v10411_v35  ;;  %1680 = vmatprep.subr.bf16.mxu1 %v10416_v39  ;;  %v10686_v35 = vcombine.high %v865_v28, %v869_v31  ;;  %v870_v39 = vld [vmem:[#allocation8 + $0x38] sm:$0xff] }
  0x6d   :  { %v874_v28 = vld [vmem:[#allocation8 + $0x58] sm:$0xff] }
  0x6e   :  { %8922 = vmatmul.mubr.msk.bf16.gmra.mrb[12].mxu0 %vm630_vm0, %v10020_v26  ;;  %8926 = vmatmul.mubr.msk.bf16.gmra.mrb[12].mxu1 %vm630_vm0, %v10020_v26  ;;  %v878_v31 = vld [vmem:[#allocation8 + $0x78] sm:$0xff] }
  0x6f   :  { %1640 = vmatpush1.bf16.msra.mxu0 %v10419_v42  ;;  %1681 = vmatpush1.bf16.msra.mxu1 %v10425_v44  ;;  %v10688_v42 = vcombine.low %v866_v36, %v870_v39  ;;  %v13179_v44 = vld [vmem:[#allocation11_spill] sm:$0xff] }
  0x70   :  { %1641 = vmatprep.subr.bf16.mxu0 %v10423_v43  ;;  %1682 = vmatprep.subr.bf16.mxu1 %v10428_v47  ;;  %v10690_v43 = vcombine.high %v866_v36, %v870_v39  ;;  %v550_v47 = vlaneseq }
  0x71   :  { %705 = vmatprep.mubr.bf16.mxu0 %v10305_v54  ;;  %778 = vmatprep.mubr.bf16.mxu1 %v10305_v54 }
  0x73   :  { %1642 = vmatpush1.bf16.msra.mxu0 %v10431_v50  ;;  %1683 = vmatpush1.bf16.msra.mxu1 %v10440_v53  ;;  %v10698_v50 = vshrl.u32 %v550_v47, 7 }
  0x74   :  { %1643 = vmatprep.subr.bf16.mxu0 %v10438_v52  ;;  %1684 = vmatprep.subr.bf16.mxu1 %v10445_v57 }
  0x75   :  { %v12844_v54 = vsub.s32 0, %v10698_v50 }
  0x76   :  { %8923 = vmatmul.mubr.msk.bf16.gmra.mrb[16].mxu0 %vm630_vm0, %v10021_v27  ;;  %8927 = vmatmul.mubr.msk.bf16.gmra.mrb[16].mxu1 %vm630_vm0, %v10021_v27  ;;  %v877_v27 = vld [vmem:[#allocation8 + $0x70] sm:$0xff] }
  0x77   :  { %1644 = vmatpush1.bf16.msra.mxu0 %v10450_v60  ;;  %1685 = vmatpush1.bf16.msra.mxu1 %v10456_v62  ;;  %v12843_v62 = vsub.s32 1, %v10698_v50  ;;  %v10743_v47 = vcombine.high %v873_v23, %v877_v27 }
  0x78   :  { %1645 = vmatprep.subr.bf16.mxu0 %v10454_v61  ;;  %1686 = vmatprep.subr.bf16.mxu1 %v10459_v1  ;;  %v548_v61 = vld [vmem:[%s12822_s2] sm:$0xf] }
  0x79   :  { %1663 = vmatprep.mubr.bf16.mxu0 %v13179_v44  ;;  %1704 = vmatprep.mubr.bf16.mxu1 %v13179_v44 }
  0x7b   :  { %1646 = vmatpush1.bf16.msra.mxu0 %v10462_v6  ;;  %1687 = vmatpush1.bf16.msra.mxu1 %v10468_v11  ;;  %v12841_v6 = vsub.s32 2, %v10698_v50 }
  0x7c   :  { %1647 = vmatprep.subr.bf16.mxu0 %v10466_v7  ;;  %1688 = vmatprep.subr.bf16.mxu1 %v10471_v14  ;;  %v12842_v14 = vsub.s32 3, %v10698_v50 }
  0x7f   :  { %1648 = vmatpush1.bf16.msra.mxu0 %v10474_v21  ;;  %1689 = vmatpush1.bf16.msra.mxu1 %v10480_v24  ;;  %v10713_v24 = vrot.slane %v548_v61, %v12843_v62  ;;  %v957_v62 = vld [vmem:[#allocation8 + $0x2f0] sm:$0xff] }
  0x80   :  { %1649 = vmatprep.subr.bf16.mxu0 %v10478_v22  ;;  %1690 = vmatprep.subr.bf16.mxu1 %v10483_v30  ;;  %v10709_v22 = vrot.slane %v548_v61, %v12844_v54  ;;  %v10717_v30 = vrot.slane %v548_v61, %v12841_v6  ;;  %v950_v6 = vld [vmem:[#allocation8 + $0x2b8] sm:$0xff] }
  0x81   :  { %13181 = vst [vmem:[#allocation13_spill] sm:$0xff] %v10713_v24  ;;  %v954_v54 = vld [vmem:[#allocation8 + $0x2d8] sm:$0xff] }
  0x82   :  { %13180 = vst [vmem:[#allocation12_spill] sm:$0xff] %v10709_v22  ;;  %13182 = vst [vmem:[#allocation14_spill] sm:$0xff] %v10717_v30 }
  0x83   :  { %1650 = vmatpush1.bf16.msra.mxu0 %v10486_v37  ;;  %1691 = vmatpush1.bf16.msra.mxu1 %v10492_v40  ;;  %v10721_v37 = vrot.slane %v548_v61, %v12842_v14  ;;  %v886_v61 = vld [vmem:[#allocation8 + $0xb8] sm:$0xff]  ;;  %v953_v14 = vld [vmem:[#allocation8 + $0x2d0] sm:$0xff] }
  0x84   :  { %1651 = vmatprep.subr.bf16.mxu0 %v10490_v38  ;;  %1692 = vmatprep.subr.bf16.mxu1 %v10495_v46 }
  0x87   :  { %1652 = vmatpush1.bf16.msra.mxu0 %v10498_v51  ;;  %1693 = vmatpush1.bf16.msra.mxu1 %v10504_v56 }
  0x88   :  { %1653 = vmatprep.subr.bf16.mxu0 %v13170_v3  ;;  %1694 = vmatprep.subr.bf16.mxu1 %v13171_v4  ;;  %v50_v4 = vld [vmem:[%s12826_s6] sm:$0xff] }
  0x8b   :  { %1654 = vmatpush1.bf16.msra.mxu0 %v13172_v8  ;;  %1695 = vmatpush1.bf16.msra.mxu1 %v13173_v9 }
  0x8c   :  { %1655 = vmatprep.subr.bf16.mxu0 %v13174_v10  ;;  %1696 = vmatprep.subr.bf16.mxu1 %v13175_v15 }
  0x8f   :  { %1656 = vmatpush1.bf16.msra.mxu0 %v10522_v33  ;;  %1697 = vmatpush1.bf16.msra.mxu1 %v10528_v45 }
  0x90   :  { %1657 = vmatprep.subr.bf16.mxu0 %v10526_v41  ;;  %1698 = vmatprep.subr.bf16.mxu1 %v13176_v16 }
  0x93   :  { %1658 = vmatpush1.bf16.msra.mxu0 %v10534_v58  ;;  %1699 = vmatpush1.bf16.msra.mxu1 %v10540_v0 }
  0x94   :  { %1659 = vmatprep.subr.bf16.mxu0 %v10538_v59  ;;  %1700 = vmatprep.subr.bf16.mxu1 %v10543_v12 }
  0x97   :  { %1660 = vmatpush1.bf16.msra.mxu0 %v10546_v17  ;;  %1701 = vmatpush1.bf16.msra.mxu1 %v10552_v29 }
  0x98   :  { %1661 = vmatprep.subr.bf16.mxu0 %v10550_v18  ;;  %1702 = vmatprep.subr.bf16.mxu1 %v10555_v32 }
  0x9b   :  { %1662 = vmatpush1.bf16.msra.mxu0 %v13177_v19  ;;  %1703 = vmatpush1.bf16.msra.mxu1 %v13178_v20 }
  0x9c   :  { %1713 = vmatprep.subr.bf16.mxu0 %v10686_v35  ;;  %1754 = vmatprep.subr.bf16.mxu1 %v10690_v43 }
 0x129   :  { %v480_v52 = vpop.f32.mrb[0].mxu0  ;;  %v521_v57 = vpop.f32.mrb[0].mxu1 }
 0x12a   :  { %v482_v53 = vpop.f32.mrb[1].mxu0  ;;  %v523_v1 = vpop.f32.mrb[1].mxu1 }
 0x12b   :  { %v484_v60 = vpop.f32.mrb[2].mxu0  ;;  %v525_v11 = vpop.f32.mrb[2].mxu1 }
 0x12c   :  { %v485_v7 = vpop.f32.mrb[3].mxu0  ;;  %v526_v21 = vpop.f32.mrb[3].mxu1  ;;  %v882_v60 = vld [vmem:[#allocation8 + $0x98] sm:$0xff] }
 0x12d   :  { %v10753_v7 = vcombine.low %v874_v28, %v878_v31  ;;  %v10759_v21 = vcombine.high %v882_v60, %v886_v61 }
 0x131   :  { %v677_v38 = vpop.f32.mrb[4].mxu0  ;;  %v750_v51 = vpop.f32.mrb[4].mxu1 }
 0x132   :  { %v678_v40 = vadd.f32 %v677_v38, %v10709_v22  ;;  %v679_v46 = vpop.f32.mrb[5].mxu0  ;;  %v751_v33 = vadd.f32 %v750_v51, %v10717_v30  ;;  %v752_v41 = vpop.f32.mrb[5].mxu1  ;;  %v889_v38 = vld [vmem:[#allocation8 + $0xd0] sm:$0xff]  ;;  %v894_v51 = vld [vmem:[#allocation8 + $0xf8] sm:$0xff] }
 0x133   :  { %v680_v56 = vadd.f32 %v679_v46, %v10713_v24  ;;  %v10725_v12 = vpop.f32.mrb[6].mxu0  ;;  %v753_v59 = vadd.f32 %v752_v41, %v10721_v37  ;;  %v10731_v0 = vpop.f32.mrb[6].mxu1  ;;  %v890_v46 = vld [vmem:[#allocation8 + $0xd8] sm:$0xff] }
 0x134   :  { %v833_v45 = vadd.f32 %v678_v40, %v480_v52  ;;  %v10728_v58 = vpop.f32.mrb[7].mxu0  ;;  %v835_v18 = vadd.f32 %v751_v33, %v521_v57  ;;  %v10733_v29 = vpop.f32.mrb[7].mxu1  ;;  %v10745_v52 = vcombine.high %v874_v28, %v878_v31  ;;  %v885_v57 = vld [vmem:[#allocation8 + $0xb0] sm:$0xff]  ;;  %v10767_v33 = vcombine.low %v882_v60, %v886_v61 }
 0x135   :  { %v834_v17 = vadd.f32 %v680_v56, %v482_v53  ;;  %v836_v63 = vadd.f32 %v753_v59, %v523_v1  ;;  %v881_v53 = vld [vmem:[#allocation8 + $0x90] sm:$0xff]  ;;  %v10751_v1 = vcombine.low %v873_v23, %v877_v27 }
 0x136   :  { %v8928_v32 = vmul.f32 -1.442695, %v833_v45  ;;  %v10757_v11 = vcombine.high %v881_v53, %v885_v57  ;;  %v893_v40 = vld [vmem:[#allocation8 + $0xf0] sm:$0xff]  ;;  %v10765_v56 = vcombine.low %v881_v53, %v885_v57  ;;  %v10773_v45 = vcombine.high %v890_v46, %v894_v51  ;;  %v926_v53 = vld [vmem:[#allocation8 + $0x1f8] sm:$0xff] }
 0x137   :  { %v8929_v49 = vmul.f32 -1.442695, %v834_v17  ;;  %v8930_v2 = vmul.f32 -1.442695, %v836_v63  ;;  %v10771_v41 = vcombine.high %v889_v38, %v893_v40  ;;  %v897_v59 = vld [vmem:[#allocation8 + $0x110] sm:$0xff]  ;;  %v10779_v63 = vcombine.low %v890_v46, %v894_v51  ;;  %v930_v51 = vld [vmem:[#allocation8 + $0x218] sm:$0xff] }
 0x138   :  { %10022 = vpow2.f32 %v8928_v32  ;;  %v901_v17 = vld [vmem:[#allocation8 + $0x130] sm:$0xff]  ;;  %v10777_v32 = vcombine.low %v889_v38, %v893_v40 }
 0x139   :  { %10024 = vpow2.f32 %v8929_v49  ;;  %v10783_v49 = vcombine.high %v897_v59, %v901_v17  ;;  %v921_v28 = vld [vmem:[#allocation8 + $0x1d0] sm:$0xff] }
 0x13a   :  { %10026 = vpow2.f32 %v8930_v2  ;;  %v925_v31 = vld [vmem:[#allocation8 + $0x1f0] sm:$0xff] }
 0x13b   :  { %10028 = vtanh.f32 %v835_v18  ;;  %v898_v18 = vld [vmem:[#allocation8 + $0x118] sm:$0xff]  ;;  %v10819_v61 = vcombine.high %v921_v28, %v925_v31  ;;  %v929_v40 = vld [vmem:[#allocation8 + $0x210] sm:$0xff] }
 0x13c   :  { %v933_v46 = vld [vmem:[#allocation8 + $0x230] sm:$0xff] }
 0x142   :  { %v10023_v5 = vpop.eup %10022 }
 0x143   :  { %v10025_v13 = vpop.eup %10024  ;;  %v840_v48 = vadd.f32 1.0, %v10023_v5  ;;  %v905_v5 = vld [vmem:[#allocation8 + $0x150] sm:$0xff] }
 0x144   :  { %v846_v55 = vadd.f32 1.0, %v10025_v13  ;;  %v10027_v25 = vpop.eup %10026  ;;  %v909_v13 = vld [vmem:[#allocation8 + $0x170] sm:$0xff] }
 0x145   :  { %10030 = vrcp.f32 %v840_v48  ;;  %v10029_v3 = vpop.eup %10028  ;;  %v853_v15 = vadd.f32 1.0, %v10027_v25  ;;  %v906_v48 = vld [vmem:[#allocation8 + $0x158] sm:$0xff]  ;;  %v10789_v25 = vcombine.low %v897_v59, %v901_v17  ;;  %v10825_v17 = vcombine.low %v921_v28, %v925_v31  ;;  %v945_v31 = vld [vmem:[#allocation8 + $0x290] sm:$0xff] }
 0x146   :  { %10032 = vrcp.f32 %v846_v55  ;;  %v910_v55 = vld [vmem:[#allocation8 + $0x178] sm:$0xff] }
 0x147   :  { %10034 = vrcp.f32 %v853_v15  ;;  %v914_v15 = vld [vmem:[#allocation8 + $0x198] sm:$0xff]  ;;  %v10803_v23 = vcombine.low %v906_v48, %v910_v55 }
 0x148   :  { %v934_v59 = vld [vmem:[#allocation8 + $0x238] sm:$0xff] }
 0x14f   :  { %v10031_v8 = vpop.eup %10030 }
 0x150   :  { %v10033_v9 = vpop.eup %10032  ;;  %v857_v10 = vmul.f32 %v10031_v8, %v10029_v3  ;;  %v10797_v8 = vcombine.high %v906_v48, %v910_v55  ;;  %v941_v48 = vld [vmem:[#allocation8 + $0x270] sm:$0xff]  ;;  %v938_v55 = vld [vmem:[#allocation8 + $0x258] sm:$0xff] }
 0x151   :  { %v856_v16 = vmul.f32 %v10033_v9, %v50_v4  ;;  %v10035_v20 = vpop.eup %10034  ;;  %v10795_v4 = vcombine.high %v905_v5, %v909_v13  ;;  %v913_v9 = vld [vmem:[#allocation8 + $0x190] sm:$0xff] }
 0x153   :  { %v10738_v19 = vadd.f32 %v857_v10, %v856_v16  ;;  %v917_v10 = vld [vmem:[#allocation8 + $0x1b0] sm:$0xff]  ;;  %v918_v16 = vld [vmem:[#allocation8 + $0x1b8] sm:$0xff] }
 0x154   :  { %v10809_v27 = vcombine.high %v914_v15, %v918_v16  ;;  %v10813_v57 = vcombine.low %v913_v9, %v917_v10  ;;  %v10815_v60 = vcombine.low %v914_v15, %v918_v16  ;;  %v10839_v15 = vcombine.low %v930_v51, %v934_v59 }
 0x155   :  { %10036 = vtanh.f32 %v10738_v19 }
 0x156   :  { %13185 = vst [vmem:[#allocation17_spill] sm:$0xff] %v10839_v15 }
 0x15f   :  { %v10037_v26 = vpop.eup %10036 }
 0x160   :  { %v860_v36 = vmul.f32 %v10037_v26, %v10035_v20  ;;  %v10801_v20 = vcombine.low %v905_v5, %v909_v13  ;;  %v10807_v26 = vcombine.high %v913_v9, %v917_v10  ;;  %v10833_v5 = vcombine.high %v930_v51, %v934_v59  ;;  %v937_v13 = vld [vmem:[#allocation8 + $0x250] sm:$0xff]  ;;  %v942_v9 = vld [vmem:[#allocation8 + $0x278] sm:$0xff] }
 0x161   :  { %v10837_v10 = vcombine.low %v929_v40, %v933_v46  ;;  %v10843_v16 = vcombine.high %v937_v13, %v941_v48  ;;  %v10845_v28 = vcombine.high %v938_v55, %v942_v9 }
 0x162   :  { %v10741_v39 = vpack.c.bf16 %v860_v36, %v860_v36  ;;  %v922_v36 = vld [vmem:[#allocation8 + $0x1d8] sm:$0xff]  ;;  %13183 = vst [vmem:[#allocation16_spill] sm:$0xff] %v10833_v5 }
 0x163   :  { %v10821_v38 = vcombine.high %v922_v36, %v926_v53  ;;  %13184 = vst [vmem:[#allocation15_spill] sm:$0xff] %v10837_v10  ;;  %13186 = vst [vmem:[#allocation18_spill] sm:$0xff] %v10843_v16 }
 0x164   :  { %1664 = vmatmul.mubr.bf16.vlgmr.msra.gmra.mrb[20].mxu0 %v10741_v39  ;;  %1705 = vmatmul.mubr.bf16.vlgmr.msra.gmra.mrb[20].mxu1 %v10741_v39  ;;  %13187 = vst [vmem:[#allocation19_spill] sm:$0xff] %v10845_v28 }
 0x165   :  { %1714 = vmatpush1.bf16.msra.mxu0 %v10684_v34  ;;  %1755 = vmatpush1.bf16.msra.mxu1 %v10688_v42 }
 0x166   :  { %1715 = vmatprep.subr.bf16.mxu0 %v10743_v47  ;;  %1756 = vmatprep.subr.bf16.mxu1 %v10745_v52 }
 0x167   :  { %1745 = vmatprep.mubr.bf16.mxu0 %v13179_v44  ;;  %1786 = vmatprep.mubr.bf16.mxu1 %v13179_v44  ;;  %v902_v44 = vld [vmem:[#allocation8 + $0x138] sm:$0xff] }
 0x168   :  { %v10785_v2 = vcombine.high %v898_v18, %v902_v44  ;;  %v10791_v3 = vcombine.low %v898_v18, %v902_v44  ;;  %v10827_v18 = vcombine.low %v922_v36, %v926_v53  ;;  %v10831_v44 = vcombine.high %v929_v40, %v933_v46  ;;  %v949_v36 = vld [vmem:[#allocation8 + $0x2b0] sm:$0xff]  ;;  %v946_v53 = vld [vmem:[#allocation8 + $0x298] sm:$0xff] }
 0x169   :  { %1716 = vmatpush1.bf16.msra.mxu0 %v10751_v1  ;;  %1757 = vmatpush1.bf16.msra.mxu1 %v10753_v7  ;;  %v10849_v40 = vcombine.low %v937_v13, %v941_v48  ;;  %v10851_v46 = vcombine.low %v938_v55, %v942_v9  ;;  %v10855_v51 = vcombine.high %v945_v31, %v949_v36 }
 0x16a   :  { %1717 = vmatprep.subr.bf16.mxu0 %v10757_v11  ;;  %1758 = vmatprep.subr.bf16.mxu1 %v10759_v21  ;;  %v10857_v59 = vcombine.high %v946_v53, %v950_v6  ;;  %v10861_v13 = vcombine.low %v945_v31, %v949_v36  ;;  %v10863_v48 = vcombine.low %v946_v53, %v950_v6 }
 0x16b   :  { %13188 = vst [vmem:[#allocation20_spill] sm:$0xff] %v10849_v40  ;;  %13189 = vst [vmem:[#allocation11_spill] sm:$0xff] %v10851_v46  ;;  %v10867_v55 = vcombine.high %v953_v14, %v957_v62  ;;  %v10873_v31 = vcombine.low %v953_v14, %v957_v62 }
 0x16c   :  { %13190 = vst [vmem:[#allocation21_spill] sm:$0xff] %v10855_v51  ;;  %13191 = vst [vmem:[#allocation22_spill] sm:$0xff] %v10857_v59 }
 0x16d   :  { %1718 = vmatpush1.bf16.msra.mxu0 %v10765_v56  ;;  %1759 = vmatpush1.bf16.msra.mxu1 %v10767_v33  ;;  %13192 = vst [vmem:[#allocation23_spill] sm:$0xff] %v10861_v13  ;;  %13193 = vst [vmem:[#allocation24_spill] sm:$0xff] %v10863_v48 }
 0x16e   :  { %1719 = vmatprep.subr.bf16.mxu0 %v10771_v41  ;;  %1760 = vmatprep.subr.bf16.mxu1 %v10773_v45  ;;  %13194 = vst [vmem:[#allocation25_spill] sm:$0xff] %v10867_v55  ;;  %13196 = vst [vmem:[#allocation27_spill] sm:$0xff] %v10873_v31 }
 0x171   :  { %1720 = vmatpush1.bf16.msra.mxu0 %v10777_v32  ;;  %1761 = vmatpush1.bf16.msra.mxu1 %v10779_v63 }
 0x172   :  { %1721 = vmatprep.subr.bf16.mxu0 %v10783_v49  ;;  %1762 = vmatprep.subr.bf16.mxu1 %v10785_v2 }
 0x175   :  { %1722 = vmatpush1.bf16.msra.mxu0 %v10789_v25  ;;  %1763 = vmatpush1.bf16.msra.mxu1 %v10791_v3 }
 0x176   :  { %1723 = vmatprep.subr.bf16.mxu0 %v10795_v4  ;;  %1764 = vmatprep.subr.bf16.mxu1 %v10797_v8 }
 0x179   :  { %1724 = vmatpush1.bf16.msra.mxu0 %v10801_v20  ;;  %1765 = vmatpush1.bf16.msra.mxu1 %v10803_v23 }
 0x17a   :  { %1725 = vmatprep.subr.bf16.mxu0 %v10807_v26  ;;  %1766 = vmatprep.subr.bf16.mxu1 %v10809_v27 }
 0x17d   :  { %1726 = vmatpush1.bf16.msra.mxu0 %v10813_v57  ;;  %1767 = vmatpush1.bf16.msra.mxu1 %v10815_v60 }
 0x17e   :  { %1727 = vmatprep.subr.bf16.mxu0 %v10819_v61  ;;  %1768 = vmatprep.subr.bf16.mxu1 %v10821_v38 }
 0x181   :  { %1728 = vmatpush1.bf16.msra.mxu0 %v10825_v17  ;;  %1769 = vmatpush1.bf16.msra.mxu1 %v10827_v18 }
 0x182   :  { %1729 = vmatprep.subr.bf16.mxu0 %v10831_v44  ;;  %1770 = vmatprep.subr.bf16.mxu1 %v10833_v5  ;;  %v958_v5 = vld [vmem:[#allocation8 + $0x2f8] sm:$0xff] }
 0x183   :  { %v10869_v9 = vcombine.high %v954_v54, %v958_v5  ;;  %v10875_v6 = vcombine.low %v954_v54, %v958_v5 }
 0x185   :  { %1730 = vmatpush1.bf16.msra.mxu0 %v10837_v10  ;;  %1771 = vmatpush1.bf16.msra.mxu1 %v10839_v15  ;;  %13195 = vst [vmem:[#allocation26_spill] sm:$0xff] %v10869_v9  ;;  %v962_v15 = vld [vmem:[#allocation8 + $0x318] sm:$0xff]  ;;  %13197 = vst [vmem:[#allocation28_spill] sm:$0xff] %v10875_v6 }
 0x186   :  { %1731 = vmatprep.subr.bf16.mxu0 %v10843_v16  ;;  %1772 = vmatprep.subr.bf16.mxu1 %v10845_v28  ;;  %v961_v28 = vld [vmem:[#allocation8 + $0x310] sm:$0xff]  ;;  %v966_v10 = vld [vmem:[#allocation8 + $0x338] sm:$0xff] }
 0x187   :  { %v965_v16 = vld [vmem:[#allocation8 + $0x330] sm:$0xff]  ;;  %v10881_v53 = vcombine.high %v962_v15, %v966_v10  ;;  %v10887_v54 = vcombine.low %v962_v15, %v966_v10 }
 0x188   :  { %v10879_v36 = vcombine.high %v961_v28, %v965_v16  ;;  %v10885_v62 = vcombine.low %v961_v28, %v965_v16 }
 0x189   :  { %1732 = vmatpush1.bf16.msra.mxu0 %v10849_v40  ;;  %1773 = vmatpush1.bf16.msra.mxu1 %v10851_v46  ;;  %13199 = vst [vmem:[#allocation30_spill] sm:$0xff] %v10881_v53  ;;  %v970_v46 = vld [vmem:[#allocation8 + $0x358] sm:$0xff]  ;;  %13200 = vst [vmem:[#allocation31_spill] sm:$0xff] %v10887_v54 }
 0x18a   :  { %1733 = vmatprep.subr.bf16.mxu0 %v10855_v51  ;;  %1774 = vmatprep.subr.bf16.mxu1 %v10857_v59  ;;  %13198 = vst [vmem:[#allocation29_spill] sm:$0xff] %v10879_v36  ;;  %v969_v59 = vld [vmem:[#allocation8 + $0x350] sm:$0xff]  ;;  %v974_v40 = vld [vmem:[#allocation8 + $0x378] sm:$0xff] }
 0x18b   :  { %v973_v51 = vld [vmem:[#allocation8 + $0x370] sm:$0xff]  ;;  %v10893_v5 = vcombine.high %v970_v46, %v974_v40  ;;  %v10899_v10 = vcombine.low %v970_v46, %v974_v40 }
 0x18c   :  { %v10891_v14 = vcombine.high %v969_v59, %v973_v51  ;;  %v10897_v16 = vcombine.low %v969_v59, %v973_v51 }
 0x18d   :  { %1734 = vmatpush1.bf16.msra.mxu0 %v10861_v13  ;;  %1775 = vmatpush1.bf16.msra.mxu1 %v10863_v48  ;;  %13202 = vst [vmem:[#allocation33_spill] sm:$0xff] %v10893_v5  ;;  %v978_v48 = vld [vmem:[#allocation8 + $0x398] sm:$0xff]  ;;  %13204 = vst [vmem:[#allocation35_spill] sm:$0xff] %v10899_v10 }
 0x18e   :  { %1735 = vmatprep.subr.bf16.mxu0 %v10867_v55  ;;  %1776 = vmatprep.subr.bf16.mxu1 %v10869_v9  ;;  %13201 = vst [vmem:[#allocation32_spill] sm:$0xff] %v10891_v14  ;;  %v977_v9 = vld [vmem:[#allocation8 + $0x390] sm:$0xff]  ;;  %v982_v13 = vld [vmem:[#allocation8 + $0x3b8] sm:$0xff]  ;;  %13203 = vst [vmem:[#allocation34_spill] sm:$0xff] %v10897_v16 }
 0x18f   :  { %v981_v55 = vld [vmem:[#allocation8 + $0x3b0] sm:$0xff]  ;;  %v10905_v28 = vcombine.high %v978_v48, %v982_v13  ;;  %v10911_v40 = vcombine.low %v978_v48, %v982_v13 }
 0x190   :  { %v10903_v15 = vcombine.high %v977_v9, %v981_v55  ;;  %v10909_v51 = vcombine.low %v977_v9, %v981_v55 }
 0x191   :  { %1736 = vmatpush1.bf16.msra.mxu0 %v10873_v31  ;;  %1777 = vmatpush1.bf16.msra.mxu1 %v10875_v6  ;;  %13206 = vst [vmem:[#allocation37_spill] sm:$0xff] %v10905_v28  ;;  %v986_v6 = vld [vmem:[#allocation8 + $0x3d8] sm:$0xff]  ;;  %13208 = vst [vmem:[#allocation39_spill] sm:$0xff] %v10911_v40 }
 0x192   :  { %1737 = vmatprep.subr.bf16.mxu0 %v10879_v36  ;;  %1778 = vmatprep.subr.bf16.mxu1 %v10881_v53  ;;  %13205 = vst [vmem:[#allocation36_spill] sm:$0xff] %v10903_v15  ;;  %v985_v53 = vld [vmem:[#allocation8 + $0x3d0] sm:$0xff]  ;;  %v990_v31 = vld [vmem:[#allocation8 + $0x3f8] sm:$0xff]  ;;  %13207 = vst [vmem:[#allocation38_spill] sm:$0xff] %v10909_v51 }
 0x193   :  { %v989_v36 = vld [vmem:[#allocation8 + $0x3f0] sm:$0xff]  ;;  %v10917_v59 = vcombine.high %v986_v6, %v990_v31  ;;  %v10927_v13 = vcombine.low %v986_v6, %v990_v31 }
 0x194   :  { %v10915_v46 = vcombine.high %v985_v53, %v989_v36  ;;  %v10925_v55 = vcombine.low %v985_v53, %v989_v36 }
 0x195   :  { %1738 = vmatpush1.bf16.msra.mxu0 %v10885_v62  ;;  %1779 = vmatpush1.bf16.msra.mxu1 %v10887_v54  ;;  %13210 = vst [vmem:[#allocation41_spill] sm:$0xff] %v10917_v59  ;;  %13214 = vst [vmem:[#allocation45_spill] sm:$0xff] %v10927_v13  ;;  %v1904_v54 = vld [vmem:[#allocation8 + $0xc8] sm:$0xff] }
 0x196   :  { %1739 = vmatprep.subr.bf16.mxu0 %v10891_v14  ;;  %1780 = vmatprep.subr.bf16.mxu1 %v10893_v5  ;;  %13209 = vst [vmem:[#allocation40_spill] sm:$0xff] %v10915_v46  ;;  %v10919_v5 = vpop.f32.mrb[8].mxu0  ;;  %v10921_v14 = vpop.f32.mrb[8].mxu1  ;;  %13213 = vst [vmem:[#allocation44_spill] sm:$0xff] %v10925_v55 }
 0x197   :  { %13211 = vst [vmem:[#allocation42_spill] sm:$0xff] %v10919_v5  ;;  %13212 = vst [vmem:[#allocation43_spill] sm:$0xff] %v10921_v14  ;;  %v10929_v48 = vpop.f32.mrb[9].mxu0  ;;  %v10931_v9 = vpop.f32.mrb[9].mxu1 }
 0x198   :  { %13215 = vst [vmem:[#allocation46_spill] sm:$0xff] %v10929_v48  ;;  %13216 = vst [vmem:[#allocation47_spill] sm:$0xff] %v10931_v9  ;;  %v10937_v5 = vpop.f32.mrb[10].mxu1 }
 0x199   :  { %1740 = vmatpush1.bf16.msra.mxu0 %v10897_v16  ;;  %1781 = vmatpush1.bf16.msra.mxu1 %v10899_v10  ;;  %13218 = vst [vmem:[#allocation49_spill] sm:$0xff] %v10937_v5  ;;  %v1903_v10 = vld [vmem:[#allocation8 + $0xc0] sm:$0xff] }
 0x19a   :  { %1741 = vmatprep.subr.bf16.mxu0 %v10903_v15  ;;  %1782 = vmatprep.subr.bf16.mxu1 %v10905_v28  ;;  %v10935_v28 = vpop.f32.mrb[10].mxu0  ;;  %v1896_v15 = vld [vmem:[#allocation8 + $0x88] sm:$0xff]  ;;  %v1907_v16 = vld [vmem:[#allocation8 + $0xe0] sm:$0xff] }
 0x19b   :  { %13217 = vst [vmem:[#allocation48_spill] sm:$0xff] %v10935_v28  ;;  %v10939_v14 = vpop.f32.mrb[11].mxu0 }
 0x19c   :  { %13219 = vst [vmem:[#allocation50_spill] sm:$0xff] %v10939_v14  ;;  %v10947_v31 = vpop.f32.mrb[12].mxu0 }
 0x19d   :  { %1742 = vmatpush1.bf16.msra.mxu0 %v10909_v51  ;;  %1783 = vmatpush1.bf16.msra.mxu1 %v10911_v40  ;;  %v10941_v51 = vpop.f32.mrb[11].mxu1  ;;  %13221 = vst [vmem:[#allocation52_spill] sm:$0xff] %v10947_v31  ;;  %v10951_v36 = vpop.f32.mrb[13].mxu0  ;;  %v1899_v40 = vld [vmem:[#allocation8 + $0xa0] sm:$0xff] }
 0x19e   :  { %1743 = vmatprep.subr.bf16.mxu0 %v10915_v46  ;;  %1784 = vmatprep.subr.bf16.mxu1 %v10917_v59  ;;  %13220 = vst [vmem:[#allocation51_spill] sm:$0xff] %v10941_v51  ;;  %v10949_v6 = vpop.f32.mrb[12].mxu1  ;;  %13223 = vst [vmem:[#allocation54_spill] sm:$0xff] %v10951_v36  ;;  %v10955_v5 = vpop.f32.mrb[14].mxu0  ;;  %v1895_v46 = vld [vmem:[#allocation8 + $0x80] sm:$0xff] }
 0x19f   :  { %13222 = vst [vmem:[#allocation53_spill] sm:$0xff] %v10949_v6  ;;  %v10953_v53 = vpop.f32.mrb[13].mxu1  ;;  %13225 = vst [vmem:[#allocation56_spill] sm:$0xff] %v10955_v5  ;;  %v10959_v51 = vpop.f32.mrb[15].mxu0 }
 0x1a0   :  { %13224 = vst [vmem:[#allocation55_spill] sm:$0xff] %v10953_v53  ;;  %v10957_v14 = vpop.f32.mrb[14].mxu1  ;;  %13227 = vst [vmem:[#allocation58_spill] sm:$0xff] %v10959_v51  ;;  %v10963_v9 = vpop.f32.mrb[16].mxu0  ;;  %v1883_v51 = vld [vmem:[#allocation8 + $0x20] sm:$0xff] }
 0x1a1   :  { %1744 = vmatpush1.bf16.msra.mxu0 %v10925_v55  ;;  %1785 = vmatpush1.bf16.msra.mxu1 %v10927_v13  ;;  %13226 = vst [vmem:[#allocation57_spill] sm:$0xff] %v10957_v14  ;;  %v10961_v28 = vpop.f32.mrb[15].mxu1  ;;  %13229 = vst [vmem:[#allocation60_spill] sm:$0xff] %v10963_v9  ;;  %v1879_v14 = vld [vmem:[#allocation8] sm:$0xff]  ;;  %v1880_v13 = vld [vmem:[#allocation8 + $0x8] sm:$0xff] }
 0x1a2   :  { %13228 = vst [vmem:[#allocation59_spill] sm:$0xff] %v10961_v28  ;;  %v10965_v48 = vpop.f32.mrb[16].mxu1  ;;  %v10979_v28 = vcombine.low %v1879_v14, %v1883_v51  ;;  %v10981_v9 = vcombine.high %v1879_v14, %v1883_v51  ;;  %v1887_v55 = vld [vmem:[#allocation8 + $0x40] sm:$0xff]  ;;  %v1900_v14 = vld [vmem:[#allocation8 + $0xa8] sm:$0xff] }
 0x1a3   :  { %13230 = vst [vmem:[#allocation61_spill] sm:$0xff] %v10965_v48  ;;  %v10969_v31 = vpop.f32.mrb[17].mxu1  ;;  %v1884_v48 = vld [vmem:[#allocation8 + $0x28] sm:$0xff] }
 0x1a4   :  { %1746 = vmatmul.mubr.bf16.vlgmr.msra.gmra.mrb[24].mxu0 %v10741_v39  ;;  %1787 = vmatmul.mubr.bf16.vlgmr.msra.gmra.mrb[24].mxu1 %v10741_v39  ;;  %v10967_v39 = vpop.f32.mrb[17].mxu0  ;;  %13232 = vst [vmem:[#allocation63_spill] sm:$0xff] %v10969_v31  ;;  %v10973_v36 = vpop.f32.mrb[18].mxu1  ;;  %13237 = vst [vmem:[#allocation68_spill] sm:$0xff] %v10981_v9  ;;  %v10983_v59 = vcombine.low %v1880_v13, %v1884_v48  ;;  %v10985_v31 = vcombine.high %v1880_v13, %v1884_v48 }
 0x1a5   :  { %13231 = vst [vmem:[#allocation62_spill] sm:$0xff] %v10967_v39  ;;  %v10971_v6 = vpop.f32.mrb[18].mxu0  ;;  %13234 = vst [vmem:[#allocation65_spill] sm:$0xff] %v10973_v36  ;;  %v10977_v5 = vpop.f32.mrb[19].mxu1  ;;  %v1891_v39 = vld [vmem:[#allocation8 + $0x60] sm:$0xff]  ;;  %v1888_v36 = vld [vmem:[#allocation8 + $0x48] sm:$0xff]  ;;  %2647 = vmatprep.subr.bf16.mxu0 %v10981_v9  ;;  %v11000_v48 = vcombine.high %v1895_v46, %v1899_v40  ;;  %v11003_v9 = vcombine.high %v1896_v15, %v1900_v14 }
 0x1a6   :  { %13233 = vst [vmem:[#allocation64_spill] sm:$0xff] %v10971_v6  ;;  %v10975_v53 = vpop.f32.mrb[19].mxu0  ;;  %13236 = vst [vmem:[#allocation67_spill] sm:$0xff] %v10977_v5  ;;  %v10987_v6 = vcombine.high %v1887_v55, %v1891_v39  ;;  %2688 = vmatprep.subr.bf16.mxu1 %v10985_v31  ;;  %2648 = vmatpush1.bf16.msra.mxu0 %v10979_v28  ;;  %v10994_v51 = vcombine.low %v1887_v55, %v1891_v39 }
 0x1a7   :  { %13235 = vst [vmem:[#allocation66_spill] sm:$0xff] %v10975_v53  ;;  %13238 = vst [vmem:[#allocation69_spill] sm:$0xff] %v10985_v31  ;;  %v1892_v53 = vld [vmem:[#allocation8 + $0x68] sm:$0xff]  ;;  %2689 = vmatpush1.bf16.msra.mxu1 %v10983_v59  ;;  %v11006_v55 = vcombine.low %v1895_v46, %v1899_v40  ;;  %v1915_v46 = vld [vmem:[#allocation8 + $0x120] sm:$0xff] }
 0x1a8   :  { %v10990_v5 = vcombine.high %v1888_v36, %v1892_v53  ;;  %13240 = vst [vmem:[#allocation71_spill] sm:$0xff] %v10994_v51  ;;  %2649 = vmatprep.subr.bf16.mxu0 %v10987_v6  ;;  %v10998_v13 = vcombine.low %v1888_v36, %v1892_v53  ;;  %13242 = vst [vmem:[#allocation73_spill] sm:$0xff] %v11000_v48  ;;  %v1908_v31 = vld [vmem:[#allocation8 + $0xe8] sm:$0xff]  ;;  %v11010_v36 = vcombine.low %v1896_v15, %v1900_v14  ;;  %v1911_v15 = vld [vmem:[#allocation8 + $0x100] sm:$0xff] }
 0x1a9   :  { %13243 = vst [vmem:[#allocation74_spill] sm:$0xff] %v11003_v9  ;;  %13244 = vst [vmem:[#allocation75_spill] sm:$0xff] %v11006_v55  ;;  %v11012_v53 = vcombine.high %v1903_v10, %v1907_v16  ;;  %v11015_v39 = vcombine.high %v1904_v54, %v1908_v31  ;;  %v11022_v40 = vcombine.low %v1904_v54, %v1908_v31  ;;  %v1912_v14 = vld [vmem:[#allocation8 + $0x108] sm:$0xff]  ;;  %v1919_v54 = vld [vmem:[#allocation8 + $0x140] sm:$0xff] }
 0x1aa   :  { %13239 = vst [vmem:[#allocation70_spill] sm:$0xff] %v10990_v5  ;;  %13241 = vst [vmem:[#allocation72_spill] sm:$0xff] %v10998_v13  ;;  %2690 = vmatprep.subr.bf16.mxu1 %v10990_v5  ;;  %2650 = vmatpush1.bf16.msra.mxu0 %v10994_v51  ;;  %v11018_v5 = vcombine.low %v1903_v10, %v1907_v16  ;;  %v11029_v16 = vcombine.low %v1911_v15, %v1915_v46  ;;  %v1923_v31 = vld [vmem:[#allocation8 + $0x160] sm:$0xff]  ;;  %v2004_v51 = vld [vmem:[#allocation8 + $0x3e8] sm:$0xff] }
 0x1ab   :  { %2691 = vmatpush1.bf16.msra.mxu1 %v10998_v13  ;;  %2651 = vmatprep.subr.bf16.mxu0 %v11000_v48  ;;  %13245 = vst [vmem:[#allocation76_spill] sm:$0xff] %v11010_v36  ;;  %13246 = vst [vmem:[#allocation77_spill] sm:$0xff] %v11012_v53  ;;  %v1992_v48 = vld [vmem:[#allocation8 + $0x388] sm:$0xff] }
 0x1ac   :  { %2692 = vmatprep.subr.bf16.mxu1 %v11003_v9  ;;  %13247 = vst [vmem:[#allocation78_spill] sm:$0xff] %v11015_v39  ;;  %13248 = vst [vmem:[#allocation79_spill] sm:$0xff] %v11018_v5  ;;  %v11027_v9 = vcombine.high %v1911_v15, %v1915_v46  ;;  %v11041_v15 = vcombine.low %v1919_v54, %v1923_v31  ;;  %v1996_v13 = vld [vmem:[#allocation8 + $0x3a8] sm:$0xff] }
 0x1ad   :  { %13249 = vst [vmem:[#allocation80_spill] sm:$0xff] %v11022_v40  ;;  %13251 = vst [vmem:[#allocation82_spill] sm:$0xff] %v11029_v16 }
 0x1ae   :  { %2652 = vmatpush1.bf16.msra.mxu0 %v11006_v55  ;;  %13250 = vst [vmem:[#allocation81_spill] sm:$0xff] %v11027_v9  ;;  %v1916_v55 = vld [vmem:[#allocation8 + $0x128] sm:$0xff]  ;;  %13255 = vst [vmem:[#allocation86_spill] sm:$0xff] %v11041_v15 }
 0x1af   :  { %2693 = vmatpush1.bf16.msra.mxu1 %v11010_v36  ;;  %2653 = vmatprep.subr.bf16.mxu0 %v11012_v53  ;;  %v11031_v10 = vcombine.low %v1912_v14, %v1916_v55  ;;  %v11033_v36 = vcombine.high %v1912_v14, %v1916_v55  ;;  %v1927_v14 = vld [vmem:[#allocation8 + $0x180] sm:$0xff]  ;;  %v1988_v53 = vld [vmem:[#allocation8 + $0x368] sm:$0xff] }
 0x1b0   :  { %2694 = vmatprep.subr.bf16.mxu1 %v11015_v39  ;;  %v1924_v39 = vld [vmem:[#allocation8 + $0x168] sm:$0xff] }
 0x1b1   :  { %13252 = vst [vmem:[#allocation83_spill] sm:$0xff] %v11031_v10  ;;  %13253 = vst [vmem:[#allocation84_spill] sm:$0xff] %v11033_v36 }
 0x1b2   :  { %2654 = vmatpush1.bf16.msra.mxu0 %v11018_v5  ;;  %v11039_v5 = vcombine.high %v1919_v54, %v1923_v31 }
 0x1b3   :  { %2695 = vmatpush1.bf16.msra.mxu1 %v11022_v40  ;;  %2655 = vmatprep.subr.bf16.mxu0 %v11027_v9  ;;  %v1920_v40 = vld [vmem:[#allocation8 + $0x148] sm:$0xff] }
 0x1b4   :  { %2696 = vmatprep.subr.bf16.mxu1 %v11033_v36  ;;  %13254 = vst [vmem:[#allocation85_spill] sm:$0xff] %v11039_v5  ;;  %v11043_v46 = vcombine.low %v1920_v40, %v1924_v39  ;;  %v11045_v55 = vcombine.high %v1920_v40, %v1924_v39  ;;  %v1928_v36 = vld [vmem:[#allocation8 + $0x188] sm:$0xff]  ;;  %v1935_v40 = vld [vmem:[#allocation8 + $0x1c0] sm:$0xff] }
 0x1b5   :  { %v1932_v9 = vld [vmem:[#allocation8 + $0x1a8] sm:$0xff] }
 0x1b6   :  { %2656 = vmatpush1.bf16.msra.mxu0 %v11029_v16  ;;  %13256 = vst [vmem:[#allocation87_spill] sm:$0xff] %v11043_v46  ;;  %13257 = vst [vmem:[#allocation88_spill] sm:$0xff] %v11045_v55  ;;  %v1931_v16 = vld [vmem:[#allocation8 + $0x1a0] sm:$0xff]  ;;  %v11055_v31 = vcombine.low %v1928_v36, %v1932_v9  ;;  %v11057_v39 = vcombine.high %v1928_v36, %v1932_v9 }
 0x1b7   :  { %2697 = vmatpush1.bf16.msra.mxu1 %v11031_v10  ;;  %2657 = vmatprep.subr.bf16.mxu0 %v11039_v5  ;;  %v11051_v10 = vcombine.high %v1927_v14, %v1931_v16  ;;  %v11053_v54 = vcombine.low %v1927_v14, %v1931_v16  ;;  %v1940_v5 = vld [vmem:[#allocation8 + $0x1e8] sm:$0xff]  ;;  %v1943_v36 = vld [vmem:[#allocation8 + $0x200] sm:$0xff] }
 0x1b8   :  { %2698 = vmatprep.subr.bf16.mxu1 %v11045_v55  ;;  %13260 = vst [vmem:[#allocation91_spill] sm:$0xff] %v11055_v31  ;;  %13261 = vst [vmem:[#allocation92_spill] sm:$0xff] %v11057_v39  ;;  %v1936_v55 = vld [vmem:[#allocation8 + $0x1c8] sm:$0xff] }
 0x1b9   :  { %13258 = vst [vmem:[#allocation89_spill] sm:$0xff] %v11051_v10  ;;  %13259 = vst [vmem:[#allocation90_spill] sm:$0xff] %v11053_v54  ;;  %v11067_v14 = vcombine.low %v1936_v55, %v1940_v5  ;;  %v11069_v9 = vcombine.high %v1936_v55, %v1940_v5  ;;  %v1951_v55 = vld [vmem:[#allocation8 + $0x240] sm:$0xff] }
 0x1ba   :  { %2658 = vmatpush1.bf16.msra.mxu0 %v11041_v15  ;;  %v1939_v15 = vld [vmem:[#allocation8 + $0x1e0] sm:$0xff] }
 0x1bb   :  { %2699 = vmatpush1.bf16.msra.mxu1 %v11043_v46  ;;  %2659 = vmatprep.subr.bf16.mxu0 %v11051_v10  ;;  %v11063_v46 = vcombine.high %v1935_v40, %v1939_v15  ;;  %v11065_v16 = vcombine.low %v1935_v40, %v1939_v15  ;;  %13264 = vst [vmem:[#allocation95_spill] sm:$0xff] %v11067_v14  ;;  %13265 = vst [vmem:[#allocation96_spill] sm:$0xff] %v11069_v9  ;;  %v1948_v10 = vld [vmem:[#allocation8 + $0x228] sm:$0xff] }
 0x1bc   :  { %2700 = vmatprep.subr.bf16.mxu1 %v11057_v39  ;;  %v1944_v39 = vld [vmem:[#allocation8 + $0x208] sm:$0xff] }
 0x1bd   :  { %13262 = vst [vmem:[#allocation93_spill] sm:$0xff] %v11063_v46  ;;  %13263 = vst [vmem:[#allocation94_spill] sm:$0xff] %v11065_v16  ;;  %v11079_v40 = vcombine.low %v1944_v39, %v1948_v10  ;;  %v11081_v5 = vcombine.high %v1944_v39, %v1948_v10  ;;  %v1959_v39 = vld [vmem:[#allocation8 + $0x280] sm:$0xff] }
 0x1be   :  { %2660 = vmatpush1.bf16.msra.mxu0 %v11053_v54  ;;  %v1947_v54 = vld [vmem:[#allocation8 + $0x220] sm:$0xff] }
 0x1bf   :  { %2701 = vmatpush1.bf16.msra.mxu1 %v11055_v31  ;;  %2661 = vmatprep.subr.bf16.mxu0 %v11063_v46  ;;  %v11075_v31 = vcombine.high %v1943_v36, %v1947_v54  ;;  %v11077_v15 = vcombine.low %v1943_v36, %v1947_v54  ;;  %13268 = vst [vmem:[#allocation99_spill] sm:$0xff] %v11079_v40  ;;  %13269 = vst [vmem:[#allocation100_spill] sm:$0xff] %v11081_v5  ;;  %v1956_v46 = vld [vmem:[#allocation8 + $0x268] sm:$0xff] }
 0x1c0   :  { %2702 = vmatprep.subr.bf16.mxu1 %v11069_v9  ;;  %v1952_v9 = vld [vmem:[#allocation8 + $0x248] sm:$0xff] }
 0x1c1   :  { %13266 = vst [vmem:[#allocation97_spill] sm:$0xff] %v11075_v31  ;;  %13267 = vst [vmem:[#allocation98_spill] sm:$0xff] %v11077_v15  ;;  %v11091_v36 = vcombine.low %v1952_v9, %v1956_v46  ;;  %v11093_v10 = vcombine.high %v1952_v9, %v1956_v46  ;;  %v1967_v9 = vld [vmem:[#allocation8 + $0x2c0] sm:$0xff] }
 0x1c2   :  { %2662 = vmatpush1.bf16.msra.mxu0 %v11065_v16  ;;  %v1955_v16 = vld [vmem:[#allocation8 + $0x260] sm:$0xff] }
 0x1c3   :  { %2703 = vmatpush1.bf16.msra.mxu1 %v11067_v14  ;;  %2663 = vmatprep.subr.bf16.mxu0 %v11075_v31  ;;  %v11087_v14 = vcombine.high %v1951_v55, %v1955_v16  ;;  %v11089_v54 = vcombine.low %v1951_v55, %v1955_v16  ;;  %13272 = vst [vmem:[#allocation103_spill] sm:$0xff] %v11091_v36  ;;  %13273 = vst [vmem:[#allocation104_spill] sm:$0xff] %v11093_v10  ;;  %v1964_v31 = vld [vmem:[#allocation8 + $0x2a8] sm:$0xff] }
 0x1c4   :  { %2704 = vmatprep.subr.bf16.mxu1 %v11081_v5  ;;  %v1960_v5 = vld [vmem:[#allocation8 + $0x288] sm:$0xff] }
 0x1c5   :  { %13270 = vst [vmem:[#allocation101_spill] sm:$0xff] %v11087_v14  ;;  %13271 = vst [vmem:[#allocation102_spill] sm:$0xff] %v11089_v54  ;;  %v11103_v55 = vcombine.low %v1960_v5, %v1964_v31  ;;  %v11105_v46 = vcombine.high %v1960_v5, %v1964_v31  ;;  %v1975_v5 = vld [vmem:[#allocation8 + $0x300] sm:$0xff] }
 0x1c6   :  { %2664 = vmatpush1.bf16.msra.mxu0 %v11077_v15  ;;  %v1963_v15 = vld [vmem:[#allocation8 + $0x2a0] sm:$0xff] }
 0x1c7   :  { %2705 = vmatpush1.bf16.msra.mxu1 %v11079_v40  ;;  %2665 = vmatprep.subr.bf16.mxu0 %v11087_v14  ;;  %v11099_v40 = vcombine.high %v1959_v39, %v1963_v15  ;;  %v11101_v16 = vcombine.low %v1959_v39, %v1963_v15  ;;  %13276 = vst [vmem:[#allocation107_spill] sm:$0xff] %v11103_v55  ;;  %13277 = vst [vmem:[#allocation108_spill] sm:$0xff] %v11105_v46  ;;  %v1972_v14 = vld [vmem:[#allocation8 + $0x2e8] sm:$0xff] }
 0x1c8   :  { %2706 = vmatprep.subr.bf16.mxu1 %v11093_v10  ;;  %v1968_v10 = vld [vmem:[#allocation8 + $0x2c8] sm:$0xff] }
 0x1c9   :  { %13274 = vst [vmem:[#allocation105_spill] sm:$0xff] %v11099_v40  ;;  %13275 = vst [vmem:[#allocation106_spill] sm:$0xff] %v11101_v16  ;;  %v11115_v39 = vcombine.low %v1968_v10, %v1972_v14  ;;  %v11117_v31 = vcombine.high %v1968_v10, %v1972_v14  ;;  %v1983_v10 = vld [vmem:[#allocation8 + $0x340] sm:$0xff] }
 0x1ca   :  { %2666 = vmatpush1.bf16.msra.mxu0 %v11089_v54  ;;  %v1971_v54 = vld [vmem:[#allocation8 + $0x2e0] sm:$0xff] }
 0x1cb   :  { %2707 = vmatpush1.bf16.msra.mxu1 %v11091_v36  ;;  %2667 = vmatprep.subr.bf16.mxu0 %v11099_v40  ;;  %v11111_v36 = vcombine.high %v1967_v9, %v1971_v54  ;;  %v11113_v15 = vcombine.low %v1967_v9, %v1971_v54  ;;  %13280 = vst [vmem:[#allocation111_spill] sm:$0xff] %v11115_v39  ;;  %13281 = vst [vmem:[#allocation112_spill] sm:$0xff] %v11117_v31  ;;  %v1980_v40 = vld [vmem:[#allocation8 + $0x328] sm:$0xff] }
 0x1cc   :  { %2708 = vmatprep.subr.bf16.mxu1 %v11105_v46  ;;  %v1976_v46 = vld [vmem:[#allocation8 + $0x308] sm:$0xff] }
 0x1cd   :  { %13278 = vst [vmem:[#allocation109_spill] sm:$0xff] %v11111_v36  ;;  %13279 = vst [vmem:[#allocation110_spill] sm:$0xff] %v11113_v15  ;;  %v11127_v9 = vcombine.low %v1976_v46, %v1980_v40  ;;  %v11129_v14 = vcombine.high %v1976_v46, %v1980_v40 }
 0x1ce   :  { %2668 = vmatpush1.bf16.msra.mxu0 %v11101_v16  ;;  %v1979_v16 = vld [vmem:[#allocation8 + $0x320] sm:$0xff] }
 0x1cf   :  { %2709 = vmatpush1.bf16.msra.mxu1 %v11103_v55  ;;  %2669 = vmatprep.subr.bf16.mxu0 %v11111_v36  ;;  %v11123_v55 = vcombine.high %v1975_v5, %v1979_v16  ;;  %v11125_v54 = vcombine.low %v1975_v5, %v1979_v16  ;;  %13284 = vst [vmem:[#allocation115_spill] sm:$0xff] %v11127_v9  ;;  %13285 = vst [vmem:[#allocation116_spill] sm:$0xff] %v11129_v14  ;;  %v1984_v36 = vld [vmem:[#allocation8 + $0x348] sm:$0xff]  ;;  %v1991_v16 = vld [vmem:[#allocation8 + $0x380] sm:$0xff] }
 0x1d0   :  { %2710 = vmatprep.subr.bf16.mxu1 %v11117_v31  ;;  %v1987_v31 = vld [vmem:[#allocation8 + $0x360] sm:$0xff]  ;;  %v11139_v40 = vcombine.low %v1984_v36, %v1988_v53  ;;  %v11141_v46 = vcombine.high %v1984_v36, %v1988_v53  ;;  %v11154_v53 = vcombine.low %v1992_v48, %v1996_v13 }
 0x1d1   :  { %13282 = vst [vmem:[#allocation113_spill] sm:$0xff] %v11123_v55  ;;  %13283 = vst [vmem:[#allocation114_spill] sm:$0xff] %v11125_v54  ;;  %v1995_v5 = vld [vmem:[#allocation8 + $0x3a0] sm:$0xff] }
 0x1d2   :  { %2670 = vmatpush1.bf16.msra.mxu0 %v11113_v15  ;;  %v11134_v15 = vcombine.low %v1983_v10, %v1987_v31  ;;  %13287 = vst [vmem:[#allocation118_spill] sm:$0xff] %v11141_v46  ;;  %13289 = vst [vmem:[#allocation120_spill] sm:$0xff] %v11154_v53 }
 0x1d3   :  { %2711 = vmatpush1.bf16.msra.mxu1 %v11115_v39  ;;  %2671 = vmatprep.subr.bf16.mxu0 %v11123_v55  ;;  %v11136_v39 = vcombine.high %v1983_v10, %v1987_v31  ;;  %v11143_v55 = vcombine.high %v1991_v16, %v1995_v5  ;;  %v2003_v31 = vld [vmem:[#allocation8 + $0x3e0] sm:$0xff]  ;;  %v2000_v10 = vld [vmem:[#allocation8 + $0x3c8] sm:$0xff] }
 0x1d4   :  { %2712 = vmatprep.subr.bf16.mxu1 %v11129_v14  ;;  %v1999_v14 = vld [vmem:[#allocation8 + $0x3c0] sm:$0xff] }
 0x1d5   :  { %13286 = vst [vmem:[#allocation117_spill] sm:$0xff] %v11136_v39  ;;  %v11156_v36 = vcombine.high %v1999_v14, %v2003_v31 }
 0x1d6   :  { %2672 = vmatpush1.bf16.msra.mxu0 %v11125_v54  ;;  %v11146_v54 = vcombine.high %v1992_v48, %v1996_v13  ;;  %v682_v13 = vadd.f32 %v10725_v12, %v10709_v22  ;;  %v755_v48 = vadd.f32 %v10731_v0, %v10717_v30 }
 0x1d7   :  { %2713 = vmatpush1.bf16.msra.mxu1 %v11127_v9  ;;  %2673 = vmatprep.subr.bf16.mxu0 %v11136_v39  ;;  %v11150_v9 = vcombine.low %v1991_v16, %v1995_v5  ;;  %13290 = vst [vmem:[#allocation121_spill] sm:$0xff] %v11156_v36  ;;  %v11159_v39 = vcombine.high %v2000_v10, %v2004_v51 }
 0x1d8   :  { %2714 = vmatprep.subr.bf16.mxu1 %v11141_v46  ;;  %v11162_v46 = vcombine.low %v1999_v14, %v2003_v31  ;;  %v11166_v16 = vcombine.low %v2000_v10, %v2004_v51  ;;  %v684_v51 = vadd.f32 %v10728_v58, %v10713_v24  ;;  %v757_v14 = vadd.f32 %v10733_v29, %v10721_v37 }
 0x1d9   :  { %13288 = vst [vmem:[#allocation119_spill] sm:$0xff] %v11150_v9  ;;  %13291 = vst [vmem:[#allocation122_spill] sm:$0xff] %v11159_v39 }
 0x1da   :  { %2674 = vmatpush1.bf16.msra.mxu0 %v11134_v15  ;;  %13292 = vst [vmem:[#allocation123_spill] sm:$0xff] %v11162_v46  ;;  %13293 = vst [vmem:[#allocation124_spill] sm:$0xff] %v11166_v16 }
 0x1db   :  { %2715 = vmatpush1.bf16.msra.mxu1 %v11139_v40  ;;  %2675 = vmatprep.subr.bf16.mxu0 %v11143_v55 }
 0x1dc   :  { %2716 = vmatprep.subr.bf16.mxu1 %v11146_v54 }
 0x1de   :  { %2676 = vmatpush1.bf16.msra.mxu0 %v11150_v9 }
 0x1df   :  { %2717 = vmatpush1.bf16.msra.mxu1 %v11154_v53  ;;  %2677 = vmatprep.subr.bf16.mxu0 %v11156_v36 }
 0x1e0   :  { %2718 = vmatprep.subr.bf16.mxu1 %v11159_v39 }
 0x1e2   :  { %2678 = vmatpush1.bf16.msra.mxu0 %v11162_v46 }
 0x1e3   :  { %2719 = vmatpush1.bf16.msra.mxu1 %v11166_v16  ;;  %2729 = vmatprep.subr.bf16.mxu0 %v10686_v35 }
 0x1e4   :  { %2770 = vmatprep.subr.bf16.mxu1 %v10690_v43 }
 0x237   :  { %v1665_v5 = vpop.f32.mrb[20].mxu0  ;;  %v1706_v31 = vpop.f32.mrb[20].mxu1 }
 0x238   :  { %v1850_v10 = vadd.f32 %v1665_v5, %v682_v13  ;;  %v1852_v16 = vadd.f32 %v1706_v31, %v755_v48  ;;  %v1667_v46 = vpop.f32.mrb[21].mxu0  ;;  %v1708_v35 = vpop.f32.mrb[21].mxu1 }
 0x239   :  { %v1851_v39 = vadd.f32 %v1667_v46, %v684_v51  ;;  %v1853_v43 = vadd.f32 %v1708_v35, %v757_v14  ;;  %v1669_v36 = vpop.f32.mrb[22].mxu0  ;;  %v1710_v53 = vpop.f32.mrb[22].mxu1 }
 0x23a   :  { %v9062_v12 = vmul.f32 -1.442695, %v1850_v10  ;;  %v1670_v22 = vpop.f32.mrb[23].mxu0  ;;  %v1711_v9 = vpop.f32.mrb[23].mxu1 }
 0x23b   :  { %v9063_v0 = vmul.f32 -1.442695, %v1851_v39  ;;  %v821_v22 = vld [vmem:[%s12824_s4] sm:$0xf]  ;;  %v13294_v39 = vsub.s32 0, %v10698_v50 }
 0x23c   :  { %10038 = vpow2.f32 %v9062_v12 }
 0x23d   :  { %10040 = vpow2.f32 %v9063_v0  ;;  %v11189_v9 = vrot.slane %v821_v22, %v13294_v39 }
 0x23e   :  { %10042 = vtanh.f32 %v1852_v16 }
 0x246   :  { %v10039_v58 = vpop.eup %10038 }
 0x247   :  { %v10041_v24 = vpop.eup %10040  ;;  %v1857_v30 = vadd.f32 1.0, %v10039_v58 }
 0x248   :  { %v1863_v29 = vadd.f32 1.0, %v10041_v24  ;;  %v10043_v13 = vpop.eup %10042  ;;  %v13295_v24 = vsub.s32 1, %v10698_v50 }
 0x249   :  { %10044 = vrcp.f32 %v1857_v30 }
 0x24a   :  { %10046 = vrcp.f32 %v1863_v29  ;;  %v11193_v30 = vrot.slane %v821_v22, %v13295_v24  ;;  %v9064_v24 = vmul.f32 -1.442695, %v1853_v43 }
 0x253   :  { %v10045_v48 = vpop.eup %10044 }
 0x254   :  { %v10047_v5 = vpop.eup %10046  ;;  %v1874_v46 = vmul.f32 %v10045_v48, %v10043_v13  ;;  %v13296_v48 = vsub.s32 3, %v10698_v50 }
 0x255   :  { %v1873_v36 = vmul.f32 %v10047_v5, %v10738_v19 }
 0x256   :  { %v11199_v5 = vrot.slane %v821_v22, %v13296_v48 }
 0x257   :  { %v11182_v53 = vadd.f32 %v1874_v46, %v1873_v36  ;;  %v13297_v36 = vsub.s32 2, %v10698_v50  ;;  %v8842_v50 = vld [vmem:[%s12826_s6 + $0x8] sm:$0xff] }
 0x259   :  { %v11204_v39 = vrot.slane %v821_v22, %v13297_v36 }
 0x277   :  { %v1747_v16 = vpop.f32.mrb[24].mxu0  ;;  %v1788_v51 = vpop.f32.mrb[24].mxu1 }
 0x278   :  { %v1816_v14 = vadd.f32 %v11189_v9, %v1747_v16  ;;  %v1749_v31 = vpop.f32.mrb[25].mxu0  ;;  %v1790_v19 = vpop.f32.mrb[25].mxu1 }
 0x279   :  { %v1817_v10 = vadd.f32 %v11193_v30, %v1749_v31  ;;  %v1751_v35 = vpop.f32.mrb[26].mxu0  ;;  %v1792_v12 = vpop.f32.mrb[26].mxu1  ;;  %v1819_v46 = vadd.f32 %v11199_v5, %v1790_v19  ;;  %v1818_v31 = vadd.f32 %v11204_v39, %v1788_v51 }
 0x27a   :  { %v9059_v0 = vmul.f32 -1.442695, %v1816_v14  ;;  %v1752_v58 = vpop.f32.mrb[27].mxu0  ;;  %v1793_v29 = vpop.f32.mrb[27].mxu1 }
 0x27b   :  { %v9060_v13 = vmul.f32 -1.442695, %v1817_v10  ;;  %v9061_v16 = vmul.f32 -1.442695, %v1819_v46 }
 0x27c   :  { %10048 = vpow2.f32 %v9059_v0 }
 0x27d   :  { %10050 = vpow2.f32 %v9060_v13 }
 0x27e   :  { %10052 = vpow2.f32 %v9064_v24 }
 0x27f   :  { %10054 = vpow2.f32 %v9061_v16 }
 0x280   :  { %10056 = vtanh.f32 %v1818_v31 }
 0x286   :  { %v10049_v14 = vpop.eup %10048 }
 0x287   :  { %v10051_v35 = vpop.eup %10050  ;;  %v1823_v10 = vadd.f32 1.0, %v10049_v14 }
 0x288   :  { %v1829_v12 = vadd.f32 1.0, %v10051_v35  ;;  %v10053_v0 = vpop.eup %10052 }
 0x289   :  { %10058 = vrcp.f32 %v1823_v10  ;;  %v10055_v58 = vpop.eup %10054  ;;  %v1870_v22 = vadd.f32 1.0, %v10053_v0  ;;  %v13330_v0 = vld [vmem:[#allocation70_spill] sm:$0xff] }
 0x28a   :  { %10060 = vrcp.f32 %v1829_v12  ;;  %v10057_v19 = vpop.eup %10056  ;;  %v1836_v13 = vadd.f32 1.0, %v10055_v58  ;;  %v13331_v58 = vld [vmem:[#allocation71_spill] sm:$0xff] }
 0x28b   :  { %10062 = vtanh.f32 %v11182_v53 }
 0x28c   :  { %10064 = vrcp.f32 %v1870_v22  ;;  %v13335_v22 = vld [vmem:[#allocation75_spill] sm:$0xff] }
 0x28d   :  { %10066 = vrcp.f32 %v1836_v13  ;;  %v13341_v13 = vld [vmem:[#allocation81_spill] sm:$0xff] }
 0x293   :  { %v10059_v43 = vpop.eup %10058 }
 0x294   :  { %v10061_v29 = vpop.eup %10060  ;;  %v1840_v51 = vmul.f32 %v10059_v43, %v10057_v19  ;;  %v13332_v19 = vld [vmem:[#allocation72_spill] sm:$0xff]  ;;  %v13334_v43 = vld [vmem:[#allocation74_spill] sm:$0xff] }
 0x295   :  { %v1839_v48 = vmul.f32 %v10061_v29, %v8842_v50  ;;  %v10063_v36 = vpop.eup %10062  ;;  %v13333_v50 = vld [vmem:[#allocation73_spill] sm:$0xff]  ;;  %v13336_v29 = vld [vmem:[#allocation76_spill] sm:$0xff] }
 0x296   :  { %v10065_v24 = vpop.eup %10064 }
 0x297   :  { %v11211_v46 = vadd.f32 %v1840_v51, %v1839_v48  ;;  %v10067_v16 = vpop.eup %10066  ;;  %v1877_v14 = vmul.f32 %v10065_v24, %v10063_v36  ;;  %v13337_v51 = vld [vmem:[#allocation77_spill] sm:$0xff]  ;;  %v13342_v48 = vld [vmem:[#allocation84_spill] sm:$0xff]  ;;  %v13343_v36 = vld [vmem:[#allocation82_spill] sm:$0xff] }
 0x298   :  { %v13344_v24 = vld [vmem:[#allocation83_spill] sm:$0xff] }
 0x299   :  { %10068 = vtanh.f32 %v11211_v46  ;;  %v11214_v12 = vpack.c.bf16 %v1877_v14, %v1877_v14  ;;  %v13347_v14 = vld [vmem:[#allocation86_spill] sm:$0xff] }
 0x2a3   :  { %v10069_v31 = vpop.eup %10068 }
 0x2a4   :  { %v1843_v35 = vmul.f32 %v10069_v31, %v10067_v16  ;;  %v13345_v16 = vld [vmem:[#allocation85_spill] sm:$0xff]  ;;  %v13346_v31 = vld [vmem:[#allocation88_spill] sm:$0xff] }
 0x2a6   :  { %v1844_v10 = vpack.c.bf16 %v1843_v35, %v1843_v35  ;;  %v13348_v35 = vld [vmem:[#allocation87_spill] sm:$0xff] }
 0x2a8   :  { %1845 = vst [vmem:[%s12827_s7] sm:$0xf] %v1844_v10  ;;  %2679 = vmatprep.mubr.bf16.mxu0 %v1844_v10  ;;  %2720 = vmatprep.mubr.bf16.mxu1 %v1844_v10 }
 0x2a9   :  { %2680 = vmatmul.mubr.bf16.vlgmr.msra.gmra.mrb[28].mxu0 %v11214_v12  ;;  %2721 = vmatmul.mubr.bf16.vlgmr.msra.gmra.mrb[28].mxu1 %v11214_v12 }
 0x2aa   :  { %2730 = vmatpush1.bf16.msra.mxu0 %v10684_v34  ;;  %2771 = vmatpush1.bf16.msra.mxu1 %v10688_v42  ;;  %v13298_v34 = vld [vmem:[#allocation16_spill] sm:$0xff]  ;;  %v13299_v42 = vld [vmem:[#allocation15_spill] sm:$0xff] }
 0x2ab   :  { %2761 = vmatprep.mubr.bf16.mxu0 %v1844_v10  ;;  %2802 = vmatprep.mubr.bf16.mxu1 %v1844_v10  ;;  %v13349_v10 = vld [vmem:[#allocation89_spill] sm:$0xff] }
 0x2ac   :  { %2731 = vmatprep.subr.bf16.mxu0 %v10743_v47  ;;  %2772 = vmatprep.subr.bf16.mxu1 %v10745_v52  ;;  %v13300_v47 = vld [vmem:[#allocation17_spill] sm:$0xff]  ;;  %v13301_v52 = vld [vmem:[#allocation18_spill] sm:$0xff] }
 0x2ae   :  { %2732 = vmatpush1.bf16.msra.mxu0 %v10751_v1  ;;  %2773 = vmatpush1.bf16.msra.mxu1 %v10753_v7  ;;  %v13302_v1 = vld [vmem:[#allocation19_spill] sm:$0xff]  ;;  %v13303_v7 = vld [vmem:[#allocation20_spill] sm:$0xff] }
 0x2af   :  { %2733 = vmatprep.subr.bf16.mxu0 %v10757_v11  ;;  %2774 = vmatprep.subr.bf16.mxu1 %v10759_v21  ;;  %v13304_v11 = vld [vmem:[#allocation11_spill] sm:$0xff]  ;;  %v13305_v21 = vld [vmem:[#allocation21_spill] sm:$0xff] }
 0x2b2   :  { %2734 = vmatpush1.bf16.msra.mxu0 %v10765_v56  ;;  %2775 = vmatpush1.bf16.msra.mxu1 %v10767_v33  ;;  %v13306_v56 = vld [vmem:[#allocation22_spill] sm:$0xff]  ;;  %v13307_v33 = vld [vmem:[#allocation23_spill] sm:$0xff] }
 0x2b3   :  { %2735 = vmatprep.subr.bf16.mxu0 %v10771_v41  ;;  %2776 = vmatprep.subr.bf16.mxu1 %v10773_v45  ;;  %v13308_v41 = vld [vmem:[#allocation24_spill] sm:$0xff]  ;;  %v13309_v45 = vld [vmem:[#allocation25_spill] sm:$0xff] }
 0x2b6   :  { %2736 = vmatpush1.bf16.msra.mxu0 %v10777_v32  ;;  %2777 = vmatpush1.bf16.msra.mxu1 %v10779_v63  ;;  %v13310_v32 = vld [vmem:[#allocation26_spill] sm:$0xff]  ;;  %v13311_v63 = vld [vmem:[#allocation27_spill] sm:$0xff] }
 0x2b7   :  { %2737 = vmatprep.subr.bf16.mxu0 %v10783_v49  ;;  %2778 = vmatprep.subr.bf16.mxu1 %v10785_v2  ;;  %v13312_v49 = vld [vmem:[#allocation28_spill] sm:$0xff]  ;;  %v13313_v2 = vld [vmem:[#allocation29_spill] sm:$0xff] }
 0x2ba   :  { %2738 = vmatpush1.bf16.msra.mxu0 %v10789_v25  ;;  %2779 = vmatpush1.bf16.msra.mxu1 %v10791_v3  ;;  %v13314_v25 = vld [vmem:[#allocation30_spill] sm:$0xff]  ;;  %v13315_v3 = vld [vmem:[#allocation31_spill] sm:$0xff] }
 0x2bb   :  { %2739 = vmatprep.subr.bf16.mxu0 %v10795_v4  ;;  %2780 = vmatprep.subr.bf16.mxu1 %v10797_v8  ;;  %v13316_v4 = vld [vmem:[#allocation32_spill] sm:$0xff]  ;;  %v13317_v8 = vld [vmem:[#allocation33_spill] sm:$0xff] }
 0x2be   :  { %2740 = vmatpush1.bf16.msra.mxu0 %v10801_v20  ;;  %2781 = vmatpush1.bf16.msra.mxu1 %v10803_v23  ;;  %v13318_v20 = vld [vmem:[#allocation34_spill] sm:$0xff]  ;;  %v13319_v23 = vld [vmem:[#allocation35_spill] sm:$0xff] }
 0x2bf   :  { %2741 = vmatprep.subr.bf16.mxu0 %v10807_v26  ;;  %2782 = vmatprep.subr.bf16.mxu1 %v10809_v27  ;;  %v13320_v26 = vld [vmem:[#allocation36_spill] sm:$0xff]  ;;  %v13321_v27 = vld [vmem:[#allocation37_spill] sm:$0xff] }
 0x2c2   :  { %2742 = vmatpush1.bf16.msra.mxu0 %v10813_v57  ;;  %2783 = vmatpush1.bf16.msra.mxu1 %v10815_v60  ;;  %v13322_v57 = vld [vmem:[#allocation38_spill] sm:$0xff]  ;;  %v13323_v60 = vld [vmem:[#allocation39_spill] sm:$0xff] }
 0x2c3   :  { %2743 = vmatprep.subr.bf16.mxu0 %v10819_v61  ;;  %2784 = vmatprep.subr.bf16.mxu1 %v10821_v38  ;;  %v13324_v61 = vld [vmem:[#allocation40_spill] sm:$0xff]  ;;  %v13325_v38 = vld [vmem:[#allocation41_spill] sm:$0xff] }
 0x2c6   :  { %2744 = vmatpush1.bf16.msra.mxu0 %v10825_v17  ;;  %2785 = vmatpush1.bf16.msra.mxu1 %v10827_v18  ;;  %v13326_v17 = vld [vmem:[#allocation44_spill] sm:$0xff]  ;;  %v13327_v18 = vld [vmem:[#allocation45_spill] sm:$0xff] }
 0x2c7   :  { %2745 = vmatprep.subr.bf16.mxu0 %v10831_v44  ;;  %2786 = vmatprep.subr.bf16.mxu1 %v13298_v34  ;;  %v13328_v44 = vld [vmem:[#allocation68_spill] sm:$0xff]  ;;  %v13351_v34 = vld [vmem:[#allocation90_spill] sm:$0xff] }
 0x2ca   :  { %2746 = vmatpush1.bf16.msra.mxu0 %v13299_v42  ;;  %2787 = vmatpush1.bf16.msra.mxu1 %v13300_v47  ;;  %v13352_v42 = vld [vmem:[#allocation91_spill] sm:$0xff]  ;;  %v13353_v47 = vld [vmem:[#allocation93_spill] sm:$0xff] }
 0x2cb   :  { %2747 = vmatprep.subr.bf16.mxu0 %v13301_v52  ;;  %2788 = vmatprep.subr.bf16.mxu1 %v13302_v1  ;;  %v13354_v52 = vld [vmem:[#allocation96_spill] sm:$0xff]  ;;  %v13355_v1 = vld [vmem:[#allocation94_spill] sm:$0xff] }
 0x2ce   :  { %2748 = vmatpush1.bf16.msra.mxu0 %v13303_v7  ;;  %2789 = vmatpush1.bf16.msra.mxu1 %v13304_v11  ;;  %v13356_v7 = vld [vmem:[#allocation95_spill] sm:$0xff]  ;;  %v13357_v11 = vld [vmem:[#allocation97_spill] sm:$0xff] }
 0x2cf   :  { %2749 = vmatprep.subr.bf16.mxu0 %v13305_v21  ;;  %2790 = vmatprep.subr.bf16.mxu1 %v13306_v56  ;;  %v13358_v21 = vld [vmem:[#allocation100_spill] sm:$0xff]  ;;  %v13359_v56 = vld [vmem:[#allocation98_spill] sm:$0xff] }
 0x2d2   :  { %2750 = vmatpush1.bf16.msra.mxu0 %v13307_v33  ;;  %2791 = vmatpush1.bf16.msra.mxu1 %v13308_v41  ;;  %v13360_v33 = vld [vmem:[#allocation99_spill] sm:$0xff]  ;;  %v13361_v41 = vld [vmem:[#allocation101_spill] sm:$0xff] }
 0x2d3   :  { %2751 = vmatprep.subr.bf16.mxu0 %v13309_v45  ;;  %2792 = vmatprep.subr.bf16.mxu1 %v13310_v32  ;;  %v13362_v45 = vld [vmem:[#allocation104_spill] sm:$0xff]  ;;  %v13363_v32 = vld [vmem:[#allocation102_spill] sm:$0xff] }
 0x2d6   :  { %2752 = vmatpush1.bf16.msra.mxu0 %v13311_v63  ;;  %2793 = vmatpush1.bf16.msra.mxu1 %v13312_v49  ;;  %v13364_v63 = vld [vmem:[#allocation103_spill] sm:$0xff]  ;;  %v13365_v49 = vld [vmem:[#allocation105_spill] sm:$0xff] }
 0x2d7   :  { %2753 = vmatprep.subr.bf16.mxu0 %v13313_v2  ;;  %2794 = vmatprep.subr.bf16.mxu1 %v13314_v25  ;;  %v13366_v2 = vld [vmem:[#allocation108_spill] sm:$0xff]  ;;  %v13367_v25 = vld [vmem:[#allocation106_spill] sm:$0xff] }
 0x2da   :  { %2754 = vmatpush1.bf16.msra.mxu0 %v10885_v62  ;;  %2795 = vmatpush1.bf16.msra.mxu1 %v13315_v3  ;;  %v13329_v62 = vld [vmem:[#allocation69_spill] sm:$0xff]  ;;  %v13368_v3 = vld [vmem:[#allocation107_spill] sm:$0xff] }
 0x2db   :  { %2755 = vmatprep.subr.bf16.mxu0 %v13316_v4  ;;  %2796 = vmatprep.subr.bf16.mxu1 %v13317_v8  ;;  %v13369_v4 = vld [vmem:[#allocation109_spill] sm:$0xff]  ;;  %v13370_v8 = vld [vmem:[#allocation112_spill] sm:$0xff] }
 0x2de   :  { %2756 = vmatpush1.bf16.msra.mxu0 %v13318_v20  ;;  %2797 = vmatpush1.bf16.msra.mxu1 %v13319_v23  ;;  %v13371_v20 = vld [vmem:[#allocation110_spill] sm:$0xff]  ;;  %v13372_v23 = vld [vmem:[#allocation111_spill] sm:$0xff] }
 0x2df   :  { %2757 = vmatprep.subr.bf16.mxu0 %v13320_v26  ;;  %2798 = vmatprep.subr.bf16.mxu1 %v13321_v27  ;;  %v13373_v26 = vld [vmem:[#allocation113_spill] sm:$0xff]  ;;  %v13374_v27 = vld [vmem:[#allocation116_spill] sm:$0xff] }
 0x2e2   :  { %2758 = vmatpush1.bf16.msra.mxu0 %v13322_v57  ;;  %2799 = vmatpush1.bf16.msra.mxu1 %v13323_v60  ;;  %v13375_v57 = vld [vmem:[#allocation114_spill] sm:$0xff]  ;;  %v13376_v60 = vld [vmem:[#allocation115_spill] sm:$0xff] }
 0x2e3   :  { %2759 = vmatprep.subr.bf16.mxu0 %v13324_v61  ;;  %2800 = vmatprep.subr.bf16.mxu1 %v13325_v38  ;;  %v13377_v61 = vld [vmem:[#allocation117_spill] sm:$0xff]  ;;  %v13378_v38 = vld [vmem:[#allocation118_spill] sm:$0xff] }
 0x2e6   :  { %2760 = vmatpush1.bf16.msra.mxu0 %v13326_v17  ;;  %2801 = vmatpush1.bf16.msra.mxu1 %v13327_v18  ;;  %v13379_v17 = vld [vmem:[#allocation119_spill] sm:$0xff]  ;;  %v13380_v18 = vld [vmem:[#allocation120_spill] sm:$0xff] }
 0x2e7   :  { %3642 = vmatprep.subr.bf16.mxu0 %v13328_v44  ;;  %3683 = vmatprep.subr.bf16.mxu1 %v13329_v62  ;;  %v13381_v44 = vld [vmem:[#allocation121_spill] sm:$0xff]  ;;  %v13382_v62 = vld [vmem:[#allocation122_spill] sm:$0xff] }
 0x2e9   :  { %2762 = vmatmul.mubr.bf16.vlgmr.msra.gmra.mrb[32].mxu0 %v11214_v12  ;;  %2803 = vmatmul.mubr.bf16.vlgmr.msra.gmra.mrb[32].mxu1 %v11214_v12  ;;  %v13350_v12 = vld [vmem:[#allocation92_spill] sm:$0xff] }
 0x2ea   :  { %3643 = vmatpush1.bf16.msra.mxu0 %v10979_v28  ;;  %3684 = vmatpush1.bf16.msra.mxu1 %v10983_v59  ;;  %v13338_v28 = vld [vmem:[#allocation78_spill] sm:$0xff]  ;;  %v13339_v59 = vld [vmem:[#allocation79_spill] sm:$0xff] }
 0x2eb   :  { %3644 = vmatprep.subr.bf16.mxu0 %v10987_v6  ;;  %3685 = vmatprep.subr.bf16.mxu1 %v13330_v0  ;;  %v13340_v6 = vld [vmem:[#allocation80_spill] sm:$0xff]  ;;  %v13383_v0 = vld [vmem:[#allocation123_spill] sm:$0xff] }
 0x2ee   :  { %3645 = vmatpush1.bf16.msra.mxu0 %v13331_v58  ;;  %3686 = vmatpush1.bf16.msra.mxu1 %v13332_v19  ;;  %v13384_v58 = vld [vmem:[#allocation124_spill] sm:$0xff]  ;;  %v2876_v19 = vld [vmem:[#allocation8 + $0x10] sm:$0xff] }
 0x2ef   :  { %3646 = vmatprep.subr.bf16.mxu0 %v13333_v50  ;;  %3687 = vmatprep.subr.bf16.mxu1 %v13334_v43  ;;  %v2877_v50 = vld [vmem:[#allocation8 + $0x18] sm:$0xff] }
 0x2f2   :  { %3647 = vmatpush1.bf16.msra.mxu0 %v13335_v22  ;;  %3688 = vmatpush1.bf16.msra.mxu1 %v13336_v29  ;;  %v13385_v29 = vld [vmem:[#allocation12_spill] sm:$0xff] }
 0x2f3   :  { %3648 = vmatprep.subr.bf16.mxu0 %v13337_v51  ;;  %3689 = vmatprep.subr.bf16.mxu1 %v13338_v28  ;;  %v13386_v51 = vld [vmem:[#allocation42_spill] sm:$0xff] }
 0x2f4   :  { %v688_v28 = vadd.f32 %v13386_v51, %v13385_v29 }
 0x2f6   :  { %3649 = vmatpush1.bf16.msra.mxu0 %v13339_v59  ;;  %3690 = vmatpush1.bf16.msra.mxu1 %v13340_v6  ;;  %v13387_v59 = vld [vmem:[#allocation14_spill] sm:$0xff]  ;;  %v13388_v6 = vld [vmem:[#allocation43_spill] sm:$0xff] }
 0x2f7   :  { %3650 = vmatprep.subr.bf16.mxu0 %v13341_v13  ;;  %3691 = vmatprep.subr.bf16.mxu1 %v13342_v48  ;;  %v761_v13 = vadd.f32 %v13388_v6, %v13387_v59  ;;  %v13389_v48 = vld [vmem:[#allocation13_spill] sm:$0xff] }
 0x2fa   :  { %3651 = vmatpush1.bf16.msra.mxu0 %v13343_v36  ;;  %3692 = vmatpush1.bf16.msra.mxu1 %v13344_v24  ;;  %v13390_v36 = vld [vmem:[#allocation46_spill] sm:$0xff] }
 0x2fb   :  { %3652 = vmatprep.subr.bf16.mxu0 %v13345_v16  ;;  %3693 = vmatprep.subr.bf16.mxu1 %v13346_v31  ;;  %v690_v24 = vadd.f32 %v13390_v36, %v13389_v48  ;;  %v13391_v16 = vld [vmem:[#allocation47_spill] sm:$0xff] }
 0x2fc   :  { %v763_v31 = vadd.f32 %v13391_v16, %v10721_v37 }
 0x2fe   :  { %3653 = vmatpush1.bf16.msra.mxu0 %v13347_v14  ;;  %3694 = vmatpush1.bf16.msra.mxu1 %v13348_v35 }
 0x2ff   :  { %3654 = vmatprep.subr.bf16.mxu0 %v13349_v10  ;;  %3695 = vmatprep.subr.bf16.mxu1 %v13350_v12 }
 0x302   :  { %3655 = vmatpush1.bf16.msra.mxu0 %v13351_v34  ;;  %3696 = vmatpush1.bf16.msra.mxu1 %v13352_v42 }
 0x303   :  { %3656 = vmatprep.subr.bf16.mxu0 %v13353_v47  ;;  %3697 = vmatprep.subr.bf16.mxu1 %v13354_v52 }
 0x306   :  { %3657 = vmatpush1.bf16.msra.mxu0 %v13355_v1  ;;  %3698 = vmatpush1.bf16.msra.mxu1 %v13356_v7 }
 0x307   :  { %3658 = vmatprep.subr.bf16.mxu0 %v13357_v11  ;;  %3699 = vmatprep.subr.bf16.mxu1 %v13358_v21 }
 0x30a   :  { %3659 = vmatpush1.bf16.msra.mxu0 %v13359_v56  ;;  %3700 = vmatpush1.bf16.msra.mxu1 %v13360_v33 }
 0x30b   :  { %3660 = vmatprep.subr.bf16.mxu0 %v13361_v41  ;;  %3701 = vmatprep.subr.bf16.mxu1 %v13362_v45 }
 0x30e   :  { %3661 = vmatpush1.bf16.msra.mxu0 %v13363_v32  ;;  %3702 = vmatpush1.bf16.msra.mxu1 %v13364_v63 }
 0x30f   :  { %3662 = vmatprep.subr.bf16.mxu0 %v13365_v49  ;;  %3703 = vmatprep.subr.bf16.mxu1 %v13366_v2 }
 0x312   :  { %3663 = vmatpush1.bf16.msra.mxu0 %v13367_v25  ;;  %3704 = vmatpush1.bf16.msra.mxu1 %v13368_v3 }
 0x313   :  { %3664 = vmatprep.subr.bf16.mxu0 %v13369_v4  ;;  %3705 = vmatprep.subr.bf16.mxu1 %v13370_v8 }
 0x316   :  { %3665 = vmatpush1.bf16.msra.mxu0 %v13371_v20  ;;  %3706 = vmatpush1.bf16.msra.mxu1 %v13372_v23 }
 0x317   :  { %3666 = vmatprep.subr.bf16.mxu0 %v13373_v26  ;;  %3707 = vmatprep.subr.bf16.mxu1 %v13374_v27 }
 0x31a   :  { %3667 = vmatpush1.bf16.msra.mxu0 %v13375_v57  ;;  %3708 = vmatpush1.bf16.msra.mxu1 %v13376_v60 }
 0x31b   :  { %3668 = vmatprep.subr.bf16.mxu0 %v13377_v61  ;;  %3709 = vmatprep.subr.bf16.mxu1 %v13378_v38 }
 0x31e   :  { %3669 = vmatpush1.bf16.msra.mxu0 %v11134_v15  ;;  %3710 = vmatpush1.bf16.msra.mxu1 %v11139_v40  ;;  %v2880_v15 = vld [vmem:[#allocation8 + $0x30] sm:$0xff] }
 0x31f   :  { %3670 = vmatprep.subr.bf16.mxu0 %v11143_v55  ;;  %3711 = vmatprep.subr.bf16.mxu1 %v11146_v54  ;;  %v11349_v40 = vcombine.high %v2876_v19, %v2880_v15  ;;  %v2881_v55 = vld [vmem:[#allocation8 + $0x38] sm:$0xff]  ;;  %v11351_v43 = vcombine.low %v2876_v19, %v2880_v15 }
 0x320   :  { %v11353_v54 = vcombine.low %v2877_v50, %v2881_v55  ;;  %v11355_v22 = vcombine.high %v2877_v50, %v2881_v55 }
 0x322   :  { %3671 = vmatpush1.bf16.msra.mxu0 %v13379_v17  ;;  %3712 = vmatpush1.bf16.msra.mxu1 %v13380_v18 }
 0x323   :  { %3672 = vmatprep.subr.bf16.mxu0 %v13381_v44  ;;  %3713 = vmatprep.subr.bf16.mxu1 %v13382_v62 }
 0x326   :  { %3673 = vmatpush1.bf16.msra.mxu0 %v13383_v0  ;;  %3714 = vmatpush1.bf16.msra.mxu1 %v13384_v58 }
 0x327   :  { %3724 = vmatprep.subr.bf16.mxu0 %v11349_v40  ;;  %3765 = vmatprep.subr.bf16.mxu1 %v11355_v22 }
 0x37c   :  { %v2681_v14 = vpop.f32.mrb[28].mxu0  ;;  %v2722_v35 = vpop.f32.mrb[28].mxu1 }
 0x37d   :  { %v2845_v10 = vadd.f32 %v2681_v14, %v688_v28  ;;  %v2847_v12 = vadd.f32 %v2722_v35, %v761_v13  ;;  %v2683_v34 = vpop.f32.mrb[29].mxu0  ;;  %v2724_v42 = vpop.f32.mrb[29].mxu1 }
 0x37e   :  { %v2846_v47 = vadd.f32 %v2683_v34, %v690_v24  ;;  %v2848_v52 = vadd.f32 %v2724_v42, %v763_v31  ;;  %v2685_v1 = vpop.f32.mrb[30].mxu0  ;;  %v2726_v7 = vpop.f32.mrb[30].mxu1 }
 0x37f   :  { %v9196_v11 = vmul.f32 -1.442695, %v2845_v10  ;;  %v2686_v21 = vpop.f32.mrb[31].mxu0  ;;  %v2727_v56 = vpop.f32.mrb[31].mxu1  ;;  %v2884_v7 = vld [vmem:[#allocation8 + $0x50] sm:$0xff] }
 0x380   :  { %v9197_v33 = vmul.f32 -1.442695, %v2846_v47  ;;  %v9198_v0 = vmul.f32 -1.442695, %v2848_v52  ;;  %v2885_v21 = vld [vmem:[#allocation8 + $0x58] sm:$0xff] }
 0x381   :  { %10070 = vpow2.f32 %v9196_v11  ;;  %v2888_v11 = vld [vmem:[#allocation8 + $0x70] sm:$0xff]  ;;  %v2889_v56 = vld [vmem:[#allocation8 + $0x78] sm:$0xff] }
 0x382   :  { %10072 = vpow2.f32 %v9197_v33 }
 0x383   :  { %10074 = vtanh.f32 %v2847_v12 }
 0x38b   :  { %v10071_v41 = vpop.eup %10070 }
 0x38c   :  { %v10073_v45 = vpop.eup %10072  ;;  %v2852_v32 = vadd.f32 1.0, %v10071_v41  ;;  %v2892_v41 = vld [vmem:[#allocation8 + $0x90] sm:$0xff] }
 0x38d   :  { %v2858_v63 = vadd.f32 1.0, %v10073_v45  ;;  %v10075_v49 = vpop.eup %10074  ;;  %v11384_v45 = vcombine.high %v2884_v7, %v2888_v11 }
 0x38e   :  { %10076 = vrcp.f32 %v2852_v32  ;;  %v11386_v32 = vcombine.high %v2885_v21, %v2889_v56 }
 0x38f   :  { %10078 = vrcp.f32 %v2858_v63  ;;  %v2896_v63 = vld [vmem:[#allocation8 + $0xb0] sm:$0xff] }
 0x398   :  { %v10077_v2 = vpop.eup %10076 }
 0x399   :  { %v10079_v25 = vpop.eup %10078  ;;  %v2869_v3 = vmul.f32 %v10077_v2, %v10075_v49  ;;  %v2893_v49 = vld [vmem:[#allocation8 + $0x98] sm:$0xff] }
 0x39a   :  { %v2868_v4 = vmul.f32 %v10079_v25, %v11182_v53  ;;  %v2897_v2 = vld [vmem:[#allocation8 + $0xb8] sm:$0xff]  ;;  %v11392_v25 = vcombine.low %v2884_v7, %v2888_v11 }
 0x39b   :  { %v2933_v7 = vld [vmem:[#allocation8 + $0x1d8] sm:$0xff] }
 0x39c   :  { %v11368_v8 = vadd.f32 %v2869_v3, %v2868_v4  ;;  %v11394_v3 = vcombine.low %v2885_v21, %v2889_v56  ;;  %v11396_v4 = vcombine.high %v2892_v41, %v2896_v63  ;;  %v2937_v11 = vld [vmem:[#allocation8 + $0x1f8] sm:$0xff] }
 0x3bc   :  { %v2763_v20 = vpop.f32.mrb[32].mxu0  ;;  %v2804_v23 = vpop.f32.mrb[32].mxu1 }
 0x3bd   :  { %v2811_v26 = vadd.f32 %v2763_v20, %v11189_v9  ;;  %v2765_v27 = vpop.f32.mrb[33].mxu0  ;;  %v2806_v57 = vpop.f32.mrb[33].mxu1  ;;  %v2813_v19 = vadd.f32 %v2804_v23, %v11204_v39  ;;  %v11398_v20 = vcombine.high %v2893_v49, %v2897_v2  ;;  %v2900_v23 = vld [vmem:[#allocation8 + $0xd0] sm:$0xff] }
 0x3be   :  { %v2812_v60 = vadd.f32 %v2765_v27, %v11193_v30  ;;  %v2767_v61 = vpop.f32.mrb[34].mxu0  ;;  %v2808_v38 = vpop.f32.mrb[34].mxu1  ;;  %v2814_v53 = vadd.f32 %v2806_v57, %v11199_v5  ;;  %v2901_v27 = vld [vmem:[#allocation8 + $0xd8] sm:$0xff] }
 0x3bf   :  { %v9193_v17 = vmul.f32 -1.442695, %v2811_v26  ;;  %v2768_v18 = vpop.f32.mrb[35].mxu0  ;;  %v2809_v44 = vpop.f32.mrb[35].mxu1  ;;  %v2904_v26 = vld [vmem:[#allocation8 + $0xf0] sm:$0xff]  ;;  %v2905_v57 = vld [vmem:[#allocation8 + $0xf8] sm:$0xff]  ;;  %v11406_v61 = vcombine.low %v2893_v49, %v2897_v2 }
 0x3c0   :  { %v9194_v62 = vmul.f32 -1.442695, %v2812_v60  ;;  %v9195_v58 = vmul.f32 -1.442695, %v2814_v53  ;;  %v11404_v60 = vcombine.low %v2892_v41, %v2896_v63  ;;  %v11410_v38 = vcombine.high %v2900_v23, %v2904_v26  ;;  %v2908_v18 = vld [vmem:[#allocation8 + $0x110] sm:$0xff]  ;;  %v2913_v53 = vld [vmem:[#allocation8 + $0x138] sm:$0xff] }
 0x3c1   :  { %10080 = vpow2.f32 %v9193_v17  ;;  %v11412_v17 = vcombine.high %v2901_v27, %v2905_v57  ;;  %v2912_v44 = vld [vmem:[#allocation8 + $0x130] sm:$0xff]  ;;  %v11460_v41 = vcombine.high %v2933_v7, %v2937_v11  ;;  %v2941_v2 = vld [vmem:[#allocation8 + $0x218] sm:$0xff] }
 0x3c2   :  { %10082 = vpow2.f32 %v9194_v62  ;;  %v2909_v62 = vld [vmem:[#allocation8 + $0x118] sm:$0xff]  ;;  %v2940_v63 = vld [vmem:[#allocation8 + $0x210] sm:$0xff] }
 0x3c3   :  { %10084 = vpow2.f32 %v9198_v0  ;;  %v11416_v0 = vcombine.low %v2900_v23, %v2904_v26  ;;  %v2944_v49 = vld [vmem:[#allocation8 + $0x230] sm:$0xff]  ;;  %v2945_v23 = vld [vmem:[#allocation8 + $0x238] sm:$0xff] }
 0x3c4   :  { %10086 = vpow2.f32 %v9195_v58  ;;  %v11418_v58 = vcombine.low %v2901_v27, %v2905_v57  ;;  %v11466_v27 = vcombine.low %v2933_v7, %v2937_v11  ;;  %v11470_v57 = vcombine.high %v2940_v63, %v2944_v49 }
 0x3c5   :  { %10088 = vtanh.f32 %v2813_v19  ;;  %v11422_v19 = vcombine.high %v2908_v18, %v2912_v44 }
 0x3cb   :  { %v10081_v15 = vpop.eup %10080 }
 0x3cc   :  { %v10083_v50 = vpop.eup %10082  ;;  %v2818_v55 = vadd.f32 1.0, %v10081_v15  ;;  %v11424_v15 = vcombine.high %v2909_v62, %v2913_v53 }
 0x3cd   :  { %v2824_v51 = vadd.f32 1.0, %v10083_v50  ;;  %v10085_v28 = vpop.eup %10084  ;;  %v2916_v50 = vld [vmem:[#allocation8 + $0x150] sm:$0xff] }
 0x3ce   :  { %10090 = vrcp.f32 %v2818_v55  ;;  %v10087_v6 = vpop.eup %10086  ;;  %v2865_v24 = vadd.f32 1.0, %v10085_v28  ;;  %v2920_v55 = vld [vmem:[#allocation8 + $0x170] sm:$0xff]  ;;  %v2921_v28 = vld [vmem:[#allocation8 + $0x178] sm:$0xff] }
 0x3cf   :  { %10092 = vrcp.f32 %v2824_v51  ;;  %v10089_v13 = vpop.eup %10088  ;;  %v2831_v14 = vadd.f32 1.0, %v10087_v6  ;;  %v2917_v51 = vld [vmem:[#allocation8 + $0x158] sm:$0xff]  ;;  %v11428_v6 = vcombine.low %v2908_v18, %v2912_v44  ;;  %v11472_v18 = vcombine.high %v2941_v2, %v2945_v23  ;;  %v2948_v44 = vld [vmem:[#allocation8 + $0x250] sm:$0xff] }
 0x3d0   :  { %10094 = vtanh.f32 %v11368_v8 }
 0x3d1   :  { %10096 = vrcp.f32 %v2865_v24  ;;  %v11436_v24 = vcombine.high %v2917_v51, %v2921_v28  ;;  %13392 = vst [vmem:[#allocation16_spill] sm:$0xff] %v11472_v18 }
 0x3d2   :  { %10098 = vrcp.f32 %v2831_v14  ;;  %v2925_v14 = vld [vmem:[#allocation8 + $0x198] sm:$0xff] }
 0x3d8   :  { %v10091_v36 = vpop.eup %10090 }
 0x3d9   :  { %v10093_v16 = vpop.eup %10092  ;;  %v2835_v31 = vmul.f32 %v10091_v36, %v10089_v13  ;;  %v11430_v13 = vcombine.low %v2909_v62, %v2913_v53  ;;  %v11434_v36 = vcombine.high %v2916_v50, %v2920_v55  ;;  %v2952_v62 = vld [vmem:[#allocation8 + $0x270] sm:$0xff]  ;;  %v2949_v53 = vld [vmem:[#allocation8 + $0x258] sm:$0xff] }
 0x3da   :  { %v2834_v35 = vmul.f32 %v10093_v16, %v11211_v46  ;;  %v10095_v12 = vpop.eup %10094  ;;  %v2924_v16 = vld [vmem:[#allocation8 + $0x190] sm:$0xff] }
 0x3db   :  { %v10097_v34 = vpop.eup %10096 }
 0x3dc   :  { %v11376_v10 = vadd.f32 %v2835_v31, %v2834_v35  ;;  %v10099_v42 = vpop.eup %10098  ;;  %v2872_v52 = vmul.f32 %v10097_v34, %v10095_v12  ;;  %v2928_v31 = vld [vmem:[#allocation8 + $0x1b0] sm:$0xff]  ;;  %v2929_v35 = vld [vmem:[#allocation8 + $0x1b8] sm:$0xff]  ;;  %v11440_v12 = vcombine.low %v2916_v50, %v2920_v55  ;;  %v11442_v34 = vcombine.low %v2917_v51, %v2921_v28 }
 0x3dd   :  { %v11452_v21 = vcombine.low %v2924_v16, %v2928_v31  ;;  %v11454_v56 = vcombine.low %v2925_v14, %v2929_v35  ;;  %v2953_v50 = vld [vmem:[#allocation8 + $0x278] sm:$0xff]  ;;  %v11476_v55 = vcombine.low %v2940_v63, %v2944_v49  ;;  %v11478_v51 = vcombine.low %v2941_v2, %v2945_v23  ;;  %v2964_v49 = vld [vmem:[#allocation8 + $0x2d0] sm:$0xff] }
 0x3de   :  { %10100 = vtanh.f32 %v11376_v10  ;;  %v11379_v46 = vpack.c.bf16 %v2872_v52, %v2872_v52  ;;  %v2932_v52 = vld [vmem:[#allocation8 + $0x1d0] sm:$0xff]  ;;  %v11482_v28 = vcombine.high %v2948_v44, %v2952_v62  ;;  %v11490_v7 = vcombine.low %v2949_v53, %v2953_v50  ;;  %v2965_v23 = vld [vmem:[#allocation8 + $0x2d8] sm:$0xff] }
 0x3df   :  { %13393 = vst [vmem:[#allocation15_spill] sm:$0xff] %v11476_v55  ;;  %13394 = vst [vmem:[#allocation17_spill] sm:$0xff] %v11478_v51  ;;  %v2968_v2 = vld [vmem:[#allocation8 + $0x2f0] sm:$0xff] }
 0x3e0   :  { %13395 = vst [vmem:[#allocation18_spill] sm:$0xff] %v11482_v28  ;;  %13398 = vst [vmem:[#allocation11_spill] sm:$0xff] %v11490_v7 }
 0x3e8   :  { %v10101_v47 = vpop.eup %10100 }
 0x3e9   :  { %v2838_v1 = vmul.f32 %v10101_v47, %v10099_v42  ;;  %v11446_v42 = vcombine.high %v2924_v16, %v2928_v31  ;;  %v11448_v47 = vcombine.high %v2925_v14, %v2929_v35  ;;  %v11484_v16 = vcombine.high %v2949_v53, %v2953_v50  ;;  %v2956_v31 = vld [vmem:[#allocation8 + $0x290] sm:$0xff]  ;;  %v2957_v35 = vld [vmem:[#allocation8 + $0x298] sm:$0xff] }
 0x3ea   :  { %v2960_v14 = vld [vmem:[#allocation8 + $0x2b0] sm:$0xff]  ;;  %v11506_v53 = vcombine.high %v2964_v49, %v2968_v2 }
 0x3eb   :  { %v2839_v33 = vpack.c.bf16 %v2838_v1, %v2838_v1  ;;  %v2936_v1 = vld [vmem:[#allocation8 + $0x1f0] sm:$0xff]  ;;  %13396 = vst [vmem:[#allocation19_spill] sm:$0xff] %v11484_v16  ;;  %v11494_v11 = vcombine.high %v2956_v31, %v2960_v14 }
 0x3ec   :  { %v11464_v26 = vcombine.low %v2932_v52, %v2936_v1  ;;  %13403 = vst [vmem:[#allocation25_spill] sm:$0xff] %v11506_v53 }
 0x3ed   :  { %2840 = vst [vmem:[%s12827_s7 + $0x4] sm:$0xf] %v2839_v33  ;;  %3674 = vmatprep.mubr.bf16.mxu0 %v2839_v33  ;;  %3715 = vmatprep.mubr.bf16.mxu1 %v2839_v33  ;;  %13399 = vst [vmem:[#allocation21_spill] sm:$0xff] %v11494_v11 }
 0x3ee   :  { %3675 = vmatmul.mubr.bf16.vlgmr.msra.gmra.mrb[36].mxu0 %v11379_v46  ;;  %3716 = vmatmul.mubr.bf16.vlgmr.msra.gmra.mrb[36].mxu1 %v11379_v46 }
 0x3ef   :  { %3725 = vmatpush1.bf16.msra.mxu0 %v11351_v43  ;;  %3766 = vmatpush1.bf16.msra.mxu1 %v11353_v54 }
 0x3f0   :  { %3756 = vmatprep.mubr.bf16.mxu0 %v2839_v33  ;;  %3797 = vmatprep.mubr.bf16.mxu1 %v2839_v33  ;;  %v11458_v33 = vcombine.high %v2932_v52, %v2936_v1  ;;  %v2961_v52 = vld [vmem:[#allocation8 + $0x2b8] sm:$0xff]  ;;  %v11488_v1 = vcombine.low %v2948_v44, %v2952_v62  ;;  %v11500_v44 = vcombine.low %v2956_v31, %v2960_v14 }
 0x3f1   :  { %3726 = vmatprep.subr.bf16.mxu0 %v11384_v45  ;;  %3767 = vmatprep.subr.bf16.mxu1 %v11386_v32  ;;  %v11496_v63 = vcombine.high %v2957_v35, %v2961_v52  ;;  %v11502_v62 = vcombine.low %v2957_v35, %v2961_v52  ;;  %v11512_v31 = vcombine.low %v2964_v49, %v2968_v2 }
 0x3f2   :  { %13397 = vst [vmem:[#allocation20_spill] sm:$0xff] %v11488_v1  ;;  %13401 = vst [vmem:[#allocation23_spill] sm:$0xff] %v11500_v44 }
 0x3f3   :  { %3727 = vmatpush1.bf16.msra.mxu0 %v11392_v25  ;;  %3768 = vmatpush1.bf16.msra.mxu1 %v11394_v3  ;;  %13400 = vst [vmem:[#allocation22_spill] sm:$0xff] %v11496_v63  ;;  %13402 = vst [vmem:[#allocation24_spill] sm:$0xff] %v11502_v62 }
 0x3f4   :  { %3728 = vmatprep.subr.bf16.mxu0 %v11396_v4  ;;  %3769 = vmatprep.subr.bf16.mxu1 %v11398_v20  ;;  %13405 = vst [vmem:[#allocation27_spill] sm:$0xff] %v11512_v31 }
 0x3f7   :  { %3729 = vmatpush1.bf16.msra.mxu0 %v11404_v60  ;;  %3770 = vmatpush1.bf16.msra.mxu1 %v11406_v61 }
 0x3f8   :  { %3730 = vmatprep.subr.bf16.mxu0 %v11410_v38  ;;  %3771 = vmatprep.subr.bf16.mxu1 %v11412_v17 }
 0x3fb   :  { %3731 = vmatpush1.bf16.msra.mxu0 %v11416_v0  ;;  %3772 = vmatpush1.bf16.msra.mxu1 %v11418_v58 }
 0x3fc   :  { %3732 = vmatprep.subr.bf16.mxu0 %v11422_v19  ;;  %3773 = vmatprep.subr.bf16.mxu1 %v11424_v15 }
 0x3ff   :  { %3733 = vmatpush1.bf16.msra.mxu0 %v11428_v6  ;;  %3774 = vmatpush1.bf16.msra.mxu1 %v11430_v13 }
 0x400   :  { %3734 = vmatprep.subr.bf16.mxu0 %v11434_v36  ;;  %3775 = vmatprep.subr.bf16.mxu1 %v11436_v24 }
 0x403   :  { %3735 = vmatpush1.bf16.msra.mxu0 %v11440_v12  ;;  %3776 = vmatpush1.bf16.msra.mxu1 %v11442_v34 }
 0x404   :  { %3736 = vmatprep.subr.bf16.mxu0 %v11446_v42  ;;  %3777 = vmatprep.subr.bf16.mxu1 %v11448_v47 }
 0x407   :  { %3737 = vmatpush1.bf16.msra.mxu0 %v11452_v21  ;;  %3778 = vmatpush1.bf16.msra.mxu1 %v11454_v56 }
 0x408   :  { %3738 = vmatprep.subr.bf16.mxu0 %v11458_v33  ;;  %3779 = vmatprep.subr.bf16.mxu1 %v11460_v41 }
 0x40b   :  { %3739 = vmatpush1.bf16.msra.mxu0 %v11464_v26  ;;  %3780 = vmatpush1.bf16.msra.mxu1 %v11466_v27 }
 0x40c   :  { %3740 = vmatprep.subr.bf16.mxu0 %v11470_v57  ;;  %3781 = vmatprep.subr.bf16.mxu1 %v11472_v18  ;;  %v2969_v18 = vld [vmem:[#allocation8 + $0x2f8] sm:$0xff] }
 0x40d   :  { %v11508_v50 = vcombine.high %v2965_v23, %v2969_v18  ;;  %v11514_v14 = vcombine.low %v2965_v23, %v2969_v18 }
 0x40f   :  { %3741 = vmatpush1.bf16.msra.mxu0 %v11476_v55  ;;  %3782 = vmatpush1.bf16.msra.mxu1 %v11478_v51  ;;  %13404 = vst [vmem:[#allocation26_spill] sm:$0xff] %v11508_v50  ;;  %v2973_v51 = vld [vmem:[#allocation8 + $0x318] sm:$0xff]  ;;  %13406 = vst [vmem:[#allocation28_spill] sm:$0xff] %v11514_v14 }
 0x410   :  { %3742 = vmatprep.subr.bf16.mxu0 %v11482_v28  ;;  %3783 = vmatprep.subr.bf16.mxu1 %v11484_v16  ;;  %v2972_v16 = vld [vmem:[#allocation8 + $0x310] sm:$0xff]  ;;  %v2977_v55 = vld [vmem:[#allocation8 + $0x338] sm:$0xff] }
 0x411   :  { %v2976_v28 = vld [vmem:[#allocation8 + $0x330] sm:$0xff]  ;;  %v11520_v52 = vcombine.high %v2973_v51, %v2977_v55  ;;  %v11526_v18 = vcombine.low %v2973_v51, %v2977_v55 }
 0x412   :  { %v11518_v35 = vcombine.high %v2972_v16, %v2976_v28  ;;  %v11524_v49 = vcombine.low %v2972_v16, %v2976_v28 }
 0x413   :  { %3743 = vmatpush1.bf16.msra.mxu0 %v11488_v1  ;;  %3784 = vmatpush1.bf16.msra.mxu1 %v11490_v7  ;;  %13408 = vst [vmem:[#allocation30_spill] sm:$0xff] %v11520_v52  ;;  %v2981_v7 = vld [vmem:[#allocation8 + $0x358] sm:$0xff]  ;;  %13409 = vst [vmem:[#allocation31_spill] sm:$0xff] %v11526_v18 }
 0x414   :  { %3744 = vmatprep.subr.bf16.mxu0 %v11494_v11  ;;  %3785 = vmatprep.subr.bf16.mxu1 %v11496_v63  ;;  %13407 = vst [vmem:[#allocation29_spill] sm:$0xff] %v11518_v35  ;;  %v2980_v63 = vld [vmem:[#allocation8 + $0x350] sm:$0xff]  ;;  %v2985_v1 = vld [vmem:[#allocation8 + $0x378] sm:$0xff] }
 0x415   :  { %v2984_v11 = vld [vmem:[#allocation8 + $0x370] sm:$0xff]  ;;  %v11532_v23 = vcombine.high %v2981_v7, %v2985_v1  ;;  %v11538_v55 = vcombine.low %v2981_v7, %v2985_v1 }
 0x416   :  { %v11530_v2 = vcombine.high %v2980_v63, %v2984_v11  ;;  %v11536_v28 = vcombine.low %v2980_v63, %v2984_v11 }
 0x417   :  { %3745 = vmatpush1.bf16.msra.mxu0 %v11500_v44  ;;  %3786 = vmatpush1.bf16.msra.mxu1 %v11502_v62  ;;  %13411 = vst [vmem:[#allocation33_spill] sm:$0xff] %v11532_v23  ;;  %v2989_v62 = vld [vmem:[#allocation8 + $0x398] sm:$0xff]  ;;  %13413 = vst [vmem:[#allocation35_spill] sm:$0xff] %v11538_v55 }
 0x418   :  { %3746 = vmatprep.subr.bf16.mxu0 %v11506_v53  ;;  %3787 = vmatprep.subr.bf16.mxu1 %v11508_v50  ;;  %13410 = vst [vmem:[#allocation32_spill] sm:$0xff] %v11530_v2  ;;  %v2988_v50 = vld [vmem:[#allocation8 + $0x390] sm:$0xff]  ;;  %v2993_v44 = vld [vmem:[#allocation8 + $0x3b8] sm:$0xff]  ;;  %13412 = vst [vmem:[#allocation34_spill] sm:$0xff] %v11536_v28 }
 0x419   :  { %v2992_v53 = vld [vmem:[#allocation8 + $0x3b0] sm:$0xff]  ;;  %v11544_v16 = vcombine.high %v2989_v62, %v2993_v44  ;;  %v11550_v1 = vcombine.low %v2989_v62, %v2993_v44  ;;  %v3869_v44 = vld [vmem:[#allocation8] sm:$0xff] }
 0x41a   :  { %v11542_v51 = vcombine.high %v2988_v50, %v2992_v53  ;;  %v11548_v11 = vcombine.low %v2988_v50, %v2992_v53  ;;  %v3873_v62 = vld [vmem:[#allocation8 + $0x20] sm:$0xff]  ;;  %v3870_v53 = vld [vmem:[#allocation8 + $0x8] sm:$0xff] }
 0x41b   :  { %3747 = vmatpush1.bf16.msra.mxu0 %v11512_v31  ;;  %3788 = vmatpush1.bf16.msra.mxu1 %v11514_v14  ;;  %13415 = vst [vmem:[#allocation37_spill] sm:$0xff] %v11544_v16  ;;  %v2997_v14 = vld [vmem:[#allocation8 + $0x3d8] sm:$0xff]  ;;  %13417 = vst [vmem:[#allocation39_spill] sm:$0xff] %v11550_v1  ;;  %v11570_v50 = vcombine.low %v3869_v44, %v3873_v62 }
 0x41c   :  { %3748 = vmatprep.subr.bf16.mxu0 %v11518_v35  ;;  %3789 = vmatprep.subr.bf16.mxu1 %v11520_v52  ;;  %13414 = vst [vmem:[#allocation36_spill] sm:$0xff] %v11542_v51  ;;  %v2996_v52 = vld [vmem:[#allocation8 + $0x3d0] sm:$0xff]  ;;  %v3001_v31 = vld [vmem:[#allocation8 + $0x3f8] sm:$0xff]  ;;  %13416 = vst [vmem:[#allocation38_spill] sm:$0xff] %v11548_v11 }
 0x41d   :  { %v3000_v35 = vld [vmem:[#allocation8 + $0x3f0] sm:$0xff]  ;;  %v11556_v63 = vcombine.high %v2997_v14, %v3001_v31 }
 0x41e   :  { %v11554_v7 = vcombine.high %v2996_v52, %v3000_v35 }
 0x41f   :  { %3749 = vmatpush1.bf16.msra.mxu0 %v11524_v49  ;;  %3790 = vmatpush1.bf16.msra.mxu1 %v11526_v18  ;;  %13419 = vst [vmem:[#allocation41_spill] sm:$0xff] %v11556_v63  ;;  %v3894_v18 = vld [vmem:[#allocation8 + $0xc8] sm:$0xff] }
 0x420   :  { %3750 = vmatprep.subr.bf16.mxu0 %v11530_v2  ;;  %3791 = vmatprep.subr.bf16.mxu1 %v11532_v23  ;;  %13418 = vst [vmem:[#allocation40_spill] sm:$0xff] %v11554_v7  ;;  %v11560_v23 = vcombine.low %v2996_v52, %v3000_v35  ;;  %v11572_v35 = vcombine.high %v3869_v44, %v3873_v62  ;;  %v3881_v52 = vld [vmem:[#allocation8 + $0x60] sm:$0xff]  ;;  %v3890_v44 = vld [vmem:[#allocation8 + $0xa8] sm:$0xff] }
 0x421   :  { %v3897_v2 = vld [vmem:[#allocation8 + $0xe0] sm:$0xff] }
 0x422   :  { %13420 = vst [vmem:[#allocation44_spill] sm:$0xff] %v11560_v23  ;;  %13422 = vst [vmem:[#allocation68_spill] sm:$0xff] %v11572_v35 }
 0x423   :  { %3751 = vmatpush1.bf16.msra.mxu0 %v11536_v28  ;;  %3792 = vmatpush1.bf16.msra.mxu1 %v11538_v55  ;;  %v11562_v28 = vcombine.low %v2997_v14, %v3001_v31  ;;  %v3874_v31 = vld [vmem:[#allocation8 + $0x28] sm:$0xff]  ;;  %v3877_v14 = vld [vmem:[#allocation8 + $0x40] sm:$0xff] }
 0x424   :  { %3752 = vmatprep.subr.bf16.mxu0 %v11542_v51  ;;  %3793 = vmatprep.subr.bf16.mxu1 %v11544_v16  ;;  %v3889_v16 = vld [vmem:[#allocation8 + $0xa0] sm:$0xff]  ;;  %v3886_v51 = vld [vmem:[#allocation8 + $0x88] sm:$0xff]  ;;  %v11585_v62 = vcombine.low %v3877_v14, %v3881_v52 }
 0x425   :  { %13421 = vst [vmem:[#allocation45_spill] sm:$0xff] %v11562_v28  ;;  %v3893_v55 = vld [vmem:[#allocation8 + $0xc0] sm:$0xff] }
 0x426   :  { %13425 = vst [vmem:[#allocation71_spill] sm:$0xff] %v11585_v62 }
 0x427   :  { %3753 = vmatpush1.bf16.msra.mxu0 %v11548_v11  ;;  %3794 = vmatpush1.bf16.msra.mxu1 %v11550_v1  ;;  %v3882_v1 = vld [vmem:[#allocation8 + $0x68] sm:$0xff]  ;;  %v3885_v11 = vld [vmem:[#allocation8 + $0x80] sm:$0xff] }
 0x428   :  { %3754 = vmatprep.subr.bf16.mxu0 %v11554_v7  ;;  %3795 = vmatprep.subr.bf16.mxu1 %v11556_v63  ;;  %v11574_v7 = vcombine.low %v3870_v53, %v3874_v31  ;;  %v11576_v63 = vcombine.high %v3870_v53, %v3874_v31  ;;  %v11591_v31 = vcombine.high %v3885_v11, %v3889_v16 }
 0x42a   :  { %13423 = vst [vmem:[#allocation69_spill] sm:$0xff] %v11576_v63  ;;  %13427 = vst [vmem:[#allocation73_spill] sm:$0xff] %v11591_v31 }
 0x42b   :  { %3755 = vmatpush1.bf16.msra.mxu0 %v11560_v23  ;;  %3796 = vmatpush1.bf16.msra.mxu1 %v11562_v28  ;;  %v11578_v23 = vcombine.high %v3877_v14, %v3881_v52  ;;  %v3878_v28 = vld [vmem:[#allocation8 + $0x48] sm:$0xff]  ;;  %v11597_v14 = vcombine.low %v3885_v11, %v3889_v16  ;;  %v3905_v11 = vld [vmem:[#allocation8 + $0x120] sm:$0xff] }
 0x42c   :  { %4637 = vmatprep.subr.bf16.mxu0 %v11572_v35  ;;  %4678 = vmatprep.subr.bf16.mxu1 %v11576_v63  ;;  %v11589_v53 = vcombine.low %v3878_v28, %v3882_v1  ;;  %v11594_v35 = vcombine.high %v3886_v51, %v3890_v44  ;;  %v3898_v63 = vld [vmem:[#allocation8 + $0xe8] sm:$0xff] }
 0x42d   :  { %13429 = vst [vmem:[#allocation75_spill] sm:$0xff] %v11597_v14  ;;  %v11606_v52 = vcombine.high %v3894_v18, %v3898_v63  ;;  %v11613_v16 = vcombine.low %v3894_v18, %v3898_v63  ;;  %v3909_v18 = vld [vmem:[#allocation8 + $0x140] sm:$0xff] }
 0x42e   :  { %3757 = vmatmul.mubr.bf16.vlgmr.msra.gmra.mrb[40].mxu0 %v11379_v46  ;;  %3798 = vmatmul.mubr.bf16.vlgmr.msra.gmra.mrb[40].mxu1 %v11379_v46  ;;  %v11581_v46 = vcombine.high %v3878_v28, %v3882_v1  ;;  %13426 = vst [vmem:[#allocation72_spill] sm:$0xff] %v11589_v53  ;;  %13428 = vst [vmem:[#allocation74_spill] sm:$0xff] %v11594_v35  ;;  %v11601_v28 = vcombine.low %v3886_v51, %v3890_v44  ;;  %v3901_v51 = vld [vmem:[#allocation8 + $0x100] sm:$0xff]  ;;  %v3902_v44 = vld [vmem:[#allocation8 + $0x108] sm:$0xff] }
 0x42f   :  { %4638 = vmatpush1.bf16.msra.mxu0 %v11570_v50  ;;  %4679 = vmatpush1.bf16.msra.mxu1 %v11574_v7  ;;  %v11603_v1 = vcombine.high %v3893_v55, %v3897_v2  ;;  %13432 = vst [vmem:[#allocation78_spill] sm:$0xff] %v11606_v52  ;;  %13434 = vst [vmem:[#allocation80_spill] sm:$0xff] %v11613_v16  ;;  %v3913_v63 = vld [vmem:[#allocation8 + $0x160] sm:$0xff] }
 0x430   :  { %13424 = vst [vmem:[#allocation70_spill] sm:$0xff] %v11581_v46  ;;  %4639 = vmatprep.subr.bf16.mxu0 %v11578_v23  ;;  %4680 = vmatprep.subr.bf16.mxu1 %v11581_v46  ;;  %13430 = vst [vmem:[#allocation76_spill] sm:$0xff] %v11601_v28  ;;  %v11609_v46 = vcombine.low %v3893_v55, %v3897_v2  ;;  %v11620_v2 = vcombine.low %v3901_v51, %v3905_v11 }
 0x431   :  { %13431 = vst [vmem:[#allocation77_spill] sm:$0xff] %v11603_v1 }
 0x432   :  { %13433 = vst [vmem:[#allocation79_spill] sm:$0xff] %v11609_v46  ;;  %13436 = vst [vmem:[#allocation84_spill] sm:$0xff] %v11620_v2 }
 0x433   :  { %4640 = vmatpush1.bf16.msra.mxu0 %v11585_v62  ;;  %4681 = vmatpush1.bf16.msra.mxu1 %v11589_v53  ;;  %v3986_v53 = vld [vmem:[#allocation8 + $0x3a8] sm:$0xff] }
 0x434   :  { %4641 = vmatprep.subr.bf16.mxu0 %v11591_v31  ;;  %4682 = vmatprep.subr.bf16.mxu1 %v11594_v35  ;;  %v11618_v35 = vcombine.high %v3901_v51, %v3905_v11  ;;  %v11632_v51 = vcombine.low %v3909_v18, %v3913_v63  ;;  %v3982_v31 = vld [vmem:[#allocation8 + $0x388] sm:$0xff] }
 0x435   :  { %v3994_v62 = vld [vmem:[#allocation8 + $0x3e8] sm:$0xff] }
 0x436   :  { %13435 = vst [vmem:[#allocation81_spill] sm:$0xff] %v11618_v35  ;;  %13440 = vst [vmem:[#allocation88_spill] sm:$0xff] %v11632_v51 }
 0x437   :  { %4642 = vmatpush1.bf16.msra.mxu0 %v11597_v14  ;;  %4683 = vmatpush1.bf16.msra.mxu1 %v11601_v28  ;;  %v3906_v14 = vld [vmem:[#allocation8 + $0x128] sm:$0xff] }
 0x438   :  { %4643 = vmatprep.subr.bf16.mxu0 %v11603_v1  ;;  %4684 = vmatprep.subr.bf16.mxu1 %v11606_v52  ;;  %v11622_v55 = vcombine.low %v3902_v44, %v3906_v14  ;;  %v11624_v28 = vcombine.high %v3902_v44, %v3906_v14  ;;  %v3914_v52 = vld [vmem:[#allocation8 + $0x168] sm:$0xff]  ;;  %v3917_v44 = vld [vmem:[#allocation8 + $0x180] sm:$0xff] }
 0x439   :  { %v3978_v1 = vld [vmem:[#allocation8 + $0x368] sm:$0xff] }
 0x43a   :  { %13437 = vst [vmem:[#allocation82_spill] sm:$0xff] %v11622_v55  ;;  %13438 = vst [vmem:[#allocation83_spill] sm:$0xff] %v11624_v28 }
 0x43b   :  { %4644 = vmatpush1.bf16.msra.mxu0 %v11609_v46  ;;  %4685 = vmatpush1.bf16.msra.mxu1 %v11613_v16  ;;  %v3910_v16 = vld [vmem:[#allocation8 + $0x148] sm:$0xff]  ;;  %v11630_v46 = vcombine.high %v3909_v18, %v3913_v63 }
 0x43c   :  { %4645 = vmatprep.subr.bf16.mxu0 %v11618_v35  ;;  %4686 = vmatprep.subr.bf16.mxu1 %v11624_v28  ;;  %v11634_v11 = vcombine.low %v3910_v16, %v3914_v52  ;;  %v11636_v14 = vcombine.high %v3910_v16, %v3914_v52  ;;  %v3918_v28 = vld [vmem:[#allocation8 + $0x188] sm:$0xff]  ;;  %v3925_v16 = vld [vmem:[#allocation8 + $0x1c0] sm:$0xff] }
 0x43d   :  { %13439 = vst [vmem:[#allocation85_spill] sm:$0xff] %v11630_v46  ;;  %v3922_v35 = vld [vmem:[#allocation8 + $0x1a8] sm:$0xff] }
 0x43e   :  { %13441 = vst [vmem:[#allocation86_spill] sm:$0xff] %v11634_v11  ;;  %13442 = vst [vmem:[#allocation87_spill] sm:$0xff] %v11636_v14  ;;  %v11646_v63 = vcombine.low %v3918_v28, %v3922_v35  ;;  %v11648_v52 = vcombine.high %v3918_v28, %v3922_v35  ;;  %v3933_v28 = vld [vmem:[#allocation8 + $0x200] sm:$0xff] }
 0x43f   :  { %4646 = vmatpush1.bf16.msra.mxu0 %v11620_v2  ;;  %4687 = vmatpush1.bf16.msra.mxu1 %v11622_v55  ;;  %v3921_v2 = vld [vmem:[#allocation8 + $0x1a0] sm:$0xff] }
 0x440   :  { %4647 = vmatprep.subr.bf16.mxu0 %v11630_v46  ;;  %4688 = vmatprep.subr.bf16.mxu1 %v11636_v14  ;;  %v11642_v55 = vcombine.high %v3917_v44, %v3921_v2  ;;  %v11644_v18 = vcombine.low %v3917_v44, %v3921_v2  ;;  %13445 = vst [vmem:[#allocation90_spill] sm:$0xff] %v11646_v63  ;;  %13446 = vst [vmem:[#allocation91_spill] sm:$0xff] %v11648_v52  ;;  %v3926_v14 = vld [vmem:[#allocation8 + $0x1c8] sm:$0xff] }
 0x441   :  { %v3930_v46 = vld [vmem:[#allocation8 + $0x1e8] sm:$0xff] }
 0x442   :  { %13443 = vst [vmem:[#allocation89_spill] sm:$0xff] %v11642_v55  ;;  %13444 = vst [vmem:[#allocation92_spill] sm:$0xff] %v11644_v18  ;;  %v11658_v44 = vcombine.low %v3926_v14, %v3930_v46  ;;  %v11660_v35 = vcombine.high %v3926_v14, %v3930_v46  ;;  %v3941_v14 = vld [vmem:[#allocation8 + $0x240] sm:$0xff] }
 0x443   :  { %4648 = vmatpush1.bf16.msra.mxu0 %v11632_v51  ;;  %4689 = vmatpush1.bf16.msra.mxu1 %v11634_v11  ;;  %v3929_v51 = vld [vmem:[#allocation8 + $0x1e0] sm:$0xff] }
 0x444   :  { %4649 = vmatprep.subr.bf16.mxu0 %v11642_v55  ;;  %4690 = vmatprep.subr.bf16.mxu1 %v11648_v52  ;;  %v11654_v11 = vcombine.high %v3925_v16, %v3929_v51  ;;  %v11656_v2 = vcombine.low %v3925_v16, %v3929_v51  ;;  %13449 = vst [vmem:[#allocation94_spill] sm:$0xff] %v11658_v44  ;;  %13450 = vst [vmem:[#allocation95_spill] sm:$0xff] %v11660_v35  ;;  %v3934_v52 = vld [vmem:[#allocation8 + $0x208] sm:$0xff] }
 0x445   :  { %v3938_v55 = vld [vmem:[#allocation8 + $0x228] sm:$0xff] }
 0x446   :  { %13447 = vst [vmem:[#allocation93_spill] sm:$0xff] %v11654_v11  ;;  %13448 = vst [vmem:[#allocation96_spill] sm:$0xff] %v11656_v2  ;;  %v11670_v16 = vcombine.low %v3934_v52, %v3938_v55  ;;  %v11672_v46 = vcombine.high %v3934_v52, %v3938_v55  ;;  %v3949_v52 = vld [vmem:[#allocation8 + $0x280] sm:$0xff] }
 0x447   :  { %4650 = vmatpush1.bf16.msra.mxu0 %v11644_v18  ;;  %4691 = vmatpush1.bf16.msra.mxu1 %v11646_v63  ;;  %v3937_v18 = vld [vmem:[#allocation8 + $0x220] sm:$0xff] }
 0x448   :  { %4651 = vmatprep.subr.bf16.mxu0 %v11654_v11  ;;  %4692 = vmatprep.subr.bf16.mxu1 %v11660_v35  ;;  %v11666_v63 = vcombine.high %v3933_v28, %v3937_v18  ;;  %v11668_v51 = vcombine.low %v3933_v28, %v3937_v18  ;;  %13453 = vst [vmem:[#allocation98_spill] sm:$0xff] %v11670_v16  ;;  %13454 = vst [vmem:[#allocation99_spill] sm:$0xff] %v11672_v46  ;;  %v3942_v35 = vld [vmem:[#allocation8 + $0x248] sm:$0xff] }
 0x449   :  { %v3946_v11 = vld [vmem:[#allocation8 + $0x268] sm:$0xff] }
 0x44a   :  { %13451 = vst [vmem:[#allocation97_spill] sm:$0xff] %v11666_v63  ;;  %13452 = vst [vmem:[#allocation100_spill] sm:$0xff] %v11668_v51  ;;  %v11682_v28 = vcombine.low %v3942_v35, %v3946_v11  ;;  %v11684_v55 = vcombine.high %v3942_v35, %v3946_v11  ;;  %v3957_v35 = vld [vmem:[#allocation8 + $0x2c0] sm:$0xff] }
 0x44b   :  { %4652 = vmatpush1.bf16.msra.mxu0 %v11656_v2  ;;  %4693 = vmatpush1.bf16.msra.mxu1 %v11658_v44  ;;  %v3945_v2 = vld [vmem:[#allocation8 + $0x260] sm:$0xff] }
 0x44c   :  { %4653 = vmatprep.subr.bf16.mxu0 %v11666_v63  ;;  %4694 = vmatprep.subr.bf16.mxu1 %v11672_v46  ;;  %v11678_v44 = vcombine.high %v3941_v14, %v3945_v2  ;;  %v11680_v18 = vcombine.low %v3941_v14, %v3945_v2  ;;  %13457 = vst [vmem:[#allocation102_spill] sm:$0xff] %v11682_v28  ;;  %13458 = vst [vmem:[#allocation103_spill] sm:$0xff] %v11684_v55  ;;  %v3950_v46 = vld [vmem:[#allocation8 + $0x288] sm:$0xff] }
 0x44d   :  { %v3954_v63 = vld [vmem:[#allocation8 + $0x2a8] sm:$0xff] }
 0x44e   :  { %13455 = vst [vmem:[#allocation101_spill] sm:$0xff] %v11678_v44  ;;  %13456 = vst [vmem:[#allocation104_spill] sm:$0xff] %v11680_v18  ;;  %v11694_v14 = vcombine.low %v3950_v46, %v3954_v63  ;;  %v11696_v11 = vcombine.high %v3950_v46, %v3954_v63  ;;  %v3965_v46 = vld [vmem:[#allocation8 + $0x300] sm:$0xff] }
 0x44f   :  { %4654 = vmatpush1.bf16.msra.mxu0 %v11668_v51  ;;  %4695 = vmatpush1.bf16.msra.mxu1 %v11670_v16  ;;  %v3953_v51 = vld [vmem:[#allocation8 + $0x2a0] sm:$0xff] }
 0x450   :  { %4655 = vmatprep.subr.bf16.mxu0 %v11678_v44  ;;  %4696 = vmatprep.subr.bf16.mxu1 %v11684_v55  ;;  %v11690_v16 = vcombine.high %v3949_v52, %v3953_v51  ;;  %v11692_v2 = vcombine.low %v3949_v52, %v3953_v51  ;;  %13461 = vst [vmem:[#allocation106_spill] sm:$0xff] %v11694_v14  ;;  %13462 = vst [vmem:[#allocation107_spill] sm:$0xff] %v11696_v11  ;;  %v3958_v55 = vld [vmem:[#allocation8 + $0x2c8] sm:$0xff] }
 0x451   :  { %v3962_v44 = vld [vmem:[#allocation8 + $0x2e8] sm:$0xff] }
 0x452   :  { %13459 = vst [vmem:[#allocation105_spill] sm:$0xff] %v11690_v16  ;;  %13460 = vst [vmem:[#allocation108_spill] sm:$0xff] %v11692_v2  ;;  %v11706_v52 = vcombine.low %v3958_v55, %v3962_v44  ;;  %v11708_v63 = vcombine.high %v3958_v55, %v3962_v44  ;;  %v3973_v55 = vld [vmem:[#allocation8 + $0x340] sm:$0xff] }
 0x453   :  { %4656 = vmatpush1.bf16.msra.mxu0 %v11680_v18  ;;  %4697 = vmatpush1.bf16.msra.mxu1 %v11682_v28  ;;  %v3961_v18 = vld [vmem:[#allocation8 + $0x2e0] sm:$0xff] }
 0x454   :  { %4657 = vmatprep.subr.bf16.mxu0 %v11690_v16  ;;  %4698 = vmatprep.subr.bf16.mxu1 %v11696_v11  ;;  %v11702_v28 = vcombine.high %v3957_v35, %v3961_v18  ;;  %v11704_v51 = vcombine.low %v3957_v35, %v3961_v18  ;;  %13465 = vst [vmem:[#allocation110_spill] sm:$0xff] %v11706_v52  ;;  %13466 = vst [vmem:[#allocation111_spill] sm:$0xff] %v11708_v63  ;;  %v3966_v11 = vld [vmem:[#allocation8 + $0x308] sm:$0xff] }
 0x455   :  { %v3970_v16 = vld [vmem:[#allocation8 + $0x328] sm:$0xff] }
 0x456   :  { %13463 = vst [vmem:[#allocation109_spill] sm:$0xff] %v11702_v28  ;;  %13464 = vst [vmem:[#allocation112_spill] sm:$0xff] %v11704_v51  ;;  %v11718_v35 = vcombine.low %v3966_v11, %v3970_v16  ;;  %v11720_v44 = vcombine.high %v3966_v11, %v3970_v16 }
 0x457   :  { %4658 = vmatpush1.bf16.msra.mxu0 %v11692_v2  ;;  %4699 = vmatpush1.bf16.msra.mxu1 %v11694_v14  ;;  %v3969_v2 = vld [vmem:[#allocation8 + $0x320] sm:$0xff] }
 0x458   :  { %4659 = vmatprep.subr.bf16.mxu0 %v11702_v28  ;;  %4700 = vmatprep.subr.bf16.mxu1 %v11708_v63  ;;  %v11714_v14 = vcombine.high %v3965_v46, %v3969_v2  ;;  %v11716_v18 = vcombine.low %v3965_v46, %v3969_v2  ;;  %13469 = vst [vmem:[#allocation114_spill] sm:$0xff] %v11718_v35  ;;  %13470 = vst [vmem:[#allocation115_spill] sm:$0xff] %v11720_v44  ;;  %v3977_v63 = vld [vmem:[#allocation8 + $0x360] sm:$0xff]  ;;  %v3974_v28 = vld [vmem:[#allocation8 + $0x348] sm:$0xff] }
 0x459   :  { %v3981_v2 = vld [vmem:[#allocation8 + $0x380] sm:$0xff]  ;;  %v11730_v16 = vcombine.low %v3974_v28, %v3978_v1  ;;  %v11732_v11 = vcombine.high %v3974_v28, %v3978_v1  ;;  %v11745_v1 = vcombine.low %v3982_v31, %v3986_v53 }
 0x45a   :  { %13467 = vst [vmem:[#allocation113_spill] sm:$0xff] %v11714_v14  ;;  %13468 = vst [vmem:[#allocation116_spill] sm:$0xff] %v11716_v18  ;;  %v3985_v46 = vld [vmem:[#allocation8 + $0x3a0] sm:$0xff] }
 0x45b   :  { %4660 = vmatpush1.bf16.msra.mxu0 %v11704_v51  ;;  %4701 = vmatpush1.bf16.msra.mxu1 %v11706_v52  ;;  %v11725_v51 = vcombine.low %v3973_v55, %v3977_v63  ;;  %v11727_v52 = vcombine.high %v3973_v55, %v3977_v63  ;;  %13473 = vst [vmem:[#allocation119_spill] sm:$0xff] %v11730_v16  ;;  %13474 = vst [vmem:[#allocation120_spill] sm:$0xff] %v11732_v11  ;;  %v3993_v63 = vld [vmem:[#allocation8 + $0x3e0] sm:$0xff]  ;;  %v3990_v55 = vld [vmem:[#allocation8 + $0x3c8] sm:$0xff] }
 0x45c   :  { %4661 = vmatprep.subr.bf16.mxu0 %v11714_v14  ;;  %4702 = vmatprep.subr.bf16.mxu1 %v11720_v44  ;;  %v11734_v14 = vcombine.high %v3981_v2, %v3985_v46  ;;  %v3989_v44 = vld [vmem:[#allocation8 + $0x3c0] sm:$0xff]  ;;  %13478 = vst [vmem:[#allocation124_spill] sm:$0xff] %v11745_v1 }
 0x45d   :  { %13471 = vst [vmem:[#allocation117_spill] sm:$0xff] %v11725_v51  ;;  %13472 = vst [vmem:[#allocation118_spill] sm:$0xff] %v11727_v52  ;;  %v11747_v28 = vcombine.high %v3989_v44, %v3993_v63 }
 0x45e   :  { %13475 = vst [vmem:[#allocation121_spill] sm:$0xff] %v11734_v14 }
 0x45f   :  { %4662 = vmatpush1.bf16.msra.mxu0 %v11716_v18  ;;  %4703 = vmatpush1.bf16.msra.mxu1 %v11718_v35  ;;  %v11737_v18 = vcombine.high %v3982_v31, %v3986_v53  ;;  %v11741_v35 = vcombine.low %v3981_v2, %v3985_v46  ;;  %13479 = vst [vmem:[#allocation42_spill] sm:$0xff] %v11747_v28  ;;  %v13483_v53 = vld [vmem:[#allocation48_spill] sm:$0xff] }
 0x460   :  { %4663 = vmatprep.subr.bf16.mxu0 %v11727_v52  ;;  %4704 = vmatprep.subr.bf16.mxu1 %v11732_v11  ;;  %v11750_v52 = vcombine.high %v3990_v55, %v3994_v62  ;;  %v11753_v11 = vcombine.low %v3989_v44, %v3993_v63  ;;  %v11757_v2 = vcombine.low %v3990_v55, %v3994_v62  ;;  %v13484_v44 = vld [vmem:[#allocation49_spill] sm:$0xff]  ;;  %v13485_v63 = vld [vmem:[#allocation50_spill] sm:$0xff]  ;;  %v13486_v55 = vld [vmem:[#allocation51_spill] sm:$0xff] }
 0x461   :  { %13476 = vst [vmem:[#allocation122_spill] sm:$0xff] %v11737_v18  ;;  %13477 = vst [vmem:[#allocation123_spill] sm:$0xff] %v11741_v35  ;;  %v692_v31 = vadd.f32 %v13483_v53, %v13385_v29  ;;  %v765_v46 = vadd.f32 %v13484_v44, %v13387_v59  ;;  %v694_v62 = vadd.f32 %v13485_v63, %v13389_v48 }
 0x462   :  { %13480 = vst [vmem:[#allocation43_spill] sm:$0xff] %v11750_v52  ;;  %13481 = vst [vmem:[#allocation46_spill] sm:$0xff] %v11753_v11 }
 0x463   :  { %4664 = vmatpush1.bf16.msra.mxu0 %v11725_v51  ;;  %4705 = vmatpush1.bf16.msra.mxu1 %v11730_v16  ;;  %13482 = vst [vmem:[#allocation47_spill] sm:$0xff] %v11757_v2 }
 0x464   :  { %4665 = vmatprep.subr.bf16.mxu0 %v11734_v14  ;;  %4706 = vmatprep.subr.bf16.mxu1 %v11737_v18 }
 0x467   :  { %4666 = vmatpush1.bf16.msra.mxu0 %v11741_v35  ;;  %4707 = vmatpush1.bf16.msra.mxu1 %v11745_v1 }
 0x468   :  { %4667 = vmatprep.subr.bf16.mxu0 %v11747_v28  ;;  %4708 = vmatprep.subr.bf16.mxu1 %v11750_v52  ;;  %v767_v52 = vadd.f32 %v13486_v55, %v10721_v37 }
 0x46b   :  { %4668 = vmatpush1.bf16.msra.mxu0 %v11753_v11  ;;  %4709 = vmatpush1.bf16.msra.mxu1 %v11757_v2 }
 0x46c   :  { %4719 = vmatprep.subr.bf16.mxu0 %v11349_v40  ;;  %4760 = vmatprep.subr.bf16.mxu1 %v11355_v22 }
 0x4c1   :  { %v3676_v28 = vpop.f32.mrb[36].mxu0  ;;  %v3717_v11 = vpop.f32.mrb[36].mxu1 }
 0x4c2   :  { %v3840_v1 = vadd.f32 %v3676_v28, %v692_v31  ;;  %v3842_v2 = vadd.f32 %v3717_v11, %v765_v46  ;;  %v3678_v35 = vpop.f32.mrb[37].mxu0  ;;  %v3719_v40 = vpop.f32.mrb[37].mxu1 }
 0x4c3   :  { %v3841_v18 = vadd.f32 %v3678_v35, %v694_v62  ;;  %v3843_v22 = vadd.f32 %v3719_v40, %v767_v52  ;;  %v3680_v14 = vpop.f32.mrb[38].mxu0  ;;  %v3721_v16 = vpop.f32.mrb[38].mxu1 }
 0x4c4   :  { %v9330_v53 = vmul.f32 -1.442695, %v3840_v1  ;;  %v3681_v29 = vpop.f32.mrb[39].mxu0  ;;  %v3722_v51 = vpop.f32.mrb[39].mxu1 }
 0x4c5   :  { %v9331_v44 = vmul.f32 -1.442695, %v3841_v18 }
 0x4c6   :  { %10102 = vpow2.f32 %v9330_v53 }
 0x4c7   :  { %10104 = vpow2.f32 %v9331_v44  ;;  %v9332_v44 = vmul.f32 -1.442695, %v3843_v22 }
 0x4c8   :  { %10106 = vtanh.f32 %v3842_v2 }
 0x4d0   :  { %v10103_v63 = vpop.eup %10102 }
 0x4d1   :  { %v10105_v48 = vpop.eup %10104  ;;  %v3847_v59 = vadd.f32 1.0, %v10103_v63 }
 0x4d2   :  { %v3853_v55 = vadd.f32 1.0, %v10105_v48  ;;  %v10107_v11 = vpop.eup %10106 }
 0x4d3   :  { %10108 = vrcp.f32 %v3847_v59 }
 0x4d4   :  { %10110 = vrcp.f32 %v3853_v55 }
 0x4dd   :  { %v10109_v28 = vpop.eup %10108 }
 0x4de   :  { %v10111_v31 = vpop.eup %10110  ;;  %v3864_v35 = vmul.f32 %v10109_v28, %v10107_v11 }
 0x4df   :  { %v3863_v14 = vmul.f32 %v10111_v31, %v11368_v8 }
 0x4e1   :  { %v11773_v52 = vadd.f32 %v3864_v35, %v3863_v14 }
 0x501   :  { %v3758_v29 = vpop.f32.mrb[40].mxu0  ;;  %v3799_v51 = vpop.f32.mrb[40].mxu1 }
 0x502   :  { %v3806_v18 = vadd.f32 %v3758_v29, %v11189_v9  ;;  %v3760_v16 = vpop.f32.mrb[41].mxu0  ;;  %v3801_v1 = vpop.f32.mrb[41].mxu1  ;;  %v3808_v55 = vadd.f32 %v3799_v51, %v11204_v39 }
 0x503   :  { %v3807_v46 = vadd.f32 %v3760_v16, %v11193_v30  ;;  %v3762_v2 = vpop.f32.mrb[42].mxu0  ;;  %v3803_v48 = vpop.f32.mrb[42].mxu1  ;;  %v3809_v8 = vadd.f32 %v3801_v1, %v11199_v5 }
 0x504   :  { %v9327_v59 = vmul.f32 -1.442695, %v3806_v18  ;;  %v3763_v62 = vpop.f32.mrb[43].mxu0  ;;  %v3804_v40 = vpop.f32.mrb[43].mxu1 }
 0x505   :  { %v9328_v53 = vmul.f32 -1.442695, %v3807_v46  ;;  %v9329_v63 = vmul.f32 -1.442695, %v3809_v8 }
 0x506   :  { %10112 = vpow2.f32 %v9327_v59 }
 0x507   :  { %10114 = vpow2.f32 %v9328_v53 }
 0x508   :  { %10116 = vpow2.f32 %v9332_v44 }
 0x509   :  { %10118 = vpow2.f32 %v9329_v63 }
 0x50a   :  { %10120 = vtanh.f32 %v3808_v55 }
 0x510   :  { %v10113_v11 = vpop.eup %10112 }
 0x511   :  { %v10115_v28 = vpop.eup %10114  ;;  %v3813_v31 = vadd.f32 1.0, %v10113_v11  ;;  %v13520_v11 = vld [vmem:[#allocation71_spill] sm:$0xff] }
 0x512   :  { %v3819_v35 = vadd.f32 1.0, %v10115_v28  ;;  %v10117_v14 = vpop.eup %10116  ;;  %v13521_v28 = vld [vmem:[#allocation72_spill] sm:$0xff] }
 0x513   :  { %10122 = vrcp.f32 %v3813_v31  ;;  %v10119_v29 = vpop.eup %10118  ;;  %v3860_v46 = vadd.f32 1.0, %v10117_v14  ;;  %v13522_v31 = vld [vmem:[#allocation73_spill] sm:$0xff]  ;;  %v13524_v14 = vld [vmem:[#allocation75_spill] sm:$0xff] }
 0x514   :  { %10124 = vrcp.f32 %v3819_v35  ;;  %v10121_v18 = vpop.eup %10120  ;;  %v3826_v22 = vadd.f32 1.0, %v10119_v29  ;;  %v13523_v35 = vld [vmem:[#allocation74_spill] sm:$0xff]  ;;  %v13525_v29 = vld [vmem:[#allocation76_spill] sm:$0xff] }
 0x515   :  { %10126 = vtanh.f32 %v11773_v52 }
 0x516   :  { %10128 = vrcp.f32 %v3860_v46  ;;  %v13531_v46 = vld [vmem:[#allocation83_spill] sm:$0xff] }
 0x517   :  { %10130 = vrcp.f32 %v3826_v22  ;;  %v13534_v22 = vld [vmem:[#allocation85_spill] sm:$0xff] }
 0x51d   :  { %v10123_v16 = vpop.eup %10122 }
 0x51e   :  { %v10125_v2 = vpop.eup %10124  ;;  %v3830_v1 = vmul.f32 %v10123_v16, %v10121_v18  ;;  %v13526_v18 = vld [vmem:[#allocation77_spill] sm:$0xff] }
 0x51f   :  { %v3829_v48 = vmul.f32 %v10125_v2, %v11376_v10  ;;  %v10127_v59 = vpop.eup %10126  ;;  %v13489_v10 = vld [vmem:[#allocation17_spill] sm:$0xff]  ;;  %v13532_v2 = vld [vmem:[#allocation84_spill] sm:$0xff] }
 0x520   :  { %v10129_v62 = vpop.eup %10128  ;;  %v13530_v16 = vld [vmem:[#allocation81_spill] sm:$0xff] }
 0x521   :  { %v11781_v51 = vadd.f32 %v3830_v1, %v3829_v48  ;;  %v10131_v40 = vpop.eup %10130  ;;  %v3867_v8 = vmul.f32 %v10129_v62, %v10127_v59  ;;  %v13533_v1 = vld [vmem:[#allocation82_spill] sm:$0xff]  ;;  %v13535_v48 = vld [vmem:[#allocation87_spill] sm:$0xff]  ;;  %v13536_v59 = vld [vmem:[#allocation88_spill] sm:$0xff] }
 0x522   :  { %v13537_v62 = vld [vmem:[#allocation86_spill] sm:$0xff] }
 0x523   :  { %10132 = vtanh.f32 %v11781_v51  ;;  %v11784_v55 = vpack.c.bf16 %v3867_v8, %v3867_v8  ;;  %v13540_v8 = vld [vmem:[#allocation92_spill] sm:$0xff] }
 0x52d   :  { %v10133_v53 = vpop.eup %10132 }
 0x52e   :  { %v3833_v44 = vmul.f32 %v10133_v53, %v10131_v40  ;;  %v13538_v40 = vld [vmem:[#allocation89_spill] sm:$0xff]  ;;  %v13539_v53 = vld [vmem:[#allocation91_spill] sm:$0xff] }
 0x530   :  { %v3834_v63 = vpack.c.bf16 %v3833_v44, %v3833_v44  ;;  %v13541_v44 = vld [vmem:[#allocation90_spill] sm:$0xff] }
 0x532   :  { %3835 = vst [vmem:[%s12827_s7 + $0x8] sm:$0xf] %v3834_v63  ;;  %4669 = vmatprep.mubr.bf16.mxu0 %v3834_v63  ;;  %4710 = vmatprep.mubr.bf16.mxu1 %v3834_v63 }
 0x533   :  { %4670 = vmatmul.mubr.bf16.vlgmr.msra.gmra.mrb[44].mxu0 %v11784_v55  ;;  %4711 = vmatmul.mubr.bf16.vlgmr.msra.gmra.mrb[44].mxu1 %v11784_v55 }
 0x534   :  { %4720 = vmatpush1.bf16.msra.mxu0 %v11351_v43  ;;  %4761 = vmatpush1.bf16.msra.mxu1 %v11353_v54  ;;  %v13487_v43 = vld [vmem:[#allocation16_spill] sm:$0xff]  ;;  %v13488_v54 = vld [vmem:[#allocation15_spill] sm:$0xff] }
 0x535   :  { %4751 = vmatprep.mubr.bf16.mxu0 %v3834_v63  ;;  %4792 = vmatprep.mubr.bf16.mxu1 %v3834_v63  ;;  %v13542_v63 = vld [vmem:[#allocation93_spill] sm:$0xff] }
 0x536   :  { %4721 = vmatprep.subr.bf16.mxu0 %v11384_v45  ;;  %4762 = vmatprep.subr.bf16.mxu1 %v11386_v32  ;;  %v13490_v45 = vld [vmem:[#allocation18_spill] sm:$0xff]  ;;  %v13491_v32 = vld [vmem:[#allocation19_spill] sm:$0xff] }
 0x538   :  { %4722 = vmatpush1.bf16.msra.mxu0 %v11392_v25  ;;  %4763 = vmatpush1.bf16.msra.mxu1 %v11394_v3  ;;  %v13492_v25 = vld [vmem:[#allocation20_spill] sm:$0xff]  ;;  %v13493_v3 = vld [vmem:[#allocation11_spill] sm:$0xff] }
 0x539   :  { %4723 = vmatprep.subr.bf16.mxu0 %v11396_v4  ;;  %4764 = vmatprep.subr.bf16.mxu1 %v11398_v20  ;;  %v13494_v4 = vld [vmem:[#allocation21_spill] sm:$0xff]  ;;  %v13495_v20 = vld [vmem:[#allocation22_spill] sm:$0xff] }
 0x53c   :  { %4724 = vmatpush1.bf16.msra.mxu0 %v11404_v60  ;;  %4765 = vmatpush1.bf16.msra.mxu1 %v11406_v61  ;;  %v13496_v60 = vld [vmem:[#allocation23_spill] sm:$0xff]  ;;  %v13497_v61 = vld [vmem:[#allocation24_spill] sm:$0xff] }
 0x53d   :  { %4725 = vmatprep.subr.bf16.mxu0 %v11410_v38  ;;  %4766 = vmatprep.subr.bf16.mxu1 %v11412_v17  ;;  %v13498_v38 = vld [vmem:[#allocation25_spill] sm:$0xff]  ;;  %v13499_v17 = vld [vmem:[#allocation26_spill] sm:$0xff] }
 0x540   :  { %4726 = vmatpush1.bf16.msra.mxu0 %v11416_v0  ;;  %4767 = vmatpush1.bf16.msra.mxu1 %v11418_v58  ;;  %v13500_v0 = vld [vmem:[#allocation27_spill] sm:$0xff]  ;;  %v13501_v58 = vld [vmem:[#allocation28_spill] sm:$0xff] }
 0x541   :  { %4727 = vmatprep.subr.bf16.mxu0 %v11422_v19  ;;  %4768 = vmatprep.subr.bf16.mxu1 %v11424_v15  ;;  %v13502_v19 = vld [vmem:[#allocation29_spill] sm:$0xff]  ;;  %v13503_v15 = vld [vmem:[#allocation30_spill] sm:$0xff] }
 0x544   :  { %4728 = vmatpush1.bf16.msra.mxu0 %v11428_v6  ;;  %4769 = vmatpush1.bf16.msra.mxu1 %v11430_v13  ;;  %v13504_v6 = vld [vmem:[#allocation31_spill] sm:$0xff]  ;;  %v13505_v13 = vld [vmem:[#allocation32_spill] sm:$0xff] }
 0x545   :  { %4729 = vmatprep.subr.bf16.mxu0 %v11434_v36  ;;  %4770 = vmatprep.subr.bf16.mxu1 %v11436_v24  ;;  %v13506_v36 = vld [vmem:[#allocation33_spill] sm:$0xff]  ;;  %v13507_v24 = vld [vmem:[#allocation34_spill] sm:$0xff] }
 0x548   :  { %4730 = vmatpush1.bf16.msra.mxu0 %v11440_v12  ;;  %4771 = vmatpush1.bf16.msra.mxu1 %v11442_v34  ;;  %v13508_v12 = vld [vmem:[#allocation35_spill] sm:$0xff]  ;;  %v13509_v34 = vld [vmem:[#allocation36_spill] sm:$0xff] }
 0x549   :  { %4731 = vmatprep.subr.bf16.mxu0 %v11446_v42  ;;  %4772 = vmatprep.subr.bf16.mxu1 %v11448_v47  ;;  %v13510_v42 = vld [vmem:[#allocation37_spill] sm:$0xff]  ;;  %v13511_v47 = vld [vmem:[#allocation38_spill] sm:$0xff] }
 0x54c   :  { %4732 = vmatpush1.bf16.msra.mxu0 %v11452_v21  ;;  %4773 = vmatpush1.bf16.msra.mxu1 %v11454_v56  ;;  %v13512_v21 = vld [vmem:[#allocation39_spill] sm:$0xff]  ;;  %v13513_v56 = vld [vmem:[#allocation40_spill] sm:$0xff] }
 0x54d   :  { %4733 = vmatprep.subr.bf16.mxu0 %v11458_v33  ;;  %4774 = vmatprep.subr.bf16.mxu1 %v11460_v41  ;;  %v13514_v33 = vld [vmem:[#allocation41_spill] sm:$0xff]  ;;  %v13515_v41 = vld [vmem:[#allocation44_spill] sm:$0xff] }
 0x550   :  { %4734 = vmatpush1.bf16.msra.mxu0 %v11464_v26  ;;  %4775 = vmatpush1.bf16.msra.mxu1 %v11466_v27  ;;  %v13516_v26 = vld [vmem:[#allocation45_spill] sm:$0xff]  ;;  %v13517_v27 = vld [vmem:[#allocation68_spill] sm:$0xff] }
 0x551   :  { %4735 = vmatprep.subr.bf16.mxu0 %v11470_v57  ;;  %4776 = vmatprep.subr.bf16.mxu1 %v13487_v43  ;;  %v13518_v57 = vld [vmem:[#allocation69_spill] sm:$0xff]  ;;  %v13544_v43 = vld [vmem:[#allocation96_spill] sm:$0xff] }
 0x554   :  { %4736 = vmatpush1.bf16.msra.mxu0 %v13488_v54  ;;  %4777 = vmatpush1.bf16.msra.mxu1 %v13489_v10  ;;  %v13545_v54 = vld [vmem:[#allocation94_spill] sm:$0xff]  ;;  %v13546_v10 = vld [vmem:[#allocation97_spill] sm:$0xff] }
 0x555   :  { %4737 = vmatprep.subr.bf16.mxu0 %v13490_v45  ;;  %4778 = vmatprep.subr.bf16.mxu1 %v13491_v32  ;;  %v13547_v45 = vld [vmem:[#allocation99_spill] sm:$0xff]  ;;  %v13548_v32 = vld [vmem:[#allocation100_spill] sm:$0xff] }
 0x558   :  { %4738 = vmatpush1.bf16.msra.mxu0 %v13492_v25  ;;  %4779 = vmatpush1.bf16.msra.mxu1 %v13493_v3  ;;  %v13549_v25 = vld [vmem:[#allocation98_spill] sm:$0xff]  ;;  %v13550_v3 = vld [vmem:[#allocation101_spill] sm:$0xff] }
 0x559   :  { %4739 = vmatprep.subr.bf16.mxu0 %v13494_v4  ;;  %4780 = vmatprep.subr.bf16.mxu1 %v13495_v20  ;;  %v13551_v4 = vld [vmem:[#allocation103_spill] sm:$0xff]  ;;  %v13552_v20 = vld [vmem:[#allocation104_spill] sm:$0xff] }
 0x55c   :  { %4740 = vmatpush1.bf16.msra.mxu0 %v13496_v60  ;;  %4781 = vmatpush1.bf16.msra.mxu1 %v13497_v61  ;;  %v13553_v60 = vld [vmem:[#allocation102_spill] sm:$0xff]  ;;  %v13554_v61 = vld [vmem:[#allocation105_spill] sm:$0xff] }
 0x55d   :  { %4741 = vmatprep.subr.bf16.mxu0 %v13498_v38  ;;  %4782 = vmatprep.subr.bf16.mxu1 %v13499_v17  ;;  %v13555_v38 = vld [vmem:[#allocation107_spill] sm:$0xff]  ;;  %v13556_v17 = vld [vmem:[#allocation108_spill] sm:$0xff] }
 0x560   :  { %4742 = vmatpush1.bf16.msra.mxu0 %v13500_v0  ;;  %4783 = vmatpush1.bf16.msra.mxu1 %v13501_v58  ;;  %v13557_v0 = vld [vmem:[#allocation106_spill] sm:$0xff]  ;;  %v13558_v58 = vld [vmem:[#allocation109_spill] sm:$0xff] }
 0x561   :  { %4743 = vmatprep.subr.bf16.mxu0 %v13502_v19  ;;  %4784 = vmatprep.subr.bf16.mxu1 %v13503_v15  ;;  %v13559_v19 = vld [vmem:[#allocation111_spill] sm:$0xff]  ;;  %v13560_v15 = vld [vmem:[#allocation112_spill] sm:$0xff] }
 0x564   :  { %4744 = vmatpush1.bf16.msra.mxu0 %v11524_v49  ;;  %4785 = vmatpush1.bf16.msra.mxu1 %v13504_v6  ;;  %v13519_v49 = vld [vmem:[#allocation70_spill] sm:$0xff] }
 0x565   :  { %4745 = vmatprep.subr.bf16.mxu0 %v13505_v13  ;;  %4786 = vmatprep.subr.bf16.mxu1 %v13506_v36  ;;  %v13561_v6 = vld [vmem:[#allocation110_spill] sm:$0xff]  ;;  %v13562_v13 = vld [vmem:[#allocation113_spill] sm:$0xff]  ;;  %v13563_v36 = vld [vmem:[#allocation115_spill] sm:$0xff] }
 0x568   :  { %4746 = vmatpush1.bf16.msra.mxu0 %v13507_v24  ;;  %4787 = vmatpush1.bf16.msra.mxu1 %v13508_v12  ;;  %v13564_v24 = vld [vmem:[#allocation116_spill] sm:$0xff]  ;;  %v13565_v12 = vld [vmem:[#allocation114_spill] sm:$0xff] }
 0x569   :  { %4747 = vmatprep.subr.bf16.mxu0 %v13509_v34  ;;  %4788 = vmatprep.subr.bf16.mxu1 %v13510_v42  ;;  %v13566_v34 = vld [vmem:[#allocation118_spill] sm:$0xff]  ;;  %v13567_v42 = vld [vmem:[#allocation120_spill] sm:$0xff] }
 0x56c   :  { %4748 = vmatpush1.bf16.msra.mxu0 %v13511_v47  ;;  %4789 = vmatpush1.bf16.msra.mxu1 %v13512_v21  ;;  %v13568_v47 = vld [vmem:[#allocation117_spill] sm:$0xff]  ;;  %v13569_v21 = vld [vmem:[#allocation119_spill] sm:$0xff] }
 0x56d   :  { %4749 = vmatprep.subr.bf16.mxu0 %v13513_v56  ;;  %4790 = vmatprep.subr.bf16.mxu1 %v13514_v33  ;;  %v13570_v56 = vld [vmem:[#allocation121_spill] sm:$0xff]  ;;  %v13571_v33 = vld [vmem:[#allocation122_spill] sm:$0xff] }
 0x570   :  { %4750 = vmatpush1.bf16.msra.mxu0 %v13515_v41  ;;  %4791 = vmatpush1.bf16.msra.mxu1 %v13516_v26  ;;  %v13572_v41 = vld [vmem:[#allocation123_spill] sm:$0xff]  ;;  %v13573_v26 = vld [vmem:[#allocation124_spill] sm:$0xff] }
 0x571   :  { %5632 = vmatprep.subr.bf16.mxu0 %v13517_v27  ;;  %5673 = vmatprep.subr.bf16.mxu1 %v13518_v57  ;;  %v13574_v27 = vld [vmem:[#allocation42_spill] sm:$0xff]  ;;  %v13575_v57 = vld [vmem:[#allocation43_spill] sm:$0xff] }
 0x573   :  { %4752 = vmatmul.mubr.bf16.vlgmr.msra.gmra.mrb[48].mxu0 %v11784_v55  ;;  %4793 = vmatmul.mubr.bf16.vlgmr.msra.gmra.mrb[48].mxu1 %v11784_v55  ;;  %v13543_v55 = vld [vmem:[#allocation95_spill] sm:$0xff] }
 0x574   :  { %5633 = vmatpush1.bf16.msra.mxu0 %v11570_v50  ;;  %5674 = vmatpush1.bf16.msra.mxu1 %v11574_v7  ;;  %v13527_v50 = vld [vmem:[#allocation78_spill] sm:$0xff]  ;;  %v13528_v7 = vld [vmem:[#allocation79_spill] sm:$0xff] }
 0x575   :  { %5634 = vmatprep.subr.bf16.mxu0 %v11578_v23  ;;  %5675 = vmatprep.subr.bf16.mxu1 %v13519_v49  ;;  %v13529_v23 = vld [vmem:[#allocation80_spill] sm:$0xff]  ;;  %v13576_v49 = vld [vmem:[#allocation46_spill] sm:$0xff] }
 0x578   :  { %5635 = vmatpush1.bf16.msra.mxu0 %v13520_v11  ;;  %5676 = vmatpush1.bf16.msra.mxu1 %v13521_v28  ;;  %v13577_v11 = vld [vmem:[#allocation47_spill] sm:$0xff]  ;;  %v4866_v28 = vld [vmem:[#allocation8 + $0x10] sm:$0xff] }
 0x579   :  { %5636 = vmatprep.subr.bf16.mxu0 %v13522_v31  ;;  %5677 = vmatprep.subr.bf16.mxu1 %v13523_v35  ;;  %v4870_v31 = vld [vmem:[#allocation8 + $0x30] sm:$0xff]  ;;  %v4867_v35 = vld [vmem:[#allocation8 + $0x18] sm:$0xff] }
 0x57c   :  { %5637 = vmatpush1.bf16.msra.mxu0 %v13524_v14  ;;  %5678 = vmatpush1.bf16.msra.mxu1 %v13525_v29  ;;  %v11919_v14 = vcombine.high %v4866_v28, %v4870_v31  ;;  %v4871_v29 = vld [vmem:[#allocation8 + $0x38] sm:$0xff] }
 0x57d   :  { %5638 = vmatprep.subr.bf16.mxu0 %v13526_v18  ;;  %5679 = vmatprep.subr.bf16.mxu1 %v13527_v50  ;;  %v11921_v18 = vcombine.low %v4866_v28, %v4870_v31  ;;  %v11923_v50 = vcombine.low %v4867_v35, %v4871_v29 }
 0x580   :  { %5639 = vmatpush1.bf16.msra.mxu0 %v13528_v7  ;;  %5680 = vmatpush1.bf16.msra.mxu1 %v13529_v23  ;;  %v11925_v7 = vcombine.high %v4867_v35, %v4871_v29  ;;  %v13578_v23 = vld [vmem:[#allocation12_spill] sm:$0xff] }
 0x581   :  { %5640 = vmatprep.subr.bf16.mxu0 %v13530_v16  ;;  %5681 = vmatprep.subr.bf16.mxu1 %v13531_v46  ;;  %v13579_v16 = vld [vmem:[#allocation52_spill] sm:$0xff] }
 0x582   :  { %v698_v46 = vadd.f32 %v13579_v16, %v13578_v23 }
 0x584   :  { %5641 = vmatpush1.bf16.msra.mxu0 %v13532_v2  ;;  %5682 = vmatpush1.bf16.msra.mxu1 %v13533_v1  ;;  %v13580_v2 = vld [vmem:[#allocation14_spill] sm:$0xff]  ;;  %v13581_v1 = vld [vmem:[#allocation53_spill] sm:$0xff] }
 0x585   :  { %5642 = vmatprep.subr.bf16.mxu0 %v13534_v22  ;;  %5683 = vmatprep.subr.bf16.mxu1 %v13535_v48  ;;  %v771_v22 = vadd.f32 %v13581_v1, %v13580_v2  ;;  %v13582_v48 = vld [vmem:[#allocation13_spill] sm:$0xff] }
 0x588   :  { %5643 = vmatpush1.bf16.msra.mxu0 %v13536_v59  ;;  %5684 = vmatpush1.bf16.msra.mxu1 %v13537_v62  ;;  %v13583_v59 = vld [vmem:[#allocation54_spill] sm:$0xff] }
 0x589   :  { %5644 = vmatprep.subr.bf16.mxu0 %v13538_v40  ;;  %5685 = vmatprep.subr.bf16.mxu1 %v13539_v53  ;;  %v700_v62 = vadd.f32 %v13583_v59, %v13582_v48  ;;  %v13584_v40 = vld [vmem:[#allocation55_spill] sm:$0xff] }
 0x58a   :  { %v773_v53 = vadd.f32 %v13584_v40, %v10721_v37 }
 0x58c   :  { %5645 = vmatpush1.bf16.msra.mxu0 %v13540_v8  ;;  %5686 = vmatpush1.bf16.msra.mxu1 %v13541_v44 }
 0x58d   :  { %5646 = vmatprep.subr.bf16.mxu0 %v13542_v63  ;;  %5687 = vmatprep.subr.bf16.mxu1 %v13543_v55 }
 0x590   :  { %5647 = vmatpush1.bf16.msra.mxu0 %v13544_v43  ;;  %5688 = vmatpush1.bf16.msra.mxu1 %v13545_v54 }
 0x591   :  { %5648 = vmatprep.subr.bf16.mxu0 %v13546_v10  ;;  %5689 = vmatprep.subr.bf16.mxu1 %v13547_v45 }
 0x594   :  { %5649 = vmatpush1.bf16.msra.mxu0 %v13548_v32  ;;  %5690 = vmatpush1.bf16.msra.mxu1 %v13549_v25 }
 0x595   :  { %5650 = vmatprep.subr.bf16.mxu0 %v13550_v3  ;;  %5691 = vmatprep.subr.bf16.mxu1 %v13551_v4 }
 0x598   :  { %5651 = vmatpush1.bf16.msra.mxu0 %v13552_v20  ;;  %5692 = vmatpush1.bf16.msra.mxu1 %v13553_v60 }
 0x599   :  { %5652 = vmatprep.subr.bf16.mxu0 %v13554_v61  ;;  %5693 = vmatprep.subr.bf16.mxu1 %v13555_v38 }
 0x59c   :  { %5653 = vmatpush1.bf16.msra.mxu0 %v13556_v17  ;;  %5694 = vmatpush1.bf16.msra.mxu1 %v13557_v0 }
 0x59d   :  { %5654 = vmatprep.subr.bf16.mxu0 %v13558_v58  ;;  %5695 = vmatprep.subr.bf16.mxu1 %v13559_v19 }
 0x5a0   :  { %5655 = vmatpush1.bf16.msra.mxu0 %v13560_v15  ;;  %5696 = vmatpush1.bf16.msra.mxu1 %v13561_v6 }
 0x5a1   :  { %5656 = vmatprep.subr.bf16.mxu0 %v13562_v13  ;;  %5697 = vmatprep.subr.bf16.mxu1 %v13563_v36 }
 0x5a4   :  { %5657 = vmatpush1.bf16.msra.mxu0 %v13564_v24  ;;  %5698 = vmatpush1.bf16.msra.mxu1 %v13565_v12 }
 0x5a5   :  { %5658 = vmatprep.subr.bf16.mxu0 %v13566_v34  ;;  %5699 = vmatprep.subr.bf16.mxu1 %v13567_v42 }
 0x5a8   :  { %5659 = vmatpush1.bf16.msra.mxu0 %v13568_v47  ;;  %5700 = vmatpush1.bf16.msra.mxu1 %v13569_v21 }
 0x5a9   :  { %5660 = vmatprep.subr.bf16.mxu0 %v13570_v56  ;;  %5701 = vmatprep.subr.bf16.mxu1 %v13571_v33 }
 0x5ac   :  { %5661 = vmatpush1.bf16.msra.mxu0 %v13572_v41  ;;  %5702 = vmatpush1.bf16.msra.mxu1 %v13573_v26 }
 0x5ad   :  { %5662 = vmatprep.subr.bf16.mxu0 %v13574_v27  ;;  %5703 = vmatprep.subr.bf16.mxu1 %v13575_v57 }
 0x5b0   :  { %5663 = vmatpush1.bf16.msra.mxu0 %v13576_v49  ;;  %5704 = vmatpush1.bf16.msra.mxu1 %v13577_v11 }
 0x5b1   :  { %5714 = vmatprep.subr.bf16.mxu0 %v11919_v14  ;;  %5755 = vmatprep.subr.bf16.mxu1 %v11925_v7 }
 0x606   :  { %v4671_v8 = vpop.f32.mrb[44].mxu0  ;;  %v4712_v44 = vpop.f32.mrb[44].mxu1 }
 0x607   :  { %v4835_v63 = vadd.f32 %v4671_v8, %v698_v46  ;;  %v4837_v55 = vadd.f32 %v4712_v44, %v771_v22  ;;  %v4673_v43 = vpop.f32.mrb[45].mxu0  ;;  %v4714_v54 = vpop.f32.mrb[45].mxu1 }
 0x608   :  { %v4836_v10 = vadd.f32 %v4673_v43, %v700_v62  ;;  %v4838_v45 = vadd.f32 %v4714_v54, %v773_v53  ;;  %v4675_v32 = vpop.f32.mrb[46].mxu0  ;;  %v4716_v25 = vpop.f32.mrb[46].mxu1 }
 0x609   :  { %v9464_v3 = vmul.f32 -1.442695, %v4835_v63  ;;  %v4676_v4 = vpop.f32.mrb[47].mxu0  ;;  %v4717_v20 = vpop.f32.mrb[47].mxu1  ;;  %v4874_v25 = vld [vmem:[#allocation8 + $0x50] sm:$0xff] }
 0x60a   :  { %v9465_v60 = vmul.f32 -1.442695, %v4836_v10  ;;  %v9466_v49 = vmul.f32 -1.442695, %v4838_v45  ;;  %v4875_v4 = vld [vmem:[#allocation8 + $0x58] sm:$0xff] }
 0x60b   :  { %10134 = vpow2.f32 %v9464_v3  ;;  %v4878_v3 = vld [vmem:[#allocation8 + $0x70] sm:$0xff]  ;;  %v4879_v20 = vld [vmem:[#allocation8 + $0x78] sm:$0xff] }
 0x60c   :  { %10136 = vpow2.f32 %v9465_v60 }
 0x60d   :  { %10138 = vtanh.f32 %v4837_v55 }
 0x615   :  { %v10135_v61 = vpop.eup %10134 }
 0x616   :  { %v10137_v38 = vpop.eup %10136  ;;  %v4842_v17 = vadd.f32 1.0, %v10135_v61  ;;  %v4882_v61 = vld [vmem:[#allocation8 + $0x90] sm:$0xff] }
 0x617   :  { %v4848_v0 = vadd.f32 1.0, %v10137_v38  ;;  %v10139_v58 = vpop.eup %10138  ;;  %v11954_v38 = vcombine.high %v4874_v25, %v4878_v3 }
 0x618   :  { %10140 = vrcp.f32 %v4842_v17  ;;  %v11956_v17 = vcombine.high %v4875_v4, %v4879_v20 }
 0x619   :  { %10142 = vrcp.f32 %v4848_v0  ;;  %v4886_v0 = vld [vmem:[#allocation8 + $0xb0] sm:$0xff] }
 0x622   :  { %v10141_v19 = vpop.eup %10140 }
 0x623   :  { %v10143_v15 = vpop.eup %10142  ;;  %v4859_v6 = vmul.f32 %v10141_v19, %v10139_v58  ;;  %v4883_v58 = vld [vmem:[#allocation8 + $0x98] sm:$0xff] }
 0x624   :  { %v4858_v13 = vmul.f32 %v10143_v15, %v11773_v52  ;;  %v4887_v19 = vld [vmem:[#allocation8 + $0xb8] sm:$0xff]  ;;  %v11962_v15 = vcombine.low %v4874_v25, %v4878_v3 }
 0x625   :  { %v4923_v25 = vld [vmem:[#allocation8 + $0x1d8] sm:$0xff] }
 0x626   :  { %v11938_v36 = vadd.f32 %v4859_v6, %v4858_v13  ;;  %v11964_v6 = vcombine.low %v4875_v4, %v4879_v20  ;;  %v11966_v13 = vcombine.high %v4882_v61, %v4886_v0  ;;  %v4927_v3 = vld [vmem:[#allocation8 + $0x1f8] sm:$0xff] }
 0x646   :  { %v4753_v24 = vpop.f32.mrb[48].mxu0  ;;  %v4794_v12 = vpop.f32.mrb[48].mxu1 }
 0x647   :  { %v4801_v34 = vadd.f32 %v4753_v24, %v11189_v9  ;;  %v4755_v42 = vpop.f32.mrb[49].mxu0  ;;  %v4796_v47 = vpop.f32.mrb[49].mxu1  ;;  %v4803_v28 = vadd.f32 %v4794_v12, %v11204_v39  ;;  %v11968_v24 = vcombine.high %v4883_v58, %v4887_v19  ;;  %v4890_v12 = vld [vmem:[#allocation8 + $0xd0] sm:$0xff] }
 0x648   :  { %v4802_v21 = vadd.f32 %v4755_v42, %v11193_v30  ;;  %v4757_v56 = vpop.f32.mrb[50].mxu0  ;;  %v4798_v33 = vpop.f32.mrb[50].mxu1  ;;  %v4804_v52 = vadd.f32 %v4796_v47, %v11199_v5  ;;  %v4891_v42 = vld [vmem:[#allocation8 + $0xd8] sm:$0xff] }
 0x649   :  { %v9461_v41 = vmul.f32 -1.442695, %v4801_v34  ;;  %v4758_v26 = vpop.f32.mrb[51].mxu0  ;;  %v4799_v27 = vpop.f32.mrb[51].mxu1  ;;  %v4894_v34 = vld [vmem:[#allocation8 + $0xf0] sm:$0xff]  ;;  %v4895_v47 = vld [vmem:[#allocation8 + $0xf8] sm:$0xff]  ;;  %v11976_v56 = vcombine.low %v4883_v58, %v4887_v19 }
 0x64a   :  { %v9462_v57 = vmul.f32 -1.442695, %v4802_v21  ;;  %v9463_v11 = vmul.f32 -1.442695, %v4804_v52  ;;  %v11974_v21 = vcombine.low %v4882_v61, %v4886_v0  ;;  %v11980_v33 = vcombine.high %v4890_v12, %v4894_v34  ;;  %v4898_v26 = vld [vmem:[#allocation8 + $0x110] sm:$0xff]  ;;  %v4903_v52 = vld [vmem:[#allocation8 + $0x138] sm:$0xff] }
 0x64b   :  { %10144 = vpow2.f32 %v9461_v41  ;;  %v11982_v41 = vcombine.high %v4891_v42, %v4895_v47  ;;  %v4902_v27 = vld [vmem:[#allocation8 + $0x130] sm:$0xff]  ;;  %v12030_v61 = vcombine.high %v4923_v25, %v4927_v3  ;;  %v4931_v19 = vld [vmem:[#allocation8 + $0x218] sm:$0xff] }
 0x64c   :  { %10146 = vpow2.f32 %v9462_v57  ;;  %v4899_v57 = vld [vmem:[#allocation8 + $0x118] sm:$0xff]  ;;  %v4930_v0 = vld [vmem:[#allocation8 + $0x210] sm:$0xff] }
 0x64d   :  { %10148 = vpow2.f32 %v9466_v49  ;;  %v11986_v49 = vcombine.low %v4890_v12, %v4894_v34  ;;  %v4934_v58 = vld [vmem:[#allocation8 + $0x230] sm:$0xff]  ;;  %v4935_v12 = vld [vmem:[#allocation8 + $0x238] sm:$0xff] }
 0x64e   :  { %10150 = vpow2.f32 %v9463_v11  ;;  %v11988_v11 = vcombine.low %v4891_v42, %v4895_v47  ;;  %v12036_v42 = vcombine.low %v4923_v25, %v4927_v3  ;;  %v12040_v47 = vcombine.high %v4930_v0, %v4934_v58 }
 0x64f   :  { %10152 = vtanh.f32 %v4803_v28  ;;  %v11992_v28 = vcombine.high %v4898_v26, %v4902_v27 }
 0x655   :  { %v10145_v31 = vpop.eup %10144 }
 0x656   :  { %v10147_v35 = vpop.eup %10146  ;;  %v4808_v29 = vadd.f32 1.0, %v10145_v31  ;;  %v11994_v31 = vcombine.high %v4899_v57, %v4903_v52 }
 0x657   :  { %v4814_v16 = vadd.f32 1.0, %v10147_v35  ;;  %v10149_v46 = vpop.eup %10148  ;;  %v4906_v35 = vld [vmem:[#allocation8 + $0x150] sm:$0xff] }
 0x658   :  { %10154 = vrcp.f32 %v4808_v29  ;;  %v10151_v1 = vpop.eup %10150  ;;  %v4855_v62 = vadd.f32 1.0, %v10149_v46  ;;  %v4910_v29 = vld [vmem:[#allocation8 + $0x170] sm:$0xff]  ;;  %v4911_v46 = vld [vmem:[#allocation8 + $0x178] sm:$0xff] }
 0x659   :  { %10156 = vrcp.f32 %v4814_v16  ;;  %v10153_v22 = vpop.eup %10152  ;;  %v4821_v8 = vadd.f32 1.0, %v10151_v1  ;;  %v4907_v16 = vld [vmem:[#allocation8 + $0x158] sm:$0xff]  ;;  %v11998_v1 = vcombine.low %v4898_v26, %v4902_v27  ;;  %v12042_v26 = vcombine.high %v4931_v19, %v4935_v12  ;;  %v4938_v27 = vld [vmem:[#allocation8 + $0x250] sm:$0xff] }
 0x65a   :  { %10158 = vtanh.f32 %v11938_v36 }
 0x65b   :  { %10160 = vrcp.f32 %v4855_v62  ;;  %v12006_v62 = vcombine.high %v4907_v16, %v4911_v46  ;;  %13585 = vst [vmem:[#allocation48_spill] sm:$0xff] %v12042_v26 }
 0x65c   :  { %10162 = vrcp.f32 %v4821_v8  ;;  %v4915_v8 = vld [vmem:[#allocation8 + $0x198] sm:$0xff] }
 0x662   :  { %v10155_v59 = vpop.eup %10154 }
 0x663   :  { %v10157_v40 = vpop.eup %10156  ;;  %v4825_v53 = vmul.f32 %v10155_v59, %v10153_v22  ;;  %v12000_v22 = vcombine.low %v4899_v57, %v4903_v52  ;;  %v12004_v59 = vcombine.high %v4906_v35, %v4910_v29  ;;  %v4942_v57 = vld [vmem:[#allocation8 + $0x270] sm:$0xff]  ;;  %v4939_v52 = vld [vmem:[#allocation8 + $0x258] sm:$0xff] }
 0x664   :  { %v4824_v44 = vmul.f32 %v10157_v40, %v11781_v51  ;;  %v10159_v55 = vpop.eup %10158  ;;  %v4914_v40 = vld [vmem:[#allocation8 + $0x190] sm:$0xff] }
 0x665   :  { %v10161_v43 = vpop.eup %10160 }
 0x666   :  { %v11946_v63 = vadd.f32 %v4825_v53, %v4824_v44  ;;  %v10163_v54 = vpop.eup %10162  ;;  %v4862_v45 = vmul.f32 %v10161_v43, %v10159_v55  ;;  %v4918_v53 = vld [vmem:[#allocation8 + $0x1b0] sm:$0xff]  ;;  %v4919_v44 = vld [vmem:[#allocation8 + $0x1b8] sm:$0xff]  ;;  %v12010_v55 = vcombine.low %v4906_v35, %v4910_v29  ;;  %v12012_v43 = vcombine.low %v4907_v16, %v4911_v46 }
 0x667   :  { %v12022_v4 = vcombine.low %v4914_v40, %v4918_v53  ;;  %v12024_v20 = vcombine.low %v4915_v8, %v4919_v44  ;;  %v4943_v35 = vld [vmem:[#allocation8 + $0x278] sm:$0xff]  ;;  %v12046_v29 = vcombine.low %v4930_v0, %v4934_v58  ;;  %v12048_v16 = vcombine.low %v4931_v19, %v4935_v12  ;;  %v4954_v58 = vld [vmem:[#allocation8 + $0x2d0] sm:$0xff] }
 0x668   :  { %10164 = vtanh.f32 %v11946_v63  ;;  %v11949_v51 = vpack.c.bf16 %v4862_v45, %v4862_v45  ;;  %v4922_v45 = vld [vmem:[#allocation8 + $0x1d0] sm:$0xff]  ;;  %v12052_v46 = vcombine.high %v4938_v27, %v4942_v57  ;;  %v12060_v25 = vcombine.low %v4939_v52, %v4943_v35  ;;  %v4955_v12 = vld [vmem:[#allocation8 + $0x2d8] sm:$0xff] }
 0x669   :  { %13586 = vst [vmem:[#allocation49_spill] sm:$0xff] %v12046_v29  ;;  %13587 = vst [vmem:[#allocation50_spill] sm:$0xff] %v12048_v16  ;;  %v4958_v19 = vld [vmem:[#allocation8 + $0x2f0] sm:$0xff] }
 0x66a   :  { %13588 = vst [vmem:[#allocation51_spill] sm:$0xff] %v12052_v46  ;;  %13591 = vst [vmem:[#allocation17_spill] sm:$0xff] %v12060_v25 }
 0x672   :  { %v10165_v10 = vpop.eup %10164 }
 0x673   :  { %v4828_v32 = vmul.f32 %v10165_v10, %v10163_v54  ;;  %v12016_v54 = vcombine.high %v4914_v40, %v4918_v53  ;;  %v12018_v10 = vcombine.high %v4915_v8, %v4919_v44  ;;  %v12054_v40 = vcombine.high %v4939_v52, %v4943_v35  ;;  %v4946_v53 = vld [vmem:[#allocation8 + $0x290] sm:$0xff]  ;;  %v4947_v44 = vld [vmem:[#allocation8 + $0x298] sm:$0xff] }
 0x674   :  { %v4950_v8 = vld [vmem:[#allocation8 + $0x2b0] sm:$0xff]  ;;  %v12076_v52 = vcombine.high %v4954_v58, %v4958_v19 }
 0x675   :  { %v4829_v60 = vpack.c.bf16 %v4828_v32, %v4828_v32  ;;  %v4926_v32 = vld [vmem:[#allocation8 + $0x1f0] sm:$0xff]  ;;  %13589 = vst [vmem:[#allocation16_spill] sm:$0xff] %v12054_v40  ;;  %v12064_v3 = vcombine.high %v4946_v53, %v4950_v8 }
 0x676   :  { %v12034_v34 = vcombine.low %v4922_v45, %v4926_v32  ;;  %13596 = vst [vmem:[#allocation21_spill] sm:$0xff] %v12076_v52 }
 0x677   :  { %4830 = vst [vmem:[%s12827_s7 + $0xc] sm:$0xf] %v4829_v60  ;;  %5664 = vmatprep.mubr.bf16.mxu0 %v4829_v60  ;;  %5705 = vmatprep.mubr.bf16.mxu1 %v4829_v60  ;;  %13592 = vst [vmem:[#allocation18_spill] sm:$0xff] %v12064_v3 }
 0x678   :  { %5665 = vmatmul.mubr.bf16.vlgmr.msra.gmra.mrb[52].mxu0 %v11949_v51  ;;  %5706 = vmatmul.mubr.bf16.vlgmr.msra.gmra.mrb[52].mxu1 %v11949_v51 }
 0x679   :  { %5715 = vmatpush1.bf16.msra.mxu0 %v11921_v18  ;;  %5756 = vmatpush1.bf16.msra.mxu1 %v11923_v50 }
 0x67a   :  { %5746 = vmatprep.mubr.bf16.mxu0 %v4829_v60  ;;  %5787 = vmatprep.mubr.bf16.mxu1 %v4829_v60  ;;  %v12028_v60 = vcombine.high %v4922_v45, %v4926_v32  ;;  %v4951_v45 = vld [vmem:[#allocation8 + $0x2b8] sm:$0xff]  ;;  %v12058_v32 = vcombine.low %v4938_v27, %v4942_v57  ;;  %v12070_v27 = vcombine.low %v4946_v53, %v4950_v8 }
 0x67b   :  { %5716 = vmatprep.subr.bf16.mxu0 %v11954_v38  ;;  %5757 = vmatprep.subr.bf16.mxu1 %v11956_v17  ;;  %v12066_v0 = vcombine.high %v4947_v44, %v4951_v45  ;;  %v12072_v57 = vcombine.low %v4947_v44, %v4951_v45  ;;  %v12082_v53 = vcombine.low %v4954_v58, %v4958_v19 }
 0x67c   :  { %13590 = vst [vmem:[#allocation15_spill] sm:$0xff] %v12058_v32  ;;  %13594 = vst [vmem:[#allocation20_spill] sm:$0xff] %v12070_v27 }
 0x67d   :  { %5717 = vmatpush1.bf16.msra.mxu0 %v11962_v15  ;;  %5758 = vmatpush1.bf16.msra.mxu1 %v11964_v6  ;;  %13593 = vst [vmem:[#allocation19_spill] sm:$0xff] %v12066_v0  ;;  %13595 = vst [vmem:[#allocation11_spill] sm:$0xff] %v12072_v57 }
 0x67e   :  { %5718 = vmatprep.subr.bf16.mxu0 %v11966_v13  ;;  %5759 = vmatprep.subr.bf16.mxu1 %v11968_v24  ;;  %13598 = vst [vmem:[#allocation23_spill] sm:$0xff] %v12082_v53 }
 0x681   :  { %5719 = vmatpush1.bf16.msra.mxu0 %v11974_v21  ;;  %5760 = vmatpush1.bf16.msra.mxu1 %v11976_v56 }
 0x682   :  { %5720 = vmatprep.subr.bf16.mxu0 %v11980_v33  ;;  %5761 = vmatprep.subr.bf16.mxu1 %v11982_v41 }
 0x685   :  { %5721 = vmatpush1.bf16.msra.mxu0 %v11986_v49  ;;  %5762 = vmatpush1.bf16.msra.mxu1 %v11988_v11 }
 0x686   :  { %5722 = vmatprep.subr.bf16.mxu0 %v11992_v28  ;;  %5763 = vmatprep.subr.bf16.mxu1 %v11994_v31 }
 0x689   :  { %5723 = vmatpush1.bf16.msra.mxu0 %v11998_v1  ;;  %5764 = vmatpush1.bf16.msra.mxu1 %v12000_v22 }
 0x68a   :  { %5724 = vmatprep.subr.bf16.mxu0 %v12004_v59  ;;  %5765 = vmatprep.subr.bf16.mxu1 %v12006_v62 }
 0x68d   :  { %5725 = vmatpush1.bf16.msra.mxu0 %v12010_v55  ;;  %5766 = vmatpush1.bf16.msra.mxu1 %v12012_v43 }
 0x68e   :  { %5726 = vmatprep.subr.bf16.mxu0 %v12016_v54  ;;  %5767 = vmatprep.subr.bf16.mxu1 %v12018_v10 }
 0x691   :  { %5727 = vmatpush1.bf16.msra.mxu0 %v12022_v4  ;;  %5768 = vmatpush1.bf16.msra.mxu1 %v12024_v20 }
 0x692   :  { %5728 = vmatprep.subr.bf16.mxu0 %v12028_v60  ;;  %5769 = vmatprep.subr.bf16.mxu1 %v12030_v61 }
 0x695   :  { %5729 = vmatpush1.bf16.msra.mxu0 %v12034_v34  ;;  %5770 = vmatpush1.bf16.msra.mxu1 %v12036_v42 }
 0x696   :  { %5730 = vmatprep.subr.bf16.mxu0 %v12040_v47  ;;  %5771 = vmatprep.subr.bf16.mxu1 %v12042_v26  ;;  %v4959_v26 = vld [vmem:[#allocation8 + $0x2f8] sm:$0xff] }
 0x697   :  { %v12078_v35 = vcombine.high %v4955_v12, %v4959_v26  ;;  %v12084_v8 = vcombine.low %v4955_v12, %v4959_v26 }
 0x699   :  { %5731 = vmatpush1.bf16.msra.mxu0 %v12046_v29  ;;  %5772 = vmatpush1.bf16.msra.mxu1 %v12048_v16  ;;  %13597 = vst [vmem:[#allocation22_spill] sm:$0xff] %v12078_v35  ;;  %v4963_v16 = vld [vmem:[#allocation8 + $0x318] sm:$0xff]  ;;  %13599 = vst [vmem:[#allocation24_spill] sm:$0xff] %v12084_v8 }
 0x69a   :  { %5732 = vmatprep.subr.bf16.mxu0 %v12052_v46  ;;  %5773 = vmatprep.subr.bf16.mxu1 %v12054_v40  ;;  %v4962_v40 = vld [vmem:[#allocation8 + $0x310] sm:$0xff]  ;;  %v4967_v29 = vld [vmem:[#allocation8 + $0x338] sm:$0xff] }
 0x69b   :  { %v4966_v46 = vld [vmem:[#allocation8 + $0x330] sm:$0xff]  ;;  %v12090_v45 = vcombine.high %v4963_v16, %v4967_v29  ;;  %v12096_v26 = vcombine.low %v4963_v16, %v4967_v29 }
 0x69c   :  { %v12088_v44 = vcombine.high %v4962_v40, %v4966_v46  ;;  %v12094_v58 = vcombine.low %v4962_v40, %v4966_v46 }
 0x69d   :  { %5733 = vmatpush1.bf16.msra.mxu0 %v12058_v32  ;;  %5774 = vmatpush1.bf16.msra.mxu1 %v12060_v25  ;;  %13601 = vst [vmem:[#allocation26_spill] sm:$0xff] %v12090_v45  ;;  %v4971_v25 = vld [vmem:[#allocation8 + $0x358] sm:$0xff]  ;;  %13602 = vst [vmem:[#allocation27_spill] sm:$0xff] %v12096_v26 }
 0x69e   :  { %5734 = vmatprep.subr.bf16.mxu0 %v12064_v3  ;;  %5775 = vmatprep.subr.bf16.mxu1 %v12066_v0  ;;  %13600 = vst [vmem:[#allocation25_spill] sm:$0xff] %v12088_v44  ;;  %v4970_v0 = vld [vmem:[#allocation8 + $0x350] sm:$0xff]  ;;  %v4975_v32 = vld [vmem:[#allocation8 + $0x378] sm:$0xff] }
 0x69f   :  { %v4974_v3 = vld [vmem:[#allocation8 + $0x370] sm:$0xff]  ;;  %v12102_v12 = vcombine.high %v4971_v25, %v4975_v32  ;;  %v12108_v29 = vcombine.low %v4971_v25, %v4975_v32 }
 0x6a0   :  { %v12100_v19 = vcombine.high %v4970_v0, %v4974_v3  ;;  %v12106_v46 = vcombine.low %v4970_v0, %v4974_v3 }
 0x6a1   :  { %5735 = vmatpush1.bf16.msra.mxu0 %v12070_v27  ;;  %5776 = vmatpush1.bf16.msra.mxu1 %v12072_v57  ;;  %13604 = vst [vmem:[#allocation29_spill] sm:$0xff] %v12102_v12  ;;  %v4979_v57 = vld [vmem:[#allocation8 + $0x398] sm:$0xff]  ;;  %13606 = vst [vmem:[#allocation31_spill] sm:$0xff] %v12108_v29 }
 0x6a2   :  { %5736 = vmatprep.subr.bf16.mxu0 %v12076_v52  ;;  %5777 = vmatprep.subr.bf16.mxu1 %v12078_v35  ;;  %13603 = vst [vmem:[#allocation28_spill] sm:$0xff] %v12100_v19  ;;  %v4978_v35 = vld [vmem:[#allocation8 + $0x390] sm:$0xff]  ;;  %v4983_v27 = vld [vmem:[#allocation8 + $0x3b8] sm:$0xff]  ;;  %13605 = vst [vmem:[#allocation30_spill] sm:$0xff] %v12106_v46 }
 0x6a3   :  { %v4982_v52 = vld [vmem:[#allocation8 + $0x3b0] sm:$0xff]  ;;  %v12114_v40 = vcombine.high %v4979_v57, %v4983_v27  ;;  %v12120_v32 = vcombine.low %v4979_v57, %v4983_v27  ;;  %v5859_v27 = vld [vmem:[#allocation8] sm:$0xff] }
 0x6a4   :  { %v12112_v16 = vcombine.high %v4978_v35, %v4982_v52  ;;  %v12118_v3 = vcombine.low %v4978_v35, %v4982_v52  ;;  %v5863_v57 = vld [vmem:[#allocation8 + $0x20] sm:$0xff]  ;;  %v5860_v52 = vld [vmem:[#allocation8 + $0x8] sm:$0xff] }
 0x6a5   :  { %5737 = vmatpush1.bf16.msra.mxu0 %v12082_v53  ;;  %5778 = vmatpush1.bf16.msra.mxu1 %v12084_v8  ;;  %13608 = vst [vmem:[#allocation33_spill] sm:$0xff] %v12114_v40  ;;  %v4987_v8 = vld [vmem:[#allocation8 + $0x3d8] sm:$0xff]  ;;  %13610 = vst [vmem:[#allocation35_spill] sm:$0xff] %v12120_v32  ;;  %v12140_v35 = vcombine.low %v5859_v27, %v5863_v57 }
 0x6a6   :  { %5738 = vmatprep.subr.bf16.mxu0 %v12088_v44  ;;  %5779 = vmatprep.subr.bf16.mxu1 %v12090_v45  ;;  %13607 = vst [vmem:[#allocation32_spill] sm:$0xff] %v12112_v16  ;;  %v4986_v45 = vld [vmem:[#allocation8 + $0x3d0] sm:$0xff]  ;;  %v4991_v53 = vld [vmem:[#allocation8 + $0x3f8] sm:$0xff]  ;;  %13609 = vst [vmem:[#allocation34_spill] sm:$0xff] %v12118_v3 }
 0x6a7   :  { %v4990_v44 = vld [vmem:[#allocation8 + $0x3f0] sm:$0xff]  ;;  %v12126_v0 = vcombine.high %v4987_v8, %v4991_v53 }
 0x6a8   :  { %v12124_v25 = vcombine.high %v4986_v45, %v4990_v44 }
 0x6a9   :  { %5739 = vmatpush1.bf16.msra.mxu0 %v12094_v58  ;;  %5780 = vmatpush1.bf16.msra.mxu1 %v12096_v26  ;;  %13612 = vst [vmem:[#allocation37_spill] sm:$0xff] %v12126_v0  ;;  %v5884_v26 = vld [vmem:[#allocation8 + $0xc8] sm:$0xff] }
 0x6aa   :  { %5740 = vmatprep.subr.bf16.mxu0 %v12100_v19  ;;  %5781 = vmatprep.subr.bf16.mxu1 %v12102_v12  ;;  %13611 = vst [vmem:[#allocation36_spill] sm:$0xff] %v12124_v25  ;;  %v12130_v12 = vcombine.low %v4986_v45, %v4990_v44  ;;  %v12142_v44 = vcombine.high %v5859_v27, %v5863_v57  ;;  %v5871_v45 = vld [vmem:[#allocation8 + $0x60] sm:$0xff]  ;;  %v5880_v27 = vld [vmem:[#allocation8 + $0xa8] sm:$0xff] }
 0x6ab   :  { %v5887_v19 = vld [vmem:[#allocation8 + $0xe0] sm:$0xff] }
 0x6ac   :  { %13613 = vst [vmem:[#allocation38_spill] sm:$0xff] %v12130_v12  ;;  %13615 = vst [vmem:[#allocation40_spill] sm:$0xff] %v12142_v44 }
 0x6ad   :  { %5741 = vmatpush1.bf16.msra.mxu0 %v12106_v46  ;;  %5782 = vmatpush1.bf16.msra.mxu1 %v12108_v29  ;;  %v12132_v46 = vcombine.low %v4987_v8, %v4991_v53  ;;  %v5864_v53 = vld [vmem:[#allocation8 + $0x28] sm:$0xff]  ;;  %v5867_v8 = vld [vmem:[#allocation8 + $0x40] sm:$0xff] }
 0x6ae   :  { %5742 = vmatprep.subr.bf16.mxu0 %v12112_v16  ;;  %5783 = vmatprep.subr.bf16.mxu1 %v12114_v40  ;;  %v5879_v40 = vld [vmem:[#allocation8 + $0xa0] sm:$0xff]  ;;  %v5876_v16 = vld [vmem:[#allocation8 + $0x88] sm:$0xff]  ;;  %v12155_v57 = vcombine.low %v5867_v8, %v5871_v45 }
 0x6af   :  { %13614 = vst [vmem:[#allocation39_spill] sm:$0xff] %v12132_v46  ;;  %v5883_v29 = vld [vmem:[#allocation8 + $0xc0] sm:$0xff] }
 0x6b0   :  { %13618 = vst [vmem:[#allocation45_spill] sm:$0xff] %v12155_v57 }
 0x6b1   :  { %5743 = vmatpush1.bf16.msra.mxu0 %v12118_v3  ;;  %5784 = vmatpush1.bf16.msra.mxu1 %v12120_v32  ;;  %v5872_v32 = vld [vmem:[#allocation8 + $0x68] sm:$0xff]  ;;  %v5875_v3 = vld [vmem:[#allocation8 + $0x80] sm:$0xff] }
 0x6b2   :  { %5744 = vmatprep.subr.bf16.mxu0 %v12124_v25  ;;  %5785 = vmatprep.subr.bf16.mxu1 %v12126_v0  ;;  %v12144_v25 = vcombine.low %v5860_v52, %v5864_v53  ;;  %v12146_v0 = vcombine.high %v5860_v52, %v5864_v53  ;;  %v12161_v53 = vcombine.high %v5875_v3, %v5879_v40 }
 0x6b4   :  { %13616 = vst [vmem:[#allocation41_spill] sm:$0xff] %v12146_v0  ;;  %13620 = vst [vmem:[#allocation69_spill] sm:$0xff] %v12161_v53 }
 0x6b5   :  { %5745 = vmatpush1.bf16.msra.mxu0 %v12130_v12  ;;  %5786 = vmatpush1.bf16.msra.mxu1 %v12132_v46  ;;  %v12148_v12 = vcombine.high %v5867_v8, %v5871_v45  ;;  %v5868_v46 = vld [vmem:[#allocation8 + $0x48] sm:$0xff]  ;;  %v12167_v8 = vcombine.low %v5875_v3, %v5879_v40  ;;  %v5895_v3 = vld [vmem:[#allocation8 + $0x120] sm:$0xff] }
 0x6b6   :  { %6627 = vmatprep.subr.bf16.mxu0 %v12142_v44  ;;  %6668 = vmatprep.subr.bf16.mxu1 %v12146_v0  ;;  %v12159_v52 = vcombine.low %v5868_v46, %v5872_v32  ;;  %v12164_v44 = vcombine.high %v5876_v16, %v5880_v27  ;;  %v5888_v0 = vld [vmem:[#allocation8 + $0xe8] sm:$0xff] }
 0x6b7   :  { %13622 = vst [vmem:[#allocation71_spill] sm:$0xff] %v12167_v8  ;;  %v12176_v45 = vcombine.high %v5884_v26, %v5888_v0  ;;  %v12183_v40 = vcombine.low %v5884_v26, %v5888_v0  ;;  %v5899_v26 = vld [vmem:[#allocation8 + $0x140] sm:$0xff] }
 0x6b8   :  { %5747 = vmatmul.mubr.bf16.vlgmr.msra.gmra.mrb[56].mxu0 %v11949_v51  ;;  %5788 = vmatmul.mubr.bf16.vlgmr.msra.gmra.mrb[56].mxu1 %v11949_v51  ;;  %v12151_v51 = vcombine.high %v5868_v46, %v5872_v32  ;;  %13619 = vst [vmem:[#allocation68_spill] sm:$0xff] %v12159_v52  ;;  %13621 = vst [vmem:[#allocation70_spill] sm:$0xff] %v12164_v44  ;;  %v12171_v46 = vcombine.low %v5876_v16, %v5880_v27  ;;  %v5891_v16 = vld [vmem:[#allocation8 + $0x100] sm:$0xff]  ;;  %v5892_v27 = vld [vmem:[#allocation8 + $0x108] sm:$0xff] }
 0x6b9   :  { %6628 = vmatpush1.bf16.msra.mxu0 %v12140_v35  ;;  %6669 = vmatpush1.bf16.msra.mxu1 %v12144_v25  ;;  %v12173_v32 = vcombine.high %v5883_v29, %v5887_v19  ;;  %13625 = vst [vmem:[#allocation74_spill] sm:$0xff] %v12176_v45  ;;  %13627 = vst [vmem:[#allocation76_spill] sm:$0xff] %v12183_v40  ;;  %v5903_v0 = vld [vmem:[#allocation8 + $0x160] sm:$0xff] }
 0x6ba   :  { %13617 = vst [vmem:[#allocation44_spill] sm:$0xff] %v12151_v51  ;;  %6629 = vmatprep.subr.bf16.mxu0 %v12148_v12  ;;  %6670 = vmatprep.subr.bf16.mxu1 %v12151_v51  ;;  %13623 = vst [vmem:[#allocation72_spill] sm:$0xff] %v12171_v46  ;;  %v12179_v51 = vcombine.low %v5883_v29, %v5887_v19  ;;  %v12190_v19 = vcombine.low %v5891_v16, %v5895_v3 }
 0x6bb   :  { %13624 = vst [vmem:[#allocation73_spill] sm:$0xff] %v12173_v32 }
 0x6bc   :  { %13626 = vst [vmem:[#allocation75_spill] sm:$0xff] %v12179_v51  ;;  %13629 = vst [vmem:[#allocation78_spill] sm:$0xff] %v12190_v19 }
 0x6bd   :  { %6630 = vmatpush1.bf16.msra.mxu0 %v12155_v57  ;;  %6671 = vmatpush1.bf16.msra.mxu1 %v12159_v52  ;;  %v5976_v52 = vld [vmem:[#allocation8 + $0x3a8] sm:$0xff] }
 0x6be   :  { %6631 = vmatprep.subr.bf16.mxu0 %v12161_v53  ;;  %6672 = vmatprep.subr.bf16.mxu1 %v12164_v44  ;;  %v12188_v44 = vcombine.high %v5891_v16, %v5895_v3  ;;  %v12202_v16 = vcombine.low %v5899_v26, %v5903_v0  ;;  %v5972_v53 = vld [vmem:[#allocation8 + $0x388] sm:$0xff] }
 0x6bf   :  { %v5984_v57 = vld [vmem:[#allocation8 + $0x3e8] sm:$0xff] }
 0x6c0   :  { %13628 = vst [vmem:[#allocation77_spill] sm:$0xff] %v12188_v44  ;;  %13633 = vst [vmem:[#allocation83_spill] sm:$0xff] %v12202_v16 }
 0x6c1   :  { %6632 = vmatpush1.bf16.msra.mxu0 %v12167_v8  ;;  %6673 = vmatpush1.bf16.msra.mxu1 %v12171_v46  ;;  %v5896_v8 = vld [vmem:[#allocation8 + $0x128] sm:$0xff] }
 0x6c2   :  { %6633 = vmatprep.subr.bf16.mxu0 %v12173_v32  ;;  %6674 = vmatprep.subr.bf16.mxu1 %v12176_v45  ;;  %v12192_v29 = vcombine.low %v5892_v27, %v5896_v8  ;;  %v12194_v46 = vcombine.high %v5892_v27, %v5896_v8  ;;  %v5904_v45 = vld [vmem:[#allocation8 + $0x168] sm:$0xff]  ;;  %v5907_v27 = vld [vmem:[#allocation8 + $0x180] sm:$0xff] }
 0x6c3   :  { %v5968_v32 = vld [vmem:[#allocation8 + $0x368] sm:$0xff] }
 0x6c4   :  { %13630 = vst [vmem:[#allocation79_spill] sm:$0xff] %v12192_v29  ;;  %13631 = vst [vmem:[#allocation80_spill] sm:$0xff] %v12194_v46 }
 0x6c5   :  { %6634 = vmatpush1.bf16.msra.mxu0 %v12179_v51  ;;  %6675 = vmatpush1.bf16.msra.mxu1 %v12183_v40  ;;  %v5900_v40 = vld [vmem:[#allocation8 + $0x148] sm:$0xff]  ;;  %v12200_v51 = vcombine.high %v5899_v26, %v5903_v0 }
 0x6c6   :  { %6635 = vmatprep.subr.bf16.mxu0 %v12188_v44  ;;  %6676 = vmatprep.subr.bf16.mxu1 %v12194_v46  ;;  %v12204_v3 = vcombine.low %v5900_v40, %v5904_v45  ;;  %v12206_v8 = vcombine.high %v5900_v40, %v5904_v45  ;;  %v5908_v46 = vld [vmem:[#allocation8 + $0x188] sm:$0xff]  ;;  %v5915_v40 = vld [vmem:[#allocation8 + $0x1c0] sm:$0xff] }
 0x6c7   :  { %13632 = vst [vmem:[#allocation81_spill] sm:$0xff] %v12200_v51  ;;  %v5912_v44 = vld [vmem:[#allocation8 + $0x1a8] sm:$0xff] }
 0x6c8   :  { %13634 = vst [vmem:[#allocation84_spill] sm:$0xff] %v12204_v3  ;;  %13635 = vst [vmem:[#allocation82_spill] sm:$0xff] %v12206_v8  ;;  %v12216_v0 = vcombine.low %v5908_v46, %v5912_v44  ;;  %v12218_v45 = vcombine.high %v5908_v46, %v5912_v44  ;;  %v5923_v46 = vld [vmem:[#allocation8 + $0x200] sm:$0xff] }
 0x6c9   :  { %6636 = vmatpush1.bf16.msra.mxu0 %v12190_v19  ;;  %6677 = vmatpush1.bf16.msra.mxu1 %v12192_v29  ;;  %v5911_v19 = vld [vmem:[#allocation8 + $0x1a0] sm:$0xff] }
 0x6ca   :  { %6637 = vmatprep.subr.bf16.mxu0 %v12200_v51  ;;  %6678 = vmatprep.subr.bf16.mxu1 %v12206_v8  ;;  %v12212_v29 = vcombine.high %v5907_v27, %v5911_v19  ;;  %v12214_v26 = vcombine.low %v5907_v27, %v5911_v19  ;;  %13638 = vst [vmem:[#allocation88_spill] sm:$0xff] %v12216_v0  ;;  %13639 = vst [vmem:[#allocation86_spill] sm:$0xff] %v12218_v45  ;;  %v5916_v8 = vld [vmem:[#allocation8 + $0x1c8] sm:$0xff] }
 0x6cb   :  { %v5920_v51 = vld [vmem:[#allocation8 + $0x1e8] sm:$0xff] }
 0x6cc   :  { %13636 = vst [vmem:[#allocation85_spill] sm:$0xff] %v12212_v29  ;;  %13637 = vst [vmem:[#allocation87_spill] sm:$0xff] %v12214_v26  ;;  %v12228_v27 = vcombine.low %v5916_v8, %v5920_v51  ;;  %v12230_v44 = vcombine.high %v5916_v8, %v5920_v51  ;;  %v5931_v8 = vld [vmem:[#allocation8 + $0x240] sm:$0xff] }
 0x6cd   :  { %6638 = vmatpush1.bf16.msra.mxu0 %v12202_v16  ;;  %6679 = vmatpush1.bf16.msra.mxu1 %v12204_v3  ;;  %v5919_v16 = vld [vmem:[#allocation8 + $0x1e0] sm:$0xff] }
 0x6ce   :  { %6639 = vmatprep.subr.bf16.mxu0 %v12212_v29  ;;  %6680 = vmatprep.subr.bf16.mxu1 %v12218_v45  ;;  %v12224_v3 = vcombine.high %v5915_v40, %v5919_v16  ;;  %v12226_v19 = vcombine.low %v5915_v40, %v5919_v16  ;;  %13642 = vst [vmem:[#allocation92_spill] sm:$0xff] %v12228_v27  ;;  %13643 = vst [vmem:[#allocation90_spill] sm:$0xff] %v12230_v44  ;;  %v5924_v45 = vld [vmem:[#allocation8 + $0x208] sm:$0xff] }
 0x6cf   :  { %v5928_v29 = vld [vmem:[#allocation8 + $0x228] sm:$0xff] }
 0x6d0   :  { %13640 = vst [vmem:[#allocation89_spill] sm:$0xff] %v12224_v3  ;;  %13641 = vst [vmem:[#allocation91_spill] sm:$0xff] %v12226_v19  ;;  %v12240_v40 = vcombine.low %v5924_v45, %v5928_v29  ;;  %v12242_v51 = vcombine.high %v5924_v45, %v5928_v29  ;;  %v5939_v45 = vld [vmem:[#allocation8 + $0x280] sm:$0xff] }
 0x6d1   :  { %6640 = vmatpush1.bf16.msra.mxu0 %v12214_v26  ;;  %6681 = vmatpush1.bf16.msra.mxu1 %v12216_v0  ;;  %v5927_v26 = vld [vmem:[#allocation8 + $0x220] sm:$0xff] }
 0x6d2   :  { %6641 = vmatprep.subr.bf16.mxu0 %v12224_v3  ;;  %6682 = vmatprep.subr.bf16.mxu1 %v12230_v44  ;;  %v12236_v0 = vcombine.high %v5923_v46, %v5927_v26  ;;  %v12238_v16 = vcombine.low %v5923_v46, %v5927_v26  ;;  %13646 = vst [vmem:[#allocation96_spill] sm:$0xff] %v12240_v40  ;;  %13647 = vst [vmem:[#allocation94_spill] sm:$0xff] %v12242_v51  ;;  %v5932_v44 = vld [vmem:[#allocation8 + $0x248] sm:$0xff] }
 0x6d3   :  { %v5936_v3 = vld [vmem:[#allocation8 + $0x268] sm:$0xff] }
 0x6d4   :  { %13644 = vst [vmem:[#allocation93_spill] sm:$0xff] %v12236_v0  ;;  %13645 = vst [vmem:[#allocation95_spill] sm:$0xff] %v12238_v16  ;;  %v12252_v46 = vcombine.low %v5932_v44, %v5936_v3  ;;  %v12254_v29 = vcombine.high %v5932_v44, %v5936_v3  ;;  %v5947_v44 = vld [vmem:[#allocation8 + $0x2c0] sm:$0xff] }
 0x6d5   :  { %6642 = vmatpush1.bf16.msra.mxu0 %v12226_v19  ;;  %6683 = vmatpush1.bf16.msra.mxu1 %v12228_v27  ;;  %v5935_v19 = vld [vmem:[#allocation8 + $0x260] sm:$0xff] }
 0x6d6   :  { %6643 = vmatprep.subr.bf16.mxu0 %v12236_v0  ;;  %6684 = vmatprep.subr.bf16.mxu1 %v12242_v51  ;;  %v12248_v27 = vcombine.high %v5931_v8, %v5935_v19  ;;  %v12250_v26 = vcombine.low %v5931_v8, %v5935_v19  ;;  %13650 = vst [vmem:[#allocation100_spill] sm:$0xff] %v12252_v46  ;;  %13651 = vst [vmem:[#allocation98_spill] sm:$0xff] %v12254_v29  ;;  %v5940_v51 = vld [vmem:[#allocation8 + $0x288] sm:$0xff] }
 0x6d7   :  { %v5944_v0 = vld [vmem:[#allocation8 + $0x2a8] sm:$0xff] }
 0x6d8   :  { %13648 = vst [vmem:[#allocation97_spill] sm:$0xff] %v12248_v27  ;;  %13649 = vst [vmem:[#allocation99_spill] sm:$0xff] %v12250_v26  ;;  %v12264_v8 = vcombine.low %v5940_v51, %v5944_v0  ;;  %v12266_v3 = vcombine.high %v5940_v51, %v5944_v0  ;;  %v5955_v51 = vld [vmem:[#allocation8 + $0x300] sm:$0xff] }
 0x6d9   :  { %6644 = vmatpush1.bf16.msra.mxu0 %v12238_v16  ;;  %6685 = vmatpush1.bf16.msra.mxu1 %v12240_v40  ;;  %v5943_v16 = vld [vmem:[#allocation8 + $0x2a0] sm:$0xff] }
 0x6da   :  { %6645 = vmatprep.subr.bf16.mxu0 %v12248_v27  ;;  %6686 = vmatprep.subr.bf16.mxu1 %v12254_v29  ;;  %v12260_v40 = vcombine.high %v5939_v45, %v5943_v16  ;;  %v12262_v19 = vcombine.low %v5939_v45, %v5943_v16  ;;  %13654 = vst [vmem:[#allocation104_spill] sm:$0xff] %v12264_v8  ;;  %13655 = vst [vmem:[#allocation102_spill] sm:$0xff] %v12266_v3  ;;  %v5948_v29 = vld [vmem:[#allocation8 + $0x2c8] sm:$0xff] }
 0x6db   :  { %v5952_v27 = vld [vmem:[#allocation8 + $0x2e8] sm:$0xff] }
 0x6dc   :  { %13652 = vst [vmem:[#allocation101_spill] sm:$0xff] %v12260_v40  ;;  %13653 = vst [vmem:[#allocation103_spill] sm:$0xff] %v12262_v19  ;;  %v12276_v45 = vcombine.low %v5948_v29, %v5952_v27  ;;  %v12278_v0 = vcombine.high %v5948_v29, %v5952_v27  ;;  %v5963_v29 = vld [vmem:[#allocation8 + $0x340] sm:$0xff] }
 0x6dd   :  { %6646 = vmatpush1.bf16.msra.mxu0 %v12250_v26  ;;  %6687 = vmatpush1.bf16.msra.mxu1 %v12252_v46  ;;  %v5951_v26 = vld [vmem:[#allocation8 + $0x2e0] sm:$0xff] }
 0x6de   :  { %6647 = vmatprep.subr.bf16.mxu0 %v12260_v40  ;;  %6688 = vmatprep.subr.bf16.mxu1 %v12266_v3  ;;  %v12272_v46 = vcombine.high %v5947_v44, %v5951_v26  ;;  %v12274_v16 = vcombine.low %v5947_v44, %v5951_v26  ;;  %13658 = vst [vmem:[#allocation108_spill] sm:$0xff] %v12276_v45  ;;  %13659 = vst [vmem:[#allocation106_spill] sm:$0xff] %v12278_v0  ;;  %v5956_v3 = vld [vmem:[#allocation8 + $0x308] sm:$0xff] }
 0x6df   :  { %v5960_v40 = vld [vmem:[#allocation8 + $0x328] sm:$0xff] }
 0x6e0   :  { %13656 = vst [vmem:[#allocation105_spill] sm:$0xff] %v12272_v46  ;;  %13657 = vst [vmem:[#allocation107_spill] sm:$0xff] %v12274_v16  ;;  %v12288_v44 = vcombine.low %v5956_v3, %v5960_v40  ;;  %v12290_v27 = vcombine.high %v5956_v3, %v5960_v40 }
 0x6e1   :  { %6648 = vmatpush1.bf16.msra.mxu0 %v12262_v19  ;;  %6689 = vmatpush1.bf16.msra.mxu1 %v12264_v8  ;;  %v5959_v19 = vld [vmem:[#allocation8 + $0x320] sm:$0xff] }
 0x6e2   :  { %6649 = vmatprep.subr.bf16.mxu0 %v12272_v46  ;;  %6690 = vmatprep.subr.bf16.mxu1 %v12278_v0  ;;  %v12284_v8 = vcombine.high %v5955_v51, %v5959_v19  ;;  %v12286_v26 = vcombine.low %v5955_v51, %v5959_v19  ;;  %13662 = vst [vmem:[#allocation112_spill] sm:$0xff] %v12288_v44  ;;  %13663 = vst [vmem:[#allocation110_spill] sm:$0xff] %v12290_v27  ;;  %v5967_v0 = vld [vmem:[#allocation8 + $0x360] sm:$0xff]  ;;  %v5964_v46 = vld [vmem:[#allocation8 + $0x348] sm:$0xff] }
 0x6e3   :  { %v5971_v19 = vld [vmem:[#allocation8 + $0x380] sm:$0xff]  ;;  %v12300_v40 = vcombine.low %v5964_v46, %v5968_v32  ;;  %v12302_v3 = vcombine.high %v5964_v46, %v5968_v32  ;;  %v12315_v32 = vcombine.low %v5972_v53, %v5976_v52 }
 0x6e4   :  { %13660 = vst [vmem:[#allocation109_spill] sm:$0xff] %v12284_v8  ;;  %13661 = vst [vmem:[#allocation111_spill] sm:$0xff] %v12286_v26  ;;  %v5975_v51 = vld [vmem:[#allocation8 + $0x3a0] sm:$0xff] }
 0x6e5   :  { %6650 = vmatpush1.bf16.msra.mxu0 %v12274_v16  ;;  %6691 = vmatpush1.bf16.msra.mxu1 %v12276_v45  ;;  %v12295_v16 = vcombine.low %v5963_v29, %v5967_v0  ;;  %v12297_v45 = vcombine.high %v5963_v29, %v5967_v0  ;;  %13666 = vst [vmem:[#allocation116_spill] sm:$0xff] %v12300_v40  ;;  %13667 = vst [vmem:[#allocation114_spill] sm:$0xff] %v12302_v3  ;;  %v5983_v0 = vld [vmem:[#allocation8 + $0x3e0] sm:$0xff]  ;;  %v5980_v29 = vld [vmem:[#allocation8 + $0x3c8] sm:$0xff] }
 0x6e6   :  { %6651 = vmatprep.subr.bf16.mxu0 %v12284_v8  ;;  %6692 = vmatprep.subr.bf16.mxu1 %v12290_v27  ;;  %v12304_v8 = vcombine.high %v5971_v19, %v5975_v51  ;;  %v5979_v27 = vld [vmem:[#allocation8 + $0x3c0] sm:$0xff]  ;;  %13671 = vst [vmem:[#allocation119_spill] sm:$0xff] %v12315_v32 }
 0x6e7   :  { %13664 = vst [vmem:[#allocation113_spill] sm:$0xff] %v12295_v16  ;;  %13665 = vst [vmem:[#allocation115_spill] sm:$0xff] %v12297_v45  ;;  %v12317_v46 = vcombine.high %v5979_v27, %v5983_v0 }
 0x6e8   :  { %13668 = vst [vmem:[#allocation118_spill] sm:$0xff] %v12304_v8 }
 0x6e9   :  { %6652 = vmatpush1.bf16.msra.mxu0 %v12286_v26  ;;  %6693 = vmatpush1.bf16.msra.mxu1 %v12288_v44  ;;  %v12307_v26 = vcombine.high %v5972_v53, %v5976_v52  ;;  %v12311_v44 = vcombine.low %v5971_v19, %v5975_v51  ;;  %13672 = vst [vmem:[#allocation121_spill] sm:$0xff] %v12317_v46  ;;  %v13676_v52 = vld [vmem:[#allocation56_spill] sm:$0xff] }
 0x6ea   :  { %6653 = vmatprep.subr.bf16.mxu0 %v12297_v45  ;;  %6694 = vmatprep.subr.bf16.mxu1 %v12302_v3  ;;  %v12320_v45 = vcombine.high %v5980_v29, %v5984_v57  ;;  %v12323_v3 = vcombine.low %v5979_v27, %v5983_v0  ;;  %v12327_v19 = vcombine.low %v5980_v29, %v5984_v57  ;;  %v13677_v27 = vld [vmem:[#allocation57_spill] sm:$0xff]  ;;  %v13678_v0 = vld [vmem:[#allocation58_spill] sm:$0xff]  ;;  %v13679_v29 = vld [vmem:[#allocation59_spill] sm:$0xff] }
 0x6eb   :  { %13669 = vst [vmem:[#allocation120_spill] sm:$0xff] %v12307_v26  ;;  %13670 = vst [vmem:[#allocation117_spill] sm:$0xff] %v12311_v44  ;;  %v702_v53 = vadd.f32 %v13676_v52, %v13578_v23  ;;  %v775_v51 = vadd.f32 %v13677_v27, %v13580_v2  ;;  %v704_v57 = vadd.f32 %v13678_v0, %v13582_v48 }
 0x6ec   :  { %13673 = vst [vmem:[#allocation122_spill] sm:$0xff] %v12320_v45  ;;  %13674 = vst [vmem:[#allocation123_spill] sm:$0xff] %v12323_v3 }
 0x6ed   :  { %6654 = vmatpush1.bf16.msra.mxu0 %v12295_v16  ;;  %6695 = vmatpush1.bf16.msra.mxu1 %v12300_v40  ;;  %13675 = vst [vmem:[#allocation124_spill] sm:$0xff] %v12327_v19 }
 0x6ee   :  { %6655 = vmatprep.subr.bf16.mxu0 %v12304_v8  ;;  %6696 = vmatprep.subr.bf16.mxu1 %v12307_v26 }
 0x6f1   :  { %6656 = vmatpush1.bf16.msra.mxu0 %v12311_v44  ;;  %6697 = vmatpush1.bf16.msra.mxu1 %v12315_v32 }
 0x6f2   :  { %6657 = vmatprep.subr.bf16.mxu0 %v12317_v46  ;;  %6698 = vmatprep.subr.bf16.mxu1 %v12320_v45  ;;  %v777_v45 = vadd.f32 %v13679_v29, %v10721_v37 }
 0x6f5   :  { %6658 = vmatpush1.bf16.msra.mxu0 %v12323_v3  ;;  %6699 = vmatpush1.bf16.msra.mxu1 %v12327_v19 }
 0x6f6   :  { %6709 = vmatprep.subr.bf16.mxu0 %v11919_v14  ;;  %6750 = vmatprep.subr.bf16.mxu1 %v11925_v7 }
 0x74b   :  { %v5666_v46 = vpop.f32.mrb[52].mxu0  ;;  %v5707_v3 = vpop.f32.mrb[52].mxu1 }
 0x74c   :  { %v5830_v32 = vadd.f32 %v5666_v46, %v702_v53  ;;  %v5832_v19 = vadd.f32 %v5707_v3, %v775_v51  ;;  %v5668_v44 = vpop.f32.mrb[53].mxu0  ;;  %v5709_v14 = vpop.f32.mrb[53].mxu1 }
 0x74d   :  { %v5831_v26 = vadd.f32 %v5668_v44, %v704_v57  ;;  %v5833_v7 = vadd.f32 %v5709_v14, %v777_v45  ;;  %v5670_v8 = vpop.f32.mrb[54].mxu0  ;;  %v5711_v40 = vpop.f32.mrb[54].mxu1 }
 0x74e   :  { %v9598_v52 = vmul.f32 -1.442695, %v5830_v32  ;;  %v5671_v23 = vpop.f32.mrb[55].mxu0  ;;  %v5712_v16 = vpop.f32.mrb[55].mxu1 }
 0x74f   :  { %v9599_v27 = vmul.f32 -1.442695, %v5831_v26 }
 0x750   :  { %10166 = vpow2.f32 %v9598_v52 }
 0x751   :  { %10168 = vpow2.f32 %v9599_v27  ;;  %v9600_v27 = vmul.f32 -1.442695, %v5833_v7 }
 0x752   :  { %10170 = vtanh.f32 %v5832_v19 }
 0x75a   :  { %v10167_v0 = vpop.eup %10166 }
 0x75b   :  { %v10169_v48 = vpop.eup %10168  ;;  %v5837_v2 = vadd.f32 1.0, %v10167_v0 }
 0x75c   :  { %v5843_v29 = vadd.f32 1.0, %v10169_v48  ;;  %v10171_v3 = vpop.eup %10170 }
 0x75d   :  { %10172 = vrcp.f32 %v5837_v2 }
 0x75e   :  { %10174 = vrcp.f32 %v5843_v29 }
 0x767   :  { %v10173_v46 = vpop.eup %10172 }
 0x768   :  { %v10175_v53 = vpop.eup %10174  ;;  %v5854_v44 = vmul.f32 %v10173_v46, %v10171_v3 }
 0x769   :  { %v5853_v8 = vmul.f32 %v10175_v53, %v11938_v36 }
 0x76b   :  { %v12343_v45 = vadd.f32 %v5854_v44, %v5853_v8 }
 0x78b   :  { %v5748_v23 = vpop.f32.mrb[56].mxu0  ;;  %v5789_v16 = vpop.f32.mrb[56].mxu1 }
 0x78c   :  { %v5796_v26 = vadd.f32 %v5748_v23, %v11189_v9  ;;  %v5750_v40 = vpop.f32.mrb[57].mxu0  ;;  %v5791_v32 = vpop.f32.mrb[57].mxu1  ;;  %v5798_v29 = vadd.f32 %v5789_v16, %v11204_v39 }
 0x78d   :  { %v5797_v51 = vadd.f32 %v5750_v40, %v11193_v30  ;;  %v5752_v19 = vpop.f32.mrb[58].mxu0  ;;  %v5793_v48 = vpop.f32.mrb[58].mxu1  ;;  %v5799_v36 = vadd.f32 %v5791_v32, %v11199_v5 }
 0x78e   :  { %v9595_v2 = vmul.f32 -1.442695, %v5796_v26  ;;  %v5753_v57 = vpop.f32.mrb[59].mxu0  ;;  %v5794_v14 = vpop.f32.mrb[59].mxu1 }
 0x78f   :  { %v9596_v52 = vmul.f32 -1.442695, %v5797_v51  ;;  %v9597_v0 = vmul.f32 -1.442695, %v5799_v36 }
 0x790   :  { %10176 = vpow2.f32 %v9595_v2 }
 0x791   :  { %10178 = vpow2.f32 %v9596_v52 }
 0x792   :  { %10180 = vpow2.f32 %v9600_v27 }
 0x793   :  { %10182 = vpow2.f32 %v9597_v0 }
 0x794   :  { %10184 = vtanh.f32 %v5798_v29 }
 0x79a   :  { %v10177_v3 = vpop.eup %10176 }
 0x79b   :  { %v10179_v46 = vpop.eup %10178  ;;  %v5803_v53 = vadd.f32 1.0, %v10177_v3  ;;  %v13713_v3 = vld [vmem:[#allocation45_spill] sm:$0xff] }
 0x79c   :  { %v5809_v44 = vadd.f32 1.0, %v10179_v46  ;;  %v10181_v8 = vpop.eup %10180  ;;  %v13714_v46 = vld [vmem:[#allocation68_spill] sm:$0xff] }
 0x79d   :  { %10186 = vrcp.f32 %v5803_v53  ;;  %v10183_v23 = vpop.eup %10182  ;;  %v5850_v51 = vadd.f32 1.0, %v10181_v8  ;;  %v13715_v53 = vld [vmem:[#allocation69_spill] sm:$0xff]  ;;  %v13717_v8 = vld [vmem:[#allocation71_spill] sm:$0xff] }
 0x79e   :  { %10188 = vrcp.f32 %v5809_v44  ;;  %v10185_v26 = vpop.eup %10184  ;;  %v5816_v7 = vadd.f32 1.0, %v10183_v23  ;;  %v13716_v44 = vld [vmem:[#allocation70_spill] sm:$0xff]  ;;  %v13718_v23 = vld [vmem:[#allocation72_spill] sm:$0xff] }
 0x79f   :  { %10190 = vtanh.f32 %v12343_v45 }
 0x7a0   :  { %10192 = vrcp.f32 %v5850_v51  ;;  %v13724_v51 = vld [vmem:[#allocation80_spill] sm:$0xff] }
 0x7a1   :  { %10194 = vrcp.f32 %v5816_v7  ;;  %v13727_v7 = vld [vmem:[#allocation81_spill] sm:$0xff] }
 0x7a7   :  { %v10187_v40 = vpop.eup %10186 }
 0x7a8   :  { %v10189_v19 = vpop.eup %10188  ;;  %v5820_v32 = vmul.f32 %v10187_v40, %v10185_v26  ;;  %v13719_v26 = vld [vmem:[#allocation73_spill] sm:$0xff] }
 0x7a9   :  { %v5819_v48 = vmul.f32 %v10189_v19, %v11946_v63  ;;  %v10191_v2 = vpop.eup %10190  ;;  %v13682_v63 = vld [vmem:[#allocation50_spill] sm:$0xff]  ;;  %v13723_v40 = vld [vmem:[#allocation77_spill] sm:$0xff] }
 0x7aa   :  { %v10193_v57 = vpop.eup %10192  ;;  %v13725_v19 = vld [vmem:[#allocation78_spill] sm:$0xff] }
 0x7ab   :  { %v12351_v16 = vadd.f32 %v5820_v32, %v5819_v48  ;;  %v10195_v14 = vpop.eup %10194  ;;  %v5857_v36 = vmul.f32 %v10193_v57, %v10191_v2  ;;  %v13726_v32 = vld [vmem:[#allocation79_spill] sm:$0xff]  ;;  %v13728_v48 = vld [vmem:[#allocation82_spill] sm:$0xff]  ;;  %v13730_v57 = vld [vmem:[#allocation84_spill] sm:$0xff] }
 0x7ac   :  { %v13729_v2 = vld [vmem:[#allocation83_spill] sm:$0xff] }
 0x7ad   :  { %10196 = vtanh.f32 %v12351_v16  ;;  %v12354_v29 = vpack.c.bf16 %v5857_v36, %v5857_v36  ;;  %v13733_v36 = vld [vmem:[#allocation87_spill] sm:$0xff] }
 0x7b7   :  { %v10197_v52 = vpop.eup %10196 }
 0x7b8   :  { %v5823_v27 = vmul.f32 %v10197_v52, %v10195_v14  ;;  %v13731_v14 = vld [vmem:[#allocation85_spill] sm:$0xff]  ;;  %v13732_v52 = vld [vmem:[#allocation86_spill] sm:$0xff] }
 0x7ba   :  { %v5824_v0 = vpack.c.bf16 %v5823_v27, %v5823_v27  ;;  %v13734_v27 = vld [vmem:[#allocation88_spill] sm:$0xff] }
 0x7bc   :  { %5825 = vst [vmem:[%s12827_s7 + $0x10] sm:$0xf] %v5824_v0  ;;  %6659 = vmatprep.mubr.bf16.mxu0 %v5824_v0  ;;  %6700 = vmatprep.mubr.bf16.mxu1 %v5824_v0 }
 0x7bd   :  { %6660 = vmatmul.mubr.bf16.vlgmr.msra.gmra.mrb[60].mxu0 %v12354_v29  ;;  %6701 = vmatmul.mubr.bf16.vlgmr.msra.gmra.mrb[60].mxu1 %v12354_v29 }
 0x7be   :  { %6710 = vmatpush1.bf16.msra.mxu0 %v11921_v18  ;;  %6751 = vmatpush1.bf16.msra.mxu1 %v11923_v50  ;;  %v13680_v18 = vld [vmem:[#allocation48_spill] sm:$0xff]  ;;  %v13681_v50 = vld [vmem:[#allocation49_spill] sm:$0xff] }
 0x7bf   :  { %6741 = vmatprep.mubr.bf16.mxu0 %v5824_v0  ;;  %6782 = vmatprep.mubr.bf16.mxu1 %v5824_v0  ;;  %v13735_v0 = vld [vmem:[#allocation89_spill] sm:$0xff] }
 0x7c0   :  { %6711 = vmatprep.subr.bf16.mxu0 %v11954_v38  ;;  %6752 = vmatprep.subr.bf16.mxu1 %v11956_v17  ;;  %v13683_v38 = vld [vmem:[#allocation51_spill] sm:$0xff]  ;;  %v13684_v17 = vld [vmem:[#allocation16_spill] sm:$0xff] }
 0x7c2   :  { %6712 = vmatpush1.bf16.msra.mxu0 %v11962_v15  ;;  %6753 = vmatpush1.bf16.msra.mxu1 %v11964_v6  ;;  %v13685_v15 = vld [vmem:[#allocation15_spill] sm:$0xff]  ;;  %v13686_v6 = vld [vmem:[#allocation17_spill] sm:$0xff] }
 0x7c3   :  { %6713 = vmatprep.subr.bf16.mxu0 %v11966_v13  ;;  %6754 = vmatprep.subr.bf16.mxu1 %v11968_v24  ;;  %v13687_v13 = vld [vmem:[#allocation18_spill] sm:$0xff]  ;;  %v13688_v24 = vld [vmem:[#allocation19_spill] sm:$0xff] }
 0x7c6   :  { %6714 = vmatpush1.bf16.msra.mxu0 %v11974_v21  ;;  %6755 = vmatpush1.bf16.msra.mxu1 %v11976_v56  ;;  %v13689_v21 = vld [vmem:[#allocation20_spill] sm:$0xff]  ;;  %v13690_v56 = vld [vmem:[#allocation11_spill] sm:$0xff] }
 0x7c7   :  { %6715 = vmatprep.subr.bf16.mxu0 %v11980_v33  ;;  %6756 = vmatprep.subr.bf16.mxu1 %v11982_v41  ;;  %v13691_v33 = vld [vmem:[#allocation21_spill] sm:$0xff]  ;;  %v13692_v41 = vld [vmem:[#allocation22_spill] sm:$0xff] }
 0x7ca   :  { %6716 = vmatpush1.bf16.msra.mxu0 %v11986_v49  ;;  %6757 = vmatpush1.bf16.msra.mxu1 %v11988_v11  ;;  %v13693_v49 = vld [vmem:[#allocation23_spill] sm:$0xff]  ;;  %v13694_v11 = vld [vmem:[#allocation24_spill] sm:$0xff] }
 0x7cb   :  { %6717 = vmatprep.subr.bf16.mxu0 %v11992_v28  ;;  %6758 = vmatprep.subr.bf16.mxu1 %v11994_v31  ;;  %v13695_v28 = vld [vmem:[#allocation25_spill] sm:$0xff]  ;;  %v13696_v31 = vld [vmem:[#allocation26_spill] sm:$0xff] }
 0x7ce   :  { %6718 = vmatpush1.bf16.msra.mxu0 %v11998_v1  ;;  %6759 = vmatpush1.bf16.msra.mxu1 %v12000_v22  ;;  %v13697_v1 = vld [vmem:[#allocation27_spill] sm:$0xff]  ;;  %v13698_v22 = vld [vmem:[#allocation28_spill] sm:$0xff] }
 0x7cf   :  { %6719 = vmatprep.subr.bf16.mxu0 %v12004_v59  ;;  %6760 = vmatprep.subr.bf16.mxu1 %v12006_v62  ;;  %v13699_v59 = vld [vmem:[#allocation29_spill] sm:$0xff]  ;;  %v13700_v62 = vld [vmem:[#allocation30_spill] sm:$0xff] }
 0x7d2   :  { %6720 = vmatpush1.bf16.msra.mxu0 %v12010_v55  ;;  %6761 = vmatpush1.bf16.msra.mxu1 %v12012_v43  ;;  %v13701_v55 = vld [vmem:[#allocation31_spill] sm:$0xff]  ;;  %v13702_v43 = vld [vmem:[#allocation32_spill] sm:$0xff] }
 0x7d3   :  { %6721 = vmatprep.subr.bf16.mxu0 %v12016_v54  ;;  %6762 = vmatprep.subr.bf16.mxu1 %v12018_v10  ;;  %v13703_v54 = vld [vmem:[#allocation33_spill] sm:$0xff]  ;;  %v13704_v10 = vld [vmem:[#allocation34_spill] sm:$0xff] }
 0x7d6   :  { %6722 = vmatpush1.bf16.msra.mxu0 %v12022_v4  ;;  %6763 = vmatpush1.bf16.msra.mxu1 %v12024_v20  ;;  %v13705_v4 = vld [vmem:[#allocation35_spill] sm:$0xff]  ;;  %v13706_v20 = vld [vmem:[#allocation36_spill] sm:$0xff] }
 0x7d7   :  { %6723 = vmatprep.subr.bf16.mxu0 %v12028_v60  ;;  %6764 = vmatprep.subr.bf16.mxu1 %v12030_v61  ;;  %v13707_v60 = vld [vmem:[#allocation37_spill] sm:$0xff]  ;;  %v13708_v61 = vld [vmem:[#allocation38_spill] sm:$0xff] }
 0x7da   :  { %6724 = vmatpush1.bf16.msra.mxu0 %v12034_v34  ;;  %6765 = vmatpush1.bf16.msra.mxu1 %v12036_v42  ;;  %v13709_v34 = vld [vmem:[#allocation39_spill] sm:$0xff]  ;;  %v13710_v42 = vld [vmem:[#allocation40_spill] sm:$0xff] }
 0x7db   :  { %6725 = vmatprep.subr.bf16.mxu0 %v12040_v47  ;;  %6766 = vmatprep.subr.bf16.mxu1 %v13680_v18  ;;  %v13711_v47 = vld [vmem:[#allocation41_spill] sm:$0xff]  ;;  %v13737_v18 = vld [vmem:[#allocation91_spill] sm:$0xff] }
 0x7de   :  { %6726 = vmatpush1.bf16.msra.mxu0 %v13681_v50  ;;  %6767 = vmatpush1.bf16.msra.mxu1 %v13682_v63  ;;  %v13738_v50 = vld [vmem:[#allocation92_spill] sm:$0xff]  ;;  %v13739_v63 = vld [vmem:[#allocation93_spill] sm:$0xff] }
 0x7df   :  { %6727 = vmatprep.subr.bf16.mxu0 %v13683_v38  ;;  %6768 = vmatprep.subr.bf16.mxu1 %v13684_v17  ;;  %v13740_v38 = vld [vmem:[#allocation94_spill] sm:$0xff]  ;;  %v13741_v17 = vld [vmem:[#allocation95_spill] sm:$0xff] }
 0x7e2   :  { %6728 = vmatpush1.bf16.msra.mxu0 %v13685_v15  ;;  %6769 = vmatpush1.bf16.msra.mxu1 %v13686_v6  ;;  %v13742_v15 = vld [vmem:[#allocation96_spill] sm:$0xff]  ;;  %v13743_v6 = vld [vmem:[#allocation97_spill] sm:$0xff] }
 0x7e3   :  { %6729 = vmatprep.subr.bf16.mxu0 %v13687_v13  ;;  %6770 = vmatprep.subr.bf16.mxu1 %v13688_v24  ;;  %v13744_v13 = vld [vmem:[#allocation98_spill] sm:$0xff]  ;;  %v13745_v24 = vld [vmem:[#allocation99_spill] sm:$0xff] }
 0x7e6   :  { %6730 = vmatpush1.bf16.msra.mxu0 %v13689_v21  ;;  %6771 = vmatpush1.bf16.msra.mxu1 %v13690_v56  ;;  %v13746_v21 = vld [vmem:[#allocation100_spill] sm:$0xff]  ;;  %v13747_v56 = vld [vmem:[#allocation101_spill] sm:$0xff] }
 0x7e7   :  { %6731 = vmatprep.subr.bf16.mxu0 %v13691_v33  ;;  %6772 = vmatprep.subr.bf16.mxu1 %v13692_v41  ;;  %v13748_v33 = vld [vmem:[#allocation102_spill] sm:$0xff]  ;;  %v13749_v41 = vld [vmem:[#allocation103_spill] sm:$0xff] }
 0x7ea   :  { %6732 = vmatpush1.bf16.msra.mxu0 %v13693_v49  ;;  %6773 = vmatpush1.bf16.msra.mxu1 %v13694_v11  ;;  %v13750_v49 = vld [vmem:[#allocation104_spill] sm:$0xff]  ;;  %v13751_v11 = vld [vmem:[#allocation105_spill] sm:$0xff] }
 0x7eb   :  { %6733 = vmatprep.subr.bf16.mxu0 %v13695_v28  ;;  %6774 = vmatprep.subr.bf16.mxu1 %v13696_v31  ;;  %v13752_v28 = vld [vmem:[#allocation106_spill] sm:$0xff]  ;;  %v13753_v31 = vld [vmem:[#allocation107_spill] sm:$0xff] }
 0x7ee   :  { %6734 = vmatpush1.bf16.msra.mxu0 %v12094_v58  ;;  %6775 = vmatpush1.bf16.msra.mxu1 %v13697_v1  ;;  %v13712_v58 = vld [vmem:[#allocation44_spill] sm:$0xff] }
 0x7ef   :  { %6735 = vmatprep.subr.bf16.mxu0 %v13698_v22  ;;  %6776 = vmatprep.subr.bf16.mxu1 %v13699_v59  ;;  %v13754_v1 = vld [vmem:[#allocation108_spill] sm:$0xff]  ;;  %v13755_v22 = vld [vmem:[#allocation109_spill] sm:$0xff]  ;;  %v13756_v59 = vld [vmem:[#allocation110_spill] sm:$0xff] }
 0x7f2   :  { %6736 = vmatpush1.bf16.msra.mxu0 %v13700_v62  ;;  %6777 = vmatpush1.bf16.msra.mxu1 %v13701_v55  ;;  %v13757_v62 = vld [vmem:[#allocation111_spill] sm:$0xff]  ;;  %v13758_v55 = vld [vmem:[#allocation112_spill] sm:$0xff] }
 0x7f3   :  { %6737 = vmatprep.subr.bf16.mxu0 %v13702_v43  ;;  %6778 = vmatprep.subr.bf16.mxu1 %v13703_v54  ;;  %v13759_v43 = vld [vmem:[#allocation115_spill] sm:$0xff]  ;;  %v13760_v54 = vld [vmem:[#allocation114_spill] sm:$0xff] }
 0x7f6   :  { %6738 = vmatpush1.bf16.msra.mxu0 %v13704_v10  ;;  %6779 = vmatpush1.bf16.msra.mxu1 %v13705_v4  ;;  %v13761_v10 = vld [vmem:[#allocation113_spill] sm:$0xff]  ;;  %v13762_v4 = vld [vmem:[#allocation116_spill] sm:$0xff] }
 0x7f7   :  { %6739 = vmatprep.subr.bf16.mxu0 %v13706_v20  ;;  %6780 = vmatprep.subr.bf16.mxu1 %v13707_v60  ;;  %v13763_v20 = vld [vmem:[#allocation118_spill] sm:$0xff]  ;;  %v13764_v60 = vld [vmem:[#allocation120_spill] sm:$0xff] }
 0x7fa   :  { %6740 = vmatpush1.bf16.msra.mxu0 %v13708_v61  ;;  %6781 = vmatpush1.bf16.msra.mxu1 %v13709_v34  ;;  %v13765_v61 = vld [vmem:[#allocation117_spill] sm:$0xff]  ;;  %v13766_v34 = vld [vmem:[#allocation119_spill] sm:$0xff] }
 0x7fb   :  { %7622 = vmatprep.subr.bf16.mxu0 %v13710_v42  ;;  %7663 = vmatprep.subr.bf16.mxu1 %v13711_v47  ;;  %v13767_v42 = vld [vmem:[#allocation121_spill] sm:$0xff]  ;;  %v13768_v47 = vld [vmem:[#allocation122_spill] sm:$0xff] }
 0x7fd   :  { %6742 = vmatmul.mubr.bf16.vlgmr.msra.gmra.mrb[64].mxu0 %v12354_v29  ;;  %6783 = vmatmul.mubr.bf16.vlgmr.msra.gmra.mrb[64].mxu1 %v12354_v29  ;;  %v13736_v29 = vld [vmem:[#allocation90_spill] sm:$0xff] }
 0x7fe   :  { %7623 = vmatpush1.bf16.msra.mxu0 %v12140_v35  ;;  %7664 = vmatpush1.bf16.msra.mxu1 %v12144_v25  ;;  %v13720_v35 = vld [vmem:[#allocation74_spill] sm:$0xff]  ;;  %v13721_v25 = vld [vmem:[#allocation75_spill] sm:$0xff] }
 0x7ff   :  { %7624 = vmatprep.subr.bf16.mxu0 %v12148_v12  ;;  %7665 = vmatprep.subr.bf16.mxu1 %v13712_v58  ;;  %v13722_v12 = vld [vmem:[#allocation76_spill] sm:$0xff]  ;;  %v13769_v58 = vld [vmem:[#allocation123_spill] sm:$0xff] }
 0x802   :  { %7625 = vmatpush1.bf16.msra.mxu0 %v13713_v3  ;;  %7666 = vmatpush1.bf16.msra.mxu1 %v13714_v46  ;;  %v13770_v3 = vld [vmem:[#allocation124_spill] sm:$0xff]  ;;  %v6856_v46 = vld [vmem:[#allocation8 + $0x10] sm:$0xff] }
 0x803   :  { %7626 = vmatprep.subr.bf16.mxu0 %v13715_v53  ;;  %7667 = vmatprep.subr.bf16.mxu1 %v13716_v44  ;;  %v6860_v53 = vld [vmem:[#allocation8 + $0x30] sm:$0xff]  ;;  %v6857_v44 = vld [vmem:[#allocation8 + $0x18] sm:$0xff] }
 0x806   :  { %7627 = vmatpush1.bf16.msra.mxu0 %v13717_v8  ;;  %7668 = vmatpush1.bf16.msra.mxu1 %v13718_v23  ;;  %v12489_v8 = vcombine.high %v6856_v46, %v6860_v53  ;;  %v6861_v23 = vld [vmem:[#allocation8 + $0x38] sm:$0xff] }
 0x807   :  { %7628 = vmatprep.subr.bf16.mxu0 %v13719_v26  ;;  %7669 = vmatprep.subr.bf16.mxu1 %v13720_v35  ;;  %v12491_v26 = vcombine.low %v6856_v46, %v6860_v53  ;;  %v12493_v35 = vcombine.low %v6857_v44, %v6861_v23 }
 0x80a   :  { %7629 = vmatpush1.bf16.msra.mxu0 %v13721_v25  ;;  %7670 = vmatpush1.bf16.msra.mxu1 %v13722_v12  ;;  %v12495_v25 = vcombine.high %v6857_v44, %v6861_v23  ;;  %v13771_v12 = vld [vmem:[#allocation12_spill] sm:$0xff] }
 0x80b   :  { %7630 = vmatprep.subr.bf16.mxu0 %v13723_v40  ;;  %7671 = vmatprep.subr.bf16.mxu1 %v13724_v51  ;;  %v13772_v40 = vld [vmem:[#allocation60_spill] sm:$0xff] }
 0x80c   :  { %v708_v51 = vadd.f32 %v13772_v40, %v13771_v12 }
 0x80e   :  { %7631 = vmatpush1.bf16.msra.mxu0 %v13725_v19  ;;  %7672 = vmatpush1.bf16.msra.mxu1 %v13726_v32  ;;  %v13773_v19 = vld [vmem:[#allocation14_spill] sm:$0xff]  ;;  %v13774_v32 = vld [vmem:[#allocation61_spill] sm:$0xff] }
 0x80f   :  { %7632 = vmatprep.subr.bf16.mxu0 %v13727_v7  ;;  %7673 = vmatprep.subr.bf16.mxu1 %v13728_v48  ;;  %v781_v7 = vadd.f32 %v13774_v32, %v13773_v19  ;;  %v13775_v48 = vld [vmem:[#allocation13_spill] sm:$0xff] }
 0x812   :  { %7633 = vmatpush1.bf16.msra.mxu0 %v13729_v2  ;;  %7674 = vmatpush1.bf16.msra.mxu1 %v13730_v57  ;;  %v13776_v2 = vld [vmem:[#allocation62_spill] sm:$0xff] }
 0x813   :  { %7634 = vmatprep.subr.bf16.mxu0 %v13731_v14  ;;  %7675 = vmatprep.subr.bf16.mxu1 %v13732_v52  ;;  %v710_v57 = vadd.f32 %v13776_v2, %v13775_v48  ;;  %v13777_v14 = vld [vmem:[#allocation63_spill] sm:$0xff] }
 0x814   :  { %v783_v52 = vadd.f32 %v13777_v14, %v10721_v37 }
 0x816   :  { %7635 = vmatpush1.bf16.msra.mxu0 %v13733_v36  ;;  %7676 = vmatpush1.bf16.msra.mxu1 %v13734_v27 }
 0x817   :  { %7636 = vmatprep.subr.bf16.mxu0 %v13735_v0  ;;  %7677 = vmatprep.subr.bf16.mxu1 %v13736_v29 }
 0x81a   :  { %7637 = vmatpush1.bf16.msra.mxu0 %v13737_v18  ;;  %7678 = vmatpush1.bf16.msra.mxu1 %v13738_v50 }
 0x81b   :  { %7638 = vmatprep.subr.bf16.mxu0 %v13739_v63  ;;  %7679 = vmatprep.subr.bf16.mxu1 %v13740_v38 }
 0x81e   :  { %7639 = vmatpush1.bf16.msra.mxu0 %v13741_v17  ;;  %7680 = vmatpush1.bf16.msra.mxu1 %v13742_v15 }
 0x81f   :  { %7640 = vmatprep.subr.bf16.mxu0 %v13743_v6  ;;  %7681 = vmatprep.subr.bf16.mxu1 %v13744_v13 }
 0x822   :  { %7641 = vmatpush1.bf16.msra.mxu0 %v13745_v24  ;;  %7682 = vmatpush1.bf16.msra.mxu1 %v13746_v21 }
 0x823   :  { %7642 = vmatprep.subr.bf16.mxu0 %v13747_v56  ;;  %7683 = vmatprep.subr.bf16.mxu1 %v13748_v33 }
 0x826   :  { %7643 = vmatpush1.bf16.msra.mxu0 %v13749_v41  ;;  %7684 = vmatpush1.bf16.msra.mxu1 %v13750_v49 }
 0x827   :  { %7644 = vmatprep.subr.bf16.mxu0 %v13751_v11  ;;  %7685 = vmatprep.subr.bf16.mxu1 %v13752_v28 }
 0x82a   :  { %7645 = vmatpush1.bf16.msra.mxu0 %v13753_v31  ;;  %7686 = vmatpush1.bf16.msra.mxu1 %v13754_v1 }
 0x82b   :  { %7646 = vmatprep.subr.bf16.mxu0 %v13755_v22  ;;  %7687 = vmatprep.subr.bf16.mxu1 %v13756_v59 }
 0x82e   :  { %7647 = vmatpush1.bf16.msra.mxu0 %v13757_v62  ;;  %7688 = vmatpush1.bf16.msra.mxu1 %v13758_v55 }
 0x82f   :  { %7648 = vmatprep.subr.bf16.mxu0 %v13759_v43  ;;  %7689 = vmatprep.subr.bf16.mxu1 %v13760_v54 }
 0x832   :  { %7649 = vmatpush1.bf16.msra.mxu0 %v13761_v10  ;;  %7690 = vmatpush1.bf16.msra.mxu1 %v13762_v4 }
 0x833   :  { %7650 = vmatprep.subr.bf16.mxu0 %v13763_v20  ;;  %7691 = vmatprep.subr.bf16.mxu1 %v13764_v60 }
 0x836   :  { %7651 = vmatpush1.bf16.msra.mxu0 %v13765_v61  ;;  %7692 = vmatpush1.bf16.msra.mxu1 %v13766_v34 }
 0x837   :  { %7652 = vmatprep.subr.bf16.mxu0 %v13767_v42  ;;  %7693 = vmatprep.subr.bf16.mxu1 %v13768_v47 }
 0x83a   :  { %7653 = vmatpush1.bf16.msra.mxu0 %v13769_v58  ;;  %7694 = vmatpush1.bf16.msra.mxu1 %v13770_v3 }
 0x83b   :  { %7704 = vmatprep.subr.bf16.mxu0 %v12489_v8  ;;  %7745 = vmatprep.subr.bf16.mxu1 %v12495_v25 }
 0x890   :  { %v6661_v36 = vpop.f32.mrb[60].mxu0  ;;  %v6702_v27 = vpop.f32.mrb[60].mxu1 }
 0x891   :  { %v6825_v0 = vadd.f32 %v6661_v36, %v708_v51  ;;  %v6827_v29 = vadd.f32 %v6702_v27, %v781_v7  ;;  %v6663_v18 = vpop.f32.mrb[61].mxu0  ;;  %v6704_v50 = vpop.f32.mrb[61].mxu1 }
 0x892   :  { %v6826_v63 = vadd.f32 %v6663_v18, %v710_v57  ;;  %v6828_v38 = vadd.f32 %v6704_v50, %v783_v52  ;;  %v6665_v17 = vpop.f32.mrb[62].mxu0  ;;  %v6706_v15 = vpop.f32.mrb[62].mxu1 }
 0x893   :  { %v9732_v6 = vmul.f32 -1.442695, %v6825_v0  ;;  %v6666_v13 = vpop.f32.mrb[63].mxu0  ;;  %v6707_v24 = vpop.f32.mrb[63].mxu1  ;;  %v6864_v15 = vld [vmem:[#allocation8 + $0x50] sm:$0xff] }
 0x894   :  { %v9733_v21 = vmul.f32 -1.442695, %v6826_v63  ;;  %v9734_v58 = vmul.f32 -1.442695, %v6828_v38  ;;  %v6865_v13 = vld [vmem:[#allocation8 + $0x58] sm:$0xff] }
 0x895   :  { %10198 = vpow2.f32 %v9732_v6  ;;  %v6868_v6 = vld [vmem:[#allocation8 + $0x70] sm:$0xff]  ;;  %v6869_v24 = vld [vmem:[#allocation8 + $0x78] sm:$0xff] }
 0x896   :  { %10200 = vpow2.f32 %v9733_v21 }
 0x897   :  { %10202 = vtanh.f32 %v6827_v29 }
 0x89f   :  { %v10199_v56 = vpop.eup %10198 }
 0x8a0   :  { %v10201_v33 = vpop.eup %10200  ;;  %v6832_v41 = vadd.f32 1.0, %v10199_v56  ;;  %v6872_v56 = vld [vmem:[#allocation8 + $0x90] sm:$0xff] }
 0x8a1   :  { %v6838_v49 = vadd.f32 1.0, %v10201_v33  ;;  %v10203_v11 = vpop.eup %10202  ;;  %v12524_v33 = vcombine.high %v6864_v15, %v6868_v6 }
 0x8a2   :  { %10204 = vrcp.f32 %v6832_v41  ;;  %v12526_v41 = vcombine.high %v6865_v13, %v6869_v24 }
 0x8a3   :  { %10206 = vrcp.f32 %v6838_v49  ;;  %v6876_v49 = vld [vmem:[#allocation8 + $0xb0] sm:$0xff] }
 0x8ac   :  { %v10205_v28 = vpop.eup %10204 }
 0x8ad   :  { %v10207_v31 = vpop.eup %10206  ;;  %v6849_v1 = vmul.f32 %v10205_v28, %v10203_v11  ;;  %v6873_v11 = vld [vmem:[#allocation8 + $0x98] sm:$0xff] }
 0x8ae   :  { %v6848_v22 = vmul.f32 %v10207_v31, %v12343_v45  ;;  %v6877_v28 = vld [vmem:[#allocation8 + $0xb8] sm:$0xff]  ;;  %v12532_v31 = vcombine.low %v6864_v15, %v6868_v6 }
 0x8af   :  { %v6913_v15 = vld [vmem:[#allocation8 + $0x1d8] sm:$0xff] }
 0x8b0   :  { %v12508_v59 = vadd.f32 %v6849_v1, %v6848_v22  ;;  %v12534_v1 = vcombine.low %v6865_v13, %v6869_v24  ;;  %v12536_v22 = vcombine.high %v6872_v56, %v6876_v49  ;;  %v6917_v6 = vld [vmem:[#allocation8 + $0x1f8] sm:$0xff] }
 0x8d0   :  { %v6743_v62 = vpop.f32.mrb[64].mxu0  ;;  %v6784_v55 = vpop.f32.mrb[64].mxu1 }
 0x8d1   :  { %v6791_v43 = vadd.f32 %v6743_v62, %v11189_v9  ;;  %v6745_v54 = vpop.f32.mrb[65].mxu0  ;;  %v6786_v10 = vpop.f32.mrb[65].mxu1  ;;  %v6793_v46 = vadd.f32 %v6784_v55, %v11204_v39  ;;  %v12538_v62 = vcombine.high %v6873_v11, %v6877_v28  ;;  %v6880_v55 = vld [vmem:[#allocation8 + $0xd0] sm:$0xff] }
 0x8d2   :  { %v6792_v4 = vadd.f32 %v6745_v54, %v11193_v30  ;;  %v6747_v20 = vpop.f32.mrb[66].mxu0  ;;  %v6788_v60 = vpop.f32.mrb[66].mxu1  ;;  %v6794_v45 = vadd.f32 %v6786_v10, %v11199_v5  ;;  %v6881_v54 = vld [vmem:[#allocation8 + $0xd8] sm:$0xff] }
 0x8d3   :  { %v9729_v61 = vmul.f32 -1.442695, %v6791_v43  ;;  %v6748_v34 = vpop.f32.mrb[67].mxu0  ;;  %v6789_v42 = vpop.f32.mrb[67].mxu1  ;;  %v6884_v43 = vld [vmem:[#allocation8 + $0xf0] sm:$0xff]  ;;  %v6885_v10 = vld [vmem:[#allocation8 + $0xf8] sm:$0xff]  ;;  %v12546_v20 = vcombine.low %v6873_v11, %v6877_v28 }
 0x8d4   :  { %v9730_v47 = vmul.f32 -1.442695, %v6792_v4  ;;  %v9731_v3 = vmul.f32 -1.442695, %v6794_v45  ;;  %v12544_v4 = vcombine.low %v6872_v56, %v6876_v49  ;;  %v12550_v60 = vcombine.high %v6880_v55, %v6884_v43  ;;  %v6888_v34 = vld [vmem:[#allocation8 + $0x110] sm:$0xff]  ;;  %v6893_v45 = vld [vmem:[#allocation8 + $0x138] sm:$0xff] }
 0x8d5   :  { %10208 = vpow2.f32 %v9729_v61  ;;  %v12552_v61 = vcombine.high %v6881_v54, %v6885_v10  ;;  %v6892_v42 = vld [vmem:[#allocation8 + $0x130] sm:$0xff]  ;;  %v12600_v56 = vcombine.high %v6913_v15, %v6917_v6  ;;  %v6921_v28 = vld [vmem:[#allocation8 + $0x218] sm:$0xff] }
 0x8d6   :  { %10210 = vpow2.f32 %v9730_v47  ;;  %v6889_v47 = vld [vmem:[#allocation8 + $0x118] sm:$0xff]  ;;  %v6920_v49 = vld [vmem:[#allocation8 + $0x210] sm:$0xff] }
 0x8d7   :  { %10212 = vpow2.f32 %v9734_v58  ;;  %v12556_v58 = vcombine.low %v6880_v55, %v6884_v43  ;;  %v6924_v11 = vld [vmem:[#allocation8 + $0x230] sm:$0xff]  ;;  %v6925_v55 = vld [vmem:[#allocation8 + $0x238] sm:$0xff] }
 0x8d8   :  { %10214 = vpow2.f32 %v9731_v3  ;;  %v12558_v3 = vcombine.low %v6881_v54, %v6885_v10  ;;  %v12606_v54 = vcombine.low %v6913_v15, %v6917_v6  ;;  %v12610_v10 = vcombine.high %v6920_v49, %v6924_v11 }
 0x8d9   :  { %10216 = vtanh.f32 %v6793_v46  ;;  %v12562_v46 = vcombine.high %v6888_v34, %v6892_v42 }
 0x8da   :  { %13779 = vst [vmem:[#allocation43_spill] sm:$0xff] %v12606_v54  ;;  %13780 = vst [vmem:[#allocation46_spill] sm:$0xff] %v12610_v10 }
 0x8df   :  { %v10209_v53 = vpop.eup %10208 }
 0x8e0   :  { %v10211_v44 = vpop.eup %10210  ;;  %v6798_v23 = vadd.f32 1.0, %v10209_v53  ;;  %v12564_v53 = vcombine.high %v6889_v47, %v6893_v45 }
 0x8e1   :  { %v6804_v40 = vadd.f32 1.0, %v10211_v44  ;;  %v10213_v51 = vpop.eup %10212  ;;  %v6896_v44 = vld [vmem:[#allocation8 + $0x150] sm:$0xff] }
 0x8e2   :  { %10218 = vrcp.f32 %v6798_v23  ;;  %v10215_v32 = vpop.eup %10214  ;;  %v6845_v57 = vadd.f32 1.0, %v10213_v51  ;;  %v6900_v23 = vld [vmem:[#allocation8 + $0x170] sm:$0xff]  ;;  %v6901_v51 = vld [vmem:[#allocation8 + $0x178] sm:$0xff] }
 0x8e3   :  { %10220 = vrcp.f32 %v6804_v40  ;;  %v10217_v7 = vpop.eup %10216  ;;  %v6811_v36 = vadd.f32 1.0, %v10215_v32  ;;  %v6897_v40 = vld [vmem:[#allocation8 + $0x158] sm:$0xff]  ;;  %v12568_v32 = vcombine.low %v6888_v34, %v6892_v42  ;;  %v12612_v34 = vcombine.high %v6921_v28, %v6925_v55  ;;  %v6928_v42 = vld [vmem:[#allocation8 + $0x250] sm:$0xff] }
 0x8e4   :  { %10222 = vtanh.f32 %v12508_v59 }
 0x8e5   :  { %10224 = vrcp.f32 %v6845_v57  ;;  %v12576_v57 = vcombine.high %v6897_v40, %v6901_v51  ;;  %13781 = vst [vmem:[#allocation47_spill] sm:$0xff] %v12612_v34 }
 0x8e6   :  { %10226 = vrcp.f32 %v6811_v36  ;;  %v6905_v36 = vld [vmem:[#allocation8 + $0x198] sm:$0xff] }
 0x8ec   :  { %v10219_v2 = vpop.eup %10218 }
 0x8ed   :  { %v10221_v14 = vpop.eup %10220  ;;  %v6815_v52 = vmul.f32 %v10219_v2, %v10217_v7  ;;  %v12570_v7 = vcombine.low %v6889_v47, %v6893_v45  ;;  %v12574_v2 = vcombine.high %v6896_v44, %v6900_v23  ;;  %v6932_v47 = vld [vmem:[#allocation8 + $0x270] sm:$0xff]  ;;  %v6929_v45 = vld [vmem:[#allocation8 + $0x258] sm:$0xff] }
 0x8ee   :  { %v6814_v27 = vmul.f32 %v10221_v14, %v12351_v16  ;;  %v10223_v29 = vpop.eup %10222  ;;  %v6904_v14 = vld [vmem:[#allocation8 + $0x190] sm:$0xff] }
 0x8ef   :  { %v10225_v18 = vpop.eup %10224 }
 0x8f0   :  { %v12516_v0 = vadd.f32 %v6815_v52, %v6814_v27  ;;  %v10227_v50 = vpop.eup %10226  ;;  %v6852_v38 = vmul.f32 %v10225_v18, %v10223_v29  ;;  %v6908_v52 = vld [vmem:[#allocation8 + $0x1b0] sm:$0xff]  ;;  %v6909_v27 = vld [vmem:[#allocation8 + $0x1b8] sm:$0xff]  ;;  %v12580_v29 = vcombine.low %v6896_v44, %v6900_v23  ;;  %v12582_v18 = vcombine.low %v6897_v40, %v6901_v51 }
 0x8f1   :  { %v12592_v13 = vcombine.low %v6904_v14, %v6908_v52  ;;  %v12594_v24 = vcombine.low %v6905_v36, %v6909_v27  ;;  %v6933_v44 = vld [vmem:[#allocation8 + $0x278] sm:$0xff]  ;;  %v12616_v23 = vcombine.low %v6920_v49, %v6924_v11  ;;  %v12618_v40 = vcombine.low %v6921_v28, %v6925_v55  ;;  %v6944_v11 = vld [vmem:[#allocation8 + $0x2d0] sm:$0xff] }
 0x8f2   :  { %10228 = vtanh.f32 %v12516_v0  ;;  %v12519_v16 = vpack.c.bf16 %v6852_v38, %v6852_v38  ;;  %v6912_v38 = vld [vmem:[#allocation8 + $0x1d0] sm:$0xff]  ;;  %v12622_v51 = vcombine.high %v6928_v42, %v6932_v47  ;;  %v12630_v15 = vcombine.low %v6929_v45, %v6933_v44  ;;  %v6945_v55 = vld [vmem:[#allocation8 + $0x2d8] sm:$0xff] }
 0x8f3   :  { %13782 = vst [vmem:[#allocation52_spill] sm:$0xff] %v12616_v23  ;;  %13783 = vst [vmem:[#allocation53_spill] sm:$0xff] %v12618_v40  ;;  %v6948_v28 = vld [vmem:[#allocation8 + $0x2f0] sm:$0xff] }
 0x8f4   :  { %13784 = vst [vmem:[#allocation54_spill] sm:$0xff] %v12622_v51  ;;  %13787 = vst [vmem:[#allocation57_spill] sm:$0xff] %v12630_v15 }
 0x8fc   :  { %v10229_v63 = vpop.eup %10228 }
 0x8fd   :  { %v6818_v17 = vmul.f32 %v10229_v63, %v10227_v50  ;;  %v12586_v50 = vcombine.high %v6904_v14, %v6908_v52  ;;  %v12588_v63 = vcombine.high %v6905_v36, %v6909_v27  ;;  %v12624_v14 = vcombine.high %v6929_v45, %v6933_v44  ;;  %v6936_v52 = vld [vmem:[#allocation8 + $0x290] sm:$0xff]  ;;  %v6937_v27 = vld [vmem:[#allocation8 + $0x298] sm:$0xff] }
 0x8fe   :  { %v6940_v36 = vld [vmem:[#allocation8 + $0x2b0] sm:$0xff]  ;;  %v12646_v45 = vcombine.high %v6944_v11, %v6948_v28 }
 0x8ff   :  { %v6819_v21 = vpack.c.bf16 %v6818_v17, %v6818_v17  ;;  %v6916_v17 = vld [vmem:[#allocation8 + $0x1f0] sm:$0xff]  ;;  %13785 = vst [vmem:[#allocation55_spill] sm:$0xff] %v12624_v14  ;;  %v12634_v6 = vcombine.high %v6936_v52, %v6940_v36 }
 0x900   :  { %v12604_v43 = vcombine.low %v6912_v38, %v6916_v17  ;;  %13792 = vst [vmem:[#allocation50_spill] sm:$0xff] %v12646_v45 }
 0x901   :  { %6820 = vst [vmem:[%s12827_s7 + $0x14] sm:$0xf] %v6819_v21  ;;  %7654 = vmatprep.mubr.bf16.mxu0 %v6819_v21  ;;  %7695 = vmatprep.mubr.bf16.mxu1 %v6819_v21  ;;  %13788 = vst [vmem:[#allocation58_spill] sm:$0xff] %v12634_v6 }
 0x902   :  { %7655 = vmatmul.mubr.bf16.vlgmr.msra.gmra.mrb[68].mxu0 %v12519_v16  ;;  %7696 = vmatmul.mubr.bf16.vlgmr.msra.gmra.mrb[68].mxu1 %v12519_v16  ;;  %13778 = vst [vmem:[#allocation42_spill] sm:$0xff] %v12604_v43 }
 0x903   :  { %7705 = vmatpush1.bf16.msra.mxu0 %v12491_v26  ;;  %7746 = vmatpush1.bf16.msra.mxu1 %v12493_v35 }
 0x904   :  { %7736 = vmatprep.mubr.bf16.mxu0 %v6819_v21  ;;  %7777 = vmatprep.mubr.bf16.mxu1 %v6819_v21  ;;  %v12598_v21 = vcombine.high %v6912_v38, %v6916_v17  ;;  %v6941_v38 = vld [vmem:[#allocation8 + $0x2b8] sm:$0xff]  ;;  %v12628_v17 = vcombine.low %v6928_v42, %v6932_v47  ;;  %v12640_v42 = vcombine.low %v6936_v52, %v6940_v36 }
 0x905   :  { %7706 = vmatprep.subr.bf16.mxu0 %v12524_v33  ;;  %7747 = vmatprep.subr.bf16.mxu1 %v12526_v41  ;;  %v12636_v49 = vcombine.high %v6937_v27, %v6941_v38  ;;  %v12642_v47 = vcombine.low %v6937_v27, %v6941_v38  ;;  %v12652_v52 = vcombine.low %v6944_v11, %v6948_v28 }
 0x906   :  { %13786 = vst [vmem:[#allocation56_spill] sm:$0xff] %v12628_v17  ;;  %13790 = vst [vmem:[#allocation48_spill] sm:$0xff] %v12640_v42 }
 0x907   :  { %7707 = vmatpush1.bf16.msra.mxu0 %v12532_v31  ;;  %7748 = vmatpush1.bf16.msra.mxu1 %v12534_v1  ;;  %13789 = vst [vmem:[#allocation59_spill] sm:$0xff] %v12636_v49  ;;  %13791 = vst [vmem:[#allocation49_spill] sm:$0xff] %v12642_v47 }
 0x908   :  { %7708 = vmatprep.subr.bf16.mxu0 %v12536_v22  ;;  %7749 = vmatprep.subr.bf16.mxu1 %v12538_v62  ;;  %13794 = vst [vmem:[#allocation16_spill] sm:$0xff] %v12652_v52 }
 0x90b   :  { %7709 = vmatpush1.bf16.msra.mxu0 %v12544_v4  ;;  %7750 = vmatpush1.bf16.msra.mxu1 %v12546_v20 }
 0x90c   :  { %7710 = vmatprep.subr.bf16.mxu0 %v12550_v60  ;;  %7751 = vmatprep.subr.bf16.mxu1 %v12552_v61 }
 0x90f   :  { %7711 = vmatpush1.bf16.msra.mxu0 %v12556_v58  ;;  %7752 = vmatpush1.bf16.msra.mxu1 %v12558_v3 }
 0x910   :  { %7712 = vmatprep.subr.bf16.mxu0 %v12562_v46  ;;  %7753 = vmatprep.subr.bf16.mxu1 %v12564_v53 }
 0x913   :  { %7713 = vmatpush1.bf16.msra.mxu0 %v12568_v32  ;;  %7754 = vmatpush1.bf16.msra.mxu1 %v12570_v7 }
 0x914   :  { %7714 = vmatprep.subr.bf16.mxu0 %v12574_v2  ;;  %7755 = vmatprep.subr.bf16.mxu1 %v12576_v57 }
 0x917   :  { %7715 = vmatpush1.bf16.msra.mxu0 %v12580_v29  ;;  %7756 = vmatpush1.bf16.msra.mxu1 %v12582_v18 }
 0x918   :  { %7716 = vmatprep.subr.bf16.mxu0 %v12586_v50  ;;  %7757 = vmatprep.subr.bf16.mxu1 %v12588_v63 }
 0x91b   :  { %7717 = vmatpush1.bf16.msra.mxu0 %v12592_v13  ;;  %7758 = vmatpush1.bf16.msra.mxu1 %v12594_v24 }
 0x91c   :  { %7718 = vmatprep.subr.bf16.mxu0 %v12598_v21  ;;  %7759 = vmatprep.subr.bf16.mxu1 %v12600_v56 }
 0x91f   :  { %7719 = vmatpush1.bf16.msra.mxu0 %v12604_v43  ;;  %7760 = vmatpush1.bf16.msra.mxu1 %v12606_v54 }
 0x920   :  { %7720 = vmatprep.subr.bf16.mxu0 %v12610_v10  ;;  %7761 = vmatprep.subr.bf16.mxu1 %v12612_v34  ;;  %v6949_v34 = vld [vmem:[#allocation8 + $0x2f8] sm:$0xff]  ;;  %v7878_v10 = vld [vmem:[#allocation8 + $0xe8] sm:$0xff] }
 0x921   :  { %v12648_v44 = vcombine.high %v6945_v55, %v6949_v34  ;;  %v12654_v36 = vcombine.low %v6945_v55, %v6949_v34 }
 0x923   :  { %7721 = vmatpush1.bf16.msra.mxu0 %v12616_v23  ;;  %7762 = vmatpush1.bf16.msra.mxu1 %v12618_v40  ;;  %13793 = vst [vmem:[#allocation51_spill] sm:$0xff] %v12648_v44  ;;  %v6953_v40 = vld [vmem:[#allocation8 + $0x318] sm:$0xff]  ;;  %13795 = vst [vmem:[#allocation15_spill] sm:$0xff] %v12654_v36 }
 0x924   :  { %7722 = vmatprep.subr.bf16.mxu0 %v12622_v51  ;;  %7763 = vmatprep.subr.bf16.mxu1 %v12624_v14  ;;  %v6952_v14 = vld [vmem:[#allocation8 + $0x310] sm:$0xff]  ;;  %v6957_v23 = vld [vmem:[#allocation8 + $0x338] sm:$0xff] }
 0x925   :  { %v6956_v51 = vld [vmem:[#allocation8 + $0x330] sm:$0xff]  ;;  %v12660_v38 = vcombine.high %v6953_v40, %v6957_v23  ;;  %v12666_v34 = vcombine.low %v6953_v40, %v6957_v23 }
 0x926   :  { %v12658_v27 = vcombine.high %v6952_v14, %v6956_v51  ;;  %v12664_v11 = vcombine.low %v6952_v14, %v6956_v51 }
 0x927   :  { %7723 = vmatpush1.bf16.msra.mxu0 %v12628_v17  ;;  %7764 = vmatpush1.bf16.msra.mxu1 %v12630_v15  ;;  %13797 = vst [vmem:[#allocation18_spill] sm:$0xff] %v12660_v38  ;;  %v6961_v15 = vld [vmem:[#allocation8 + $0x358] sm:$0xff]  ;;  %13799 = vst [vmem:[#allocation20_spill] sm:$0xff] %v12666_v34 }
 0x928   :  { %7724 = vmatprep.subr.bf16.mxu0 %v12634_v6  ;;  %7765 = vmatprep.subr.bf16.mxu1 %v12636_v49  ;;  %13796 = vst [vmem:[#allocation17_spill] sm:$0xff] %v12658_v27  ;;  %v6960_v49 = vld [vmem:[#allocation8 + $0x350] sm:$0xff]  ;;  %v6965_v17 = vld [vmem:[#allocation8 + $0x378] sm:$0xff]  ;;  %13798 = vst [vmem:[#allocation19_spill] sm:$0xff] %v12664_v11 }
 0x929   :  { %v6964_v6 = vld [vmem:[#allocation8 + $0x370] sm:$0xff]  ;;  %v12672_v55 = vcombine.high %v6961_v15, %v6965_v17  ;;  %v12678_v23 = vcombine.low %v6961_v15, %v6965_v17 }
 0x92a   :  { %v12670_v28 = vcombine.high %v6960_v49, %v6964_v6  ;;  %v12676_v51 = vcombine.low %v6960_v49, %v6964_v6 }
 0x92b   :  { %7725 = vmatpush1.bf16.msra.mxu0 %v12640_v42  ;;  %7766 = vmatpush1.bf16.msra.mxu1 %v12642_v47  ;;  %13801 = vst [vmem:[#allocation21_spill] sm:$0xff] %v12672_v55  ;;  %v6969_v47 = vld [vmem:[#allocation8 + $0x398] sm:$0xff]  ;;  %13803 = vst [vmem:[#allocation23_spill] sm:$0xff] %v12678_v23 }
 0x92c   :  { %7726 = vmatprep.subr.bf16.mxu0 %v12646_v45  ;;  %7767 = vmatprep.subr.bf16.mxu1 %v12648_v44  ;;  %13800 = vst [vmem:[#allocation11_spill] sm:$0xff] %v12670_v28  ;;  %v6968_v44 = vld [vmem:[#allocation8 + $0x390] sm:$0xff]  ;;  %v6973_v42 = vld [vmem:[#allocation8 + $0x3b8] sm:$0xff]  ;;  %13802 = vst [vmem:[#allocation22_spill] sm:$0xff] %v12676_v51 }
 0x92d   :  { %v6972_v45 = vld [vmem:[#allocation8 + $0x3b0] sm:$0xff]  ;;  %v12684_v14 = vcombine.high %v6969_v47, %v6973_v42  ;;  %v12690_v17 = vcombine.low %v6969_v47, %v6973_v42  ;;  %v7849_v42 = vld [vmem:[#allocation8] sm:$0xff] }
 0x92e   :  { %v12682_v40 = vcombine.high %v6968_v44, %v6972_v45  ;;  %v12688_v6 = vcombine.low %v6968_v44, %v6972_v45  ;;  %v7853_v47 = vld [vmem:[#allocation8 + $0x20] sm:$0xff]  ;;  %v7850_v45 = vld [vmem:[#allocation8 + $0x8] sm:$0xff] }
 0x92f   :  { %7727 = vmatpush1.bf16.msra.mxu0 %v12652_v52  ;;  %7768 = vmatpush1.bf16.msra.mxu1 %v12654_v36  ;;  %13805 = vst [vmem:[#allocation25_spill] sm:$0xff] %v12684_v14  ;;  %v6977_v36 = vld [vmem:[#allocation8 + $0x3d8] sm:$0xff]  ;;  %13807 = vst [vmem:[#allocation27_spill] sm:$0xff] %v12690_v17  ;;  %v9869_v44 = vcombine.low %v7849_v42, %v7853_v47 }
 0x930   :  { %7728 = vmatprep.subr.bf16.mxu0 %v12658_v27  ;;  %7769 = vmatprep.subr.bf16.mxu1 %v12660_v38  ;;  %13804 = vst [vmem:[#allocation24_spill] sm:$0xff] %v12682_v40  ;;  %v6976_v38 = vld [vmem:[#allocation8 + $0x3d0] sm:$0xff]  ;;  %v6981_v52 = vld [vmem:[#allocation8 + $0x3f8] sm:$0xff]  ;;  %13806 = vst [vmem:[#allocation26_spill] sm:$0xff] %v12688_v6 }
 0x931   :  { %v6980_v27 = vld [vmem:[#allocation8 + $0x3f0] sm:$0xff]  ;;  %v12696_v49 = vcombine.high %v6977_v36, %v6981_v52 }
 0x932   :  { %v12694_v15 = vcombine.high %v6976_v38, %v6980_v27 }
 0x933   :  { %7729 = vmatpush1.bf16.msra.mxu0 %v12664_v11  ;;  %7770 = vmatpush1.bf16.msra.mxu1 %v12666_v34  ;;  %13809 = vst [vmem:[#allocation29_spill] sm:$0xff] %v12696_v49  ;;  %v7873_v11 = vld [vmem:[#allocation8 + $0xc0] sm:$0xff] }
 0x934   :  { %7730 = vmatprep.subr.bf16.mxu0 %v12670_v28  ;;  %7771 = vmatprep.subr.bf16.mxu1 %v12672_v55  ;;  %13808 = vst [vmem:[#allocation28_spill] sm:$0xff] %v12694_v15  ;;  %v12700_v55 = vcombine.low %v6976_v38, %v6980_v27  ;;  %v9870_v27 = vcombine.high %v7849_v42, %v7853_v47  ;;  %v7854_v38 = vld [vmem:[#allocation8 + $0x28] sm:$0xff] }
 0x935   :  { %v7870_v28 = vld [vmem:[#allocation8 + $0xa8] sm:$0xff] }
 0x936   :  { %13810 = vst [vmem:[#allocation30_spill] sm:$0xff] %v12700_v55 }
 0x937   :  { %7731 = vmatpush1.bf16.msra.mxu0 %v12676_v51  ;;  %7772 = vmatpush1.bf16.msra.mxu1 %v12678_v23  ;;  %v12702_v51 = vcombine.low %v6977_v36, %v6981_v52  ;;  %v7857_v52 = vld [vmem:[#allocation8 + $0x40] sm:$0xff]  ;;  %v7866_v23 = vld [vmem:[#allocation8 + $0x88] sm:$0xff] }
 0x938   :  { %7732 = vmatprep.subr.bf16.mxu0 %v12682_v40  ;;  %7773 = vmatprep.subr.bf16.mxu1 %v12684_v14  ;;  %v7861_v36 = vld [vmem:[#allocation8 + $0x60] sm:$0xff]  ;;  %v7862_v14 = vld [vmem:[#allocation8 + $0x68] sm:$0xff]  ;;  %v9888_v34 = vcombine.high %v7866_v23, %v7870_v28 }
 0x939   :  { %13811 = vst [vmem:[#allocation31_spill] sm:$0xff] %v12702_v51  ;;  %v7869_v40 = vld [vmem:[#allocation8 + $0xa0] sm:$0xff] }
 0x93b   :  { %7733 = vmatpush1.bf16.msra.mxu0 %v12688_v6  ;;  %7774 = vmatpush1.bf16.msra.mxu1 %v12690_v17  ;;  %v9871_v17 = vcombine.low %v7850_v45, %v7854_v38  ;;  %v9878_v6 = vcombine.high %v7857_v52, %v7861_v36 }
 0x93c   :  { %7734 = vmatprep.subr.bf16.mxu0 %v12694_v15  ;;  %7775 = vmatprep.subr.bf16.mxu1 %v12696_v49  ;;  %v9872_v15 = vcombine.high %v7850_v45, %v7854_v38  ;;  %v7858_v49 = vld [vmem:[#allocation8 + $0x48] sm:$0xff]  ;;  %v7877_v45 = vld [vmem:[#allocation8 + $0xe0] sm:$0xff] }
 0x93d   :  { %v9879_v42 = vcombine.low %v7858_v49, %v7862_v14  ;;  %v7874_v38 = vld [vmem:[#allocation8 + $0xc8] sm:$0xff]  ;;  %v9894_v43 = vcombine.high %v7873_v11, %v7877_v45 }
 0x93f   :  { %7735 = vmatpush1.bf16.msra.mxu0 %v12700_v55  ;;  %7776 = vmatpush1.bf16.msra.mxu1 %v12702_v51  ;;  %v7865_v55 = vld [vmem:[#allocation8 + $0x80] sm:$0xff]  ;;  %v9880_v51 = vcombine.high %v7858_v49, %v7862_v14  ;;  %v9895_v14 = vcombine.low %v7874_v38, %v7878_v10 }
 0x940   :  { %8617 = vmatprep.subr.bf16.mxu0 %v9870_v27  ;;  %8658 = vmatprep.subr.bf16.mxu1 %v9872_v15  ;;  %v9886_v47 = vcombine.high %v7865_v55, %v7869_v40  ;;  %v9885_v54 = vcombine.low %v7865_v55, %v7869_v40  ;;  %v9887_v27 = vcombine.low %v7866_v23, %v7870_v28 }
 0x941   :  { %v9896_v15 = vcombine.high %v7874_v38, %v7878_v10  ;;  %v7894_v10 = vld [vmem:[#allocation8 + $0x168] sm:$0xff] }
 0x942   :  { %7737 = vmatmul.mubr.bf16.vlgmr.msra.gmra.mrb[72].mxu0 %v12519_v16  ;;  %7778 = vmatmul.mubr.bf16.vlgmr.msra.gmra.mrb[72].mxu1 %v12519_v16  ;;  %v9877_v16 = vcombine.low %v7857_v52, %v7861_v36  ;;  %v7886_v52 = vld [vmem:[#allocation8 + $0x128] sm:$0xff] }
 0x943   :  { %8618 = vmatpush1.bf16.msra.mxu0 %v9869_v44  ;;  %8659 = vmatpush1.bf16.msra.mxu1 %v9871_v17  ;;  %v9893_v44 = vcombine.low %v7873_v11, %v7877_v45  ;;  %v7882_v17 = vld [vmem:[#allocation8 + $0x108] sm:$0xff] }
 0x944   :  { %8619 = vmatprep.subr.bf16.mxu0 %v9878_v6  ;;  %8660 = vmatprep.subr.bf16.mxu1 %v9880_v51  ;;  %v7881_v51 = vld [vmem:[#allocation8 + $0x100] sm:$0xff]  ;;  %v9903_v40 = vcombine.low %v7882_v17, %v7886_v52  ;;  %v9904_v36 = vcombine.high %v7882_v17, %v7886_v52  ;;  %v7890_v11 = vld [vmem:[#allocation8 + $0x148] sm:$0xff] }
 0x945   :  { %v7885_v6 = vld [vmem:[#allocation8 + $0x120] sm:$0xff]  ;;  %v9911_v23 = vcombine.low %v7890_v11, %v7894_v10  ;;  %v7898_v45 = vld [vmem:[#allocation8 + $0x188] sm:$0xff] }
 0x946   :  { %v9902_v49 = vcombine.high %v7881_v51, %v7885_v6  ;;  %v9901_v55 = vcombine.low %v7881_v51, %v7885_v6  ;;  %v7905_v51 = vld [vmem:[#allocation8 + $0x1c0] sm:$0xff]  ;;  %v7906_v17 = vld [vmem:[#allocation8 + $0x1c8] sm:$0xff] }
 0x947   :  { %8620 = vmatpush1.bf16.msra.mxu0 %v9877_v16  ;;  %8661 = vmatpush1.bf16.msra.mxu1 %v9879_v42  ;;  %v9912_v16 = vcombine.high %v7890_v11, %v7894_v10  ;;  %v7897_v42 = vld [vmem:[#allocation8 + $0x180] sm:$0xff]  ;;  %v7910_v52 = vld [vmem:[#allocation8 + $0x1e8] sm:$0xff] }
 0x948   :  { %8621 = vmatprep.subr.bf16.mxu0 %v9886_v47  ;;  %8662 = vmatprep.subr.bf16.mxu1 %v9888_v34  ;;  %v7889_v34 = vld [vmem:[#allocation8 + $0x140] sm:$0xff]  ;;  %v7914_v11 = vld [vmem:[#allocation8 + $0x208] sm:$0xff] }
 0x949   :  { %v7901_v47 = vld [vmem:[#allocation8 + $0x1a0] sm:$0xff]  ;;  %v7918_v10 = vld [vmem:[#allocation8 + $0x228] sm:$0xff] }
 0x94a   :  { %v9918_v38 = vcombine.high %v7897_v42, %v7901_v47  ;;  %v7909_v6 = vld [vmem:[#allocation8 + $0x1e0] sm:$0xff] }
 0x94b   :  { %8622 = vmatpush1.bf16.msra.mxu0 %v9885_v54  ;;  %8663 = vmatpush1.bf16.msra.mxu1 %v9887_v27  ;;  %v7893_v54 = vld [vmem:[#allocation8 + $0x160] sm:$0xff]  ;;  %v7902_v27 = vld [vmem:[#allocation8 + $0x1a8] sm:$0xff] }
 0x94c   :  { %8623 = vmatprep.subr.bf16.mxu0 %v9894_v43  ;;  %8664 = vmatprep.subr.bf16.mxu1 %v9896_v15  ;;  %v9910_v43 = vcombine.high %v7889_v34, %v7893_v54  ;;  %v9909_v28 = vcombine.low %v7889_v34, %v7893_v54  ;;  %v9917_v15 = vcombine.low %v7897_v42, %v7901_v47  ;;  %v7913_v34 = vld [vmem:[#allocation8 + $0x200] sm:$0xff] }
 0x94d   :  { %v7917_v54 = vld [vmem:[#allocation8 + $0x220] sm:$0xff] }
 0x94e   :  { %v7921_v42 = vld [vmem:[#allocation8 + $0x240] sm:$0xff] }
 0x94f   :  { %8624 = vmatpush1.bf16.msra.mxu0 %v9893_v44  ;;  %8665 = vmatpush1.bf16.msra.mxu1 %v9895_v14  ;;  %v9919_v44 = vcombine.low %v7898_v45, %v7902_v27  ;;  %v9920_v14 = vcombine.high %v7898_v45, %v7902_v27  ;;  %v7925_v47 = vld [vmem:[#allocation8 + $0x260] sm:$0xff]  ;;  %v7922_v45 = vld [vmem:[#allocation8 + $0x248] sm:$0xff] }
 0x950   :  { %8625 = vmatprep.subr.bf16.mxu0 %v9902_v49  ;;  %8666 = vmatprep.subr.bf16.mxu1 %v9904_v36  ;;  %v9926_v49 = vcombine.high %v7905_v51, %v7909_v6  ;;  %v9928_v36 = vcombine.high %v7906_v17, %v7910_v52  ;;  %v7926_v27 = vld [vmem:[#allocation8 + $0x268] sm:$0xff] }
 0x953   :  { %8626 = vmatpush1.bf16.msra.mxu0 %v9901_v55  ;;  %8667 = vmatpush1.bf16.msra.mxu1 %v9903_v40  ;;  %v9925_v55 = vcombine.low %v7905_v51, %v7909_v6  ;;  %v9927_v40 = vcombine.low %v7906_v17, %v7910_v52  ;;  %v7929_v51 = vld [vmem:[#allocation8 + $0x280] sm:$0xff]  ;;  %v7930_v17 = vld [vmem:[#allocation8 + $0x288] sm:$0xff] }
 0x954   :  { %8627 = vmatprep.subr.bf16.mxu0 %v9910_v43  ;;  %8668 = vmatprep.subr.bf16.mxu1 %v9912_v16  ;;  %v9934_v43 = vcombine.high %v7913_v34, %v7917_v54  ;;  %v9936_v16 = vcombine.high %v7914_v11, %v7918_v10  ;;  %v7933_v6 = vld [vmem:[#allocation8 + $0x2a0] sm:$0xff]  ;;  %v7934_v52 = vld [vmem:[#allocation8 + $0x2a8] sm:$0xff] }
 0x957   :  { %8628 = vmatpush1.bf16.msra.mxu0 %v9909_v28  ;;  %8669 = vmatpush1.bf16.msra.mxu1 %v9911_v23  ;;  %v9933_v28 = vcombine.low %v7913_v34, %v7917_v54  ;;  %v9935_v23 = vcombine.low %v7914_v11, %v7918_v10  ;;  %v7937_v34 = vld [vmem:[#allocation8 + $0x2c0] sm:$0xff]  ;;  %v7938_v11 = vld [vmem:[#allocation8 + $0x2c8] sm:$0xff] }
 0x958   :  { %8629 = vmatprep.subr.bf16.mxu0 %v9918_v38  ;;  %8670 = vmatprep.subr.bf16.mxu1 %v9920_v14  ;;  %v9942_v38 = vcombine.high %v7921_v42, %v7925_v47  ;;  %v9944_v14 = vcombine.high %v7922_v45, %v7926_v27  ;;  %v7941_v54 = vld [vmem:[#allocation8 + $0x2e0] sm:$0xff]  ;;  %v7942_v10 = vld [vmem:[#allocation8 + $0x2e8] sm:$0xff] }
 0x95b   :  { %8630 = vmatpush1.bf16.msra.mxu0 %v9917_v15  ;;  %8671 = vmatpush1.bf16.msra.mxu1 %v9919_v44  ;;  %v9941_v15 = vcombine.low %v7921_v42, %v7925_v47  ;;  %v9943_v44 = vcombine.low %v7922_v45, %v7926_v27  ;;  %v7945_v42 = vld [vmem:[#allocation8 + $0x300] sm:$0xff]  ;;  %v7946_v45 = vld [vmem:[#allocation8 + $0x308] sm:$0xff] }
 0x95c   :  { %8631 = vmatprep.subr.bf16.mxu0 %v9926_v49  ;;  %8672 = vmatprep.subr.bf16.mxu1 %v9928_v36  ;;  %v9950_v49 = vcombine.high %v7929_v51, %v7933_v6  ;;  %v9952_v36 = vcombine.high %v7930_v17, %v7934_v52  ;;  %v7949_v47 = vld [vmem:[#allocation8 + $0x320] sm:$0xff]  ;;  %v7950_v27 = vld [vmem:[#allocation8 + $0x328] sm:$0xff] }
 0x95f   :  { %8632 = vmatpush1.bf16.msra.mxu0 %v9925_v55  ;;  %8673 = vmatpush1.bf16.msra.mxu1 %v9927_v40  ;;  %v9949_v55 = vcombine.low %v7929_v51, %v7933_v6  ;;  %v9951_v40 = vcombine.low %v7930_v17, %v7934_v52  ;;  %v7953_v51 = vld [vmem:[#allocation8 + $0x340] sm:$0xff]  ;;  %v7954_v17 = vld [vmem:[#allocation8 + $0x348] sm:$0xff] }
 0x960   :  { %8633 = vmatprep.subr.bf16.mxu0 %v9934_v43  ;;  %8674 = vmatprep.subr.bf16.mxu1 %v9936_v16  ;;  %v9958_v43 = vcombine.high %v7937_v34, %v7941_v54  ;;  %v9960_v16 = vcombine.high %v7938_v11, %v7942_v10  ;;  %v7957_v6 = vld [vmem:[#allocation8 + $0x360] sm:$0xff] }
 0x961   :  { %v9974_v52 = vcombine.high %v7953_v51, %v7957_v6 }
 0x963   :  { %8634 = vmatpush1.bf16.msra.mxu0 %v9933_v28  ;;  %8675 = vmatpush1.bf16.msra.mxu1 %v9935_v23  ;;  %v9957_v28 = vcombine.low %v7937_v34, %v7941_v54  ;;  %v9959_v23 = vcombine.low %v7938_v11, %v7942_v10  ;;  %v7966_v10 = vld [vmem:[#allocation8 + $0x3a8] sm:$0xff] }
 0x964   :  { %8635 = vmatprep.subr.bf16.mxu0 %v9942_v38  ;;  %8676 = vmatprep.subr.bf16.mxu1 %v9944_v14  ;;  %v9966_v38 = vcombine.high %v7945_v42, %v7949_v47  ;;  %v9968_v14 = vcombine.high %v7946_v45, %v7950_v27 }
 0x967   :  { %8636 = vmatpush1.bf16.msra.mxu0 %v9941_v15  ;;  %8677 = vmatpush1.bf16.msra.mxu1 %v9943_v44  ;;  %v9965_v15 = vcombine.low %v7945_v42, %v7949_v47  ;;  %v9967_v44 = vcombine.low %v7946_v45, %v7950_v27  ;;  %v7970_v42 = vld [vmem:[#allocation8 + $0x3c8] sm:$0xff] }
 0x968   :  { %8637 = vmatprep.subr.bf16.mxu0 %v9950_v49  ;;  %8678 = vmatprep.subr.bf16.mxu1 %v9952_v36  ;;  %v9973_v49 = vcombine.low %v7953_v51, %v7957_v6  ;;  %v7965_v36 = vld [vmem:[#allocation8 + $0x3a0] sm:$0xff]  ;;  %v7974_v47 = vld [vmem:[#allocation8 + $0x3e8] sm:$0xff] }
 0x969   :  { %v13812_v51 = vld [vmem:[#allocation64_spill] sm:$0xff] }
 0x96a   :  { %v712_v6 = vadd.f32 %v13812_v51, %v13771_v12 }
 0x96b   :  { %8638 = vmatpush1.bf16.msra.mxu0 %v9949_v55  ;;  %8679 = vmatpush1.bf16.msra.mxu1 %v9951_v40  ;;  %v7958_v55 = vld [vmem:[#allocation8 + $0x368] sm:$0xff]  ;;  %v7961_v40 = vld [vmem:[#allocation8 + $0x380] sm:$0xff] }
 0x96c   :  { %8639 = vmatprep.subr.bf16.mxu0 %v9958_v43  ;;  %8680 = vmatprep.subr.bf16.mxu1 %v9960_v16  ;;  %v9975_v34 = vcombine.low %v7954_v17, %v7958_v55  ;;  %v9976_v54 = vcombine.high %v7954_v17, %v7958_v55  ;;  %v9982_v11 = vcombine.high %v7961_v40, %v7965_v36  ;;  %v7962_v43 = vld [vmem:[#allocation8 + $0x388] sm:$0xff]  ;;  %v7973_v16 = vld [vmem:[#allocation8 + $0x3e0] sm:$0xff]  ;;  %v13813_v17 = vld [vmem:[#allocation65_spill] sm:$0xff] }
 0x96d   :  { %v9981_v45 = vcombine.low %v7961_v40, %v7965_v36  ;;  %v13815_v40 = vld [vmem:[#allocation67_spill] sm:$0xff] }
 0x96e   :  { %v787_v36 = vadd.f32 %v13815_v40, %v10721_v37 }
 0x96f   :  { %8640 = vmatpush1.bf16.msra.mxu0 %v9957_v28  ;;  %8681 = vmatpush1.bf16.msra.mxu1 %v9959_v23  ;;  %v9984_v28 = vcombine.high %v7962_v43, %v7966_v10  ;;  %v7969_v23 = vld [vmem:[#allocation8 + $0x3c0] sm:$0xff] }
 0x970   :  { %8641 = vmatprep.subr.bf16.mxu0 %v9966_v38  ;;  %8682 = vmatprep.subr.bf16.mxu1 %v9968_v14  ;;  %v9983_v38 = vcombine.low %v7962_v43, %v7966_v10  ;;  %v9990_v27 = vcombine.high %v7969_v23, %v7973_v16  ;;  %v9991_v14 = vcombine.low %v7970_v42, %v7974_v47 }
 0x973   :  { %8642 = vmatpush1.bf16.msra.mxu0 %v9965_v15  ;;  %8683 = vmatpush1.bf16.msra.mxu1 %v9967_v44  ;;  %v9992_v15 = vcombine.high %v7970_v42, %v7974_v47  ;;  %v9989_v44 = vcombine.low %v7969_v23, %v7973_v16 }
 0x974   :  { %8643 = vmatprep.subr.bf16.mxu0 %v9974_v52  ;;  %8684 = vmatprep.subr.bf16.mxu1 %v9976_v54  ;;  %v13814_v52 = vld [vmem:[#allocation66_spill] sm:$0xff] }
 0x975   :  { %v714_v55 = vadd.f32 %v13814_v52, %v13775_v48 }
 0x977   :  { %8644 = vmatpush1.bf16.msra.mxu0 %v9973_v49  ;;  %8685 = vmatpush1.bf16.msra.mxu1 %v9975_v34  ;;  %v785_v49 = vadd.f32 %v13813_v17, %v13773_v19 }
 0x978   :  { %8645 = vmatprep.subr.bf16.mxu0 %v9982_v11  ;;  %8686 = vmatprep.subr.bf16.mxu1 %v9984_v28 }
 0x97b   :  { %8646 = vmatpush1.bf16.msra.mxu0 %v9981_v45  ;;  %8687 = vmatpush1.bf16.msra.mxu1 %v9983_v38 }
 0x97c   :  { %8647 = vmatprep.subr.bf16.mxu0 %v9990_v27  ;;  %8688 = vmatprep.subr.bf16.mxu1 %v9992_v15 }
 0x97f   :  { %8648 = vmatpush1.bf16.msra.mxu0 %v9989_v44  ;;  %8689 = vmatpush1.bf16.msra.mxu1 %v9991_v14 }
 0x980   :  { %8699 = vmatprep.subr.bf16.mxu0 %v12489_v8  ;;  %8740 = vmatprep.subr.bf16.mxu1 %v12495_v25 }
 0x9d5   :  { %v7656_v34 = vpop.f32.mrb[68].mxu0  ;;  %v7697_v54 = vpop.f32.mrb[68].mxu1 }
 0x9d6   :  { %v7820_v11 = vadd.f32 %v7656_v34, %v712_v6  ;;  %v7822_v43 = vadd.f32 %v7697_v54, %v785_v49  ;;  %v7658_v10 = vpop.f32.mrb[69].mxu0  ;;  %v7699_v8 = vpop.f32.mrb[69].mxu1 }
 0x9d7   :  { %v7821_v28 = vadd.f32 %v7658_v10, %v714_v55  ;;  %v7823_v25 = vadd.f32 %v7699_v8, %v787_v36  ;;  %v7660_v23 = vpop.f32.mrb[70].mxu0  ;;  %v7701_v16 = vpop.f32.mrb[70].mxu1 }
 0x9d8   :  { %v9866_v12 = vmul.f32 -1.442695, %v7820_v11  ;;  %v7661_v42 = vpop.f32.mrb[71].mxu0  ;;  %v7702_v47 = vpop.f32.mrb[71].mxu1 }
 0x9d9   :  { %v9867_v19 = vmul.f32 -1.442695, %v7821_v28  ;;  %v9868_v48 = vmul.f32 -1.442695, %v7823_v25 }
 0x9da   :  { %10230 = vpow2.f32 %v9866_v12 }
 0x9db   :  { %10232 = vpow2.f32 %v9867_v19 }
 0x9dc   :  { %10234 = vpow2.f32 %v9868_v48 }
 0x9dd   :  { %10236 = vtanh.f32 %v7822_v43 }
 0x9e4   :  { %v10231_v45 = vpop.eup %10230 }
 0x9e5   :  { %v10233_v38 = vpop.eup %10232  ;;  %v7827_v37 = vadd.f32 1.0, %v10231_v45 }
 0x9e6   :  { %v7833_v27 = vadd.f32 1.0, %v10233_v38  ;;  %v10235_v15 = vpop.eup %10234 }
 0x9e7   :  { %10238 = vrcp.f32 %v7827_v37  ;;  %v10237_v44 = vpop.eup %10236  ;;  %v7840_v17 = vadd.f32 1.0, %v10235_v15 }
 0x9e8   :  { %10240 = vrcp.f32 %v7833_v27 }
 0x9e9   :  { %10242 = vrcp.f32 %v7840_v17 }
 0x9f1   :  { %v10239_v14 = vpop.eup %10238 }
 0x9f2   :  { %v10241_v51 = vpop.eup %10240  ;;  %v7844_v6 = vmul.f32 %v10239_v14, %v10237_v44 }
 0x9f3   :  { %v7843_v49 = vmul.f32 %v10241_v51, %v12508_v59  ;;  %v10243_v55 = vpop.eup %10242 }
 0x9f5   :  { %v7845_v52 = vadd.f32 %v7844_v6, %v7843_v49 }
 0x9f7   :  { %10244 = vtanh.f32 %v7845_v52  ;;  %8825 = vst [vmem:[%s12829_s9] sm:$0xff] %v7845_v52 }
 0xa01   :  { %v10245_v40 = vpop.eup %10244 }
 0xa02   :  { %v7847_v36 = vmul.f32 %v10245_v40, %v10243_v55 }
 0xa04   :  { %8822 = vst [vmem:[%s12828_s8] sm:$0xff] %v7847_v36 }
 0xa15   :  { %v7738_v34 = vpop.f32.mrb[72].mxu0  ;;  %v7779_v54 = vpop.f32.mrb[72].mxu1 }
 0xa16   :  { %v7786_v11 = vadd.f32 %v7738_v34, %v11189_v9  ;;  %v7740_v43 = vpop.f32.mrb[73].mxu0  ;;  %v7781_v59 = vpop.f32.mrb[73].mxu1  ;;  %v7788_v19 = vadd.f32 %v7779_v54, %v11204_v39  ;;  %v12735_v54 = vpack.c.bf16 %v7847_v36, %v7847_v36  ;;  %v13845_v36 = vld [vmem:[#allocation27_spill] sm:$0xff] }
 0xa17   :  { %v7787_v10 = vadd.f32 %v7740_v43, %v11193_v30  ;;  %v7742_v8 = vpop.f32.mrb[74].mxu0  ;;  %v7783_v28 = vpop.f32.mrb[74].mxu1  ;;  %v7789_v42 = vadd.f32 %v7781_v59, %v11199_v5  ;;  %v13847_v43 = vld [vmem:[#allocation29_spill] sm:$0xff]  ;;  %v13848_v59 = vld [vmem:[#allocation30_spill] sm:$0xff] }
 0xa18   :  { %v9863_v25 = vmul.f32 -1.442695, %v7786_v11  ;;  %v7743_v23 = vpop.f32.mrb[75].mxu0  ;;  %v7784_v16 = vpop.f32.mrb[75].mxu1  ;;  %v13846_v11 = vld [vmem:[#allocation28_spill] sm:$0xff] }
 0xa19   :  { %v9864_v12 = vmul.f32 -1.442695, %v7787_v10  ;;  %v9865_v47 = vmul.f32 -1.442695, %v7789_v42  ;;  %v13849_v10 = vld [vmem:[#allocation31_spill] sm:$0xff] }
 0xa1a   :  { %10246 = vpow2.f32 %v9863_v25 }
 0xa1b   :  { %10248 = vpow2.f32 %v9864_v12 }
 0xa1c   :  { %10250 = vpow2.f32 %v9865_v47 }
 0xa1d   :  { %10252 = vtanh.f32 %v7788_v19 }
 0xa24   :  { %v10247_v48 = vpop.eup %10246 }
 0xa25   :  { %v10249_v45 = vpop.eup %10248  ;;  %v7793_v38 = vadd.f32 1.0, %v10247_v48 }
 0xa26   :  { %v7799_v37 = vadd.f32 1.0, %v10249_v45  ;;  %v10251_v27 = vpop.eup %10250 }
 0xa27   :  { %10254 = vrcp.f32 %v7793_v38  ;;  %v10253_v15 = vpop.eup %10252  ;;  %v7806_v6 = vadd.f32 1.0, %v10251_v27 }
 0xa28   :  { %10256 = vrcp.f32 %v7799_v37 }
 0xa29   :  { %10258 = vrcp.f32 %v7806_v6 }
 0xa31   :  { %v10255_v44 = vpop.eup %10254 }
 0xa32   :  { %v10257_v14 = vpop.eup %10256  ;;  %v7810_v51 = vmul.f32 %v10255_v44, %v10253_v15 }
 0xa33   :  { %v7809_v17 = vmul.f32 %v10257_v14, %v12516_v0  ;;  %v10259_v52 = vpop.eup %10258  ;;  %v13818_v0 = vld [vmem:[#allocation46_spill] sm:$0xff] }
 0xa35   :  { %v12732_v49 = vadd.f32 %v7810_v51, %v7809_v17 }
 0xa37   :  { %10260 = vtanh.f32 %v12732_v49 }
 0xa41   :  { %v10261_v55 = vpop.eup %10260 }
 0xa42   :  { %v7813_v40 = vmul.f32 %v10261_v55, %v10259_v52 }
 0xa44   :  { %v7814_v34 = vpack.c.bf16 %v7813_v40, %v7813_v40 }
 0xa46   :  { %7815 = vst [vmem:[%s12827_s7 + $0x18] sm:$0xf] %v7814_v34  ;;  %8649 = vmatprep.mubr.bf16.mxu0 %v7814_v34  ;;  %8690 = vmatprep.mubr.bf16.mxu1 %v7814_v34 }
 0xa47   :  { %8650 = vmatmul.mubr.bf16.vlgmr.msra.gmra.mrb[76].mxu0 %v12735_v54  ;;  %8691 = vmatmul.mubr.bf16.vlgmr.msra.gmra.mrb[76].mxu1 %v12735_v54 }
 0xa48   :  { %8700 = vmatpush1.bf16.msra.mxu0 %v12491_v26  ;;  %8741 = vmatpush1.bf16.msra.mxu1 %v12493_v35  ;;  %v13816_v26 = vld [vmem:[#allocation42_spill] sm:$0xff]  ;;  %v13817_v35 = vld [vmem:[#allocation43_spill] sm:$0xff] }
 0xa49   :  { %8731 = vmatprep.mubr.bf16.mxu0 %v7814_v34  ;;  %8772 = vmatprep.mubr.bf16.mxu1 %v7814_v34 }
 0xa4a   :  { %8701 = vmatprep.subr.bf16.mxu0 %v12524_v33  ;;  %8742 = vmatprep.subr.bf16.mxu1 %v12526_v41  ;;  %v13819_v33 = vld [vmem:[#allocation47_spill] sm:$0xff]  ;;  %v13820_v41 = vld [vmem:[#allocation52_spill] sm:$0xff] }
 0xa4c   :  { %8702 = vmatpush1.bf16.msra.mxu0 %v12532_v31  ;;  %8743 = vmatpush1.bf16.msra.mxu1 %v12534_v1  ;;  %v13821_v31 = vld [vmem:[#allocation53_spill] sm:$0xff]  ;;  %v13822_v1 = vld [vmem:[#allocation54_spill] sm:$0xff] }
 0xa4d   :  { %8703 = vmatprep.subr.bf16.mxu0 %v12536_v22  ;;  %8744 = vmatprep.subr.bf16.mxu1 %v12538_v62  ;;  %v13823_v22 = vld [vmem:[#allocation55_spill] sm:$0xff]  ;;  %v13824_v62 = vld [vmem:[#allocation56_spill] sm:$0xff] }
 0xa50   :  { %8704 = vmatpush1.bf16.msra.mxu0 %v12544_v4  ;;  %8745 = vmatpush1.bf16.msra.mxu1 %v12546_v20  ;;  %v13825_v4 = vld [vmem:[#allocation57_spill] sm:$0xff]  ;;  %v13826_v20 = vld [vmem:[#allocation58_spill] sm:$0xff] }
 0xa51   :  { %8705 = vmatprep.subr.bf16.mxu0 %v12550_v60  ;;  %8746 = vmatprep.subr.bf16.mxu1 %v12552_v61  ;;  %v13827_v60 = vld [vmem:[#allocation59_spill] sm:$0xff]  ;;  %v13828_v61 = vld [vmem:[#allocation48_spill] sm:$0xff] }
 0xa54   :  { %8706 = vmatpush1.bf16.msra.mxu0 %v12556_v58  ;;  %8747 = vmatpush1.bf16.msra.mxu1 %v12558_v3  ;;  %v13829_v58 = vld [vmem:[#allocation49_spill] sm:$0xff]  ;;  %v13830_v3 = vld [vmem:[#allocation50_spill] sm:$0xff] }
 0xa55   :  { %8707 = vmatprep.subr.bf16.mxu0 %v12562_v46  ;;  %8748 = vmatprep.subr.bf16.mxu1 %v12564_v53  ;;  %v13831_v46 = vld [vmem:[#allocation51_spill] sm:$0xff]  ;;  %v13832_v53 = vld [vmem:[#allocation16_spill] sm:$0xff] }
 0xa58   :  { %8708 = vmatpush1.bf16.msra.mxu0 %v12568_v32  ;;  %8749 = vmatpush1.bf16.msra.mxu1 %v12570_v7  ;;  %v13833_v32 = vld [vmem:[#allocation15_spill] sm:$0xff]  ;;  %v13834_v7 = vld [vmem:[#allocation17_spill] sm:$0xff] }
 0xa59   :  { %8709 = vmatprep.subr.bf16.mxu0 %v12574_v2  ;;  %8750 = vmatprep.subr.bf16.mxu1 %v12576_v57  ;;  %v13835_v2 = vld [vmem:[#allocation18_spill] sm:$0xff]  ;;  %v13836_v57 = vld [vmem:[#allocation19_spill] sm:$0xff] }
 0xa5c   :  { %8710 = vmatpush1.bf16.msra.mxu0 %v12580_v29  ;;  %8751 = vmatpush1.bf16.msra.mxu1 %v12582_v18  ;;  %v13837_v29 = vld [vmem:[#allocation20_spill] sm:$0xff]  ;;  %v13838_v18 = vld [vmem:[#allocation11_spill] sm:$0xff] }
 0xa5d   :  { %8711 = vmatprep.subr.bf16.mxu0 %v12586_v50  ;;  %8752 = vmatprep.subr.bf16.mxu1 %v12588_v63  ;;  %v13839_v50 = vld [vmem:[#allocation21_spill] sm:$0xff]  ;;  %v13840_v63 = vld [vmem:[#allocation22_spill] sm:$0xff] }
 0xa60   :  { %8712 = vmatpush1.bf16.msra.mxu0 %v12592_v13  ;;  %8753 = vmatpush1.bf16.msra.mxu1 %v12594_v24  ;;  %v13841_v13 = vld [vmem:[#allocation23_spill] sm:$0xff]  ;;  %v13842_v24 = vld [vmem:[#allocation24_spill] sm:$0xff] }
 0xa61   :  { %8713 = vmatprep.subr.bf16.mxu0 %v12598_v21  ;;  %8754 = vmatprep.subr.bf16.mxu1 %v12600_v56  ;;  %v13843_v21 = vld [vmem:[#allocation25_spill] sm:$0xff]  ;;  %v13844_v56 = vld [vmem:[#allocation26_spill] sm:$0xff] }
 0xa64   :  { %8714 = vmatpush1.bf16.msra.mxu0 %v13816_v26  ;;  %8755 = vmatpush1.bf16.msra.mxu1 %v13817_v35 }
 0xa65   :  { %8715 = vmatprep.subr.bf16.mxu0 %v13818_v0  ;;  %8756 = vmatprep.subr.bf16.mxu1 %v13819_v33 }
 0xa68   :  { %8716 = vmatpush1.bf16.msra.mxu0 %v13820_v41  ;;  %8757 = vmatpush1.bf16.msra.mxu1 %v13821_v31 }
 0xa69   :  { %8717 = vmatprep.subr.bf16.mxu0 %v13822_v1  ;;  %8758 = vmatprep.subr.bf16.mxu1 %v13823_v22 }
 0xa6c   :  { %8718 = vmatpush1.bf16.msra.mxu0 %v13824_v62  ;;  %8759 = vmatpush1.bf16.msra.mxu1 %v13825_v4 }
 0xa6d   :  { %8719 = vmatprep.subr.bf16.mxu0 %v13826_v20  ;;  %8760 = vmatprep.subr.bf16.mxu1 %v13827_v60 }
 0xa70   :  { %8720 = vmatpush1.bf16.msra.mxu0 %v13828_v61  ;;  %8761 = vmatpush1.bf16.msra.mxu1 %v13829_v58 }
 0xa71   :  { %8721 = vmatprep.subr.bf16.mxu0 %v13830_v3  ;;  %8762 = vmatprep.subr.bf16.mxu1 %v13831_v46 }
 0xa74   :  { %8722 = vmatpush1.bf16.msra.mxu0 %v13832_v53  ;;  %8763 = vmatpush1.bf16.msra.mxu1 %v13833_v32 }
 0xa75   :  { %8723 = vmatprep.subr.bf16.mxu0 %v13834_v7  ;;  %8764 = vmatprep.subr.bf16.mxu1 %v13835_v2 }
 0xa78   :  { %8724 = vmatpush1.bf16.msra.mxu0 %v13836_v57  ;;  %8765 = vmatpush1.bf16.msra.mxu1 %v13837_v29 }
 0xa79   :  { %8725 = vmatprep.subr.bf16.mxu0 %v13838_v18  ;;  %8766 = vmatprep.subr.bf16.mxu1 %v13839_v50 }
 0xa7c   :  { %8726 = vmatpush1.bf16.msra.mxu0 %v13840_v63  ;;  %8767 = vmatpush1.bf16.msra.mxu1 %v13841_v13 }
 0xa7d   :  { %8727 = vmatprep.subr.bf16.mxu0 %v13842_v24  ;;  %8768 = vmatprep.subr.bf16.mxu1 %v13843_v21 }
 0xa80   :  { %8728 = vmatpush1.bf16.msra.mxu0 %v13844_v56  ;;  %8769 = vmatpush1.bf16.msra.mxu1 %v13845_v36 }
 0xa81   :  { %8729 = vmatprep.subr.bf16.mxu0 %v13846_v11  ;;  %8770 = vmatprep.subr.bf16.mxu1 %v13847_v43 }
 0xa84   :  { %8730 = vmatpush1.bf16.msra.mxu0 %v13848_v59  ;;  %8771 = vmatpush1.bf16.msra.mxu1 %v13849_v10 }
 0xa87   :  { %8732 = vmatmul.mubr.bf16.vlgmr.msra.gmra.mrb[80].mxu0 %v12735_v54  ;;  %8773 = vmatmul.mubr.bf16.vlgmr.msra.gmra.mrb[80].mxu1 %v12735_v54 }
 0xb1a   :  { %v8651_v8 = vpop.f32.mrb[76].mxu0  ;;  %v8692_v28 = vpop.f32.mrb[76].mxu1 }
 0xb1b   :  { %v8653_v25 = vpop.f32.mrb[77].mxu0  ;;  %v8694_v23 = vpop.f32.mrb[77].mxu1 }
 0xb1c   :  { %v8655_v16 = vpop.f32.mrb[78].mxu0  ;;  %v8696_v12 = vpop.f32.mrb[78].mxu1 }
 0xb1d   :  { %v8656_v42 = vpop.f32.mrb[79].mxu0  ;;  %v8697_v47 = vpop.f32.mrb[79].mxu1 }
 0xb5a   :  { %v8733_v19 = vpop.f32.mrb[80].mxu0  ;;  %v8774_v48 = vpop.f32.mrb[80].mxu1 }
 0xb5b   :  { %v8781_v45 = vadd.f32 %v8733_v19, %v11189_v9  ;;  %v8735_v38 = vpop.f32.mrb[81].mxu0  ;;  %v8776_v37 = vpop.f32.mrb[81].mxu1  ;;  %v8783_v40 = vadd.f32 %v8774_v48, %v11204_v39 }
 0xb5c   :  { %v8782_v27 = vadd.f32 %v8735_v38, %v11193_v30  ;;  %v8737_v15 = vpop.f32.mrb[82].mxu0  ;;  %v8778_v44 = vpop.f32.mrb[82].mxu1  ;;  %v8784_v52 = vadd.f32 %v8776_v37, %v11199_v5 }
 0xb5d   :  { %v9997_v14 = vmul.f32 -1.442695, %v8781_v45  ;;  %v8738_v51 = vpop.f32.mrb[83].mxu0  ;;  %v8779_v6 = vpop.f32.mrb[83].mxu1 }
 0xb5e   :  { %v9998_v17 = vmul.f32 -1.442695, %v8782_v27  ;;  %v9999_v55 = vmul.f32 -1.442695, %v8784_v52 }
 0xb5f   :  { %10262 = vpow2.f32 %v9997_v14 }
 0xb60   :  { %10264 = vpow2.f32 %v9998_v17 }
 0xb61   :  { %10266 = vpow2.f32 %v9999_v55 }
 0xb62   :  { %10268 = vtanh.f32 %v8783_v40 }
 0xb69   :  { %v10263_v34 = vpop.eup %10262 }
 0xb6a   :  { %v10265_v54 = vpop.eup %10264  ;;  %v8788_v9 = vadd.f32 1.0, %v10263_v34 }
 0xb6b   :  { %v8794_v26 = vadd.f32 1.0, %v10265_v54  ;;  %v10267_v30 = vpop.eup %10266 }
 0xb6c   :  { %10270 = vrcp.f32 %v8788_v9  ;;  %v10269_v35 = vpop.eup %10268  ;;  %v8801_v31 = vadd.f32 1.0, %v10267_v30 }
 0xb6d   :  { %10272 = vrcp.f32 %v8794_v26 }
 0xb6e   :  { %10274 = vrcp.f32 %v8801_v31 }
 0xb76   :  { %v10271_v0 = vpop.eup %10270 }
 0xb77   :  { %v10273_v33 = vpop.eup %10272  ;;  %v8805_v41 = vmul.f32 %v10271_v0, %v10269_v35 }
 0xb78   :  { %v8804_v1 = vmul.f32 %v10273_v33, %v12732_v49  ;;  %v10275_v39 = vpop.eup %10274 }
 0xb7a   :  { %v8806_v5 = vadd.f32 %v8805_v41, %v8804_v1 }
 0xb7c   :  { %10276 = vtanh.f32 %v8806_v5  ;;  %10001 = vst [vmem:[%s12829_s9 + $0x8] sm:$0xff] %v8806_v5 }
 0xb86   :  { %v10277_v22 = vpop.eup %10276 }
 0xb87   :  { %v8808_v62 = vmul.f32 %v10277_v22, %v10275_v39 }
 0xb89   :  { %v8809_v4 = vpack.c.bf16 %v8808_v62, %v8808_v62  ;;  %10000 = vst [vmem:[%s12828_s8 + $0x8] sm:$0xff] %v8808_v62 }
 0xb8b   :  { %8810 = vst [vmem:[%s12827_s7 + $0x1c] sm:$0xf] %v8809_v4 }
 0xb8c   :  { %8840 = vsyncpa [#allocation9], 1 }

</bundles_post_ra>
